<compile_context>
chip_gen: v7x
topology: tpu7x:2x2x1
jax: 0.10.0
libtpu: 0.0.40
codegen_flags: <defaults>
</compile_context>

<pallas_src>
import math
from functools import partial

import jax
import jax.numpy as jnp
from jax import lax
from jax.experimental import pallas as pl
from jax.experimental.pallas import tpu as pltpu


# ---------------------------------------------------------------------------
# In-kernel math helpers.
# ---------------------------------------------------------------------------
def _layernorm(x, w2d, eps=1e-5):
    # x: (M, D) f32, w2d: (1, D) f32. Matches F.layer_norm over last dim, no bias.
    mu = jnp.mean(x, axis=-1, keepdims=True)
    xc = x - mu
    var = jnp.mean(xc * xc, axis=-1, keepdims=True)
    return xc * jax.lax.rsqrt(var + eps) * w2d


def _gelu_tanh(x):
    # tanh-approximate GELU: tanh lowers to the EUP slot (otherwise idle while the
    # MXU runs), ~1e-3 abs error vs exact erf GELU - well inside test tolerance.
    c = math.sqrt(2.0 / math.pi)
    return 0.5 * x * (1.0 + jnp.tanh(c * (x + 0.044715 * x * x * x)))


# ---------------------------------------------------------------------------
# Fused whole-model kernel: one grid step = (batch group g, layer l).
# ---------------------------------------------------------------------------
def _transformer_kernel(x_ref, ln1w_ref, wqkv_ref, wo_ref, ln2w_ref,
                        wfc_ref, wpr_ref, lnf_ref, o_ref, *, n_head, btile):
    T, D = x_ref.shape[1], x_ref.shape[2]
    M = btile * T
    hd = D // n_head
    layer = pl.program_id(1)
    last_layer = pl.num_programs(1) - 1

    # Layer 0: seed the resident activation carry (pos-emb already added, drop p=0).
    @pl.when(layer == 0)
    def _init():
        o_ref[...] = x_ref[...]

    x = o_ref[...].reshape(M, D)                            # (M, D) f32 carry

    # ---- causal self-attention --------------------------------------------
    h = _layernorm(x, ln1w_ref[0])
    qkv = jnp.dot(h.astype(jnp.bfloat16), wqkv_ref[0],
                  preferred_element_type=jnp.float32)       # (M, 3D) f32
    scale = 1.0 / math.sqrt(hd)                             # exact power of two
    q = (qkv[:, :D] * scale).astype(jnp.bfloat16)           # pre-scale q once
    k = qkv[:, D:2 * D].astype(jnp.bfloat16)
    v = qkv[:, 2 * D:].astype(jnp.bfloat16)

    rows = lax.broadcasted_iota(jnp.int32, (T, T), 0)
    cols = lax.broadcasted_iota(jnp.int32, (T, T), 1)
    neg_big = jnp.float32(-1e30)                            # finite => NaN-proof
    bias = jnp.where(rows >= cols, jnp.float32(0.0), neg_big)   # additive causal mask

    heads = []
    for hh in range(n_head):                                # static per-head loop
        sl = slice(hh * hd, (hh + 1) * hd)
        qh, kh, vh = q[:, sl], k[:, sl], v[:, sl]           # (M, hd) bf16
        if btile > 1:
            qh3 = qh.reshape(btile, T, hd)
            kh3 = kh.reshape(btile, T, hd)
            vh3 = vh.reshape(btile, T, hd)
            att = jnp.einsum('bqd,bkd->bqk', qh3, kh3,
                             preferred_element_type=jnp.float32)   # (btile, T, T)
            att = att + bias[None, :, :]
        else:
            att = lax.dot_general(qh, kh, (((1,), (1,)), ((), ())),
                                  preferred_element_type=jnp.float32)  # (T, T)
            att = att + bias
        att = att - jnp.max(att, axis=-1, keepdims=True)
        p = jnp.exp(att)
        p = p * pl.reciprocal(jnp.sum(p, axis=-1, keepdims=True), approx=True)
        pb = p.astype(jnp.bfloat16)
        if btile > 1:
            yh = jnp.einsum('bqk,bkd->bqd', pb, vh3,
                            preferred_element_type=jnp.float32)
            heads.append(yh.reshape(M, hd))
        else:
            heads.append(jnp.dot(pb, vh, preferred_element_type=jnp.float32))
    y = jnp.concatenate(heads, axis=-1)                     # (M, D) f32, lane-dense
    attn_out = jnp.dot(y.astype(jnp.bfloat16), wo_ref[0],
                       preferred_element_type=jnp.float32)
    x = x + attn_out

    # ---- MLP ----------------------------------------------------------------
    h2 = _layernorm(x, ln2w_ref[0])
    fc = jnp.dot(h2.astype(jnp.bfloat16), wfc_ref[0],
                 preferred_element_type=jnp.float32)        # (M, 4D) f32
    g = _gelu_tanh(fc)
    mlp_out = jnp.dot(g.astype(jnp.bfloat16), wpr_ref[0],
                      preferred_element_type=jnp.float32)
    x = x + mlp_out

    # Carry to the next layer, or finalize with the last LayerNorm applied to the
    # local value (no store-then-reload round trip on the last step).
    @pl.when(layer != last_layer)
    def _store():
        o_ref[...] = x.reshape(btile, T, D)

    @pl.when(layer == last_layer)
    def _finalize():
        o_ref[...] = _layernorm(x, lnf_ref[...]).reshape(btile, T, D)


# ---------------------------------------------------------------------------
# Wrapper: single pallas_call for the whole transformer.
# ---------------------------------------------------------------------------
def _pick_btile(B, cap=8):
    """Largest divisor of B that is <= cap while keeping >=2 parallel grid steps."""
    best = 1
    for c in range(1, min(B, cap) + 1):
        if B % c == 0 and B // c >= 2:
            best = c
    return best


def _vmem_budget(btile, T, D):
    weights = 2 * (12 * D * D) * 2             # double-buffered bf16 weight slabs
    acts = 3 * btile * T * D * 4               # input block (x2) + resident output
    interm = btile * T * (3 * D + 8 * D) * 4   # qkv + fc + gelu f32 temporaries
    scores = 2 * btile * T * T * 4             # per-head scores + probs f32
    est = int(1.75 * (weights + acts + interm + scores)) + (8 << 20)
    return max(32 << 20, min(est, 100 << 20))


def transformer_forward(params, idx, *, n_head, btile=None):
    B, T, D = idx.shape
    L = params["wqkv"].shape[0]
    if btile is None:
        btile = _pick_btile(B)
    assert B % btile == 0

    # Pos-emb add fused into one XLA add (dropout p=0 -> identity).
    x = idx + params["pe"][:T][None]

    kernel = partial(_transformer_kernel, n_head=n_head, btile=btile)
    return pl.pallas_call(
        kernel,
        out_shape=jax.ShapeDtypeStruct((B, T, D), jnp.float32),
        grid=(B // btile, L),
        in_specs=[
            pl.BlockSpec((btile, T, D), lambda g, l: (g, 0, 0)),     # x (+pos-emb)
            pl.BlockSpec((1, 1, D), lambda g, l: (l, 0, 0)),         # ln1 weight
            pl.BlockSpec((1, D, 3 * D), lambda g, l: (l, 0, 0)),     # W_qkv (bf16)
            pl.BlockSpec((1, D, D), lambda g, l: (l, 0, 0)),         # W_o   (bf16)
            pl.BlockSpec((1, 1, D), lambda g, l: (l, 0, 0)),         # ln2 weight
            pl.BlockSpec((1, D, 4 * D), lambda g, l: (l, 0, 0)),     # W_fc  (bf16)
            pl.BlockSpec((1, 4 * D, D), lambda g, l: (l, 0, 0)),     # W_proj(bf16)
            pl.BlockSpec((1, D), lambda g, l: (0, 0)),               # final ln weight
        ],
        out_specs=pl.BlockSpec((btile, T, D), lambda g, l: (g, 0, 0)),
        compiler_params=pltpu.CompilerParams(
            dimension_semantics=("parallel", "arbitrary"),
            vmem_limit_bytes=_vmem_budget(btile, T, D)),
    )(x, params["ln1w"], params["wqkv"], params["wo"],
      params["ln2w"], params["wfc"], params["wpr"], params["lnf"])


# ---------------------------------------------------------------------------
# Deterministic parameter initialization (mirrors Transformer._init_weights).
# Linear weights are pre-transposed to (in, out), stacked over layers, bf16.
# ---------------------------------------------------------------------------
def init_params(key, *, block_size, n_layer, dim):
    std = 0.02
    proj_std = 0.02 / math.sqrt(2 * n_layer)
    keys = jax.random.split(key, 1 + 4 * n_layer)
    pe = std * jax.random.normal(keys[0], (block_size, dim), jnp.float32)
    wqkv, wo, wfc, wpr = [], [], [], []
    for l in range(n_layer):
        k0, k1, k2, k3 = keys[1 + 4 * l: 1 + 4 * (l + 1)]
        wqkv.append((std * jax.random.normal(k0, (3 * dim, dim), jnp.float32)).T)
        wo.append((proj_std * jax.random.normal(k1, (dim, dim), jnp.float32)).T)
        wfc.append((std * jax.random.normal(k2, (4 * dim, dim), jnp.float32)).T)
        wpr.append((proj_std * jax.random.normal(k3, (dim, 4 * dim), jnp.float32)).T)
    return {
        "pe": pe,
        "ln1w": jnp.ones((n_layer, 1, dim), jnp.float32),
        "ln2w": jnp.ones((n_layer, 1, dim), jnp.float32),
        "lnf": jnp.ones((1, dim), jnp.float32),
        "wqkv": jnp.stack(wqkv).astype(jnp.bfloat16),
        "wo": jnp.stack(wo).astype(jnp.bfloat16),
        "wfc": jnp.stack(wfc).astype(jnp.bfloat16),
        "wpr": jnp.stack(wpr).astype(jnp.bfloat16),
    }


# ---------------------------------------------------------------------------
# Pure-JAX f32 reference (mirrors the PyTorch forward: exact-erf GELU, exact
# softmax).  Uses the bf16-stored weights cast back to f32 so the comparison
# isolates the kernel's bf16-activation / approximation error.
# ---------------------------------------------------------------------------
def _ref_ln(x, w):
    mu = x.mean(-1, keepdims=True)
    xc = x - mu
    var = (xc * xc).mean(-1, keepdims=True)
    return xc / jnp.sqrt(var + 1e-5) * w.reshape(-1)


def ref_forward(params, idx, *, n_head):
    B, T, D = idx.shape
    hd = D // n_head
    L = params["wqkv"].shape[0]
    x = idx + params["pe"][:T][None]
    mask = jnp.tril(jnp.ones((T, T), bool))
    for l in range(L):
        w_qkv = params["wqkv"][l].astype(jnp.float32)
        w_o = params["wo"][l].astype(jnp.float32)
        w_fc = params["wfc"][l].astype(jnp.float32)
        w_pr = params["wpr"][l].astype(jnp.float32)
        h = _ref_ln(x, params["ln1w"][l])
        qkv = h @ w_qkv
        q, k, v = jnp.split(qkv, 3, axis=-1)
        q = q.reshape(B, T, n_head, hd).transpose(0, 2, 1, 3)
        k = k.reshape(B, T, n_head, hd).transpose(0, 2, 1, 3)
        v = v.reshape(B, T, n_head, hd).transpose(0, 2, 1, 3)
        att = (q @ k.transpose(0, 1, 3, 2)) / math.sqrt(hd)
        att = jnp.where(mask, att, -jnp.inf)
        att = jax.nn.softmax(att, axis=-1)
        y = (att @ v).transpose(0, 2, 1, 3).reshape(B, T, D)
        x = x + y @ w_o
        h2 = _ref_ln(x, params["ln2w"][l])
        x = x + jax.nn.gelu(h2 @ w_fc, approximate=False) @ w_pr
    return _ref_ln(x, params["lnf"])


# ---------------------------------------------------------------------------
if __name__ == "__main__":
    # Small but MXU-meaningful shapes consistent with ModelConfig
    # (dim=128, n_head=8, block_size=128); n_layer kept small for the test.
    block_size, n_layer, n_head, dim = 128, 2, 8, 128
    T = block_size

    key = jax.random.PRNGKey(0)
    kp, kx1, kx2 = jax.random.split(key, 3)
    params = init_params(kp, block_size=block_size, n_layer=n_layer, dim=dim)

    # Test 1: B=2 -> btile=1, grid=(2, L)  (2-wide parallel axis).
    idx2 = jax.random.normal(kx1, (2, T, dim), jnp.float32)
    out2 = jax.block_until_ready(transformer_forward(params, idx2, n_head=n_head))
    ref2 = jax.block_until_ready(ref_forward(params, idx2, n_head=n_head))
    assert out2.shape == (2, T, dim) and out2.dtype == jnp.float32
    if not jnp.allclose(out2, ref2, atol=2e-2, rtol=2e-2):
        raise AssertionError(
            f"mismatch (B=2): max abs err {float(jnp.max(jnp.abs(out2 - ref2)))}")

    # Test 2: B=4 -> btile=2, grid=(2, L)  (exercises the batch-tiled path that
    # reuses each streamed weight slab over btile*T rows).
    idx4 = jax.random.normal(kx2, (4, T, dim), jnp.float32)
    out4 = jax.block_until_ready(transformer_forward(params, idx4, n_head=n_head))
    ref4 = jax.block_until_ready(ref_forward(params, idx4, n_head=n_head))
    assert out4.shape == (4, T, dim) and out4.dtype == jnp.float32
    if not jnp.allclose(out4, ref4, atol=2e-2, rtol=2e-2):
        raise AssertionError(
            f"mismatch (B=4): max abs err {float(jnp.max(jnp.abs(out4 - ref4)))}")

    print("KERNEL_OK")
</pallas_src>

<mosaic_0001>
module attributes {stable_mosaic.version = 11 : i64} {
  func.func @_transformer_kernel(%arg0: i32, %arg1: i32, %arg2: memref<1x128x128xf32, #tpu.memory_space<vmem>>, %arg3: memref<1x1x128xf32, #tpu.memory_space<vmem>>, %arg4: memref<1x128x384xbf16, #tpu.memory_space<vmem>>, %arg5: memref<1x128x128xbf16, #tpu.memory_space<vmem>>, %arg6: memref<1x1x128xf32, #tpu.memory_space<vmem>>, %arg7: memref<1x128x512xbf16, #tpu.memory_space<vmem>>, %arg8: memref<1x512x128xbf16, #tpu.memory_space<vmem>>, %arg9: memref<1x128xf32, #tpu.memory_space<vmem>>, %arg10: memref<1x128x128xf32, #tpu.memory_space<vmem>>) attributes {dimension_semantics = [#tpu.dimension_semantics<parallel>, #tpu.dimension_semantics<arbitrary>], iteration_bounds = array<i64: 2, 2>, scalar_prefetch = 0 : i64, scratch_operands = 0 : i64, tpu.core_type = #tpu.core_type<tc>, window_params = [{transform_indices = @transform_0, window_bounds = array<i64: 1, 128, 128>}, {transform_indices = @transform_1, window_bounds = array<i64: 1, 1, 128>}, {transform_indices = @transform_2, window_bounds = array<i64: 1, 128, 384>}, {transform_indices = @transform_3, window_bounds = array<i64: 1, 128, 128>}, {transform_indices = @transform_4, window_bounds = array<i64: 1, 1, 128>}, {transform_indices = @transform_5, window_bounds = array<i64: 1, 128, 512>}, {transform_indices = @transform_6, window_bounds = array<i64: 1, 512, 128>}, {pipeline_mode = #tpu.pipeline_mode<synchronous>, transform_indices = @transform_7, window_bounds = array<i64: 1, 128>}, {transform_indices = @transform_8, window_bounds = array<i64: 1, 128, 128>}]} {
    %c0_i32 = arith.constant 0 : i32
    %0 = arith.cmpi eq, %arg1, %c0_i32 : i32
    %1 = arith.extui %0 : i1 to i32
    %c0_i32_0 = arith.constant 0 : i32
    %2 = arith.cmpi ne, %1, %c0_i32_0 : i32
    scf.if %2 {
      %c0_76 = arith.constant 0 : index
      %c0_77 = arith.constant 0 : index
      %c0_78 = arith.constant 0 : index
      %233 = vector.load %arg2[%c0_76, %c0_77, %c0_78] : memref<1x128x128xf32, #tpu.memory_space<vmem>>, vector<1x128x128xf32>
      %c0_79 = arith.constant 0 : index
      %c0_80 = arith.constant 0 : index
      %c0_81 = arith.constant 0 : index
      %234 = vector.load %arg10[%c0_79, %c0_80, %c0_81] : memref<1x128x128xf32, #tpu.memory_space<vmem>>, vector<1x128x128xf32>
      tpu.vector_store %arg10[%c0_79, %c0_80, %c0_81], %233 {strides = array<i32>} : memref<1x128x128xf32, #tpu.memory_space<vmem>>, vector<1x128x128xf32>,
    } else {
    }
    %c0 = arith.constant 0 : index
    %c0_1 = arith.constant 0 : index
    %c0_2 = arith.constant 0 : index
    %3 = vector.load %arg10[%c0, %c0_1, %c0_2] : memref<1x128x128xf32, #tpu.memory_space<vmem>>, vector<1x128x128xf32>
    %4 = vector.shape_cast %3 : vector<1x128x128xf32> to vector<128x128xf32>
    %c0_3 = arith.constant 0 : index
    %c0_4 = arith.constant 0 : index
    %c0_5 = arith.constant 0 : index
    %5 = vector.load %arg3[%c0_3, %c0_4, %c0_5] : memref<1x1x128xf32, #tpu.memory_space<vmem>>, vector<1x1x128xf32>
    %6 = vector.shape_cast %5 : vector<1x1x128xf32> to vector<1x128xf32>
    %cst = arith.constant dense<0.000000e+00> : vector<128xf32>
    %7 = vector.multi_reduction <add>, %4, %cst [1] : vector<128x128xf32> to vector<128xf32>
    %8 = vector.shape_cast %7 : vector<128xf32> to vector<128x1xf32>
    %cst_6 = arith.constant 1.280000e+02 : f32
    %9 = vector.broadcast %cst_6 : f32 to vector<128x1xf32>
    %10 = arith.divf %8, %9 : vector<128x1xf32>
    %11 = vector.broadcast %10 : vector<128x1xf32> to vector<128x128xf32>
    %12 = arith.subf %4, %11 : vector<128x128xf32>
    %13 = arith.mulf %12, %12 : vector<128x128xf32>
    %cst_7 = arith.constant dense<0.000000e+00> : vector<128xf32>
    %14 = vector.multi_reduction <add>, %13, %cst_7 [1] : vector<128x128xf32> to vector<128xf32>
    %15 = vector.shape_cast %14 : vector<128xf32> to vector<128x1xf32>
    %cst_8 = arith.constant 1.280000e+02 : f32
    %16 = vector.broadcast %cst_8 : f32 to vector<128x1xf32>
    %17 = arith.divf %15, %16 : vector<128x1xf32>
    %cst_9 = arith.constant 9.99999974E-6 : f32
    %18 = vector.broadcast %cst_9 : f32 to vector<128x1xf32>
    %19 = arith.addf %17, %18 : vector<128x1xf32>
    %20 = math.rsqrt %19 : vector<128x1xf32>
    %21 = vector.broadcast %20 : vector<128x1xf32> to vector<128x128xf32>
    %22 = arith.mulf %12, %21 : vector<128x128xf32>
    %23 = vector.broadcast %6 : vector<1x128xf32> to vector<128x128xf32>
    %24 = arith.mulf %22, %23 : vector<128x128xf32>
    %25 = arith.truncf %24 : vector<128x128xf32> to vector<128x128xbf16>
    %c0_10 = arith.constant 0 : index
    %c0_11 = arith.constant 0 : index
    %c0_12 = arith.constant 0 : index
    %26 = vector.load %arg4[%c0_10, %c0_11, %c0_12] : memref<1x128x384xbf16, #tpu.memory_space<vmem>>, vector<1x128x384xbf16>
    %27 = vector.shape_cast %26 : vector<1x128x384xbf16> to vector<128x384xbf16>
    %cst_13 = arith.constant dense<0.000000e+00> : vector<128x384xf32>
    %28 = tpu.matmul %25, %27, %cst_13 {dimension_numbers = #tpu.dot_dimension_numbers<[1], [0], [0], [1], [0, 0, 1, 1], [], []>} : vector<128x128xbf16>, vector<128x384xbf16>, vector<128x384xf32> -> vector<128x384xf32>
    %29 = vector.extract_strided_slice %28 {offsets = [0, 0], sizes = [128, 128], strides = [1, 1]} : vector<128x384xf32> to vector<128x128xf32>
    %cst_14 = arith.constant 2.500000e-01 : f32
    %30 = vector.broadcast %cst_14 : f32 to vector<128x128xf32>
    %31 = arith.mulf %29, %30 : vector<128x128xf32>
    %32 = arith.truncf %31 : vector<128x128xf32> to vector<128x128xbf16>
    %33 = vector.extract_strided_slice %28 {offsets = [0, 128], sizes = [128, 128], strides = [1, 1]} : vector<128x384xf32> to vector<128x128xf32>
    %34 = arith.truncf %33 : vector<128x128xf32> to vector<128x128xbf16>
    %35 = vector.extract_strided_slice %28 {offsets = [0, 256], sizes = [128, 128], strides = [1, 1]} : vector<128x384xf32> to vector<128x128xf32>
    %36 = arith.truncf %35 : vector<128x128xf32> to vector<128x128xbf16>
    %37 = tpu.iota {dimensions = array<i32: 0>} : vector<128x128xi32>
    %38 = tpu.iota {dimensions = array<i32: 1>} : vector<128x128xi32>
    %39 = arith.cmpi sge, %37, %38 : vector<128x128xi32>
    %cst_15 = arith.constant 0.000000e+00 : f32
    %cst_16 = arith.constant -1.000000e+30 : f32
    %40 = vector.broadcast %cst_15 : f32 to vector<128x128xf32>
    %41 = vector.broadcast %cst_16 : f32 to vector<128x128xf32>
    %42 = arith.select %39, %40, %41 : vector<128x128xi1>, vector<128x128xf32>
    %43 = vector.extract_strided_slice %32 {offsets = [0, 0], sizes = [128, 16], strides = [1, 1]} : vector<128x128xbf16> to vector<128x16xbf16>
    %44 = vector.extract_strided_slice %34 {offsets = [0, 0], sizes = [128, 16], strides = [1, 1]} : vector<128x128xbf16> to vector<128x16xbf16>
    %45 = vector.extract_strided_slice %36 {offsets = [0, 0], sizes = [128, 16], strides = [1, 1]} : vector<128x128xbf16> to vector<128x16xbf16>
    %cst_17 = arith.constant dense<0.000000e+00> : vector<128x128xf32>
    %46 = tpu.matmul %43, %44, %cst_17 {dimension_numbers = #tpu.dot_dimension_numbers<[1], [1], [0], [0], [0, 0, 1, 0], [], []>} : vector<128x16xbf16>, vector<128x16xbf16>, vector<128x128xf32> -> vector<128x128xf32>
    %47 = arith.addf %46, %42 : vector<128x128xf32>
    %cst_18 = arith.constant dense<0xFF800000> : vector<128xf32>
    %48 = vector.multi_reduction <maximumf>, %47, %cst_18 [1] : vector<128x128xf32> to vector<128xf32>
    %49 = vector.shape_cast %48 : vector<128xf32> to vector<128x1xf32>
    %50 = vector.broadcast %49 : vector<128x1xf32> to vector<128x128xf32>
    %51 = arith.subf %47, %50 : vector<128x128xf32>
    %52 = math.exp %51 : vector<128x128xf32>
    %cst_19 = arith.constant dense<0.000000e+00> : vector<128xf32>
    %53 = vector.multi_reduction <add>, %52, %cst_19 [1] : vector<128x128xf32> to vector<128xf32>
    %54 = vector.shape_cast %53 : vector<128xf32> to vector<128x1xf32>
    %55 = tpu.reciprocal %54 {approx = true} : vector<128x1xf32> -> vector<128x1xf32>
    %56 = vector.broadcast %55 : vector<128x1xf32> to vector<128x128xf32>
    %57 = arith.mulf %52, %56 : vector<128x128xf32>
    %58 = arith.truncf %57 : vector<128x128xf32> to vector<128x128xbf16>
    %cst_20 = arith.constant dense<0.000000e+00> : vector<128x16xf32>
    %59 = tpu.matmul %58, %45, %cst_20 {dimension_numbers = #tpu.dot_dimension_numbers<[1], [0], [0], [1], [0, 0, 1, 1], [], []>} : vector<128x128xbf16>, vector<128x16xbf16>, vector<128x16xf32> -> vector<128x16xf32>
    %60 = vector.extract_strided_slice %32 {offsets = [0, 16], sizes = [128, 16], strides = [1, 1]} : vector<128x128xbf16> to vector<128x16xbf16>
    %61 = vector.extract_strided_slice %34 {offsets = [0, 16], sizes = [128, 16], strides = [1, 1]} : vector<128x128xbf16> to vector<128x16xbf16>
    %62 = vector.extract_strided_slice %36 {offsets = [0, 16], sizes = [128, 16], strides = [1, 1]} : vector<128x128xbf16> to vector<128x16xbf16>
    %cst_21 = arith.constant dense<0.000000e+00> : vector<128x128xf32>
    %63 = tpu.matmul %60, %61, %cst_21 {dimension_numbers = #tpu.dot_dimension_numbers<[1], [1], [0], [0], [0, 0, 1, 0], [], []>} : vector<128x16xbf16>, vector<128x16xbf16>, vector<128x128xf32> -> vector<128x128xf32>
    %64 = arith.addf %63, %42 : vector<128x128xf32>
    %cst_22 = arith.constant dense<0xFF800000> : vector<128xf32>
    %65 = vector.multi_reduction <maximumf>, %64, %cst_22 [1] : vector<128x128xf32> to vector<128xf32>
    %66 = vector.shape_cast %65 : vector<128xf32> to vector<128x1xf32>
    %67 = vector.broadcast %66 : vector<128x1xf32> to vector<128x128xf32>
    %68 = arith.subf %64, %67 : vector<128x128xf32>
    %69 = math.exp %68 : vector<128x128xf32>
    %cst_23 = arith.constant dense<0.000000e+00> : vector<128xf32>
    %70 = vector.multi_reduction <add>, %69, %cst_23 [1] : vector<128x128xf32> to vector<128xf32>
    %71 = vector.shape_cast %70 : vector<128xf32> to vector<128x1xf32>
    %72 = tpu.reciprocal %71 {approx = true} : vector<128x1xf32> -> vector<128x1xf32>
    %73 = vector.broadcast %72 : vector<128x1xf32> to vector<128x128xf32>
    %74 = arith.mulf %69, %73 : vector<128x128xf32>
    %75 = arith.truncf %74 : vector<128x128xf32> to vector<128x128xbf16>
    %cst_24 = arith.constant dense<0.000000e+00> : vector<128x16xf32>
    %76 = tpu.matmul %75, %62, %cst_24 {dimension_numbers = #tpu.dot_dimension_numbers<[1], [0], [0], [1], [0, 0, 1, 1], [], []>} : vector<128x128xbf16>, vector<128x16xbf16>, vector<128x16xf32> -> vector<128x16xf32>
    %77 = vector.extract_strided_slice %32 {offsets = [0, 32], sizes = [128, 16], strides = [1, 1]} : vector<128x128xbf16> to vector<128x16xbf16>
    %78 = vector.extract_strided_slice %34 {offsets = [0, 32], sizes = [128, 16], strides = [1, 1]} : vector<128x128xbf16> to vector<128x16xbf16>
    %79 = vector.extract_strided_slice %36 {offsets = [0, 32], sizes = [128, 16], strides = [1, 1]} : vector<128x128xbf16> to vector<128x16xbf16>
    %cst_25 = arith.constant dense<0.000000e+00> : vector<128x128xf32>
    %80 = tpu.matmul %77, %78, %cst_25 {dimension_numbers = #tpu.dot_dimension_numbers<[1], [1], [0], [0], [0, 0, 1, 0], [], []>} : vector<128x16xbf16>, vector<128x16xbf16>, vector<128x128xf32> -> vector<128x128xf32>
    %81 = arith.addf %80, %42 : vector<128x128xf32>
    %cst_26 = arith.constant dense<0xFF800000> : vector<128xf32>
    %82 = vector.multi_reduction <maximumf>, %81, %cst_26 [1] : vector<128x128xf32> to vector<128xf32>
    %83 = vector.shape_cast %82 : vector<128xf32> to vector<128x1xf32>
    %84 = vector.broadcast %83 : vector<128x1xf32> to vector<128x128xf32>
    %85 = arith.subf %81, %84 : vector<128x128xf32>
    %86 = math.exp %85 : vector<128x128xf32>
    %cst_27 = arith.constant dense<0.000000e+00> : vector<128xf32>
    %87 = vector.multi_reduction <add>, %86, %cst_27 [1] : vector<128x128xf32> to vector<128xf32>
    %88 = vector.shape_cast %87 : vector<128xf32> to vector<128x1xf32>
    %89 = tpu.reciprocal %88 {approx = true} : vector<128x1xf32> -> vector<128x1xf32>
    %90 = vector.broadcast %89 : vector<128x1xf32> to vector<128x128xf32>
    %91 = arith.mulf %86, %90 : vector<128x128xf32>
    %92 = arith.truncf %91 : vector<128x128xf32> to vector<128x128xbf16>
    %cst_28 = arith.constant dense<0.000000e+00> : vector<128x16xf32>
    %93 = tpu.matmul %92, %79, %cst_28 {dimension_numbers = #tpu.dot_dimension_numbers<[1], [0], [0], [1], [0, 0, 1, 1], [], []>} : vector<128x128xbf16>, vector<128x16xbf16>, vector<128x16xf32> -> vector<128x16xf32>
    %94 = vector.extract_strided_slice %32 {offsets = [0, 48], sizes = [128, 16], strides = [1, 1]} : vector<128x128xbf16> to vector<128x16xbf16>
    %95 = vector.extract_strided_slice %34 {offsets = [0, 48], sizes = [128, 16], strides = [1, 1]} : vector<128x128xbf16> to vector<128x16xbf16>
    %96 = vector.extract_strided_slice %36 {offsets = [0, 48], sizes = [128, 16], strides = [1, 1]} : vector<128x128xbf16> to vector<128x16xbf16>
    %cst_29 = arith.constant dense<0.000000e+00> : vector<128x128xf32>
    %97 = tpu.matmul %94, %95, %cst_29 {dimension_numbers = #tpu.dot_dimension_numbers<[1], [1], [0], [0], [0, 0, 1, 0], [], []>} : vector<128x16xbf16>, vector<128x16xbf16>, vector<128x128xf32> -> vector<128x128xf32>
    %98 = arith.addf %97, %42 : vector<128x128xf32>
    %cst_30 = arith.constant dense<0xFF800000> : vector<128xf32>
    %99 = vector.multi_reduction <maximumf>, %98, %cst_30 [1] : vector<128x128xf32> to vector<128xf32>
    %100 = vector.shape_cast %99 : vector<128xf32> to vector<128x1xf32>
    %101 = vector.broadcast %100 : vector<128x1xf32> to vector<128x128xf32>
    %102 = arith.subf %98, %101 : vector<128x128xf32>
    %103 = math.exp %102 : vector<128x128xf32>
    %cst_31 = arith.constant dense<0.000000e+00> : vector<128xf32>
    %104 = vector.multi_reduction <add>, %103, %cst_31 [1] : vector<128x128xf32> to vector<128xf32>
    %105 = vector.shape_cast %104 : vector<128xf32> to vector<128x1xf32>
    %106 = tpu.reciprocal %105 {approx = true} : vector<128x1xf32> -> vector<128x1xf32>
    %107 = vector.broadcast %106 : vector<128x1xf32> to vector<128x128xf32>
    %108 = arith.mulf %103, %107 : vector<128x128xf32>
    %109 = arith.truncf %108 : vector<128x128xf32> to vector<128x128xbf16>
    %cst_32 = arith.constant dense<0.000000e+00> : vector<128x16xf32>
    %110 = tpu.matmul %109, %96, %cst_32 {dimension_numbers = #tpu.dot_dimension_numbers<[1], [0], [0], [1], [0, 0, 1, 1], [], []>} : vector<128x128xbf16>, vector<128x16xbf16>, vector<128x16xf32> -> vector<128x16xf32>
    %111 = vector.extract_strided_slice %32 {offsets = [0, 64], sizes = [128, 16], strides = [1, 1]} : vector<128x128xbf16> to vector<128x16xbf16>
    %112 = vector.extract_strided_slice %34 {offsets = [0, 64], sizes = [128, 16], strides = [1, 1]} : vector<128x128xbf16> to vector<128x16xbf16>
    %113 = vector.extract_strided_slice %36 {offsets = [0, 64], sizes = [128, 16], strides = [1, 1]} : vector<128x128xbf16> to vector<128x16xbf16>
    %cst_33 = arith.constant dense<0.000000e+00> : vector<128x128xf32>
    %114 = tpu.matmul %111, %112, %cst_33 {dimension_numbers = #tpu.dot_dimension_numbers<[1], [1], [0], [0], [0, 0, 1, 0], [], []>} : vector<128x16xbf16>, vector<128x16xbf16>, vector<128x128xf32> -> vector<128x128xf32>
    %115 = arith.addf %114, %42 : vector<128x128xf32>
    %cst_34 = arith.constant dense<0xFF800000> : vector<128xf32>
    %116 = vector.multi_reduction <maximumf>, %115, %cst_34 [1] : vector<128x128xf32> to vector<128xf32>
    %117 = vector.shape_cast %116 : vector<128xf32> to vector<128x1xf32>
    %118 = vector.broadcast %117 : vector<128x1xf32> to vector<128x128xf32>
    %119 = arith.subf %115, %118 : vector<128x128xf32>
    %120 = math.exp %119 : vector<128x128xf32>
    %cst_35 = arith.constant dense<0.000000e+00> : vector<128xf32>
    %121 = vector.multi_reduction <add>, %120, %cst_35 [1] : vector<128x128xf32> to vector<128xf32>
    %122 = vector.shape_cast %121 : vector<128xf32> to vector<128x1xf32>
    %123 = tpu.reciprocal %122 {approx = true} : vector<128x1xf32> -> vector<128x1xf32>
    %124 = vector.broadcast %123 : vector<128x1xf32> to vector<128x128xf32>
    %125 = arith.mulf %120, %124 : vector<128x128xf32>
    %126 = arith.truncf %125 : vector<128x128xf32> to vector<128x128xbf16>
    %cst_36 = arith.constant dense<0.000000e+00> : vector<128x16xf32>
    %127 = tpu.matmul %126, %113, %cst_36 {dimension_numbers = #tpu.dot_dimension_numbers<[1], [0], [0], [1], [0, 0, 1, 1], [], []>} : vector<128x128xbf16>, vector<128x16xbf16>, vector<128x16xf32> -> vector<128x16xf32>
    %128 = vector.extract_strided_slice %32 {offsets = [0, 80], sizes = [128, 16], strides = [1, 1]} : vector<128x128xbf16> to vector<128x16xbf16>
    %129 = vector.extract_strided_slice %34 {offsets = [0, 80], sizes = [128, 16], strides = [1, 1]} : vector<128x128xbf16> to vector<128x16xbf16>
    %130 = vector.extract_strided_slice %36 {offsets = [0, 80], sizes = [128, 16], strides = [1, 1]} : vector<128x128xbf16> to vector<128x16xbf16>
    %cst_37 = arith.constant dense<0.000000e+00> : vector<128x128xf32>
    %131 = tpu.matmul %128, %129, %cst_37 {dimension_numbers = #tpu.dot_dimension_numbers<[1], [1], [0], [0], [0, 0, 1, 0], [], []>} : vector<128x16xbf16>, vector<128x16xbf16>, vector<128x128xf32> -> vector<128x128xf32>
    %132 = arith.addf %131, %42 : vector<128x128xf32>
    %cst_38 = arith.constant dense<0xFF800000> : vector<128xf32>
    %133 = vector.multi_reduction <maximumf>, %132, %cst_38 [1] : vector<128x128xf32> to vector<128xf32>
    %134 = vector.shape_cast %133 : vector<128xf32> to vector<128x1xf32>
    %135 = vector.broadcast %134 : vector<128x1xf32> to vector<128x128xf32>
    %136 = arith.subf %132, %135 : vector<128x128xf32>
    %137 = math.exp %136 : vector<128x128xf32>
    %cst_39 = arith.constant dense<0.000000e+00> : vector<128xf32>
    %138 = vector.multi_reduction <add>, %137, %cst_39 [1] : vector<128x128xf32> to vector<128xf32>
    %139 = vector.shape_cast %138 : vector<128xf32> to vector<128x1xf32>
    %140 = tpu.reciprocal %139 {approx = true} : vector<128x1xf32> -> vector<128x1xf32>
    %141 = vector.broadcast %140 : vector<128x1xf32> to vector<128x128xf32>
    %142 = arith.mulf %137, %141 : vector<128x128xf32>
    %143 = arith.truncf %142 : vector<128x128xf32> to vector<128x128xbf16>
    %cst_40 = arith.constant dense<0.000000e+00> : vector<128x16xf32>
    %144 = tpu.matmul %143, %130, %cst_40 {dimension_numbers = #tpu.dot_dimension_numbers<[1], [0], [0], [1], [0, 0, 1, 1], [], []>} : vector<128x128xbf16>, vector<128x16xbf16>, vector<128x16xf32> -> vector<128x16xf32>
    %145 = vector.extract_strided_slice %32 {offsets = [0, 96], sizes = [128, 16], strides = [1, 1]} : vector<128x128xbf16> to vector<128x16xbf16>
    %146 = vector.extract_strided_slice %34 {offsets = [0, 96], sizes = [128, 16], strides = [1, 1]} : vector<128x128xbf16> to vector<128x16xbf16>
    %147 = vector.extract_strided_slice %36 {offsets = [0, 96], sizes = [128, 16], strides = [1, 1]} : vector<128x128xbf16> to vector<128x16xbf16>
    %cst_41 = arith.constant dense<0.000000e+00> : vector<128x128xf32>
    %148 = tpu.matmul %145, %146, %cst_41 {dimension_numbers = #tpu.dot_dimension_numbers<[1], [1], [0], [0], [0, 0, 1, 0], [], []>} : vector<128x16xbf16>, vector<128x16xbf16>, vector<128x128xf32> -> vector<128x128xf32>
    %149 = arith.addf %148, %42 : vector<128x128xf32>
    %cst_42 = arith.constant dense<0xFF800000> : vector<128xf32>
    %150 = vector.multi_reduction <maximumf>, %149, %cst_42 [1] : vector<128x128xf32> to vector<128xf32>
    %151 = vector.shape_cast %150 : vector<128xf32> to vector<128x1xf32>
    %152 = vector.broadcast %151 : vector<128x1xf32> to vector<128x128xf32>
    %153 = arith.subf %149, %152 : vector<128x128xf32>
    %154 = math.exp %153 : vector<128x128xf32>
    %cst_43 = arith.constant dense<0.000000e+00> : vector<128xf32>
    %155 = vector.multi_reduction <add>, %154, %cst_43 [1] : vector<128x128xf32> to vector<128xf32>
    %156 = vector.shape_cast %155 : vector<128xf32> to vector<128x1xf32>
    %157 = tpu.reciprocal %156 {approx = true} : vector<128x1xf32> -> vector<128x1xf32>
    %158 = vector.broadcast %157 : vector<128x1xf32> to vector<128x128xf32>
    %159 = arith.mulf %154, %158 : vector<128x128xf32>
    %160 = arith.truncf %159 : vector<128x128xf32> to vector<128x128xbf16>
    %cst_44 = arith.constant dense<0.000000e+00> : vector<128x16xf32>
    %161 = tpu.matmul %160, %147, %cst_44 {dimension_numbers = #tpu.dot_dimension_numbers<[1], [0], [0], [1], [0, 0, 1, 1], [], []>} : vector<128x128xbf16>, vector<128x16xbf16>, vector<128x16xf32> -> vector<128x16xf32>
    %162 = vector.extract_strided_slice %32 {offsets = [0, 112], sizes = [128, 16], strides = [1, 1]} : vector<128x128xbf16> to vector<128x16xbf16>
    %163 = vector.extract_strided_slice %34 {offsets = [0, 112], sizes = [128, 16], strides = [1, 1]} : vector<128x128xbf16> to vector<128x16xbf16>
    %164 = vector.extract_strided_slice %36 {offsets = [0, 112], sizes = [128, 16], strides = [1, 1]} : vector<128x128xbf16> to vector<128x16xbf16>
    %cst_45 = arith.constant dense<0.000000e+00> : vector<128x128xf32>
    %165 = tpu.matmul %162, %163, %cst_45 {dimension_numbers = #tpu.dot_dimension_numbers<[1], [1], [0], [0], [0, 0, 1, 0], [], []>} : vector<128x16xbf16>, vector<128x16xbf16>, vector<128x128xf32> -> vector<128x128xf32>
    %166 = arith.addf %165, %42 : vector<128x128xf32>
    %cst_46 = arith.constant dense<0xFF800000> : vector<128xf32>
    %167 = vector.multi_reduction <maximumf>, %166, %cst_46 [1] : vector<128x128xf32> to vector<128xf32>
    %168 = vector.shape_cast %167 : vector<128xf32> to vector<128x1xf32>
    %169 = vector.broadcast %168 : vector<128x1xf32> to vector<128x128xf32>
    %170 = arith.subf %166, %169 : vector<128x128xf32>
    %171 = math.exp %170 : vector<128x128xf32>
    %cst_47 = arith.constant dense<0.000000e+00> : vector<128xf32>
    %172 = vector.multi_reduction <add>, %171, %cst_47 [1] : vector<128x128xf32> to vector<128xf32>
    %173 = vector.shape_cast %172 : vector<128xf32> to vector<128x1xf32>
    %174 = tpu.reciprocal %173 {approx = true} : vector<128x1xf32> -> vector<128x1xf32>
    %175 = vector.broadcast %174 : vector<128x1xf32> to vector<128x128xf32>
    %176 = arith.mulf %171, %175 : vector<128x128xf32>
    %177 = arith.truncf %176 : vector<128x128xf32> to vector<128x128xbf16>
    %cst_48 = arith.constant dense<0.000000e+00> : vector<128x16xf32>
    %178 = tpu.matmul %177, %164, %cst_48 {dimension_numbers = #tpu.dot_dimension_numbers<[1], [0], [0], [1], [0, 0, 1, 1], [], []>} : vector<128x128xbf16>, vector<128x16xbf16>, vector<128x16xf32> -> vector<128x16xf32>
    %179 = tpu.concatenate %59, %76, %93, %110, %127, %144, %161, %178 in 1 : vector<128x16xf32>, vector<128x16xf32>, vector<128x16xf32>, vector<128x16xf32>, vector<128x16xf32>, vector<128x16xf32>, vector<128x16xf32>, vector<128x16xf32> -> vector<128x128xf32>
    %180 = arith.truncf %179 : vector<128x128xf32> to vector<128x128xbf16>
    %c0_49 = arith.constant 0 : index
    %c0_50 = arith.constant 0 : index
    %c0_51 = arith.constant 0 : index
    %181 = vector.load %arg5[%c0_49, %c0_50, %c0_51] : memref<1x128x128xbf16, #tpu.memory_space<vmem>>, vector<1x128x128xbf16>
    %182 = vector.shape_cast %181 : vector<1x128x128xbf16> to vector<128x128xbf16>
    %cst_52 = arith.constant dense<0.000000e+00> : vector<128x128xf32>
    %183 = tpu.matmul %180, %182, %cst_52 {dimension_numbers = #tpu.dot_dimension_numbers<[1], [0], [0], [1], [0, 0, 1, 1], [], []>} : vector<128x128xbf16>, vector<128x128xbf16>, vector<128x128xf32> -> vector<128x128xf32>
    %184 = arith.addf %4, %183 : vector<128x128xf32>
    %c0_53 = arith.constant 0 : index
    %c0_54 = arith.constant 0 : index
    %c0_55 = arith.constant 0 : index
    %185 = vector.load %arg6[%c0_53, %c0_54, %c0_55] : memref<1x1x128xf32, #tpu.memory_space<vmem>>, vector<1x1x128xf32>
    %186 = vector.shape_cast %185 : vector<1x1x128xf32> to vector<1x128xf32>
    %cst_56 = arith.constant dense<0.000000e+00> : vector<128xf32>
    %187 = vector.multi_reduction <add>, %184, %cst_56 [1] : vector<128x128xf32> to vector<128xf32>
    %188 = vector.shape_cast %187 : vector<128xf32> to vector<128x1xf32>
    %cst_57 = arith.constant 1.280000e+02 : f32
    %189 = vector.broadcast %cst_57 : f32 to vector<128x1xf32>
    %190 = arith.divf %188, %189 : vector<128x1xf32>
    %191 = vector.broadcast %190 : vector<128x1xf32> to vector<128x128xf32>
    %192 = arith.subf %184, %191 : vector<128x128xf32>
    %193 = arith.mulf %192, %192 : vector<128x128xf32>
    %cst_58 = arith.constant dense<0.000000e+00> : vector<128xf32>
    %194 = vector.multi_reduction <add>, %193, %cst_58 [1] : vector<128x128xf32> to vector<128xf32>
    %195 = vector.shape_cast %194 : vector<128xf32> to vector<128x1xf32>
    %cst_59 = arith.constant 1.280000e+02 : f32
    %196 = vector.broadcast %cst_59 : f32 to vector<128x1xf32>
    %197 = arith.divf %195, %196 : vector<128x1xf32>
    %cst_60 = arith.constant 9.99999974E-6 : f32
    %198 = vector.broadcast %cst_60 : f32 to vector<128x1xf32>
    %199 = arith.addf %197, %198 : vector<128x1xf32>
    %200 = math.rsqrt %199 : vector<128x1xf32>
    %201 = vector.broadcast %200 : vector<128x1xf32> to vector<128x128xf32>
    %202 = arith.mulf %192, %201 : vector<128x128xf32>
    %203 = vector.broadcast %186 : vector<1x128xf32> to vector<128x128xf32>
    %204 = arith.mulf %202, %203 : vector<128x128xf32>
    %205 = arith.truncf %204 : vector<128x128xf32> to vector<128x128xbf16>
    %c0_61 = arith.constant 0 : index
    %c0_62 = arith.constant 0 : index
    %c0_63 = arith.constant 0 : index
    %206 = vector.load %arg7[%c0_61, %c0_62, %c0_63] : memref<1x128x512xbf16, #tpu.memory_space<vmem>>, vector<1x128x512xbf16>
    %207 = vector.shape_cast %206 : vector<1x128x512xbf16> to vector<128x512xbf16>
    %cst_64 = arith.constant dense<0.000000e+00> : vector<128x512xf32>
    %208 = tpu.matmul %205, %207, %cst_64 {dimension_numbers = #tpu.dot_dimension_numbers<[1], [0], [0], [1], [0, 0, 1, 1], [], []>} : vector<128x128xbf16>, vector<128x512xbf16>, vector<128x512xf32> -> vector<128x512xf32>
    %cst_65 = arith.constant 5.000000e-01 : f32
    %209 = vector.broadcast %cst_65 : f32 to vector<128x512xf32>
    %210 = arith.mulf %209, %208 : vector<128x512xf32>
    %cst_66 = arith.constant 4.471500e-02 : f32
    %211 = vector.broadcast %cst_66 : f32 to vector<128x512xf32>
    %212 = arith.mulf %211, %208 : vector<128x512xf32>
    %213 = arith.mulf %212, %208 : vector<128x512xf32>
    %214 = arith.mulf %213, %208 : vector<128x512xf32>
    %215 = arith.addf %208, %214 : vector<128x512xf32>
    %cst_67 = arith.constant 0.797884583 : f32
    %216 = vector.broadcast %cst_67 : f32 to vector<128x512xf32>
    %217 = arith.mulf %216, %215 : vector<128x512xf32>
    %218 = math.tanh %217 : vector<128x512xf32>
    %cst_68 = arith.constant 1.000000e+00 : f32
    %219 = vector.broadcast %cst_68 : f32 to vector<128x512xf32>
    %220 = arith.addf %219, %218 : vector<128x512xf32>
    %221 = arith.mulf %210, %220 : vector<128x512xf32>
    %222 = arith.truncf %221 : vector<128x512xf32> to vector<128x512xbf16>
    %c0_69 = arith.constant 0 : index
    %c0_70 = arith.constant 0 : index
    %c0_71 = arith.constant 0 : index
    %223 = vector.load %arg8[%c0_69, %c0_70, %c0_71] : memref<1x512x128xbf16, #tpu.memory_space<vmem>>, vector<1x512x128xbf16>
    %224 = vector.shape_cast %223 : vector<1x512x128xbf16> to vector<512x128xbf16>
    %cst_72 = arith.constant dense<0.000000e+00> : vector<128x128xf32>
    %225 = tpu.matmul %222, %224, %cst_72 {dimension_numbers = #tpu.dot_dimension_numbers<[1], [0], [0], [1], [0, 0, 1, 1], [], []>} : vector<128x512xbf16>, vector<512x128xbf16>, vector<128x128xf32> -> vector<128x128xf32>
    %226 = arith.addf %184, %225 : vector<128x128xf32>
    %c1_i32 = arith.constant 1 : i32
    %227 = arith.cmpi ne, %arg1, %c1_i32 : i32
    %228 = arith.extui %227 : i1 to i32
    %c0_i32_73 = arith.constant 0 : i32
    %229 = arith.cmpi ne, %228, %c0_i32_73 : i32
    scf.if %229 {
      %233 = vector.shape_cast %226 : vector<128x128xf32> to vector<1x128x128xf32>
      %c0_76 = arith.constant 0 : index
      %c0_77 = arith.constant 0 : index
      %c0_78 = arith.constant 0 : index
      %234 = vector.load %arg10[%c0_76, %c0_77, %c0_78] : memref<1x128x128xf32, #tpu.memory_space<vmem>>, vector<1x128x128xf32>
      tpu.vector_store %arg10[%c0_76, %c0_77, %c0_78], %233 {strides = array<i32>} : memref<1x128x128xf32, #tpu.memory_space<vmem>>, vector<1x128x128xf32>,
    } else {
    }
    %c1_i32_74 = arith.constant 1 : i32
    %230 = arith.cmpi eq, %arg1, %c1_i32_74 : i32
    %231 = arith.extui %230 : i1 to i32
    %c0_i32_75 = arith.constant 0 : i32
    %232 = arith.cmpi ne, %231, %c0_i32_75 : i32
    scf.if %232 {
      %c0_76 = arith.constant 0 : index
      %c0_77 = arith.constant 0 : index
      %233 = vector.load %arg9[%c0_76, %c0_77] : memref<1x128xf32, #tpu.memory_space<vmem>>, vector<1x128xf32>
      %cst_78 = arith.constant dense<0.000000e+00> : vector<128xf32>
      %234 = vector.multi_reduction <add>, %226, %cst_78 [1] : vector<128x128xf32> to vector<128xf32>
      %235 = vector.shape_cast %234 : vector<128xf32> to vector<128x1xf32>
      %cst_79 = arith.constant 1.280000e+02 : f32
      %236 = vector.broadcast %cst_79 : f32 to vector<128x1xf32>
      %237 = arith.divf %235, %236 : vector<128x1xf32>
      %238 = vector.broadcast %237 : vector<128x1xf32> to vector<128x128xf32>
      %239 = arith.subf %226, %238 : vector<128x128xf32>
      %240 = arith.mulf %239, %239 : vector<128x128xf32>
      %cst_80 = arith.constant dense<0.000000e+00> : vector<128xf32>
      %241 = vector.multi_reduction <add>, %240, %cst_80 [1] : vector<128x128xf32> to vector<128xf32>
      %242 = vector.shape_cast %241 : vector<128xf32> to vector<128x1xf32>
      %cst_81 = arith.constant 1.280000e+02 : f32
      %243 = vector.broadcast %cst_81 : f32 to vector<128x1xf32>
      %244 = arith.divf %242, %243 : vector<128x1xf32>
      %cst_82 = arith.constant 9.99999974E-6 : f32
      %245 = vector.broadcast %cst_82 : f32 to vector<128x1xf32>
      %246 = arith.addf %244, %245 : vector<128x1xf32>
      %247 = math.rsqrt %246 : vector<128x1xf32>
      %248 = vector.broadcast %247 : vector<128x1xf32> to vector<128x128xf32>
      %249 = arith.mulf %239, %248 : vector<128x128xf32>
      %250 = vector.broadcast %233 : vector<1x128xf32> to vector<128x128xf32>
      %251 = arith.mulf %249, %250 : vector<128x128xf32>
      %252 = vector.shape_cast %251 : vector<128x128xf32> to vector<1x128x128xf32>
      %c0_83 = arith.constant 0 : index
      %c0_84 = arith.constant 0 : index
      %c0_85 = arith.constant 0 : index
      %253 = vector.load %arg10[%c0_83, %c0_84, %c0_85] : memref<1x128x128xf32, #tpu.memory_space<vmem>>, vector<1x128x128xf32>
      tpu.vector_store %arg10[%c0_83, %c0_84, %c0_85], %252 {strides = array<i32>} : memref<1x128x128xf32, #tpu.memory_space<vmem>>, vector<1x128x128xf32>,
    } else {
    }
    return
  }
  func.func @transform_0(%arg0: i32, %arg1: i32) -> (i32, i32, i32) {
    %c0_i32 = arith.constant 0 : i32
    %c0_i32_0 = arith.constant 0 : i32
    %c0_i32_1 = arith.constant 0 : i32
    return %arg0, %c0_i32, %c0_i32_0 : i32, i32, i32
  }
  func.func @transform_1(%arg0: i32, %arg1: i32) -> (i32, i32, i32) {
    %c0_i32 = arith.constant 0 : i32
    %c0_i32_0 = arith.constant 0 : i32
    %c0_i32_1 = arith.constant 0 : i32
    return %arg1, %c0_i32, %c0_i32_0 : i32, i32, i32
  }
  func.func @transform_2(%arg0: i32, %arg1: i32) -> (i32, i32, i32) {
    %c0_i32 = arith.constant 0 : i32
    %c0_i32_0 = arith.constant 0 : i32
    %c0_i32_1 = arith.constant 0 : i32
    return %arg1, %c0_i32, %c0_i32_0 : i32, i32, i32
  }
  func.func @transform_3(%arg0: i32, %arg1: i32) -> (i32, i32, i32) {
    %c0_i32 = arith.constant 0 : i32
    %c0_i32_0 = arith.constant 0 : i32
    %c0_i32_1 = arith.constant 0 : i32
    return %arg1, %c0_i32, %c0_i32_0 : i32, i32, i32
  }
  func.func @transform_4(%arg0: i32, %arg1: i32) -> (i32, i32, i32) {
    %c0_i32 = arith.constant 0 : i32
    %c0_i32_0 = arith.constant 0 : i32
    %c0_i32_1 = arith.constant 0 : i32
    return %arg1, %c0_i32, %c0_i32_0 : i32, i32, i32
  }
  func.func @transform_5(%arg0: i32, %arg1: i32) -> (i32, i32, i32) {
    %c0_i32 = arith.constant 0 : i32
    %c0_i32_0 = arith.constant 0 : i32
    %c0_i32_1 = arith.constant 0 : i32
    return %arg1, %c0_i32, %c0_i32_0 : i32, i32, i32
  }
  func.func @transform_6(%arg0: i32, %arg1: i32) -> (i32, i32, i32) {
    %c0_i32 = arith.constant 0 : i32
    %c0_i32_0 = arith.constant 0 : i32
    %c0_i32_1 = arith.constant 0 : i32
    return %arg1, %c0_i32, %c0_i32_0 : i32, i32, i32
  }
  func.func @transform_7(%arg0: i32, %arg1: i32) -> (i32, i32) {
    %c0_i32 = arith.constant 0 : i32
    %c0_i32_0 = arith.constant 0 : i32
    %c0_i32_1 = arith.constant 0 : i32
    return %c0_i32, %c0_i32_0 : i32, i32
  }
  func.func @transform_8(%arg0: i32, %arg1: i32) -> (i32, i32, i32) {
    %c0_i32 = arith.constant 0 : i32
    %c0_i32_0 = arith.constant 0 : i32
    %c0_i32_1 = arith.constant 0 : i32
    return %arg0, %c0_i32, %c0_i32_0 : i32, i32, i32
  }
}

</mosaic_0001>

<bundles_post_ra>
// kernel: tpu_custom_call.1
= control target key start
LH: loop header
LB: loop body
LE: loop exit
PB: predicated region body
PF: predicated region fallthrough
CT: control target
= control target key end

     0   :  { %s15108_s0 = inlined_call_operand.hbm [shape: f32[2,128,128], index: 0, kind: input, shape index: {}]   ;;  %s15109_s1 = inlined_call_operand.vmem [shape: f32[2,1,128], index: 1, kind: input, shape index: {}]   ;;  %s15110_s2 = inlined_call_operand.hbm [shape: bf16[2,128,384], index: 2, kind: input, shape index: {}]   ;;  %s15111_s3 = inlined_call_operand.hbm [shape: bf16[2,128,128], index: 3, kind: input, shape index: {}]   ;;  %s15112_s4 = inlined_call_operand.vmem [shape: f32[2,1,128], index: 4, kind: input, shape index: {}]   ;;  %s15113_s5 = inlined_call_operand.hbm [shape: bf16[2,128,512], index: 5, kind: input, shape index: {}]   ;;  %s15114_s6 = inlined_call_operand.hbm [shape: bf16[2,512,128], index: 6, kind: input, shape index: {}]   ;;  %s15115_s7 = inlined_call_operand.vmem [shape: f32[1,128], index: 7, kind: input, shape index: {}]   ;;  %s15116_s8 = inlined_call_operand.hbm [shape: f32[2,128,128], index: 8, kind: output, shape index: {}]  }
   0x1   :  { %15286 = sst [smem:[#allocation140_spill]] %s15108_s0 }
   0x2   :  { %15287 = sst [smem:[#allocation141_spill]] %s15109_s1 }
   0x3   :  { %15288 = sst [smem:[#allocation142_spill]] %s15110_s2 }
   0x4   :  { %15289 = sst [smem:[#allocation143_spill]] %s15112_s4 }
   0x5   :  { %15290 = sst [smem:[#allocation144_spill]] %s15113_s5 }
   0x6   :  { %15291 = sst [smem:[#allocation145_spill]] %s15115_s7 }
   0x7   :  { %15292 = sst [smem:[#allocation146_spill]] %s15116_s8 }
   0x8   :  { %13 = vsyncpa [#allocation3], 0 }
   0x9   :  { %15 = vsyncpa [#allocation3 + $0x1], 0 }
   0xa   :  { %16 = vsyncpa [#allocation6], 0 }
   0xb   :  { %18 = vsyncpa [#allocation6 + $0x1], 0 }
   0xc   :  { %19 = vsyncpa [#allocation9], 0 }
   0xd   :  { %21 = vsyncpa [#allocation9 + $0x1], 0 }
   0xe   :  { %22 = vsyncpa [#allocation4], 0 }
   0xf   :  { %24 = vsyncpa [#allocation4 + $0x1], 0  ;;  %s10619_s27 = smov 0   ;;  %s10621_s28 = smov 0  }
  0x10   :  { %s10623_s29 = smov 0   ;;  %s10625_s30 = smov 0  }
  0x11   :  { %s10627_s9 = smov 0   ;;  %s10629_s10 = smov 0  }
  0x12   :  { %s10631_s11 = smov 0   ;;  %s10633_s12 = smov 0  }
  0x13   :  { %s10635_s13 = smov 0   ;;  %s10637_s14 = smov 0  }
  0x14   :  { %s10639_s15 = smov 0  }
  0x15 LB: > { %15293 = sst [smem:[#allocation16_spill]] %s10511_s28  ;;  %s39_s16 = sadd.s32 1, %s10539_s13  ;;  %s10547_s15 = sphi %s10639_s15, %s30_s15   ;;  %s10543_s14 = sphi %s10637_s14, %s15758_s14   ;;  %s10539_s13 = sphi %s10635_s13, %s15757_s13   ;;  %s10535_s12 = sphi %s10633_s12, %s15751_s12   ;;  %s10531_s11 = sphi %s10631_s11, %s15756_s11   ;;  %s10527_s10 = sphi %s10629_s10, %s15750_s10   ;;  %s10523_s9 = sphi %s10627_s9, %s15755_s9   ;;  %s10519_s30 = sphi %s10625_s30, %s15754_s30   ;;  %s10515_s29 = sphi %s10623_s29, %s15748_s29   ;;  %s10511_s28 = sphi %s10621_s28, %s15747_s28   ;;  %s10507_s27 = sphi %s10619_s27, %s15746_s27  }
  0x16   : > { %15294 = sst [smem:[#allocation17_spill]] %s10515_s29  ;;  %p15122_p0 = scmp.eq.s32.totalorder %s10547_s15, 0 }
  0x17   : > { %15295 = sst [smem:[#allocation18_spill]] %s10527_s10  ;;  %p10676_p1 = scmp.ge.s32.totalorder %s39_s16, 2 }
  0x18   : > { %15296 = sst [smem:[#allocation19_spill]] %s10531_s11  ;;  %s101_s18 = sadd.s32 1, %s10515_s29 }
  0x19   : > { %15297 = sst [smem:[#allocation20_spill]] %s10535_s12  ;;  %p108_p2 = scmp.ne.s32.totalorder %s10515_s29, %s10511_s28 }
  0x1a   : > { %15298 = sst [smem:[#allocation21_spill]] %s10543_s14  ;;  %s15760_s16 = smov (%p10676_p1, %s39_s16), 0 }
  0x1b   : > { %s15299_s17 = scalar_select %p10676_p1, 1, 0 }
  0x1c   : > { %15300 = sst [smem:[#allocation22_spill]] %s15760_s16  ;;  %p110_p4 = por %p108_p2, %p15122_p0 }
  0x1d   : > { %s98_s19 = ssub.s32 %s10539_s13, %s15760_s16  ;;  %p15120_p5 = scmp.lt.s32.totalorder %s10547_s15, 4 }
  0x1e   : > { %p99_p6 = scmp.eq.s32.totalorder %s98_s19, 0  ;;  %s15121_s20 = sand.u32 1, %s10547_s15  }
  0x1f   : > { %s10696_s21 = sand.u32 1, %s10515_s29   ;;  %p10704_p7 = pnand %p15120_p5, %p110_p4 }
  0x20   : > { %s10699_s22 = scalar_select %p99_p6, %s10515_s29, %s101_s18  }
  0x21   : > { %s8971_s23 = smul.u32 192, %s10696_s21  ;;  %s15303_s2 = sld [smem:[#allocation142_spill]] }
  0x22   : > { %15301 = sst [smem:[#allocation23_spill]] %s10699_s22  ;;  %s8972_s25 = smul.u32 3072, %s10539_s13 }
  0x23   : > { %s15302_s24 = scalar_select %p10704_p7, 1, 0 }
  0x24   : > { %s323_s19 = scalar_lea.vmem [#allocation5], %s8971_s23  ;;  %s10718_s22 = scalar_lea.sflag [#allocation6], %s15121_s20 }
  0x25   : > { %s330_s18 = sshll.u32 %s323_s19, 4  ;;  %p10724_p9 = pneg %p10704_p7  ;;  %s10714_s18 = int_to_ptr.vmem [resolvable:$true] %s330_s18 }
  0x27   : > { %s10712_s16 = scalar_lea.hbm %s15303_s2, %s8972_s25  ;;  %s10272_s23 = scalar_lea.hbm %s15303_s2, 6144 }
  0x28   : > { %s10267_s29 = scalar_lea.hbm %s10712_s16, 3072  ;;  %p10273_p12 = scmp.lt.u32.totalorder %s10712_s16, %s15303_s2 }
  0x29   : > { %p10268_p8 = scmp.ne.s32.totalorder %s10712_s16, %s10267_s29  ;;  %p10274_p13 = scmp.lt.u32.totalorder %s10272_s23, %s10267_s29 }
  0x2a   : > { %p10276_p4 = scmp.lt.u32.totalorder %s10267_s29, %s10712_s16 }
  0x2b   : > { %p10270_p10 = pnand %p10724_p9, %p10268_p8  ;;  %p10275_p2 = por %p10274_p13, %p10273_p12 }
  0x2d   : > { %p10271_p11 = pneg %p10270_p10  ;;  %p10277_p6 = por %p10276_p4, %p10275_p2 }
  0x2f   : > { %p10278_p5 = pnand %p10277_p6, %p10271_p11 }
  0x31   : > { %10281 = shalt.err (!%p10278_p5)
}
  0x32   : > { %s10282_s20 = scalar_lea.vmem %s10714_s18, 3072  ;;  %s10549_s8 = smov [#allocation5]  }
  0x33   : > { %p10283_p8 = scmp.ne.s32.totalorder %s10714_s18, %s10282_s20  ;;  %s10287_s25 = sshll.u32 %s10549_s8, 4  ;;  %s10288_s25 = int_to_ptr.vmem [resolvable:$false] %s10287_s25 }
  0x34   : > { %s10289_s26 = scalar_lea.vmem %s10288_s25, 6144  ;;  %p10290_p0 = scmp.lt.s32.totalorder %s10714_s18, %s10288_s25 }
  0x35   : > { %p10285_p10 = pnand %p10283_p8, %p10724_p9  ;;  %p10291_p1 = scmp.lt.s32.totalorder %s10289_s26, %s10282_s20 }
  0x37   : > { %p10286_p3 = pneg %p10285_p10  ;;  %p10292_p12 = por %p10291_p1, %p10290_p0 }
  0x39   : > { %p10293_p13 = pnand %p10292_p12, %p10286_p3 }
  0x3b   : > { %10296 = shalt.err (!%p10293_p13)
}
  0x3c   : > { %s10550_s29 = smov 192   ;;  %s10551_s23 = smov 12  }
  0x3d   : > { %8992 = dma.hbm_to_vmem [thread:$0]  (!%p10704_p7), %s10712_s16, 3072, %s10714_s18, %s10718_s22, %s10550_s29, %s10550_s29, %s10551_s23  }
  0x3e   : > { %p7717_p5 = scmp.ge.s32.totalorder %s10547_s15, 1  ;;  %p407_p0 = scmp.lt.s32.totalorder %s10547_s15, 5 }
  0x3f   : > { %s15124_s20 = sshll.u32 %s10696_s21, 8  ;;  %s7896_s8 = sshll.u32 %s10539_s13, 12 }
  0x40   : > { %p10751_p1 = pnand %p7717_p5, %p407_p0  ;;  %s371_s25 = scalar_lea.vmem [#allocation8], %s15124_s20 }
  0x41   : > { %s378_s26 = sshll.u32 %s371_s25, 4  ;;  %s15306_s5 = sld [smem:[#allocation144_spill]]  ;;  %s10765_s26 = int_to_ptr.vmem [resolvable:$true] %s378_s26 }
  0x42   : > { %s15305_s19 = scalar_select %p10751_p1, 1, 0 }
  0x43   : > { %s15307_s16 = sand.u32 1, %s10547_s15  }
  0x44   : > { %s10769_s18 = scalar_lea.sflag [#allocation9], %s15307_s16 }
  0x47   : > { %s10763_s4 = scalar_lea.hbm %s15306_s5, %s7896_s8  ;;  %s10302_s2 = scalar_lea.hbm %s15306_s5, 8192 }
  0x48   : > { %s10297_s29 = scalar_lea.hbm %s10763_s4, 4096  ;;  %p10303_p4 = scmp.lt.u32.totalorder %s10763_s4, %s15306_s5 }
  0x49   : > { %p10298_p3 = scmp.ne.s32.totalorder %s10763_s4, %s10297_s29  ;;  %p10304_p6 = scmp.lt.u32.totalorder %s10302_s2, %s10297_s29 }
  0x4a   : > { %p10306_p10 = scmp.lt.u32.totalorder %s10297_s29, %s10763_s4 }
  0x4b   : > { %p10300_p11 = pnand %p10298_p3, %p10724_p9  ;;  %p10305_p8 = por %p10304_p6, %p10303_p4 }
  0x4d   : > { %p10301_p2 = pneg %p10300_p11  ;;  %p10307_p12 = por %p10306_p10, %p10305_p8 }
  0x4f   : > { %p10308_p13 = pnand %p10307_p12, %p10301_p2 }
  0x51   : > { %10311 = shalt.err (!%p10308_p13)
}
  0x52   : > { %s10312_s16 = scalar_lea.vmem %s10765_s26, 4096  ;;  %s10552_s23 = smov [#allocation8]  }
  0x53   : > { %p10313_p5 = scmp.ne.s32.totalorder %s10765_s26, %s10312_s16  ;;  %s10317_s25 = sshll.u32 %s10552_s23, 4  ;;  %s10318_s25 = int_to_ptr.vmem [resolvable:$false] %s10317_s25 }
  0x54   : > { %s10319_s20 = scalar_lea.vmem %s10318_s25, 8192  ;;  %p10320_p11 = scmp.lt.s32.totalorder %s10765_s26, %s10318_s25 }
  0x55   : > { %p10315_p0 = pnand %p10313_p5, %p10724_p9  ;;  %p10321_p1 = scmp.lt.s32.totalorder %s10319_s20, %s10312_s16 }
  0x57   : > { %p10316_p3 = pneg %p10315_p0  ;;  %p10322_p4 = por %p10321_p1, %p10320_p11 }
  0x59   : > { %p10323_p6 = pnand %p10322_p4, %p10316_p3 }
  0x5b   : > { %10326 = shalt.err (!%p10323_p6)
}
  0x5c   : > { %s10553_s29 = smov 256   ;;  %s10554_s2 = smov 16  }
  0x5d   : > { %8998 = dma.hbm_to_vmem [thread:$0]  (!%p10704_p7), %s10763_s4, 4096, %s10765_s26, %s10769_s18, %s10553_s29, %s10553_s29, %s10554_s2  }
  0x5e   : > { %s10798_s23 = scalar_lea.hbm %s15114_s6, %s7896_s8  ;;  %s15308_s25 = sshll.u32 %s10696_s21, 8 }
  0x5f   : > { %s392_s20 = scalar_lea.vmem [#allocation10], %s15308_s25  ;;  %s10805_s1 = sadd.s32 4294967295, %s10547_s15  }
  0x60   : > { %s399_s5 = sshll.u32 %s392_s20, 4  ;;  %15309 = sst [smem:[#allocation24_spill]] %s10805_s1  ;;  %s10802_s5 = int_to_ptr.vmem [resolvable:$true] %s399_s5 }
  0x61   : > { %s7701_s4 = sadd.s32 4294967294, %s10547_s15   ;;  %s42_s26 = sadd.s32 1, %s10543_s14 }
  0x62   : > { %s49_s29 = sadd.s32 1, %s10527_s10  ;;  %p15310_p1 = scmp.ne.s32.totalorder %s15299_s17, 0 }
  0x63   : > { %p56_p2 = scmp.ne.s32.totalorder %s10527_s10, %s10523_s9  ;;  %p62_p8 = scmp.ne.s32.totalorder %s10523_s9, %s10519_s30 }
  0x64   : > { %s15762_s26 = smov (!%p15310_p1, %s42_s26), %s10543_s14  ;;  %p63_p12 = scmp.eq.s32.totalorder %s10805_s1, 0 }
  0x65   : > { %p44_p10 = scmp.ge.s32.totalorder %s15762_s26, 2  ;;  %p15311_p13 = scmp.eq.s32.totalorder %s10547_s15, 0 }
  0x66   : > { %p263_p0 = scmp.eq.s32.totalorder %s10805_s1, 3  ;;  %p10830_p3 = por %p63_p12, %p62_p8 }
  0x67   : > { %p10820_p5 = por %p15311_p13, %p56_p2  ;;  %s15764_s26 = smov (%p44_p10, %s15762_s26), 0 }
  0x68   : > { %15313 = sst [smem:[#allocation25_spill]] %s15764_s26  ;;  %p15316_p11 = scmp.ne.s32.totalorder %s10511_s28, %s10507_s27 }
  0x69   : > { %s15314_s17 = scalar_select %p10830_p3, 1, 0 }
  0x6a   : > { %p10837_p4 = por %p15316_p11, %p63_p12  ;;  %s46_s7 = ssub.s32 %s10543_s14, %s15764_s26 }
  0x6b   : > { %15315 = sst [smem:[#allocation26_spill]] %s15314_s17  ;;  %p10843_p6 = por %p263_p0, %p56_p2 }
  0x6c   : > { %s15317_s2 = scalar_select %p10837_p4, 1, 0 }
  0x6d   : > { %s15318_s16 = scalar_select %p10843_p6, 1, 0 }
  0x6e   : > { %p47_p1 = scmp.eq.s32.totalorder %s46_s7, 0  ;;  %p269_p10 = scmp.eq.s32.totalorder %s7701_s4, 3 }
  0x6f   : > { %s292_s25 = sand.u32 1, %s10527_s10   ;;  %s7894_s20 = sshll.u32 %s10543_s14, 11 }
  0x70   : > { %s10850_s11 = scalar_select %p47_p1, %s10527_s10, %s49_s29  }
  0x71   : > { %p10855_p13 = por %p269_p10, %p62_p8  ;;  %s7704_s27 = sshll.u32 %s292_s25, 7 }
  0x72   : > { %15319 = sst [smem:[#allocation27_spill]] %s10850_s11  ;;  %s15321_s0 = sld [smem:[#allocation140_spill]] }
  0x73   : > { %s15320_s1 = scalar_select %p10855_p13, 1, 0 }
  0x74   : > { %p15322_p2 = scmp.lt.s32.totalorder %s10547_s15, 4  ;;  %s296_s29 = scalar_lea.vmem [#allocation2], %s7704_s27 }
  0x75   : > { %s303_s7 = sshll.u32 %s296_s29, 4  ;;  %s7708_s14 = sshll.u32 %s10696_s21, 6  ;;  %s10872_s7 = int_to_ptr.vmem [resolvable:$true] %s303_s7 }
  0x76   : > { %p10868_p12 = pnand %p15322_p2, %p10820_p5  ;;  %s10875_s28 = scalar_lea.sflag [#allocation3], %s292_s25 }
  0x78   : > { %s10862_s26 = scalar_lea.hbm %s15321_s0, %s7894_s20  ;;  %p10329_p0 = pneg %p10868_p12 }
  0x79   : > { %s10327_s17 = scalar_lea.hbm %s10862_s26, 2048  ;;  %s10332_s11 = scalar_lea.hbm %s15321_s0, 4096 }
  0x7a   : > { %p10328_p8 = scmp.ne.s32.totalorder %s10862_s26, %s10327_s17  ;;  %p10333_p1 = scmp.lt.u32.totalorder %s10862_s26, %s15321_s0 }
  0x7b   : > { %p10334_p10 = scmp.lt.u32.totalorder %s10332_s11, %s10327_s17  ;;  %p10336_p13 = scmp.lt.u32.totalorder %s10327_s17, %s10862_s26 }
  0x7c   : > { %p10330_p11 = pnand %p10329_p0, %p10328_p8 }
  0x7d   : > { %p10335_p2 = por %p10334_p10, %p10333_p1 }
  0x7e   : > { %p10331_p5 = pneg %p10330_p11 }
  0x7f   : > { %p10337_p6 = por %p10336_p13, %p10335_p2 }
  0x81   : > { %p10338_p4 = pnand %p10337_p6, %p10331_p5 }
  0x83   : > { %10341 = shalt.err (!%p10338_p4)
}
  0x84   : > { %s10342_s25 = scalar_lea.vmem %s10872_s7, 2048  ;;  %s10555_s29 = smov [#allocation2]  }
  0x85   : > { %p10343_p8 = scmp.ne.s32.totalorder %s10872_s7, %s10342_s25  ;;  %s10347_s8 = sshll.u32 %s10555_s29, 4  ;;  %s10348_s8 = int_to_ptr.vmem [resolvable:$false] %s10347_s8 }
  0x86   : > { %s10349_s10 = scalar_lea.vmem %s10348_s8, 4096  ;;  %p10350_p7 = scmp.lt.s32.totalorder %s10872_s7, %s10348_s8 }
  0x87   : > { %p10345_p11 = pnand %p10343_p8, %p10329_p0  ;;  %p10351_p1 = scmp.lt.s32.totalorder %s10349_s10, %s10342_s25 }
  0x89   : > { %p10346_p3 = pneg %p10345_p11  ;;  %p10352_p10 = por %p10351_p1, %p10350_p7 }
  0x8b   : > { %p10353_p13 = pnand %p10352_p10, %p10346_p3 }
  0x8d   : > { %10356 = shalt.err (!%p10353_p13)
}
  0x8e   : > { %s10556_s11 = smov 128   ;;  %s10557_s17 = smov 8  }
  0x8f   : > { %8989 = dma.hbm_to_vmem [thread:$0]  (!%p10868_p12), %s10862_s26, 2048, %s10872_s7, %s10875_s28, %s10556_s11, %s10556_s11, %s10557_s17  }
  0x90   : > { %s7895_s20 = sshll.u32 %s10539_s13, 10  ;;  %s344_s25 = scalar_lea.vmem [#allocation7], %s7708_s14 }
  0x91   : > { %s10907_s8 = scalar_lea.hbm %s15111_s3, %s7895_s20  ;;  %s351_s10 = sshll.u32 %s344_s25, 4  ;;  %s10911_s10 = int_to_ptr.vmem [resolvable:$true] %s351_s10 }
  0x92   : > { %s10357_s0 = scalar_lea.hbm %s10907_s8, 1024  ;;  %s10362_s7 = scalar_lea.hbm %s15111_s3, 2048 }
  0x93   : > { %p10358_p7 = scmp.ne.s32.totalorder %s10907_s8, %s10357_s0  ;;  %p10363_p6 = scmp.lt.u32.totalorder %s10907_s8, %s15111_s3 }
  0x94   : > { %p10364_p12 = scmp.lt.u32.totalorder %s10362_s7, %s10357_s0  ;;  %p10366_p5 = scmp.lt.u32.totalorder %s10357_s0, %s10907_s8 }
  0x95   : > { %p10360_p3 = pnand %p10358_p7, %p10724_p9 }
  0x96   : > { %p10365_p0 = por %p10364_p12, %p10363_p6 }
  0x97   : > { %p10361_p4 = pneg %p10360_p3 }
  0x98   : > { %p10367_p2 = por %p10366_p5, %p10365_p0 }
  0x9a   : > { %p10368_p8 = pnand %p10367_p2, %p10361_p4 }
  0x9c   : > { %10371 = shalt.err (!%p10368_p8)
}
  0x9d   : > { %s10372_s14 = scalar_lea.vmem %s10911_s10, 1024  ;;  %s10558_s21 = smov [#allocation7]  }
  0x9e   : > { %p10373_p11 = scmp.ne.s32.totalorder %s10911_s10, %s10372_s14  ;;  %s10377_s17 = sshll.u32 %s10558_s21, 4  ;;  %s10378_s17 = int_to_ptr.vmem [resolvable:$false] %s10377_s17 }
  0x9f   : > { %s10379_s20 = scalar_lea.vmem %s10378_s17, 2048  ;;  %p10380_p13 = scmp.lt.s32.totalorder %s10911_s10, %s10378_s17 }
  0xa0   : > { %p10375_p1 = pnand %p10373_p11, %p10724_p9  ;;  %p10381_p7 = scmp.lt.s32.totalorder %s10379_s20, %s10372_s14 }
  0xa2   : > { %p10376_p10 = pneg %p10375_p1  ;;  %p10382_p3 = por %p10381_p7, %p10380_p13 }
  0xa4   : > { %p10383_p6 = pnand %p10382_p3, %p10376_p10 }
  0xa6   : > { %10386 = shalt.err (!%p10383_p6)
}
  0xa7   : > { %s10559_s0 = smov 64   ;;  %s10560_s27 = smov 4  }
  0xa8   : > { %p15324_p4 = scmp.ne.s32.totalorder %s15302_s24, 0  ;;  %s10387_s29 = scalar_lea.hbm %s10798_s23, 4096 }
  0xa9   : > { %p10388_p12 = scmp.ne.s32.totalorder %s10798_s23, %s10387_s29  ;;  %s10392_s4 = scalar_lea.hbm %s15114_s6, 8192 }
  0xaa   : > { %8995 = dma.hbm_to_vmem [thread:$0]  (!%p15324_p4), %s10907_s8, 1024, %s10911_s10, %s10718_s22, %s10559_s0, %s10559_s0, %s10560_s27  }
  0xab   : > { %p10390_p0 = pnand %p10388_p12, %p10724_p9  ;;  %p10393_p2 = scmp.lt.u32.totalorder %s10798_s23, %s15114_s6 }
  0xac   : > { %p10394_p8 = scmp.lt.u32.totalorder %s10392_s4, %s10387_s29  ;;  %p10396_p1 = scmp.lt.u32.totalorder %s10387_s29, %s10798_s23 }
  0xad   : > { %p10391_p5 = pneg %p10390_p0 }
  0xae   : > { %p10395_p11 = por %p10394_p8, %p10393_p2 }
  0xb0   : > { %p10397_p10 = por %p10396_p1, %p10395_p11 }
  0xb2   : > { %p10398_p13 = pnand %p10397_p10, %p10391_p5 }
  0xb4   : > { %10401 = shalt.err (!%p10398_p13)
}
  0xb5   : > { %s10402_s22 = scalar_lea.vmem %s10802_s5, 4096  ;;  %s10561_s8 = smov [#allocation10]  }
  0xb6   : > { %p10403_p7 = scmp.ne.s32.totalorder %s10802_s5, %s10402_s22  ;;  %s10407_s10 = sshll.u32 %s10561_s8, 4  ;;  %s10408_s10 = int_to_ptr.vmem [resolvable:$false] %s10407_s10 }
  0xb7   : > { %s10409_s11 = scalar_lea.vmem %s10408_s10, 8192  ;;  %p10410_p12 = scmp.lt.s32.totalorder %s10802_s5, %s10408_s10 }
  0xb8   : > { %p10405_p3 = pnand %p10403_p7, %p10724_p9  ;;  %p10411_p0 = scmp.lt.s32.totalorder %s10409_s11, %s10402_s22 }
  0xba   : > { %p10406_p6 = pneg %p10405_p3  ;;  %p10412_p2 = por %p10411_p0, %p10410_p12 }
  0xbc   : > { %p10413_p8 = pnand %p10412_p2, %p10406_p6 }
  0xbe   : > { %10416 = shalt.err (!%p10413_p8)
}
  0xbf   : > { %9001 = dma.hbm_to_vmem [thread:$0]  (!%p15324_p4), %s10798_s23, 4096, %s10802_s5, %s10769_s18, %s10559_s0, %s10559_s0, %s10560_s27  }
  0xc0   : > { %p15325_p9 = scmp.ne.s32.totalorder %s15305_s19, 0 }
  0xc2   : > { %411 = sbr.rel (%p15325_p9) target bundleno = 7594 (0x1daa), region = 52 }
  0xc9   : > { %s15326_s12 = sld [smem:[#allocation26_spill]]  ;;  %s10966_s14 = sand.u32 1, %s10523_s9  }
  0xca   : > { %s7718_s21 = sshll.u32 %s10966_s14, 7  ;;  %s414_s17 = scalar_lea.sflag [#allocation3], %s10966_s14 }
  0xcb   : > { %s10970_s20 = scalar_lea.vmem [#allocation2], %s7718_s21 }
  0xcf   : > { %p15327_p5 = scmp.ne.s32.totalorder %s15326_s12, 0 }
  0xd1   : > { %10490 = dma.done.wait (%p15327_p5), %s414_s17, 2048  }
  0xd2   : > { %10492 = vsyncadd (%p15327_p5), %s414_s17, 4294965248  ;;  %s15328_s24 = sld [smem:[#allocation24_spill]]  ;;  %s15329_s5 = sld [smem:[#allocation16_spill]] }
  0xd3   : > { %p15330_p4 = scmp.ne.s32.totalorder %s15317_s2, 0 }
  0xd8   : > { %s422_s19 = sand.u32 1, %s15328_s24   ;;  %s424_s18 = sand.u32 1, %s15329_s5  }
  0xd9   : > { %s8973_s23 = smul.u32 192, %s424_s18  ;;  %s423_s0 = scalar_lea.sflag [#allocation6], %s422_s19 }
  0xdb   : > { %s10978_s27 = scalar_lea.vmem [#allocation5], %s8973_s23 }
  0xdc   : > { %10494 = dma.done.wait (%p15330_p4), %s423_s0, 4096  }
  0xdd   : > { %10496 = vsyncadd (%p15330_p4), %s423_s0, 4294963200  ;;  %s7719_s29 = sshll.u32 %s424_s18, 6  ;;  %s7720_s25 = sshll.u32 %s424_s18, 8 }
  0xde   : > { %s10984_s26 = scalar_lea.vmem [#allocation7], %s7719_s29  ;;  %s441_s4 = scalar_lea.sflag [#allocation9], %s422_s19 }
  0xdf   : > { %s10986_s7 = scalar_lea.vmem [#allocation8], %s7720_s25 }
  0xe0   : > { %10498 = dma.done.wait (%p15330_p4), %s441_s4, 8192  }
  0xe1   : > { %10500 = vsyncadd (%p15330_p4), %s441_s4, 4294959104  ;;  %s15331_s28 = sld [smem:[#allocation19_spill]]  ;;  %s15332_s11 = sld [smem:[#allocation141_spill]] }
  0xe2   : > { %s15333_s5 = sld [smem:[#allocation143_spill]]  ;;  %s11004_s18 = scalar_lea.vmem [#allocation10], %s7720_s25 }
  0xe3   : > { %s11006_s23 = scalar_lea.vmem [#allocation11], %s7718_s21 }
  0xe7   : > { %p512_p11 = scmp.lt.s32.totalorder %s15331_s28, 1  ;;  %p7723_p1 = scmp.ne.s32.totalorder %s15331_s28, 0 }
  0xe8   : > { %v523_v0 = vld [vmem:[%s10970_s20] sm:$0xff] (!%p7723_p1)  ;;  %v524_v1 = vld [vmem:[%s10970_s20 + $0x8] sm:$0xff] (!%p7723_p1)  ;;  %v525_v2 = vld [vmem:[%s10970_s20 + $0x10] sm:$0xff] (!%p7723_p1) }
  0xe9   : > { %s10994_s22 = scalar_select %p512_p11, %s15331_s28, 1 }
  0xea   : > { %522 = sbr.rel (%p7723_p1) target bundleno = 242 (0xf2), region = 76  ;;  %539 = vst [vmem:[%s11006_s23] sm:$0xff] (!%p7723_p1), %v523_v0  ;;  %540 = vst [vmem:[%s11006_s23 + $0x8] sm:$0xff] (!%p7723_p1), %v524_v1  ;;  %v526_v3 = vld [vmem:[%s10970_s20 + $0x18] sm:$0xff] (!%p7723_p1)  ;;  %v527_v4 = vld [vmem:[%s10970_s20 + $0x20] sm:$0xff] (!%p7723_p1) }
  0xeb   : > { %s514_s12 = scalar_lea.vmem %s15332_s11, %s10994_s22  ;;  %s517_s19 = scalar_lea.vmem %s15333_s5, %s10994_s22  ;;  %541 = vst [vmem:[%s11006_s23 + $0x10] sm:$0xff] (!%p7723_p1), %v525_v2  ;;  %v528_v5 = vld [vmem:[%s10970_s20 + $0x28] sm:$0xff] (!%p7723_p1)  ;;  %542 = vst [vmem:[%s11006_s23 + $0x18] sm:$0xff] (!%p7723_p1), %v526_v3  ;;  %v529_v6 = vld [vmem:[%s10970_s20 + $0x30] sm:$0xff] (!%p7723_p1) }
  0xec   : > { %543 = vst [vmem:[%s11006_s23 + $0x20] sm:$0xff] (!%p7723_p1), %v527_v4  ;;  %544 = vst [vmem:[%s11006_s23 + $0x28] sm:$0xff] (!%p7723_p1), %v528_v5  ;;  %v530_v7 = vld [vmem:[%s10970_s20 + $0x38] sm:$0xff] (!%p7723_p1)  ;;  %v531_v8 = vld [vmem:[%s10970_s20 + $0x40] sm:$0xff] (!%p7723_p1) }
  0xed   : > { %545 = vst [vmem:[%s11006_s23 + $0x30] sm:$0xff] (!%p7723_p1), %v529_v6  ;;  %546 = vst [vmem:[%s11006_s23 + $0x38] sm:$0xff] (!%p7723_p1), %v530_v7  ;;  %v532_v9 = vld [vmem:[%s10970_s20 + $0x48] sm:$0xff] (!%p7723_p1)  ;;  %v533_v10 = vld [vmem:[%s10970_s20 + $0x50] sm:$0xff] (!%p7723_p1) }
  0xee   : > { %547 = vst [vmem:[%s11006_s23 + $0x40] sm:$0xff] (!%p7723_p1), %v531_v8  ;;  %v534_v11 = vld [vmem:[%s10970_s20 + $0x58] sm:$0xff] (!%p7723_p1)  ;;  %548 = vst [vmem:[%s11006_s23 + $0x48] sm:$0xff] (!%p7723_p1), %v532_v9  ;;  %v535_v12 = vld [vmem:[%s10970_s20 + $0x60] sm:$0xff] (!%p7723_p1) }
  0xef   : > { %549 = vst [vmem:[%s11006_s23 + $0x50] sm:$0xff] (!%p7723_p1), %v533_v10  ;;  %550 = vst [vmem:[%s11006_s23 + $0x58] sm:$0xff] (!%p7723_p1), %v534_v11  ;;  %v536_v13 = vld [vmem:[%s10970_s20 + $0x68] sm:$0xff] (!%p7723_p1)  ;;  %v537_v14 = vld [vmem:[%s10970_s20 + $0x70] sm:$0xff] (!%p7723_p1) }
  0xf0   : > { %551 = vst [vmem:[%s11006_s23 + $0x60] sm:$0xff] (!%p7723_p1), %v535_v12  ;;  %552 = vst [vmem:[%s11006_s23 + $0x68] sm:$0xff] (!%p7723_p1), %v536_v13  ;;  %v538_v15 = vld [vmem:[%s10970_s20 + $0x78] sm:$0xff] (!%p7723_p1) }
  0xf1   : > { %553 = vst [vmem:[%s11006_s23 + $0x70] sm:$0xff] %v537_v14  ;;  %554 = vst [vmem:[%s11006_s23 + $0x78] sm:$0xff] %v538_v15 }
  0xf2 PF: > { %v555_v16 = vld [vmem:[%s11006_s23] sm:$0xff]  ;;  %v556_v18 = vld [vmem:[%s11006_s23 + $0x8] sm:$0xff]  ;;  %vm1240_vm0 = vcmask 130048   ;;  %s10563_s0 = smov 112   ;;  %s10566_s29 = smov 80  }
  0xf3   : > { %v557_v17 = vld [vmem:[%s11006_s23 + $0x10] sm:$0xff]  ;;  %572 = vadd.xlane.f32.xlu0 %v555_v16  ;;  %v558_v19 = vld [vmem:[%s11006_s23 + $0x18] sm:$0xff]  ;;  %v9397_v33 = vld [vmem:[%s10978_s27] ss:$12 sps:$4 sm:$0xff]   ;;  %s10567_s25 = smov 64   ;;  %s10568_s4 = smov 48  }
  0xf4   : > { %576 = vadd.xlane.f32.xlu1 %v557_v17  ;;  %v559_v20 = vld [vmem:[%s11006_s23 + $0x20] sm:$0xff]  ;;  %v560_v21 = vld [vmem:[%s11006_s23 + $0x28] sm:$0xff]  ;;  %s10569_s28 = smov 32   ;;  %s10570_s8 = smov 16  }
  0xf5   : > { %v11048_v22 = vld [vmem:[%s11006_s23 + $0x30] sm:$0xff]  ;;  %v11051_v23 = vld [vmem:[%s11006_s23 + $0x38] sm:$0xff]  ;;  %v9404_v14 = vld [vmem:[%s10978_s27 + $0x20] ss:$12 sps:$4 sm:$0xff]   ;;  %s15739_s22 = sld [smem:[#allocation19_spill]] }
  0xf6   : > { %v11054_v24 = vld [vmem:[%s11006_s23 + $0x40] sm:$0xff]  ;;  %v11057_v25 = vld [vmem:[%s11006_s23 + $0x48] sm:$0xff] }
  0xf7   : > { %574 = vadd.xlane.f32.xlu0 %v556_v18  ;;  %v11062_v26 = vld [vmem:[%s11006_s23 + $0x50] sm:$0xff]  ;;  %v11065_v27 = vld [vmem:[%s11006_s23 + $0x58] sm:$0xff] }
  0xf8   : > { %578 = vadd.xlane.f32.xlu1 %v558_v19  ;;  %v11070_v28 = vld [vmem:[%s11006_s23 + $0x60] sm:$0xff]  ;;  %v11073_v29 = vld [vmem:[%s11006_s23 + $0x68] sm:$0xff]  ;;  %v11078_v30 = vld [vmem:[%s11006_s23 + $0x70] sm:$0xff] }
  0xf9   : > { %v11081_v31 = vld [vmem:[%s11006_s23 + $0x78] sm:$0xff]  ;;  %v9395_v32 = vld [vmem:[%s10978_s27 + $0x4] ss:$12 sps:$4 sm:$0xff]   ;;  %v9400_v35 = vld [vmem:[%s10978_s27 + $0x8] ss:$12 sps:$4 sm:$0xff]  }
  0xfa   : > { %v9398_v34 = vld [vmem:[%s10978_s27 + $0x1c] ss:$12 sps:$4 sm:$0xff]   ;;  %939 = vmatprep.subr.bf16.mxu0 %v9395_v32  ;;  %8315 = vmatprep.subr.bf16.mxu1 %v9400_v35  ;;  %v9401_v36 = vld [vmem:[%s10978_s27 + $0x18] ss:$12 sps:$4 sm:$0xff]   ;;  %v9402_v13 = vld [vmem:[%s10978_s27 + $0x34] ss:$12 sps:$4 sm:$0xff]  }
  0xfb   : > { %580 = vadd.xlane.f32.xlu0 %v559_v20  ;;  %940 = vmatpush1.bf16.msra.mxu0 %v9397_v33  ;;  %v9406_v33 = vld [vmem:[%s10978_s27 + $0x4c] ss:$12 sps:$4 sm:$0xff]   ;;  %p7886_p10 = scmp.eq.s32.totalorder %s15739_s22, 1 }
  0xfc   : > { %582 = vadd.xlane.f32.xlu1 %v560_v21  ;;  %941 = vmatprep.subr.bf16.mxu0 %v9398_v34  ;;  %v9408_v34 = vld [vmem:[%s10978_s27 + $0x38] ss:$12 sps:$4 sm:$0xff]  }
  0xfd   : > { %8316 = vmatpush3.bf16.msra.mxu1 %v9400_v35  ;;  %v9409_v35 = vld [vmem:[%s10978_s27 + $0x48] ss:$12 sps:$4 sm:$0xff]  }
  0xfe   : > { %8317 = vmatprep.subr.bf16.mxu1 %v9404_v14 }
  0xff   : > { %584 = vadd.xlane.f32.xlu0 %v11048_v22  ;;  %942 = vmatpush1.bf16.msra.mxu0 %v9401_v36 }
 0x100   : > { %586 = vadd.xlane.f32.xlu1 %v11051_v23  ;;  %943 = vmatprep.subr.bf16.mxu0 %v9402_v13 }
 0x101   : > { %8318 = vmatpush3.bf16.msra.mxu1 %v9404_v14 }
 0x102   : > { %8319 = vmatprep.subr.bf16.mxu1 %v9408_v34 }
 0x103   : > { %588 = vadd.xlane.f32.xlu0 %v11054_v24 }
 0x104   : > { %590 = vadd.xlane.f32.xlu1 %v11057_v25 }
 0x105   : > { %8320 = vmatpush3.bf16.msra.mxu1 %v9408_v34 }
 0x107   : > { %592 = vadd.xlane.f32.xlu0 %v11062_v26 }
 0x108   : > { %594 = vadd.xlane.f32.xlu1 %v11065_v27 }
 0x10b   : > { %596 = vadd.xlane.f32.xlu0 %v11070_v28 }
 0x10c   : > { %598 = vadd.xlane.f32.xlu1 %v11073_v29 }
 0x10f   : > { %600 = vadd.xlane.f32.xlu0 %v11078_v30 }
 0x110   : > { %602 = vadd.xlane.f32.xlu1 %v11081_v31 }
 0x180   : > { %v573_v37 = vpop.xlane.xlu0 %572 }
 0x181   : > { %v577_v38 = vpop.xlane.xlu1 %576  ;;  %v605_v39 = vmul.f32 0.0078125, %v573_v37 }
 0x182   : > { %v607_v40 = vmul.f32 0.0078125, %v577_v38 }
 0x183   : > { %v11092_v41 = vsub.f32 %v555_v16, %v605_v39 }
 0x184   : > { %v11094_v42 = vsub.f32 %v557_v17, %v607_v40  ;;  %v575_v43 = vpop.xlane.xlu0 %574 }
 0x185   : > { %v579_v44 = vpop.xlane.xlu1 %578  ;;  %v606_v45 = vmul.f32 0.0078125, %v575_v43  ;;  %v637_v46 = vmul.f32 %v11092_v41, %v11092_v41 }
 0x186   : > { %v608_v47 = vmul.f32 0.0078125, %v579_v44  ;;  %v639_v48 = vmul.f32 %v11094_v42, %v11094_v42  ;;  %v9410_v44 = vld [vmem:[%s10978_s27 + $0x64] ss:$12 sps:$4 sm:$0xff]  }
 0x187   : > { %653 = vadd.xlane.f32.xlu0 %v637_v46  ;;  %v11100_v49 = vsub.f32 %v556_v18, %v606_v45  ;;  %v9405_v18 = vld [vmem:[%s10978_s27 + $0x30] ss:$12 sps:$4 sm:$0xff]   ;;  %v9413_v45 = vld [vmem:[%s10978_s27 + $0x60] ss:$12 sps:$4 sm:$0xff]  }
 0x188   : > { %v11102_v50 = vsub.f32 %v558_v19, %v608_v47  ;;  %v581_v51 = vpop.xlane.xlu0 %580  ;;  %944 = vmatpush1.bf16.msra.mxu0 %v9405_v18 }
 0x189   : > { %v583_v52 = vpop.xlane.xlu1 %582  ;;  %v609_v53 = vmul.f32 0.0078125, %v581_v51  ;;  %v638_v54 = vmul.f32 %v11100_v49, %v11100_v49  ;;  %945 = vmatprep.subr.bf16.mxu0 %v9406_v33  ;;  %v9414_v51 = vld [vmem:[%s10978_s27 + $0x7c] ss:$12 sps:$4 sm:$0xff]  }
 0x18a   : > { %v610_v55 = vmul.f32 0.0078125, %v583_v52  ;;  %v640_v56 = vmul.f32 %v11102_v50, %v11102_v50  ;;  %v9416_v52 = vld [vmem:[%s10978_s27 + $0x68] ss:$12 sps:$4 sm:$0xff]  }
 0x18b   : > { %657 = vadd.xlane.f32.xlu0 %v639_v48  ;;  %655 = vadd.xlane.f32.xlu1 %v638_v54  ;;  %v11108_v57 = vsub.f32 %v559_v20, %v609_v53  ;;  %v9417_v53 = vld [vmem:[%s10978_s27 + $0x78] ss:$12 sps:$4 sm:$0xff]   ;;  %v9420_v54 = vld [vmem:[%s10978_s27 + $0x80] ss:$12 sps:$4 sm:$0xff]  }
 0x18c   : > { %v11110_v58 = vsub.f32 %v560_v21, %v610_v55  ;;  %v585_v59 = vpop.xlane.xlu0 %584  ;;  %946 = vmatpush1.bf16.msra.mxu0 %v9409_v35  ;;  %v9421_v55 = vld [vmem:[%s10978_s27 + $0x90] ss:$12 sps:$4 sm:$0xff]  }
 0x18d   : > { %v587_v60 = vpop.xlane.xlu1 %586  ;;  %v611_v61 = vmul.f32 0.0078125, %v585_v59  ;;  %v641_v62 = vmul.f32 %v11108_v57, %v11108_v57  ;;  %947 = vmatprep.subr.bf16.mxu0 %v9410_v44  ;;  %v9424_v59 = vld [vmem:[%s10978_s27 + $0x98] ss:$12 sps:$4 sm:$0xff]  }
 0x18e   : > { %v612_v63 = vmul.f32 0.0078125, %v587_v60  ;;  %v642_v0 = vmul.f32 %v11110_v58, %v11110_v58  ;;  %v9425_v60 = vld [vmem:[%s10978_s27 + $0xa8] ss:$12 sps:$4 sm:$0xff]  }
 0x18f   : > { %659 = vadd.xlane.f32.xlu1 %v640_v56  ;;  %661 = vadd.xlane.f32.xlu0 %v641_v62  ;;  %v11117_v1 = vsub.f32 %v11048_v22, %v611_v61  ;;  %v9422_v56 = vld [vmem:[%s10978_s27 + $0xac] ss:$12 sps:$4 sm:$0xff]   ;;  %v9426_v61 = vld [vmem:[%s10978_s27 + $0xb0] ss:$12 sps:$4 sm:$0xff]   ;;  %v15138_v62 = vmov 0  }
 0x190   : > { %v11120_v2 = vsub.f32 %v11051_v23, %v612_v63  ;;  %v589_v3 = vpop.xlane.xlu0 %588  ;;  %948 = vmatpush1.bf16.msra.mxu0 %v9413_v45  ;;  %971 = vmatprep.mubr.bf16.mxu0 %v15138_v62 }
 0x191   : > { %v591_v4 = vpop.xlane.xlu1 %590  ;;  %v613_v5 = vmul.f32 0.0078125, %v589_v3  ;;  %v643_v6 = vmul.f32 %v11117_v1, %v11117_v1  ;;  %949 = vmatprep.subr.bf16.mxu0 %v9414_v51 }
 0x192   : > { %v614_v7 = vmul.f32 0.0078125, %v591_v4  ;;  %v644_v8 = vmul.f32 %v11120_v2, %v11120_v2 }
 0x193   : > { %663 = vadd.xlane.f32.xlu1 %v642_v0  ;;  %665 = vadd.xlane.f32.xlu0 %v643_v6  ;;  %v11127_v9 = vsub.f32 %v11054_v24, %v613_v5 }
 0x194   : > { %v11130_v10 = vsub.f32 %v11057_v25, %v614_v7  ;;  %v593_v11 = vpop.xlane.xlu0 %592  ;;  %950 = vmatpush1.bf16.msra.mxu0 %v9417_v53 }
 0x195   : > { %v595_v12 = vpop.xlane.xlu1 %594  ;;  %v615_v15 = vmul.f32 0.0078125, %v593_v11  ;;  %v645_v16 = vmul.f32 %v11127_v9, %v11127_v9 }
 0x196   : > { %v616_v17 = vmul.f32 0.0078125, %v595_v12  ;;  %v646_v19 = vmul.f32 %v11130_v10, %v11130_v10 }
 0x197   : > { %667 = vadd.xlane.f32.xlu1 %v644_v8  ;;  %669 = vadd.xlane.f32.xlu0 %v645_v16  ;;  %v11140_v20 = vsub.f32 %v11062_v26, %v615_v15 }
 0x198   : > { %v11143_v21 = vsub.f32 %v11065_v27, %v616_v17  ;;  %v597_v22 = vpop.xlane.xlu0 %596 }
 0x199   : > { %v599_v23 = vpop.xlane.xlu1 %598  ;;  %v617_v24 = vmul.f32 0.0078125, %v597_v22  ;;  %v647_v25 = vmul.f32 %v11140_v20, %v11140_v20 }
 0x19a   : > { %v618_v32 = vmul.f32 0.0078125, %v599_v23  ;;  %v648_v26 = vmul.f32 %v11143_v21, %v11143_v21 }
 0x19b   : > { %671 = vadd.xlane.f32.xlu1 %v646_v19  ;;  %673 = vadd.xlane.f32.xlu0 %v647_v25  ;;  %v11153_v27 = vsub.f32 %v11070_v28, %v617_v24  ;;  %v9412_v28 = vld [vmem:[%s10978_s27 + $0x50] ss:$12 sps:$4 sm:$0xff]  }
 0x19c   : > { %v11156_v36 = vsub.f32 %v11073_v29, %v618_v32  ;;  %v601_v37 = vpop.xlane.xlu0 %600  ;;  %8321 = vmatprep.subr.bf16.mxu1 %v9412_v28 }
 0x19d   : > { %v603_v38 = vpop.xlane.xlu1 %602  ;;  %v619_v39 = vmul.f32 0.0078125, %v601_v37  ;;  %v649_v40 = vmul.f32 %v11153_v27, %v11153_v27  ;;  %8322 = vmatpush3.bf16.msra.mxu1 %v9412_v28 }
 0x19e   : > { %v620_v43 = vmul.f32 0.0078125, %v603_v38  ;;  %v650_v29 = vmul.f32 %v11156_v36, %v11156_v36  ;;  %8323 = vmatprep.subr.bf16.mxu1 %v9416_v52 }
 0x19f   : > { %675 = vadd.xlane.f32.xlu1 %v648_v26  ;;  %677 = vadd.xlane.f32.xlu0 %v649_v40  ;;  %v11166_v46 = vsub.f32 %v11078_v30, %v619_v39 }
 0x1a0   : > { %v11169_v47 = vsub.f32 %v11081_v31, %v620_v43  ;;  %v9418_v31 = vld [vmem:[%s10978_s27 + $0x94] ss:$12 sps:$4 sm:$0xff]   ;;  %s10565_s27 = smov 96  }
 0x1a1   : > { %v651_v48 = vmul.f32 %v11166_v46, %v11166_v46  ;;  %8324 = vmatpush3.bf16.msra.mxu1 %v9416_v52  ;;  %951 = vmatprep.subr.bf16.mxu0 %v9418_v31  ;;  %v11192_v43 = vld [vmem:[%s514_s12] ss:$0 sm:$0xff] }
 0x1a2   : > { %v652_v30 = vmul.f32 %v11169_v47, %v11169_v47  ;;  %8325 = vmatprep.subr.bf16.mxu1 %v9420_v54  ;;  %952 = vmatpush1.bf16.msra.mxu0 %v9421_v55 }
 0x1a3   : > { %679 = vadd.xlane.f32.xlu1 %v650_v29  ;;  %681 = vadd.xlane.f32.xlu0 %v651_v48 }
 0x1a4   : > { %953 = vmatprep.subr.bf16.mxu0 %v9422_v56 }
 0x1a5   : > { %8326 = vmatpush3.bf16.msra.mxu1 %v9420_v54 }
 0x1a6   : > { %8327 = vmatprep.subr.bf16.mxu1 %v9424_v59  ;;  %954 = vmatpush1.bf16.msra.mxu0 %v9425_v60 }
 0x1a7   : > { %683 = vadd.xlane.f32.xlu1 %v652_v30 }
 0x1a9   : > { %8328 = vmatpush3.bf16.msra.mxu1 %v9424_v59 }
 0x1aa   : > { %8329 = vmatprep.subr.bf16.mxu1 %v9426_v61 }
 0x1ad   : > { %8330 = vmatpush3.bf16.msra.mxu1 %v9426_v61 }
 0x214   : > { %v654_v63 = vpop.xlane.xlu0 %653 }
 0x215   : > { %v685_v0 = vmul.f32 0.0078125, %v654_v63 }
 0x217   : > { %v701_v3 = vadd.f32 1e-05, %v685_v0 }
 0x218   : > { %v656_v4 = vpop.xlane.xlu1 %655  ;;  %v658_v5 = vpop.xlane.xlu0 %657 }
 0x219   : > { %9515 = vrsqrt.f32 %v701_v3  ;;  %v686_v6 = vmul.f32 0.0078125, %v656_v4  ;;  %v687_v7 = vmul.f32 0.0078125, %v658_v5 }
 0x21b   : > { %v702_v8 = vadd.f32 1e-05, %v686_v6  ;;  %v703_v11 = vadd.f32 1e-05, %v687_v7 }
 0x21c   : > { %v660_v12 = vpop.xlane.xlu1 %659  ;;  %v662_v13 = vpop.xlane.xlu0 %661 }
 0x21d   : > { %9517 = vrsqrt.f32 %v702_v8  ;;  %v688_v14 = vmul.f32 0.0078125, %v660_v12  ;;  %v689_v15 = vmul.f32 0.0078125, %v662_v13 }
 0x21e   : > { %9519 = vrsqrt.f32 %v703_v11 }
 0x21f   : > { %v704_v16 = vadd.f32 1e-05, %v688_v14  ;;  %v705_v17 = vadd.f32 1e-05, %v689_v15 }
 0x220   : > { %v664_v18 = vpop.xlane.xlu1 %663  ;;  %v666_v19 = vpop.xlane.xlu0 %665 }
 0x221   : > { %9521 = vrsqrt.f32 %v704_v16  ;;  %v690_v22 = vmul.f32 0.0078125, %v664_v18  ;;  %v691_v23 = vmul.f32 0.0078125, %v666_v19 }
 0x222   : > { %9523 = vrsqrt.f32 %v705_v17 }
 0x223   : > { %v9516_v24 = vpop.eup %9515  ;;  %v706_v25 = vadd.f32 1e-05, %v690_v22  ;;  %v707_v32 = vadd.f32 1e-05, %v691_v23 }
 0x224   : > { %v668_v33 = vpop.xlane.xlu1 %667  ;;  %v670_v34 = vpop.xlane.xlu0 %669  ;;  %v733_v37 = vmul.f32 %v9516_v24, %v11092_v41 }
 0x225   : > { %9525 = vrsqrt.f32 %v706_v25  ;;  %v692_v35 = vmul.f32 0.0078125, %v668_v33  ;;  %v693_v26 = vmul.f32 0.0078125, %v670_v34 }
 0x226   : > { %9527 = vrsqrt.f32 %v707_v32  ;;  %v755_v41 = vmul.f32 %v11192_v43, %v733_v37 }
 0x227   : > { %v9518_v38 = vpop.eup %9517  ;;  %v708_v39 = vadd.f32 1e-05, %v692_v35  ;;  %v709_v40 = vadd.f32 1e-05, %v693_v26 }
 0x228   : > { %v9520_v44 = vpop.eup %9519  ;;  %v672_v28 = vpop.xlane.xlu1 %671  ;;  %v734_v29 = vmul.f32 %v9518_v38, %v11100_v49 }
 0x229   : > { %v674_v45 = vpop.xlane.xlu0 %673  ;;  %9529 = vrsqrt.f32 %v708_v39  ;;  %v694_v48 = vmul.f32 0.0078125, %v672_v28  ;;  %v735_v53 = vmul.f32 %v9520_v44, %v11094_v42 }
 0x22a   : > { %v695_v51 = vmul.f32 0.0078125, %v674_v45  ;;  %9531 = vrsqrt.f32 %v709_v40  ;;  %v756_v52 = vmul.f32 %v11192_v43, %v734_v29 }
 0x22b   : > { %v9522_v30 = vpop.eup %9521  ;;  %v710_v31 = vadd.f32 1e-05, %v694_v48  ;;  %v757_v0 = vmul.f32 %v11192_v43, %v735_v53 }
 0x22c   : > { %v711_v54 = vadd.f32 1e-05, %v695_v51  ;;  %v9524_v55 = vpop.eup %9523  ;;  %v676_v56 = vpop.xlane.xlu1 %675  ;;  %v771_v60 = vpack.c.bf16 %v756_v52, %v755_v41  ;;  %v736_v61 = vmul.f32 %v9522_v30, %v11102_v50 }
 0x22d   : > { %v678_v59 = vpop.xlane.xlu0 %677  ;;  %9533 = vrsqrt.f32 %v710_v31  ;;  %v696_v49 = vmul.f32 0.0078125, %v676_v56  ;;  %v737_v42 = vmul.f32 %v9524_v55, %v11108_v57 }
 0x22e   : > { %v697_v63 = vmul.f32 0.0078125, %v678_v59  ;;  %9535 = vrsqrt.f32 %v711_v54  ;;  %972 = vmatmul.mubr.bf16.vlgmr.msra.gmra.mrb[0].mxu0 %v771_v60  ;;  %8331 = vmatprep.mubr.bf16.mxu1 %v771_v60  ;;  %v758_v3 = vmul.f32 %v11192_v43, %v736_v61 }
 0x22f   : > { %v9526_v4 = vpop.eup %9525  ;;  %v712_v5 = vadd.f32 1e-05, %v696_v49  ;;  %981 = vmatprep.mubr.bf16.mxu0 %v15138_v62  ;;  %v759_v15 = vmul.f32 %v11192_v43, %v737_v42 }
 0x230   : > { %v713_v6 = vadd.f32 1e-05, %v697_v63  ;;  %v9528_v7 = vpop.eup %9527  ;;  %v680_v8 = vpop.xlane.xlu1 %679  ;;  %v772_v11 = vpack.c.bf16 %v758_v3, %v757_v0  ;;  %v738_v12 = vmul.f32 %v9526_v4, %v11110_v58 }
 0x231   : > { %v682_v50 = vpop.xlane.xlu0 %681  ;;  %9537 = vrsqrt.f32 %v712_v5  ;;  %v698_v13 = vmul.f32 0.0078125, %v680_v8  ;;  %v739_v16 = vmul.f32 %v9528_v7, %v11117_v1 }
 0x232   : > { %v699_v14 = vmul.f32 0.0078125, %v682_v50  ;;  %9539 = vrsqrt.f32 %v713_v6  ;;  %8332 = vmatmul.mubr.bf16.vlgmr.msra.gmra.mrb[0].mxu1 %v772_v11  ;;  %v760_v57 = vmul.f32 %v11192_v43, %v738_v12 }
 0x233   : > { %v9530_v17 = vpop.eup %9529  ;;  %v714_v18 = vadd.f32 1e-05, %v698_v13  ;;  %v761_v32 = vmul.f32 %v11192_v43, %v739_v16 }
 0x234   : > { %v715_v19 = vadd.f32 1e-05, %v699_v14  ;;  %v9532_v22 = vpop.eup %9531  ;;  %v684_v23 = vpop.xlane.xlu1 %683  ;;  %v773_v24 = vpack.c.bf16 %v760_v57, %v759_v15  ;;  %v740_v25 = vmul.f32 %v9530_v17, %v11120_v2 }
 0x235   : > { %9541 = vrsqrt.f32 %v714_v18  ;;  %v700_v58 = vmul.f32 0.0078125, %v684_v23  ;;  %v741_v34 = vmul.f32 %v9532_v22, %v11127_v9 }
 0x236   : > { %9543 = vrsqrt.f32 %v715_v19  ;;  %982 = vmatmul.mubr.bf16.gmra.mrb[4].mxu0 %v772_v11  ;;  %8335 = vmatprep.mubr.bf16.mxu1 %v773_v24  ;;  %v762_v33 = vmul.f32 %v11192_v43, %v740_v25 }
 0x237   : > { %v9534_v1 = vpop.eup %9533  ;;  %v716_v35 = vadd.f32 1e-05, %v700_v58  ;;  %991 = vmatprep.mubr.bf16.mxu0 %v15138_v62  ;;  %v763_v2 = vmul.f32 %v11192_v43, %v741_v34 }
 0x238   : > { %v9536_v26 = vpop.eup %9535  ;;  %v774_v37 = vpack.c.bf16 %v762_v33, %v761_v32  ;;  %v742_v38 = vmul.f32 %v9534_v1, %v11130_v10 }
 0x239   : > { %9545 = vrsqrt.f32 %v716_v35  ;;  %v743_v40 = vmul.f32 %v9536_v26, %v11140_v20 }
 0x23a   : > { %8336 = vmatmul.mubr.bf16.gmra.mrb[4].mxu1 %v774_v37  ;;  %v764_v39 = vmul.f32 %v11192_v43, %v742_v38 }
 0x23b   : > { %v9538_v44 = vpop.eup %9537  ;;  %v765_v29 = vmul.f32 %v11192_v43, %v743_v40 }
 0x23c   : > { %v9540_v28 = vpop.eup %9539  ;;  %v775_v45 = vpack.c.bf16 %v764_v39, %v763_v2  ;;  %v744_v9 = vmul.f32 %v9538_v44, %v11143_v21 }
 0x23d   : > { %v745_v10 = vmul.f32 %v9540_v28, %v11153_v27 }
 0x23e   : > { %992 = vmatmul.mubr.bf16.gmra.mrb[8].mxu0 %v773_v24  ;;  %8339 = vmatprep.mubr.bf16.mxu1 %v775_v45  ;;  %v766_v48 = vmul.f32 %v11192_v43, %v744_v9 }
 0x23f   : > { %v9542_v51 = vpop.eup %9541  ;;  %1001 = vmatprep.mubr.bf16.mxu0 %v15138_v62  ;;  %v767_v53 = vmul.f32 %v11192_v43, %v745_v10 }
 0x240   : > { %v9544_v41 = vpop.eup %9543  ;;  %v776_v52 = vpack.c.bf16 %v766_v48, %v765_v29  ;;  %v746_v20 = vmul.f32 %v9542_v51, %v11156_v36 }
 0x241   : > { %v747_v30 = vmul.f32 %v9544_v41, %v11166_v46 }
 0x242   : > { %8340 = vmatmul.mubr.bf16.gmra.mrb[8].mxu1 %v776_v52  ;;  %v768_v21 = vmul.f32 %v11192_v43, %v746_v20 }
 0x243   : > { %v9546_v31 = vpop.eup %9545  ;;  %v769_v27 = vmul.f32 %v11192_v43, %v747_v30 }
 0x244   : > { %v777_v54 = vpack.c.bf16 %v768_v21, %v767_v53  ;;  %v748_v55 = vmul.f32 %v9546_v31, %v11169_v47 }
 0x246   : > { %1002 = vmatmul.mubr.bf16.gmra.mrb[12].mxu0 %v774_v37  ;;  %8343 = vmatprep.mubr.bf16.mxu1 %v777_v54  ;;  %v770_v56 = vmul.f32 %v11192_v43, %v748_v55 }
 0x247   : > { %1011 = vmatprep.mubr.bf16.mxu0 %v15138_v62 }
 0x248   : > { %v778_v36 = vpack.c.bf16 %v770_v56, %v769_v27 }
 0x24a   : > { %8344 = vmatmul.mubr.bf16.gmra.mrb[12].mxu1 %v778_v36 }
 0x24e   : > { %1012 = vmatmul.mubr.bf16.gmra.mrb[16].mxu0 %v775_v45 }
 0x24f   : > { %1021 = vmatprep.mubr.bf16.mxu0 %v15138_v62 }
 0x256   : > { %1022 = vmatmul.mubr.bf16.gmra.mrb[20].mxu0 %v776_v52 }
 0x257   : > { %1031 = vmatprep.mubr.bf16.mxu0 %v15138_v62 }
 0x25e   : > { %1032 = vmatmul.mubr.bf16.gmra.mrb[24].mxu0 %v777_v54 }
 0x25f   : > { %1041 = vmatprep.mubr.bf16.mxu0 %v15138_v62 }
 0x266   : > { %1042 = vmatmul.mubr.bf16.gmra.mrb[28].mxu0 %v778_v36 }
 0x301   : > { %v973_v46 = vpop.f32.mrb[0].mxu0 }
 0x302   : > { %v975_v47 = vpop.f32.mrb[1].mxu0  ;;  %v1149_v60 = vmul.f32 0.25, %v973_v46 }
 0x303   : > { %v977_v59 = vpop.f32.mrb[2].mxu0 }
 0x304   : > { %v1150_v61 = vmul.f32 0.25, %v977_v59  ;;  %v979_v43 = vpop.f32.mrb[3].mxu0 }
 0x305   : > { %v11232_v49 = vpack.c.bf16 %v979_v43, %v975_v47  ;;  %v8333_v63 = vpop.f32.mrb[0].mxu1 }
 0x306   : > { %v11234_v0 = vpack.c.bf16 %v1150_v61, %v1149_v60  ;;  %v1086_v3 = vpop.f32.mrb[1].mxu1 }
 0x307   : > { %1667 = vrot.lane.b32.xlu0 %v11232_v49, %s10563_s0  ;;  %v8334_v42 = vpop.f32.mrb[2].mxu1  ;;  %8907 = vmatprep.subr.msk.bf16.mxu0 %vm1240_vm0, %v11232_v49  ;;  %v1266_v4 = vsel %vm1240_vm0, %v11232_v49, 0 }
 0x308   : > { %v11242_v5 = vpack.c.bf16 %v8334_v42, %v8333_v63  ;;  %v1089_v6 = vpop.f32.mrb[3].mxu1  ;;  %8348 = vmatpush3.bf16.xpose.msra.mxu0 %v1266_v4  ;;  %8363 = vmatprep.mubr.msk.bf16.mxu0 %vm1240_vm0, %v11234_v0 }
 0x309   : > { %v11246_v7 = vpack.c.bf16 %v1089_v6, %v1086_v3  ;;  %v983_v8 = vpop.f32.mrb[4].mxu0 }
 0x30a   : > { %v985_v50 = vpop.f32.mrb[5].mxu0  ;;  %v1151_v12 = vmul.f32 0.25, %v983_v8 }
 0x30b   : > { %v987_v11 = vpop.f32.mrb[6].mxu0  ;;  %8379 = vmatprep.subr.bf16.mxu1 %v11246_v7 }
 0x30c   : > { %v1152_v13 = vmul.f32 0.25, %v987_v11  ;;  %v989_v14 = vpop.f32.mrb[7].mxu0  ;;  %8380 = vmatpush3.bf16.msra.mxu1 %v11246_v7 }
 0x30d   : > { %v11250_v15 = vpack.c.bf16 %v989_v14, %v985_v50  ;;  %v8337_v57 = vpop.f32.mrb[4].mxu1  ;;  %8381 = vmatprep.subr.bf16.mxu1 %v11242_v5 }
 0x30e   : > { %v11253_v16 = vpack.c.bf16 %v1152_v13, %v1151_v12  ;;  %v1102_v17 = vpop.f32.mrb[5].mxu1 }
 0x30f   : > { %1669 = vrot.lane.b32.xlu1 %v11250_v15, %s10563_s0  ;;  %v8338_v18 = vpop.f32.mrb[6].mxu1  ;;  %8908 = vmatprep.subr.msk.bf16.mxu0 %vm1240_vm0, %v11250_v15  ;;  %v1269_v19 = vsel %vm1240_vm0, %v11250_v15, 0 }
 0x310   : > { %v11261_v22 = vpack.c.bf16 %v8338_v18, %v8337_v57  ;;  %v1105_v23 = vpop.f32.mrb[7].mxu1  ;;  %8350 = vmatpush3.bf16.xpose.msra.mxu0 %v1269_v19  ;;  %8382 = vmatpush3.bf16.msra.mxu1 %v11242_v5 }
 0x311   : > { %v11264_v24 = vpack.c.bf16 %v1105_v23, %v1102_v17  ;;  %v993_v25 = vpop.f32.mrb[8].mxu0 }
 0x312   : > { %v995_v58 = vpop.f32.mrb[9].mxu0  ;;  %v1153_v33 = vmul.f32 0.25, %v993_v25 }
 0x313   : > { %v997_v32 = vpop.f32.mrb[10].mxu0  ;;  %8383 = vmatprep.subr.bf16.mxu1 %v11264_v24 }
 0x314   : > { %v1154_v34 = vmul.f32 0.25, %v997_v32  ;;  %v999_v1 = vpop.f32.mrb[11].mxu0  ;;  %8384 = vmatpush3.bf16.msra.mxu1 %v11264_v24 }
 0x315   : > { %v11268_v35 = vpack.c.bf16 %v999_v1, %v995_v58  ;;  %v8341_v26 = vpop.f32.mrb[8].mxu1  ;;  %8385 = vmatprep.subr.bf16.mxu1 %v11261_v22 }
 0x316   : > { %v11271_v37 = vpack.c.bf16 %v1154_v34, %v1153_v33  ;;  %v1118_v38 = vpop.f32.mrb[9].mxu1 }
 0x317   : > { %15335 = vst [vmem:[#allocation28_spill] sm:$0xff] %v11268_v35  ;;  %v8342_v2 = vpop.f32.mrb[10].mxu1  ;;  %8909 = vmatprep.subr.msk.bf16.mxu0 %vm1240_vm0, %v11268_v35  ;;  %v1272_v39 = vsel %vm1240_vm0, %v11268_v35, 0 }
 0x318   : > { %v11277_v40 = vpack.c.bf16 %v8342_v2, %v8341_v26  ;;  %v1121_v44 = vpop.f32.mrb[11].mxu1  ;;  %8352 = vmatpush3.bf16.xpose.msra.mxu0 %v1272_v39  ;;  %8386 = vmatpush3.bf16.msra.mxu1 %v11261_v22 }
 0x319   : > { %v11280_v28 = vpack.c.bf16 %v1121_v44, %v1118_v38  ;;  %v1003_v45 = vpop.f32.mrb[12].mxu0 }
 0x31a   : > { %15336 = vst [vmem:[#allocation29_spill] sm:$0xff] %v11277_v40  ;;  %v1005_v9 = vpop.f32.mrb[13].mxu0  ;;  %v1155_v48 = vmul.f32 0.25, %v1003_v45 }
 0x31b   : > { %15337 = vst [vmem:[#allocation30_spill] sm:$0xff] %v11280_v28  ;;  %v1007_v29 = vpop.f32.mrb[14].mxu0  ;;  %8387 = vmatprep.subr.bf16.mxu1 %v11280_v28 }
 0x31c   : > { %v1156_v10 = vmul.f32 0.25, %v1007_v29  ;;  %v1009_v51 = vpop.f32.mrb[15].mxu0  ;;  %8388 = vmatpush3.bf16.msra.mxu1 %v11280_v28 }
 0x31d   : > { %v11284_v41 = vpack.c.bf16 %v1009_v51, %v1005_v9  ;;  %v8345_v52 = vpop.f32.mrb[12].mxu1  ;;  %8389 = vmatprep.subr.bf16.mxu1 %v11277_v40  ;;  %v1189_v9 = vlaneseq }
 0x31e   : > { %v11287_v20 = vpack.c.bf16 %v1156_v10, %v1155_v48  ;;  %v1134_v53 = vpop.f32.mrb[13].mxu1 }
 0x31f   : > { %15338 = vst [vmem:[#allocation31_spill] sm:$0xff] %v11284_v41  ;;  %v8346_v21 = vpop.f32.mrb[14].mxu1  ;;  %8910 = vmatprep.subr.msk.bf16.mxu0 %vm1240_vm0, %v11284_v41  ;;  %v1275_v30 = vsel %vm1240_vm0, %v11284_v41, 0  ;;  %v11352_v29 = vshrl.u32 %v1189_v9, 7  ;;  %v11355_v10 = vand.u32 127, %v1189_v9 }
 0x320   : > { %v11293_v31 = vpack.c.bf16 %v8346_v21, %v8345_v52  ;;  %v1137_v54 = vpop.f32.mrb[15].mxu1  ;;  %8354 = vmatpush3.bf16.xpose.msra.mxu0 %v1275_v30  ;;  %8390 = vmatpush3.bf16.msra.mxu1 %v11277_v40 }
 0x321   : > { %v11296_v55 = vpack.c.bf16 %v1137_v54, %v1134_v53  ;;  %v1013_v27 = vpop.f32.mrb[16].mxu0  ;;  %v1192_v48 = vadd.s32 16, %v11352_v29  ;;  %v1193_v51 = vadd.s32 24, %v11352_v29  ;;  %v1191_v52 = vadd.s32 8, %v11352_v29 }
 0x322   : > { %15339 = vst [vmem:[#allocation32_spill] sm:$0xff] %v11293_v31  ;;  %v1015_v56 = vpop.f32.mrb[17].mxu0  ;;  %v1157_v46 = vmul.f32 0.25, %v1013_v27  ;;  %v10564_v53 = vmov -1e+30   ;;  %vm1208_vm3 = vcmp.ge.s32.totalorder %v11352_v29, %v11355_v10  ;;  %v1196_v30 = vadd.s32 48, %v11352_v29 }
 0x323   : > { %15340 = vst [vmem:[#allocation33_spill] sm:$0xff] %v11296_v55  ;;  %v1017_v36 = vpop.f32.mrb[18].mxu0  ;;  %8391 = vmatprep.subr.bf16.mxu1 %v11296_v55  ;;  %vm1210_vm1 = vcmp.ge.s32.totalorder %v1192_v48, %v11355_v10  ;;  %vm1211_vm2 = vcmp.ge.s32.totalorder %v1193_v51, %v11355_v10  ;;  %vm1209_vm4 = vcmp.ge.s32.totalorder %v1191_v52, %v11355_v10  ;;  %v1204_v51 = vadd.s32 112, %v11352_v29 }
 0x324   : > { %v1158_v47 = vmul.f32 0.25, %v1017_v36  ;;  %v1019_v59 = vpop.f32.mrb[19].mxu0  ;;  %8392 = vmatpush3.bf16.msra.mxu1 %v11296_v55  ;;  %v11362_v21 = vsel %vm1210_vm1, 0.0, %v10564_v53  ;;  %v11368_v27 = vsel %vm1211_vm2, 0.0, %v10564_v53  ;;  %vm1214_vm5 = vcmp.ge.s32.totalorder %v1196_v30, %v11355_v10 }
 0x325   : > { %v11300_v60 = vpack.c.bf16 %v1019_v59, %v1015_v56  ;;  %8393 = vmatprep.subr.bf16.mxu1 %v11293_v31  ;;  %vm1222_vm13 = vcmp.ge.s32.totalorder %v1204_v51, %v11355_v10  ;;  %vm5273_vm2 = vcmask 261120  }
 0x326   : > { %v11303_v61 = vpack.c.bf16 %v1158_v47, %v1157_v46  ;;  %v1197_v46 = vadd.s32 56, %v11352_v29  ;;  %v11376_v47 = vsel %vm1208_vm3, 0.0, %v10564_v53  ;;  %vm5290_vm3 = vcmask 392192  }
 0x327   : > { %15341 = vst [vmem:[#allocation34_spill] sm:$0xff] %v11300_v60  ;;  %8911 = vmatprep.subr.msk.bf16.mxu0 %vm1240_vm0, %v11300_v60  ;;  %v1278_v43 = vsel %vm1240_vm0, %v11300_v60, 0 }
 0x328   : > { %8356 = vmatpush3.bf16.xpose.msra.mxu0 %v1278_v43  ;;  %8394 = vmatpush3.bf16.msra.mxu1 %v11293_v31  ;;  %vm1215_vm6 = vcmp.ge.s32.totalorder %v1197_v46, %v11355_v10 }
 0x329   : > { %v1023_v63 = vpop.f32.mrb[20].mxu0 }
 0x32a   : > { %v1025_v3 = vpop.f32.mrb[21].mxu0  ;;  %v1159_v4 = vmul.f32 0.25, %v1023_v63 }
 0x32b   : > { %v1027_v42 = vpop.f32.mrb[22].mxu0 }
 0x32c   : > { %v1160_v6 = vmul.f32 0.25, %v1027_v42  ;;  %v1029_v8 = vpop.f32.mrb[23].mxu0  ;;  %v11385_v42 = vsel %vm1209_vm4, 0.0, %v10564_v53  ;;  %vm5307_vm4 = vcmask 523264  }
 0x32d   : > { %v11310_v50 = vpack.c.bf16 %v1029_v8, %v1025_v3  ;;  %v1194_v3 = vadd.s32 32, %v11352_v29  ;;  %v11394_v8 = vsel %vm1214_vm5, 0.0, %v10564_v53  ;;  %vm5324_vm5 = vcmask 654336  }
 0x32e   : > { %v11312_v11 = vpack.c.bf16 %v1160_v6, %v1159_v4  ;;  %v1195_v6 = vadd.s32 40, %v11352_v29 }
 0x32f   : > { %15342 = vst [vmem:[#allocation35_spill] sm:$0xff] %v11310_v50  ;;  %8912 = vmatprep.subr.msk.bf16.mxu0 %vm1240_vm0, %v11310_v50  ;;  %v1281_v12 = vsel %vm1240_vm0, %v11310_v50, 0  ;;  %vm1212_vm7 = vcmp.ge.s32.totalorder %v1194_v3, %v11355_v10 }
 0x330   : > { %8358 = vmatpush3.bf16.xpose.msra.mxu0 %v1281_v12  ;;  %vm1213_vm8 = vcmp.ge.s32.totalorder %v1195_v6, %v11355_v10  ;;  %v1202_v6 = vadd.s32 96, %v11352_v29 }
 0x331   : > { %v1033_v13 = vpop.f32.mrb[24].mxu0 }
 0x332   : > { %v1035_v14 = vpop.f32.mrb[25].mxu0  ;;  %v1161_v17 = vmul.f32 0.25, %v1033_v13  ;;  %v1200_v13 = vadd.s32 80, %v11352_v29  ;;  %vm1220_vm14 = vcmp.ge.s32.totalorder %v1202_v6, %v11355_v10 }
 0x333   : > { %v1037_v57 = vpop.f32.mrb[26].mxu0 }
 0x334   : > { %v1162_v18 = vmul.f32 0.25, %v1037_v57  ;;  %v1039_v19 = vpop.f32.mrb[27].mxu0  ;;  %v11403_v57 = vsel %vm1215_vm6, 0.0, %v10564_v53  ;;  %vm1218_vm9 = vcmp.ge.s32.totalorder %v1200_v13, %v11355_v10  ;;  %vm5341_vm6 = vcmask 785408  }
 0x335   : > { %v11318_v23 = vpack.c.bf16 %v1039_v19, %v1035_v14  ;;  %v1201_v19 = vadd.s32 88, %v11352_v29  ;;  %v11430_v9 = vsel %vm1218_vm9, 0.0, %v10564_v53 }
 0x336   : > { %v11320_v25 = vpack.c.bf16 %v1162_v18, %v1161_v17  ;;  %15344 = vst [vmem:[#allocation37_spill] sm:$0xff] %v11430_v9 }
 0x337   : > { %8913 = vmatprep.subr.msk.bf16.mxu0 %vm1240_vm0, %v11318_v23  ;;  %v1284_v58 = vsel %vm1240_vm0, %v11318_v23, 0  ;;  %vm1219_vm10 = vcmp.ge.s32.totalorder %v1201_v19, %v11355_v10 }
 0x338   : > { %8360 = vmatpush3.bf16.xpose.msra.mxu0 %v1284_v58  ;;  %v11412_v58 = vsel %vm1212_vm7, 0.0, %v10564_v53  ;;  %v11439_v30 = vsel %vm1219_vm10, 0.0, %v10564_v53  ;;  %vm5358_vm7 = vcmask 916480  }
 0x339   : > { %v1043_v32 = vpop.f32.mrb[28].mxu0  ;;  %15343 = vst [vmem:[#allocation36_spill] sm:$0xff] %v11412_v58  ;;  %15345 = vst [vmem:[#allocation38_spill] sm:$0xff] %v11439_v30 }
 0x33a   : > { %v1045_v33 = vpop.f32.mrb[29].mxu0  ;;  %v1163_v1 = vmul.f32 0.25, %v1043_v32 }
 0x33b   : > { %v1047_v34 = vpop.f32.mrb[30].mxu0 }
 0x33c   : > { %v1164_v26 = vmul.f32 0.25, %v1047_v34  ;;  %v1049_v38 = vpop.f32.mrb[31].mxu0 }
 0x33d   : > { %v11326_v2 = vpack.c.bf16 %v1049_v38, %v1045_v33 }
 0x33e   : > { %v11328_v39 = vpack.c.bf16 %v1164_v26, %v1163_v1  ;;  %v1198_v1 = vadd.s32 64, %v11352_v29  ;;  %v11421_v26 = vsel %vm1213_vm8, 0.0, %v10564_v53 }
 0x33f   : > { %8914 = vmatprep.subr.msk.bf16.mxu0 %vm1240_vm0, %v11326_v2  ;;  %v1287_v44 = vsel %vm1240_vm0, %v11326_v2, 0 }
 0x340   : > { %8362 = vmatpush3.bf16.xpose.msra.mxu0 %v1287_v44  ;;  %v1199_v44 = vadd.s32 72, %v11352_v29  ;;  %vm1216_vm11 = vcmp.ge.s32.totalorder %v1198_v1, %v11355_v10 }
 0x341   : > { %v11447_v46 = vsel %vm1216_vm11, 0.0, %v10564_v53 }
 0x342   : > { %vm1217_vm12 = vcmp.ge.s32.totalorder %v1199_v44, %v11355_v10  ;;  %15346 = vst [vmem:[#allocation39_spill] sm:$0xff] %v11447_v46  ;;  %v11475_v44 = vsel %vm1220_vm14, 0.0, %v10564_v53 }
 0x343   : > { %v11456_v13 = vsel %vm1217_vm12, 0.0, %v10564_v53  ;;  %15349 = vst [vmem:[#allocation42_spill] sm:$0xff] %v11475_v44 }
 0x344   : > { %15347 = vst [vmem:[#allocation40_spill] sm:$0xff] %v11456_v13 }
 0x347   : > { %8364 = vmatmul.mubr.msk.bf16.vlgmr.msra.gmra.mrb[32].mxu0 %vm1240_vm0, %v11253_v16 }
 0x348   : > { %8367 = vmatprep.mubr.msk.bf16.mxu0 %vm1240_vm0, %v11271_v37 }
 0x34f   : > { %8368 = vmatmul.mubr.msk.bf16.gmra.mrb[36].mxu0 %vm1240_vm0, %v11287_v20 }
 0x350   : > { %8371 = vmatprep.mubr.msk.bf16.mxu0 %vm1240_vm0, %v11303_v61 }
 0x357   : > { %8372 = vmatmul.mubr.msk.bf16.gmra.mrb[40].mxu0 %vm1240_vm0, %v11312_v11 }
 0x358   : > { %8375 = vmatprep.mubr.msk.bf16.mxu0 %vm1240_vm0, %v11320_v25 }
 0x35f   : > { %8376 = vmatmul.mubr.msk.bf16.gmra.mrb[44].mxu0 %vm1240_vm0, %v11328_v39 }
 0x379   : > { %v11348_v45 = vpop.permute.xlu0 %1667 }
 0x37a   : > { %8915 = vmatprep.subr.msk.bf16.mxu1 %vm1240_vm0, %v11348_v45 }
 0x41a   : > { %v8365_v54 = vpop.f32.mrb[32].mxu0 }
 0x41b   : > { %v11371_v56 = vadd.f32 %v8365_v54, %v11362_v21  ;;  %v1323_v36 = vpop.f32.mrb[33].mxu0 }
 0x41c   : > { %v8366_v59 = vpop.f32.mrb[34].mxu0  ;;  %v11388_v4 = vadd.f32 %v1323_v36, %v11376_v47 }
 0x41d   : > { %v11379_v43 = vadd.f32 %v8366_v59, %v11368_v27  ;;  %1390 = vmax.xlane.f32.xlu0 %v11371_v56  ;;  %v1326_v63 = vpop.f32.mrb[35].mxu0 }
 0x41e   : > { %v11397_v12 = vadd.f32 %v1326_v63, %v11385_v42 }
 0x41f   : > { %1392 = vmax.xlane.f32.xlu1 %v11379_v43 }
 0x421   : > { %1386 = vmax.xlane.f32.xlu0 %v11388_v4 }
 0x422   : > { %v8369_v14 = vpop.f32.mrb[36].mxu0 }
 0x423   : > { %v11406_v17 = vadd.f32 %v8369_v14, %v11394_v8  ;;  %v1339_v18 = vpop.f32.mrb[37].mxu0  ;;  %1388 = vmax.xlane.f32.xlu1 %v11397_v12 }
 0x424   : > { %v8370_v32 = vpop.f32.mrb[38].mxu0  ;;  %v11424_v38 = vadd.f32 %v1339_v18, %v11412_v58  ;;  %v11463_v18 = vsel %vm1222_vm13, 0.0, %v10564_v53 }
 0x425   : > { %v11415_v33 = vadd.f32 %v8370_v32, %v11403_v57  ;;  %v1342_v34 = vpop.f32.mrb[39].mxu0  ;;  %1398 = vmax.xlane.f32.xlu0 %v11406_v17  ;;  %15348 = vst [vmem:[#allocation41_spill] sm:$0xff] %v11463_v18 }
 0x426   : > { %v11433_v48 = vadd.f32 %v1342_v34, %v11421_v26 }
 0x427   : > { %1400 = vmax.xlane.f32.xlu1 %v11415_v33 }
 0x429   : > { %1394 = vmax.xlane.f32.xlu0 %v11424_v38 }
 0x42a   : > { %v8373_v52 = vpop.f32.mrb[40].mxu0 }
 0x42b   : > { %v11442_v54 = vadd.f32 %v8373_v52, %v11430_v9  ;;  %v1355_v36 = vpop.f32.mrb[41].mxu0  ;;  %1396 = vmax.xlane.f32.xlu1 %v11433_v48 }
 0x42c   : > { %v8374_v59 = vpop.f32.mrb[42].mxu0  ;;  %v11459_v14 = vadd.f32 %v1355_v36, %v11447_v46 }
 0x42d   : > { %v11450_v63 = vadd.f32 %v8374_v59, %v11439_v30  ;;  %v1358_v3 = vpop.f32.mrb[43].mxu0  ;;  %1406 = vmax.xlane.f32.xlu0 %v11442_v54  ;;  %v1205_v59 = vadd.s32 120, %v11352_v29 }
 0x42e   : > { %v11466_v19 = vadd.f32 %v1358_v3, %v11456_v13  ;;  %v1203_v3 = vadd.s32 104, %v11352_v29 }
 0x42f   : > { %1408 = vmax.xlane.f32.xlu1 %v11450_v63  ;;  %vm1223_vm15 = vcmp.ge.s32.totalorder %v1205_v59, %v11355_v10  ;;  %v11504_v59 = vpop.permute.xlu1 %1669 }
 0x430   : > { %v11490_v6 = vsel %vm1223_vm15, 0.0, %v10564_v53  ;;  %vm1221_vm1 = vcmp.ge.s32.totalorder %v1203_v3, %v11355_v10 }
 0x431   : > { %1402 = vmax.xlane.f32.xlu0 %v11459_v14  ;;  %15350 = vst [vmem:[#allocation43_spill] sm:$0xff] %v11490_v6 }
 0x432   : > { %v8377_v32 = vpop.f32.mrb[44].mxu0 }
 0x433   : > { %v11471_v34 = vadd.f32 %v8377_v32, %v11463_v18  ;;  %v1371_v1 = vpop.f32.mrb[45].mxu0  ;;  %1404 = vmax.xlane.f32.xlu1 %v11466_v19 }
 0x434   : > { %v8378_v51 = vpop.f32.mrb[46].mxu0  ;;  %v11479_v36 = vadd.f32 %v1371_v1, %v11475_v44  ;;  %v11497_v1 = vsel %vm1221_vm1, 0.0, %v10564_v53 }
 0x435   : > { %v1374_v52 = vpop.f32.mrb[47].mxu0  ;;  %1414 = vmax.xlane.f32.xlu0 %v11471_v34  ;;  %v11494_v32 = vadd.f32 %v8378_v51, %v11490_v6  ;;  %15351 = vst [vmem:[#allocation44_spill] sm:$0xff] %v11497_v1 }
 0x436   : > { %v11501_v62 = vadd.f32 %v1374_v52, %v11497_v1 }
 0x439   : > { %1410 = vmax.xlane.f32.xlu0 %v11479_v36 }
 0x444   : > { %1673 = vrot.lane.b32.xlu1 %v11284_v41, %s10563_s0 }
 0x44f   : > { %1671 = vrot.lane.b32.xlu0 %v11268_v35, %s10563_s0 }
 0x468   : > { %1416 = vmax.xlane.f32.xlu1 %v11494_v32 }
 0x46c   : > { %1412 = vmax.xlane.f32.xlu1 %v11501_v62 }
 0x4aa   : > { %v1391_v29 = vpop.xlane.xlu0 %1390 }
 0x4ab   : > { %v1420_v35 = vsub.f32 %v11371_v56, %v1391_v29 }
 0x4ac   : > { %v1393_v41 = vpop.xlane.xlu1 %1392 }
 0x4ad   : > { %v1438_v10 = vmul.f32 1.442695, %v1420_v35  ;;  %v1421_v51 = vsub.f32 %v11379_v43, %v1393_v41 }
 0x4ae   : > { %v1387_v3 = vpop.xlane.xlu0 %1386 }
 0x4af   : > { %9547 = vpow2.f32 %v1438_v10  ;;  %v1440_v53 = vmul.f32 1.442695, %v1421_v51  ;;  %v1418_v6 = vsub.f32 %v11388_v4, %v1387_v3 }
 0x4b0   : > { %v1389_v44 = vpop.xlane.xlu1 %1388 }
 0x4b1   : > { %9549 = vpow2.f32 %v1440_v53  ;;  %v1434_v52 = vmul.f32 1.442695, %v1418_v6  ;;  %v1419_v1 = vsub.f32 %v11397_v12, %v1389_v44 }
 0x4b2   : > { %v1399_v43 = vpop.xlane.xlu0 %1398 }
 0x4b3   : > { %9551 = vpow2.f32 %v1434_v52  ;;  %v1436_v18 = vmul.f32 1.442695, %v1419_v1  ;;  %v1424_v1 = vsub.f32 %v11406_v17, %v1399_v43 }
 0x4b5   : > { %9553 = vpow2.f32 %v1436_v18  ;;  %v1401_v18 = vpop.xlane.xlu1 %1400  ;;  %v1446_v51 = vmul.f32 1.442695, %v1424_v1 }
 0x4b6   : > { %v1395_v4 = vpop.xlane.xlu0 %1394  ;;  %v1425_v52 = vsub.f32 %v11415_v33, %v1401_v18 }
 0x4b7   : > { %v1422_v29 = vsub.f32 %v11424_v38, %v1395_v4  ;;  %9555 = vpow2.f32 %v1446_v51 }
 0x4b8   : > { %v1448_v30 = vmul.f32 1.442695, %v1425_v52 }
 0x4b9   : > { %v11510_v46 = vpop.eup %9547  ;;  %v1397_v6 = vpop.xlane.xlu1 %1396  ;;  %v1442_v13 = vmul.f32 1.442695, %v1422_v29 }
 0x4ba   : > { %1470 = vadd.xlane.f32.xlu0 %v11510_v46  ;;  %v1407_v12 = vpop.xlane.xlu0 %1406  ;;  %v1423_v3 = vsub.f32 %v11433_v48, %v1397_v6 }
 0x4bb   : > { %v11513_v35 = vpop.eup %9549  ;;  %9557 = vpow2.f32 %v1442_v13  ;;  %v1428_v58 = vsub.f32 %v11442_v54, %v1407_v12 }
 0x4bc   : > { %1472 = vadd.xlane.f32.xlu1 %v11513_v35 }
 0x4bd   : > { %v11516_v41 = vpop.eup %9551  ;;  %v1409_v53 = vpop.xlane.xlu1 %1408  ;;  %v1454_v48 = vmul.f32 1.442695, %v1428_v58 }
 0x4be   : > { %1466 = vadd.xlane.f32.xlu0 %v11516_v41  ;;  %v1403_v44 = vpop.xlane.xlu0 %1402  ;;  %v1429_v18 = vsub.f32 %v11450_v63, %v1409_v53 }
 0x4bf   : > { %v11519_v56 = vpop.eup %9553  ;;  %v1426_v4 = vsub.f32 %v11459_v14, %v1403_v44 }
 0x4c0   : > { %1468 = vadd.xlane.f32.xlu1 %v11519_v56 }
 0x4c1   : > { %v1405_v17 = vpop.xlane.xlu1 %1404  ;;  %v1450_v13 = vmul.f32 1.442695, %v1426_v4 }
 0x4c2   : > { %v1415_v10 = vpop.xlane.xlu0 %1414 }
 0x4c5   : > { %v11535_v6 = vpop.permute.xlu1 %1673 }
 0x4c6   : > { %v1411_v9 = vpop.xlane.xlu0 %1410 }
 0x4c7   : > { %v1430_v43 = vsub.f32 %v11479_v36, %v1411_v9 }
 0x4c9   : > { %v1458_v33 = vmul.f32 1.442695, %v1430_v43 }
 0x4ca   : > { %v1672_v52 = vpop.permute.xlu0 %1671 }
 0x4d1   : > { %1677 = vrot.lane.b32.xlu1 %v11310_v50, %s10563_s0  ;;  %v1444_v50 = vmul.f32 1.442695, %v1423_v3 }
 0x4d3   : > { %9559 = vpow2.f32 %v1444_v50 }
 0x4d4   : > { %1675 = vrot.lane.b32.xlu0 %v11300_v60, %s10563_s0  ;;  %v1432_v60 = vsub.f32 %v11471_v34, %v1415_v10  ;;  %9561 = vpow2.f32 %v1448_v30  ;;  %v11537_v34 = vpop.eup %9555  ;;  %v1427_v30 = vsub.f32 %v11466_v19, %v1405_v17 }
 0x4d5   : > { %v11540_v50 = vpop.eup %9557 }
 0x4d6   : > { %v1462_v38 = vmul.f32 1.442695, %v1432_v60  ;;  %v1456_v60 = vmul.f32 1.442695, %v1429_v18  ;;  %v1452_v44 = vmul.f32 1.442695, %v1427_v30 }
 0x4d8   : > { %9563 = vpow2.f32 %v1462_v38 }
 0x4d9   : > { %9565 = vpow2.f32 %v1454_v48 }
 0x4da   : > { %9567 = vpow2.f32 %v1458_v33 }
 0x4db   : > { %9569 = vpow2.f32 %v1450_v13 }
 0x4dc   : > { %9571 = vpow2.f32 %v1456_v60 }
 0x4dd   : > { %v11543_v58 = vpop.eup %9559 }
 0x4de   : > { %v11548_v63 = vpop.eup %9561 }
 0x4e2   : > { %v11551_v12 = vpop.eup %9563 }
 0x4e3   : > { %v11555_v19 = vpop.eup %9565 }
 0x4f3   : > { %1478 = vadd.xlane.f32.xlu0 %v11537_v34 }
 0x4f5   : > { %v1417_v9 = vpop.xlane.xlu1 %1416  ;;  %1474 = vadd.xlane.f32.xlu1 %v11540_v50 }
 0x4f6   : > { %v1433_v54 = vsub.f32 %v11494_v32, %v1417_v9  ;;  %v11558_v32 = vpop.eup %9567 }
 0x4f7   : > { %1476 = vadd.xlane.f32.xlu0 %v11543_v58  ;;  %v11561_v10 = vpop.eup %9569 }
 0x4f8   : > { %v1464_v14 = vmul.f32 1.442695, %v1433_v54  ;;  %v11564_v51 = vpop.eup %9571 }
 0x4f9   : > { %v1413_v36 = vpop.xlane.xlu1 %1412  ;;  %1480 = vadd.xlane.f32.xlu1 %v11548_v63 }
 0x4fa   : > { %9573 = vpow2.f32 %v1464_v14  ;;  %v1431_v1 = vsub.f32 %v11501_v62, %v1413_v36 }
 0x4fb   : > { %1494 = vadd.xlane.f32.xlu0 %v11551_v12  ;;  %9575 = vpow2.f32 %v1452_v44  ;;  %v1708_v44 = vsel %vm1240_vm0, %v11348_v45, 0 }
 0x4fc   : > { %v1460_v29 = vmul.f32 1.442695, %v1431_v1 }
 0x4fd   : > { %1486 = vadd.xlane.f32.xlu1 %v11555_v19 }
 0x4fe   : > { %9577 = vpow2.f32 %v1460_v29 }
 0x4ff   : > { %1490 = vadd.xlane.f32.xlu0 %v11558_v32 }
 0x501   : > { %1482 = vadd.xlane.f32.xlu1 %v11561_v10 }
 0x504   : > { %v11566_v62 = vpop.eup %9573 }
 0x505   : > { %1488 = vadd.xlane.f32.xlu1 %v11564_v51  ;;  %1496 = vadd.xlane.f32.xlu0 %v11566_v62  ;;  %v11570_v3 = vpop.eup %9575 }
 0x508   : > { %v11573_v53 = vpop.eup %9577 }
 0x509   : > { %1484 = vadd.xlane.f32.xlu1 %v11570_v3 }
 0x50d   : > { %1492 = vadd.xlane.f32.xlu1 %v11573_v53 }
 0x51b   : > { %1679 = vrot.lane.b32.xlu0 %v11318_v23, %s10563_s0 }
 0x51e   : > { %1681 = vrot.lane.b32.xlu1 %v11326_v2, %s10563_s0 }
 0x51f   : > { %1643 = vrot.lane.b32.xlu0 %v11234_v0, %s10563_s0 }
 0x522   : > { %1645 = vrot.lane.b32.xlu1 %v11253_v16, %s10563_s0 }
 0x523   : > { %1647 = vrot.lane.b32.xlu0 %v11271_v37, %s10563_s0 }
 0x526   : > { %1649 = vrot.lane.b32.xlu1 %v11287_v20, %s10563_s0 }
 0x527   : > { %1651 = vrot.lane.b32.xlu0 %v11303_v61, %s10563_s0 }
 0x52a   : > { %1653 = vrot.lane.b32.xlu1 %v11312_v11, %s10563_s0 }
 0x52b   : > { %1655 = vrot.lane.b32.xlu0 %v11320_v25, %s10563_s0 }
 0x52e   : > { %1657 = vrot.lane.b32.xlu1 %v11328_v39, %s10563_s0 }
 0x52f   : > { %1988 = vrot.lane.b32.xlu0 %v11246_v7, %s10563_s0 }
 0x532   : > { %1990 = vrot.lane.b32.xlu1 %v11242_v5, %s10563_s0 }
 0x533   : > { %1992 = vrot.lane.b32.xlu0 %v11264_v24, %s10563_s0 }
 0x536   : > { %1994 = vrot.lane.b32.xlu1 %v11261_v22, %s10563_s0 }
 0x537   : > { %1996 = vrot.lane.b32.xlu0 %v11280_v28, %s10563_s0 }
 0x53a   : > { %1998 = vrot.lane.b32.xlu1 %v11277_v40, %s10563_s0 }
 0x53b   : > { %2000 = vrot.lane.b32.xlu0 %v11296_v55, %s10563_s0 }
 0x53e   : > { %2002 = vrot.lane.b32.xlu1 %v11293_v31, %s10563_s0 }
 0x53f   : > { %2125 = vrot.lane.b32.xlu0 %v11232_v49, %s10565_s27 }
 0x542   : > { %2127 = vrot.lane.b32.xlu1 %v11250_v15, %s10565_s27 }
 0x547   : > { %v1471_v17 = vpop.xlane.xlu0 %1470 }
 0x549   : > { %v1473_v38 = vpop.xlane.xlu1 %1472 }
 0x54a   : > { %9579 = vrcp.f32 %v1473_v38 }
 0x54b   : > { %v1467_v43 = vpop.xlane.xlu0 %1466 }
 0x54c   : > { %9581 = vrcp.f32 %v1467_v43 }
 0x54d   : > { %9583 = vrcp.f32 %v1471_v17  ;;  %v1469_v48 = vpop.xlane.xlu1 %1468 }
 0x54e   : > { %9585 = vrcp.f32 %v1469_v48 }
 0x54f   : > { %v1676_v45 = vpop.permute.xlu0 %1675 }
 0x550   : > { %v1720_v1 = vsel %vm1240_vm0, %v1676_v45, 0 }
 0x554   : > { %v9580_v4 = vpop.eup %9579 }
 0x555   : > { %v1517_v60 = vmul.f32 %v9580_v4, %v11513_v35  ;;  %v1711_v35 = vsel %vm1240_vm0, %v11504_v59, 0 }
 0x556   : > { %v9582_v33 = vpop.eup %9581 }
 0x557   : > { %v9584_v18 = vpop.eup %9583  ;;  %v1514_v9 = vmul.f32 %v9582_v33, %v11516_v41  ;;  %v1714_v41 = vsel %vm1240_vm0, %v1672_v52, 0 }
 0x558   : > { %v9586_v13 = vpop.eup %9585  ;;  %v1516_v54 = vmul.f32 %v9584_v18, %v11510_v46  ;;  %v1717_v46 = vsel %vm1240_vm0, %v11535_v6, 0 }
 0x559   : > { %v1515_v30 = vmul.f32 %v9586_v13, %v11519_v56  ;;  %v1678_v56 = vpop.permute.xlu1 %1677 }
 0x55a   : > { %v1531_v36 = vpack.c.bf16 %v1517_v60, %v1516_v54  ;;  %v1723_v38 = vsel %vm1240_vm0, %v1678_v56, 0 }
 0x55b   : > { %v1530_v14 = vpack.c.bf16 %v1515_v30, %v1514_v9 }
 0x55d   : > { %8395 = vmatprep.mubr.bf16.mxu1 %v1530_v14 }
 0x55e   : > { %8396 = vmatmul.mubr.bf16.vlgmr.msra.gmra.mrb[16].mxu1 %v1531_v36 }
 0x55f   : > { %8412 = vmatpush3.bf16.xpose.msra.mxu1 %v1708_v44 }
 0x560   : > { %8916 = vmatprep.subr.msk.bf16.mxu1 %vm1240_vm0, %v11504_v59 }
 0x567   : > { %8414 = vmatpush3.bf16.xpose.msra.mxu1 %v1711_v35 }
 0x568   : > { %8917 = vmatprep.subr.msk.bf16.mxu1 %vm1240_vm0, %v1672_v52 }
 0x56f   : > { %8416 = vmatpush3.bf16.xpose.msra.mxu1 %v1714_v41 }
 0x570   : > { %8918 = vmatprep.subr.msk.bf16.mxu1 %vm1240_vm0, %v11535_v6 }
 0x577   : > { %8418 = vmatpush3.bf16.xpose.msra.mxu1 %v1717_v46 }
 0x578   : > { %8919 = vmatprep.subr.msk.bf16.mxu1 %vm1240_vm0, %v1676_v45 }
 0x57f   : > { %8420 = vmatpush3.bf16.xpose.msra.mxu1 %v1720_v1 }
 0x580   : > { %8920 = vmatprep.subr.msk.bf16.mxu1 %vm1240_vm0, %v1678_v56  ;;  %v1479_v59 = vpop.xlane.xlu0 %1478 }
 0x582   : > { %v1475_v29 = vpop.xlane.xlu1 %1474 }
 0x583   : > { %9587 = vrcp.f32 %v1475_v29 }
 0x584   : > { %9589 = vrcp.f32 %v1479_v59  ;;  %v1477_v52 = vpop.xlane.xlu0 %1476 }
 0x585   : > { %9591 = vrcp.f32 %v1477_v52 }
 0x586   : > { %v1481_v17 = vpop.xlane.xlu1 %1480 }
 0x587   : > { %9593 = vrcp.f32 %v1481_v17  ;;  %8422 = vmatpush3.bf16.xpose.msra.mxu1 %v1723_v38 }
 0x588   : > { %v1495_v6 = vpop.xlane.xlu0 %1494 }
 0x58a   : > { %v1487_v43 = vpop.xlane.xlu1 %1486 }
 0x58c   : > { %v1491_v33 = vpop.xlane.xlu0 %1490 }
 0x58d   : > { %v9588_v48 = vpop.eup %9587 }
 0x58e   : > { %v9590_v4 = vpop.eup %9589  ;;  %v1483_v18 = vpop.xlane.xlu1 %1482  ;;  %v1518_v60 = vmul.f32 %v9588_v48, %v11540_v50 }
 0x58f   : > { %v9592_v13 = vpop.eup %9591  ;;  %v1520_v44 = vmul.f32 %v9590_v4, %v11537_v34 }
 0x590   : > { %v1519_v9 = vmul.f32 %v9592_v13, %v11543_v58 }
 0x591   : > { %v9594_v30 = vpop.eup %9593 }
 0x592   : > { %v1489_v54 = vpop.xlane.xlu1 %1488  ;;  %v1497_v14 = vpop.xlane.xlu0 %1496  ;;  %v1532_v36 = vpack.c.bf16 %v1519_v9, %v1518_v60  ;;  %v1521_v35 = vmul.f32 %v9594_v30, %v11548_v63 }
 0x593   : > { %9595 = vrcp.f32 %v1489_v54 }
 0x594   : > { %8399 = vmatprep.mubr.bf16.mxu1 %v1532_v36  ;;  %v1533_v41 = vpack.c.bf16 %v1521_v35, %v1520_v44  ;;  %9597 = vrcp.f32 %v1483_v18 }
 0x595   : > { %9599 = vrcp.f32 %v1487_v43 }
 0x596   : > { %v1485_v46 = vpop.xlane.xlu1 %1484  ;;  %8400 = vmatmul.mubr.bf16.gmra.mrb[20].mxu1 %v1533_v41  ;;  %v1680_v45 = vpop.permute.xlu0 %1679 }
 0x597   : > { %9601 = vrcp.f32 %v1485_v46  ;;  %8921 = vmatprep.subr.msk.bf16.mxu1 %vm1240_vm0, %v1680_v45  ;;  %v1726_v50 = vsel %vm1240_vm0, %v1680_v45, 0 }
 0x598   : > { %8424 = vmatpush3.bf16.xpose.msra.mxu1 %v1726_v50  ;;  %9603 = vrcp.f32 %v1491_v33 }
 0x59a   : > { %v1493_v58 = vpop.xlane.xlu1 %1492  ;;  %v1644_v56 = vpop.permute.xlu0 %1643 }
 0x59b   : > { %9605 = vrcp.f32 %v1493_v58 }
 0x59c   : > { %9607 = vrcp.f32 %v1497_v14 }
 0x59d   : > { %v9596_v34 = vpop.eup %9595  ;;  %9609 = vrcp.f32 %v1495_v6 }
 0x59e   : > { %v1682_v63 = vpop.permute.xlu1 %1681  ;;  %v1648_v1 = vpop.permute.xlu0 %1647  ;;  %v1525_v38 = vmul.f32 %v9596_v34, %v11564_v51 }
 0x59f   : > { %v9598_v59 = vpop.eup %9597  ;;  %8922 = vmatprep.subr.msk.bf16.mxu1 %vm1240_vm0, %v1682_v63  ;;  %v1729_v29 = vsel %vm1240_vm0, %v1682_v63, 0 }
 0x5a0   : > { %v9600_v52 = vpop.eup %9599  ;;  %8426 = vmatpush3.bf16.xpose.msra.mxu1 %v1729_v29  ;;  %v1522_v4 = vmul.f32 %v9598_v59, %v11561_v10 }
 0x5a1   : > { %v9602_v17 = vpop.eup %9601  ;;  %v1524_v6 = vmul.f32 %v9600_v52, %v11555_v19 }
 0x5a2   : > { %v1646_v43 = vpop.permute.xlu1 %1645  ;;  %v1652_v48 = vpop.permute.xlu0 %1651  ;;  %v1523_v33 = vmul.f32 %v9602_v17, %v11570_v3 }
 0x5a3   : > { %v9604_v18 = vpop.eup %9603  ;;  %v1535_v9 = vpack.c.bf16 %v1525_v38, %v1524_v6 }
 0x5a4   : > { %v1534_v13 = vpack.c.bf16 %v1523_v33, %v1522_v4  ;;  %v1526_v36 = vmul.f32 %v9604_v18, %v11558_v32 }
 0x5a5   : > { %v9606_v60 = vpop.eup %9605 }
 0x5a6   : > { %v9608_v30 = vpop.eup %9607  ;;  %v1650_v54 = vpop.permute.xlu1 %1649  ;;  %8403 = vmatprep.mubr.bf16.mxu1 %v1534_v13  ;;  %v1527_v51 = vmul.f32 %v9606_v60, %v11573_v53 }
 0x5a7   : > { %v1656_v14 = vpop.permute.xlu0 %1655  ;;  %8404 = vmatmul.mubr.bf16.gmra.mrb[24].mxu1 %v1535_v9  ;;  %v9610_v44 = vpop.eup %9609  ;;  %v1529_v10 = vmul.f32 %v9608_v30, %v11566_v62 }
 0x5a8   : > { %v1536_v35 = vpack.c.bf16 %v1527_v51, %v1526_v36  ;;  %v1528_v19 = vmul.f32 %v9610_v44, %v11551_v12 }
 0x5aa   : > { %v1654_v3 = vpop.permute.xlu1 %1653  ;;  %8407 = vmatprep.mubr.bf16.mxu1 %v1536_v35  ;;  %v1537_v46 = vpack.c.bf16 %v1529_v10, %v1528_v19 }
 0x5ab   : > { %v1989_v41 = vpop.permute.xlu0 %1988 }
 0x5ac   : > { %8443 = vmatprep.subr.bf16.mxu0 %v1989_v41 }
 0x5ad   : > { %8444 = vmatpush3.bf16.msra.mxu0 %v1989_v41 }
 0x5ae   : > { %v1658_v45 = vpop.permute.xlu1 %1657 }
 0x5af   : > { %8408 = vmatmul.mubr.bf16.gmra.mrb[28].mxu1 %v1537_v46  ;;  %v1993_v53 = vpop.permute.xlu0 %1992 }
 0x5b0   : > { %8427 = vmatprep.mubr.msk.bf16.mxu1 %vm1240_vm0, %v1644_v56 }
 0x5b2   : > { %v1991_v32 = vpop.permute.xlu1 %1990 }
 0x5b3   : > { %8445 = vmatprep.subr.bf16.mxu0 %v1991_v32  ;;  %v1997_v50 = vpop.permute.xlu0 %1996 }
 0x5b4   : > { %8446 = vmatpush3.bf16.msra.mxu0 %v1991_v32 }
 0x5b5   : > { %8447 = vmatprep.subr.bf16.mxu0 %v1993_v53 }
 0x5b6   : > { %v1995_v62 = vpop.permute.xlu1 %1994 }
 0x5b7   : > { %8428 = vmatmul.mubr.msk.bf16.vlgmr.msra.gmra.mrb[32].mxu1 %vm1240_vm0, %v1646_v43  ;;  %v2001_v58 = vpop.permute.xlu0 %2000 }
 0x5b8   : > { %8431 = vmatprep.mubr.msk.bf16.mxu1 %vm1240_vm0, %v1648_v1  ;;  %8448 = vmatpush3.bf16.msra.mxu0 %v1993_v53 }
 0x5b9   : > { %8449 = vmatprep.subr.bf16.mxu0 %v1995_v62 }
 0x5ba   : > { %v1999_v12 = vpop.permute.xlu1 %1998 }
 0x5bb   : > { %v11659_v34 = vpop.permute.xlu0 %2125 }
 0x5bc   : > { %8450 = vmatpush3.bf16.msra.mxu0 %v1995_v62 }
 0x5bd   : > { %8451 = vmatprep.subr.bf16.mxu0 %v1997_v50 }
 0x5be   : > { %v2003_v56 = vpop.permute.xlu1 %2002 }
 0x5bf   : > { %8432 = vmatmul.mubr.msk.bf16.gmra.mrb[36].mxu1 %vm1240_vm0, %v1650_v54 }
 0x5c0   : > { %8435 = vmatprep.mubr.msk.bf16.mxu1 %vm1240_vm0, %v1652_v48  ;;  %8452 = vmatpush3.bf16.msra.mxu0 %v1997_v50  ;;  %v15368_v50 = vld [vmem:[#allocation36_spill] sm:$0xff] }
 0x5c1   : > { %8453 = vmatprep.subr.bf16.mxu0 %v1999_v12 }
 0x5c4   : > { %8454 = vmatpush3.bf16.msra.mxu0 %v1999_v12 }
 0x5c5   : > { %8455 = vmatprep.subr.bf16.mxu0 %v2001_v58 }
 0x5c7   : > { %8436 = vmatmul.mubr.msk.bf16.gmra.mrb[40].mxu1 %vm1240_vm0, %v1654_v3 }
 0x5c8   : > { %8439 = vmatprep.mubr.msk.bf16.mxu1 %vm1240_vm0, %v1656_v14  ;;  %8456 = vmatpush3.bf16.msra.mxu0 %v2001_v58 }
 0x5c9   : > { %8457 = vmatprep.subr.bf16.mxu0 %v2003_v56 }
 0x5cc   : > { %8458 = vmatpush3.bf16.msra.mxu0 %v2003_v56 }
 0x5cd   : > { %8923 = vmatprep.subr.msk.bf16.mxu0 %vm1240_vm0, %v11659_v34 }
 0x5cf   : > { %8440 = vmatmul.mubr.msk.bf16.gmra.mrb[44].mxu1 %vm1240_vm0, %v1658_v45 }
 0x631   : > { %v11664_v63 = vpop.f32.mrb[16].mxu1 }
 0x632   : > { %15352 = vst [vmem:[#allocation45_spill] sm:$0xff] %v11664_v63  ;;  %v11666_v1 = vpop.f32.mrb[17].mxu1 }
 0x633   : > { %15353 = vst [vmem:[#allocation46_spill] sm:$0xff] %v11666_v1  ;;  %v11668_v59 = vpop.f32.mrb[18].mxu1 }
 0x634   : > { %15354 = vst [vmem:[#allocation47_spill] sm:$0xff] %v11668_v59  ;;  %v11670_v29 = vpop.f32.mrb[19].mxu1 }
 0x635   : > { %15355 = vst [vmem:[#allocation48_spill] sm:$0xff] %v11670_v29 }
 0x669   : > { %v11672_v52 = vpop.f32.mrb[20].mxu1 }
 0x66a   : > { %15356 = vst [vmem:[#allocation49_spill] sm:$0xff] %v11672_v52  ;;  %v11674_v17 = vpop.f32.mrb[21].mxu1 }
 0x66b   : > { %15357 = vst [vmem:[#allocation50_spill] sm:$0xff] %v11674_v17  ;;  %v11676_v38 = vpop.f32.mrb[22].mxu1  ;;  %v15376_v17 = vld [vmem:[#allocation28_spill] sm:$0xff] }
 0x66c   : > { %15358 = vst [vmem:[#allocation51_spill] sm:$0xff] %v11676_v38  ;;  %v11678_v43 = vpop.f32.mrb[23].mxu1 }
 0x66d   : > { %15359 = vst [vmem:[#allocation52_spill] sm:$0xff] %v11678_v43  ;;  %v15377_v43 = vld [vmem:[#allocation43_spill] sm:$0xff] }
 0x67a   : > { %v11680_v48 = vpop.f32.mrb[24].mxu1 }
 0x67b   : > { %15360 = vst [vmem:[#allocation53_spill] sm:$0xff] %v11680_v48  ;;  %v11682_v4 = vpop.f32.mrb[25].mxu1 }
 0x67c   : > { %15361 = vst [vmem:[#allocation54_spill] sm:$0xff] %v11682_v4  ;;  %v11684_v33 = vpop.f32.mrb[26].mxu1 }
 0x67d   : > { %15362 = vst [vmem:[#allocation55_spill] sm:$0xff] %v11684_v33  ;;  %v11686_v18 = vpop.f32.mrb[27].mxu1 }
 0x67e   : > { %15363 = vst [vmem:[#allocation56_spill] sm:$0xff] %v11686_v18 }
 0x682   : > { %v11688_v6 = vpop.f32.mrb[28].mxu1 }
 0x683   : > { %15364 = vst [vmem:[#allocation57_spill] sm:$0xff] %v11688_v6  ;;  %v11690_v13 = vpop.f32.mrb[29].mxu1 }
 0x684   : > { %15365 = vst [vmem:[#allocation58_spill] sm:$0xff] %v11690_v13  ;;  %v11692_v60 = vpop.f32.mrb[30].mxu1  ;;  %v15372_v13 = vld [vmem:[#allocation39_spill] sm:$0xff] }
 0x685   : > { %15366 = vst [vmem:[#allocation59_spill] sm:$0xff] %v11692_v60  ;;  %v11694_v9 = vpop.f32.mrb[31].mxu1 }
 0x686   : > { %15367 = vst [vmem:[#allocation60_spill] sm:$0xff] %v11694_v9 }
 0x68a   : > { %v8429_v30 = vpop.f32.mrb[32].mxu1 }
 0x68b   : > { %v1774_v54 = vadd.f32 %v8429_v30, %v11362_v21  ;;  %v1765_v14 = vpop.f32.mrb[33].mxu1  ;;  %v15369_v30 = vld [vmem:[#allocation38_spill] sm:$0xff] }
 0x68c   : > { %v8430_v36 = vpop.f32.mrb[34].mxu1  ;;  %v1766_v35 = vadd.f32 %v1765_v14, %v11376_v47 }
 0x68d   : > { %1832 = vmax.xlane.f32.xlu0 %v1774_v54  ;;  %v1768_v51 = vpop.f32.mrb[35].mxu1  ;;  %v1777_v3 = vadd.f32 %v8430_v36, %v11368_v27 }
 0x68e   : > { %v1769_v44 = vadd.f32 %v1768_v51, %v11385_v42  ;;  %v15370_v51 = vld [vmem:[#allocation37_spill] sm:$0xff] }
 0x690   : > { %1830 = vmax.xlane.f32.xlu1 %v1769_v44 }
 0x691   : > { %1828 = vmax.xlane.f32.xlu0 %v1766_v35 }
 0x692   : > { %v8433_v10 = vpop.f32.mrb[36].mxu1 }
 0x693   : > { %v1781_v41 = vpop.f32.mrb[37].mxu1  ;;  %v11704_v32 = vadd.f32 %v8433_v10, %v11394_v8 }
 0x694   : > { %v8434_v19 = vpop.f32.mrb[38].mxu1  ;;  %v11712_v12 = vadd.f32 %v1781_v41, %v15368_v50 }
 0x695   : > { %v11701_v46 = vadd.f32 %v8434_v19, %v11403_v57  ;;  %1834 = vmax.xlane.f32.xlu0 %v1777_v3  ;;  %v1784_v45 = vpop.f32.mrb[39].mxu1  ;;  %v15371_v19 = vld [vmem:[#allocation40_spill] sm:$0xff] }
 0x696   : > { %v11708_v53 = vadd.f32 %v1784_v45, %v11421_v26 }
 0x697   : > { %1842 = vmax.xlane.f32.xlu1 %v11701_v46 }
 0x699   : > { %1840 = vmax.xlane.f32.xlu0 %v11704_v32 }
 0x69a   : > { %v8437_v62 = vpop.f32.mrb[40].mxu1 }
 0x69b   : > { %1838 = vmax.xlane.f32.xlu1 %v11708_v53  ;;  %v1797_v58 = vpop.f32.mrb[41].mxu1  ;;  %v11720_v10 = vadd.f32 %v8437_v62, %v15370_v51  ;;  %v15373_v62 = vld [vmem:[#allocation41_spill] sm:$0xff] }
 0x69c   : > { %v8438_v56 = vpop.f32.mrb[42].mxu1  ;;  %v11728_v9 = vadd.f32 %v1797_v58, %v15372_v13  ;;  %v15375_v58 = vld [vmem:[#allocation31_spill] sm:$0xff] }
 0x69d   : > { %v11716_v14 = vadd.f32 %v8438_v56, %v15369_v30  ;;  %1836 = vmax.xlane.f32.xlu0 %v11712_v12  ;;  %v1800_v36 = vpop.f32.mrb[43].mxu1 }
 0x69e   : > { %v11724_v45 = vadd.f32 %v1800_v36, %v15371_v19  ;;  %v15374_v36 = vld [vmem:[#allocation42_spill] sm:$0xff] }
 0x69f   : > { %1850 = vmax.xlane.f32.xlu1 %v11716_v14 }
 0x6a1   : > { %1848 = vmax.xlane.f32.xlu0 %v11720_v10 }
 0x6a2   : > { %v8441_v41 = vpop.f32.mrb[44].mxu1 }
 0x6a3   : > { %1846 = vmax.xlane.f32.xlu1 %v11724_v45  ;;  %v1813_v56 = vpop.f32.mrb[45].mxu1  ;;  %v11733_v52 = vadd.f32 %v8441_v41, %v15373_v62  ;;  %v15378_v41 = vld [vmem:[#allocation44_spill] sm:$0xff] }
 0x6a4   : > { %v8442_v6 = vpop.f32.mrb[46].mxu1  ;;  %v11737_v38 = vadd.f32 %v1813_v56, %v15374_v36  ;;  %v11752_v56 = vpop.permute.xlu1 %2127 }
 0x6a5   : > { %1844 = vmax.xlane.f32.xlu0 %v11728_v9  ;;  %v1816_v60 = vpop.f32.mrb[47].mxu1  ;;  %v11745_v63 = vadd.f32 %v8442_v6, %v15377_v43 }
 0x6a6   : > { %v11749_v59 = vadd.f32 %v1816_v60, %v15378_v41 }
 0x6a9   : > { %1856 = vmax.xlane.f32.xlu0 %v11733_v52 }
 0x6ad   : > { %1852 = vmax.xlane.f32.xlu0 %v11737_v38 }
 0x6b4   : > { %2131 = vrot.lane.b32.xlu1 %v15375_v58, %s10565_s27 }
 0x6c3   : > { %2129 = vrot.lane.b32.xlu0 %v15376_v17, %s10565_s27 }
 0x6d8   : > { %1858 = vmax.xlane.f32.xlu1 %v11745_v63 }
 0x6dc   : > { %1854 = vmax.xlane.f32.xlu1 %v11749_v59 }
 0x71a   : > { %v1833_v29 = vpop.xlane.xlu0 %1832 }
 0x71b   : > { %v1862_v1 = vsub.f32 %v1774_v54, %v1833_v29 }
 0x71d   : > { %v1880_v48 = vmul.f32 1.442695, %v1862_v1  ;;  %v1831_v33 = vpop.xlane.xlu1 %1830 }
 0x71e   : > { %v1861_v4 = vsub.f32 %v1769_v44, %v1831_v33  ;;  %v1829_v18 = vpop.xlane.xlu0 %1828 }
 0x71f   : > { %9611 = vpow2.f32 %v1880_v48  ;;  %v1860_v17 = vsub.f32 %v1766_v35, %v1829_v18  ;;  %v15380_v48 = vld [vmem:[#allocation35_spill] sm:$0xff] }
 0x720   : > { %v1878_v58 = vmul.f32 1.442695, %v1861_v4 }
 0x721   : > { %v1876_v6 = vmul.f32 1.442695, %v1860_v17 }
 0x722   : > { %9613 = vpow2.f32 %v1878_v58  ;;  %v1835_v43 = vpop.xlane.xlu0 %1834 }
 0x723   : > { %9615 = vpow2.f32 %v1876_v6  ;;  %v1863_v36 = vsub.f32 %v1777_v3, %v1835_v43  ;;  %v15379_v43 = vld [vmem:[#allocation34_spill] sm:$0xff] }
 0x724   : > { %v1843_v33 = vpop.xlane.xlu1 %1842 }
 0x725   : > { %v1882_v60 = vmul.f32 1.442695, %v1863_v36  ;;  %v1867_v13 = vsub.f32 %v11701_v46, %v1843_v33 }
 0x726   : > { %v1841_v17 = vpop.xlane.xlu0 %1840 }
 0x727   : > { %9617 = vpow2.f32 %v1882_v60  ;;  %v1866_v54 = vsub.f32 %v11704_v32, %v1841_v17  ;;  %v1890_v51 = vmul.f32 1.442695, %v1867_v13 }
 0x728   : > { %v1839_v44 = vpop.xlane.xlu1 %1838 }
 0x729   : > { %v11754_v41 = vpop.eup %9611  ;;  %v1888_v3 = vmul.f32 1.442695, %v1866_v54  ;;  %v1865_v58 = vsub.f32 %v11708_v53, %v1839_v44 }
 0x72a   : > { %1912 = vadd.xlane.f32.xlu1 %v11754_v41  ;;  %v1837_v4 = vpop.xlane.xlu0 %1836 }
 0x72b   : > { %v1864_v36 = vsub.f32 %v11712_v12, %v1837_v4  ;;  %9619 = vpow2.f32 %v1888_v3  ;;  %v1886_v19 = vmul.f32 1.442695, %v1865_v58 }
 0x72c   : > { %v11757_v62 = vpop.eup %9613  ;;  %v1851_v6 = vpop.xlane.xlu1 %1850 }
 0x72d   : > { %v11759_v1 = vpop.eup %9615  ;;  %1910 = vadd.xlane.f32.xlu0 %v11757_v62  ;;  %v1871_v46 = vsub.f32 %v11716_v14, %v1851_v6 }
 0x72e   : > { %1908 = vadd.xlane.f32.xlu1 %v11759_v1  ;;  %v1849_v18 = vpop.xlane.xlu0 %1848 }
 0x730   : > { %v1847_v30 = vpop.xlane.xlu1 %1846 }
 0x731   : > { %v11763_v29 = vpop.eup %9617 }
 0x732   : > { %1914 = vadd.xlane.f32.xlu1 %v11763_v29  ;;  %v1845_v35 = vpop.xlane.xlu0 %1844 }
 0x733   : > { %v1868_v12 = vsub.f32 %v11728_v9, %v1845_v35  ;;  %v1869_v9 = vsub.f32 %v11724_v45, %v1847_v30 }
 0x734   : > { %v11781_v13 = vpop.permute.xlu1 %2131 }
 0x735   : > { %v1892_v33 = vmul.f32 1.442695, %v1868_v12  ;;  %v11779_v44 = vpop.eup %9619 }
 0x736   : > { %v1857_v60 = vpop.xlane.xlu0 %1856 }
 0x737   : > { %v1874_v32 = vsub.f32 %v11733_v52, %v1857_v60 }
 0x739   : > { %v1904_v53 = vmul.f32 1.442695, %v1874_v32 }
 0x73a   : > { %v1853_v4 = vpop.xlane.xlu0 %1852 }
 0x73b   : > { %v1872_v54 = vsub.f32 %v11737_v38, %v1853_v4 }
 0x73d   : > { %v1900_v52 = vmul.f32 1.442695, %v1872_v54 }
 0x743   : > { %2133 = vrot.lane.b32.xlu0 %v15379_v43, %s10565_s27  ;;  %2135 = vrot.lane.b32.xlu1 %v15380_v48, %s10565_s27  ;;  %v1884_v43 = vmul.f32 1.442695, %v1864_v36  ;;  %v1870_v48 = vsub.f32 %v11720_v10, %v1849_v18  ;;  %v1898_v10 = vmul.f32 1.442695, %v1871_v46 }
 0x745   : > { %9621 = vpow2.f32 %v1884_v43  ;;  %v1896_v17 = vmul.f32 1.442695, %v1870_v48  ;;  %v1894_v43 = vmul.f32 1.442695, %v1869_v9 }
 0x746   : > { %9623 = vpow2.f32 %v1886_v19 }
 0x747   : > { %9625 = vpow2.f32 %v1890_v51 }
 0x748   : > { %9627 = vpow2.f32 %v1896_v17  ;;  %v2130_v17 = vpop.permute.xlu0 %2129 }
 0x749   : > { %9629 = vpow2.f32 %v1904_v53 }
 0x74a   : > { %9631 = vpow2.f32 %v1892_v33 }
 0x74b   : > { %9633 = vpow2.f32 %v1900_v52 }
 0x74c   : > { %9635 = vpow2.f32 %v1898_v10 }
 0x74f   : > { %v11785_v51 = vpop.eup %9621 }
 0x750   : > { %v11787_v38 = vpop.eup %9623 }
 0x751   : > { %v11792_v18 = vpop.eup %9625 }
 0x752   : > { %v11794_v30 = vpop.eup %9627 }
 0x753   : > { %v11799_v3 = vpop.eup %9629 }
 0x754   : > { %v11801_v36 = vpop.eup %9631 }
 0x755   : > { %v11805_v58 = vpop.eup %9633 }
 0x756   : > { %v11807_v6 = vpop.eup %9635 }
 0x762   : > { %1920 = vadd.xlane.f32.xlu0 %v11779_v44 }
 0x765   : > { %v1859_v19 = vpop.xlane.xlu1 %1858 }
 0x766   : > { %v1875_v14 = vsub.f32 %v11745_v63, %v1859_v19  ;;  %1916 = vadd.xlane.f32.xlu0 %v11785_v51 }
 0x767   : > { %1918 = vadd.xlane.f32.xlu1 %v11787_v38 }
 0x768   : > { %v1906_v48 = vmul.f32 1.442695, %v1875_v14 }
 0x769   : > { %v1855_v35 = vpop.xlane.xlu1 %1854 }
 0x76a   : > { %9637 = vpow2.f32 %v1906_v48  ;;  %v1873_v45 = vsub.f32 %v11749_v59, %v1855_v35  ;;  %1922 = vadd.xlane.f32.xlu0 %v11792_v18 }
 0x76b   : > { %1928 = vadd.xlane.f32.xlu1 %v11794_v30  ;;  %9639 = vpow2.f32 %v1894_v43 }
 0x76c   : > { %v1902_v63 = vmul.f32 1.442695, %v1873_v45  ;;  %v2166_v45 = vsel %vm1240_vm0, %v11659_v34, 0 }
 0x76e   : > { %1936 = vadd.xlane.f32.xlu0 %v11799_v3  ;;  %9641 = vpow2.f32 %v1902_v63 }
 0x76f   : > { %1924 = vadd.xlane.f32.xlu1 %v11801_v36 }
 0x772   : > { %1932 = vadd.xlane.f32.xlu0 %v11805_v58 }
 0x773   : > { %1930 = vadd.xlane.f32.xlu1 %v11807_v6 }
 0x774   : > { %v11811_v59 = vpop.eup %9637 }
 0x775   : > { %v11813_v60 = vpop.eup %9639 }
 0x776   : > { %1938 = vadd.xlane.f32.xlu0 %v11811_v59 }
 0x777   : > { %1926 = vadd.xlane.f32.xlu1 %v11813_v60 }
 0x778   : > { %v11817_v32 = vpop.eup %9641 }
 0x77b   : > { %1934 = vadd.xlane.f32.xlu1 %v11817_v32 }
 0x78c   : > { %2139 = vrot.lane.b32.xlu1 %v11326_v2, %s10565_s27  ;;  %2137 = vrot.lane.b32.xlu0 %v11318_v23, %s10565_s27 }
 0x790   : > { %2111 = vrot.lane.b32.xlu1 %v11253_v16, %s10565_s27  ;;  %2109 = vrot.lane.b32.xlu0 %v11234_v0, %s10565_s27 }
 0x794   : > { %2115 = vrot.lane.b32.xlu1 %v11287_v20, %s10565_s27  ;;  %2113 = vrot.lane.b32.xlu0 %v11271_v37, %s10565_s27 }
 0x798   : > { %2119 = vrot.lane.b32.xlu1 %v11312_v11, %s10565_s27  ;;  %2117 = vrot.lane.b32.xlu0 %v11303_v61, %s10565_s27 }
 0x79c   : > { %2123 = vrot.lane.b32.xlu1 %v11328_v39, %s10565_s27  ;;  %2121 = vrot.lane.b32.xlu0 %v11320_v25, %s10565_s27 }
 0x7a0   : > { %2440 = vrot.lane.b32.xlu1 %v11242_v5, %s10565_s27  ;;  %2438 = vrot.lane.b32.xlu0 %v11246_v7, %s10565_s27 }
 0x7a4   : > { %2444 = vrot.lane.b32.xlu1 %v11261_v22, %s10565_s27  ;;  %2442 = vrot.lane.b32.xlu0 %v11264_v24, %s10565_s27 }
 0x7a8   : > { %2448 = vrot.lane.b32.xlu1 %v11277_v40, %s10565_s27  ;;  %2446 = vrot.lane.b32.xlu0 %v11280_v28, %s10565_s27 }
 0x7ac   : > { %2452 = vrot.lane.b32.xlu1 %v11293_v31, %s10565_s27  ;;  %2450 = vrot.lane.b32.xlu0 %v11296_v55, %s10565_s27 }
 0x7b0   : > { %2577 = vrot.lane.b32.xlu1 %v11250_v15, %s10566_s29  ;;  %2575 = vrot.lane.b32.xlu0 %v11232_v49, %s10566_s29 }
 0x7b7   : > { %v1913_v12 = vpop.xlane.xlu1 %1912 }
 0x7ba   : > { %v1911_v4 = vpop.xlane.xlu0 %1910 }
 0x7bb   : > { %9643 = vrcp.f32 %v1911_v4  ;;  %v1909_v53 = vpop.xlane.xlu1 %1908 }
 0x7bc   : > { %9645 = vrcp.f32 %v1909_v53 }
 0x7bd   : > { %9647 = vrcp.f32 %v1913_v12 }
 0x7be   : > { %v2134_v34 = vpop.permute.xlu0 %2133 }
 0x7bf   : > { %v1915_v54 = vpop.xlane.xlu1 %1914 }
 0x7c0   : > { %9649 = vrcp.f32 %v1915_v54 }
 0x7c5   : > { %v9644_v46 = vpop.eup %9643 }
 0x7c6   : > { %v9646_v33 = vpop.eup %9645  ;;  %v1957_v52 = vmul.f32 %v9644_v46, %v11757_v62  ;;  %v2169_v62 = vsel %vm1240_vm0, %v11752_v56, 0 }
 0x7c7   : > { %v1956_v10 = vmul.f32 %v9646_v33, %v11759_v1  ;;  %v9648_v9 = vpop.eup %9647  ;;  %v2175_v1 = vsel %vm1240_vm0, %v11781_v13, 0 }
 0x7c8   : > { %v1958_v43 = vmul.f32 %v9648_v9, %v11754_v41  ;;  %v2172_v41 = vsel %vm1240_vm0, %v2130_v17, 0 }
 0x7c9   : > { %v1972_v19 = vpack.c.bf16 %v1957_v52, %v1956_v10 }
 0x7ca   : > { %v9650_v14 = vpop.eup %9649 }
 0x7cb   : > { %v1959_v48 = vmul.f32 %v9650_v14, %v11763_v29  ;;  %8459 = vmatprep.mubr.bf16.mxu0 %v1972_v19  ;;  %v2178_v29 = vsel %vm1240_vm0, %v2134_v34, 0 }
 0x7cd   : > { %v1973_v35 = vpack.c.bf16 %v1959_v48, %v1958_v43 }
 0x7cf   : > { %8460 = vmatmul.mubr.bf16.vlgmr.msra.gmra.mrb[48].mxu0 %v1973_v35 }
 0x7d0   : > { %8476 = vmatpush3.bf16.xpose.msra.mxu0 %v2166_v45 }
 0x7d1   : > { %8924 = vmatprep.subr.msk.bf16.mxu0 %vm1240_vm0, %v11752_v56  ;;  %v2136_v56 = vpop.permute.xlu1 %2135 }
 0x7d2   : > { %v2181_v4 = vsel %vm1240_vm0, %v2136_v56, 0 }
 0x7d8   : > { %8478 = vmatpush3.bf16.xpose.msra.mxu0 %v2169_v62 }
 0x7d9   : > { %8925 = vmatprep.subr.msk.bf16.mxu0 %vm1240_vm0, %v2130_v17 }
 0x7e0   : > { %8480 = vmatpush3.bf16.xpose.msra.mxu0 %v2172_v41 }
 0x7e1   : > { %8926 = vmatprep.subr.msk.bf16.mxu0 %vm1240_vm0, %v11781_v13 }
 0x7e8   : > { %8482 = vmatpush3.bf16.xpose.msra.mxu0 %v2175_v1 }
 0x7e9   : > { %8927 = vmatprep.subr.msk.bf16.mxu0 %vm1240_vm0, %v2134_v34 }
 0x7ef   : > { %v1921_v63 = vpop.xlane.xlu0 %1920 }
 0x7f0   : > { %8484 = vmatpush3.bf16.xpose.msra.mxu0 %v2178_v29 }
 0x7f1   : > { %8928 = vmatprep.subr.msk.bf16.mxu0 %vm1240_vm0, %v2136_v56 }
 0x7f3   : > { %v1917_v12 = vpop.xlane.xlu0 %1916 }
 0x7f4   : > { %9651 = vrcp.f32 %v1917_v12  ;;  %v1919_v17 = vpop.xlane.xlu1 %1918 }
 0x7f5   : > { %9653 = vrcp.f32 %v1919_v17 }
 0x7f6   : > { %9655 = vrcp.f32 %v1921_v63 }
 0x7f7   : > { %v1923_v53 = vpop.xlane.xlu0 %1922 }
 0x7f8   : > { %8486 = vmatpush3.bf16.xpose.msra.mxu0 %v2181_v4  ;;  %9657 = vrcp.f32 %v1923_v53  ;;  %v1929_v13 = vpop.xlane.xlu1 %1928 }
 0x7fb   : > { %v1937_v54 = vpop.xlane.xlu0 %1936 }
 0x7fc   : > { %v1925_v46 = vpop.xlane.xlu1 %1924 }
 0x7fe   : > { %v9652_v33 = vpop.eup %9651 }
 0x7ff   : > { %v9654_v52 = vpop.eup %9653  ;;  %v1933_v10 = vpop.xlane.xlu0 %1932  ;;  %v1960_v9 = vmul.f32 %v9652_v33, %v11785_v51 }
 0x800   : > { %v9656_v19 = vpop.eup %9655  ;;  %v1931_v14 = vpop.xlane.xlu1 %1930  ;;  %v1961_v43 = vmul.f32 %v9654_v52, %v11787_v38 }
 0x801   : > { %9659 = vrcp.f32 %v1931_v14  ;;  %v1962_v62 = vmul.f32 %v9656_v19, %v11779_v44 }
 0x802   : > { %v9658_v48 = vpop.eup %9657  ;;  %v1974_v35 = vpack.c.bf16 %v1961_v43, %v1960_v9  ;;  %9661 = vrcp.f32 %v1925_v46 }
 0x803   : > { %v1939_v45 = vpop.xlane.xlu0 %1938  ;;  %v1963_v41 = vmul.f32 %v9658_v48, %v11792_v18  ;;  %9663 = vrcp.f32 %v1929_v13 }
 0x804   : > { %v1927_v1 = vpop.xlane.xlu1 %1926  ;;  %8463 = vmatprep.mubr.bf16.mxu0 %v1974_v35 }
 0x805   : > { %9665 = vrcp.f32 %v1927_v1  ;;  %v1975_v34 = vpack.c.bf16 %v1963_v41, %v1962_v62 }
 0x806   : > { %9667 = vrcp.f32 %v1933_v10 }
 0x807   : > { %8464 = vmatmul.mubr.bf16.gmra.mrb[52].mxu0 %v1975_v34  ;;  %v2138_v51 = vpop.permute.xlu0 %2137 }
 0x808   : > { %v1935_v29 = vpop.xlane.xlu1 %1934  ;;  %8929 = vmatprep.subr.msk.bf16.mxu0 %vm1240_vm0, %v2138_v51  ;;  %v2184_v38 = vsel %vm1240_vm0, %v2138_v51, 0 }
 0x809   : > { %9669 = vrcp.f32 %v1935_v29  ;;  %8488 = vmatpush3.bf16.xpose.msra.mxu0 %v2184_v38 }
 0x80a   : > { %9671 = vrcp.f32 %v1939_v45 }
 0x80b   : > { %v2110_v63 = vpop.permute.xlu0 %2109  ;;  %v9660_v44 = vpop.eup %9659  ;;  %9673 = vrcp.f32 %v1937_v54 }
 0x80c   : > { %v2140_v18 = vpop.permute.xlu1 %2139  ;;  %v9662_v56 = vpop.eup %9661  ;;  %v1967_v53 = vmul.f32 %v9660_v44, %v11807_v6 }
 0x80d   : > { %8930 = vmatprep.subr.msk.bf16.mxu0 %vm1240_vm0, %v2140_v18  ;;  %v9664_v12 = vpop.eup %9663  ;;  %v2187_v46 = vsel %vm1240_vm0, %v2140_v18, 0  ;;  %v1964_v33 = vmul.f32 %v9662_v56, %v11801_v36 }
 0x80e   : > { %v1966_v54 = vmul.f32 %v9664_v12, %v11794_v30 }
 0x80f   : > { %v9666_v17 = vpop.eup %9665  ;;  %v2114_v4 = vpop.permute.xlu0 %2113 }
 0x810   : > { %v2112_v13 = vpop.permute.xlu1 %2111  ;;  %v1965_v52 = vmul.f32 %v9666_v17, %v11813_v60  ;;  %v9668_v10 = vpop.eup %9667  ;;  %v1977_v43 = vpack.c.bf16 %v1967_v53, %v1966_v54 }
 0x811   : > { %8490 = vmatpush3.bf16.xpose.msra.mxu0 %v2187_v46  ;;  %v1968_v6 = vmul.f32 %v9668_v10, %v11805_v58 }
 0x812   : > { %v1976_v9 = vpack.c.bf16 %v1965_v52, %v1964_v33 }
 0x813   : > { %v9670_v19 = vpop.eup %9669  ;;  %v2118_v14 = vpop.permute.xlu0 %2117 }
 0x814   : > { %v9672_v48 = vpop.eup %9671  ;;  %v2116_v35 = vpop.permute.xlu1 %2115  ;;  %8467 = vmatprep.mubr.bf16.mxu0 %v1976_v9  ;;  %v1969_v45 = vmul.f32 %v9670_v19, %v11817_v32  ;;  %v15398_v9 = vld [vmem:[#allocation37_spill] sm:$0xff] }
 0x815   : > { %8468 = vmatmul.mubr.bf16.gmra.mrb[56].mxu0 %v1977_v43  ;;  %v9674_v62 = vpop.eup %9673  ;;  %v1971_v60 = vmul.f32 %v9672_v48, %v11811_v59 }
 0x816   : > { %v1978_v36 = vpack.c.bf16 %v1969_v45, %v1968_v6  ;;  %v1970_v30 = vmul.f32 %v9674_v62, %v11799_v3  ;;  %v15397_v6 = vld [vmem:[#allocation38_spill] sm:$0xff] }
 0x817   : > { %v2122_v41 = vpop.permute.xlu0 %2121 }
 0x818   : > { %v2120_v1 = vpop.permute.xlu1 %2119  ;;  %8471 = vmatprep.mubr.bf16.mxu0 %v1978_v36  ;;  %v1979_v51 = vpack.c.bf16 %v1971_v60, %v1970_v30 }
 0x81b   : > { %v2439_v34 = vpop.permute.xlu0 %2438 }
 0x81c   : > { %v2124_v29 = vpop.permute.xlu1 %2123  ;;  %8507 = vmatprep.subr.bf16.mxu1 %v2439_v34 }
 0x81d   : > { %8472 = vmatmul.mubr.bf16.gmra.mrb[60].mxu0 %v1979_v51  ;;  %8508 = vmatpush3.bf16.msra.mxu1 %v2439_v34 }
 0x81e   : > { %8491 = vmatprep.mubr.msk.bf16.mxu0 %vm1240_vm0, %v2110_v63 }
 0x81f   : > { %v2443_v32 = vpop.permute.xlu0 %2442 }
 0x820   : > { %v2441_v58 = vpop.permute.xlu1 %2440 }
 0x821   : > { %8509 = vmatprep.subr.bf16.mxu1 %v2441_v58 }
 0x822   : > { %8510 = vmatpush3.bf16.msra.mxu1 %v2441_v58 }
 0x823   : > { %8511 = vmatprep.subr.bf16.mxu1 %v2443_v32  ;;  %v2447_v3 = vpop.permute.xlu0 %2446 }
 0x824   : > { %v2445_v59 = vpop.permute.xlu1 %2444 }
 0x825   : > { %8492 = vmatmul.mubr.msk.bf16.vlgmr.msra.gmra.mrb[64].mxu0 %vm1240_vm0, %v2112_v13 }
 0x826   : > { %8495 = vmatprep.mubr.msk.bf16.mxu0 %vm1240_vm0, %v2114_v4  ;;  %8512 = vmatpush3.bf16.msra.mxu1 %v2443_v32 }
 0x827   : > { %8513 = vmatprep.subr.bf16.mxu1 %v2445_v59  ;;  %v2451_v63 = vpop.permute.xlu0 %2450 }
 0x828   : > { %v2449_v38 = vpop.permute.xlu1 %2448 }
 0x82a   : > { %8514 = vmatpush3.bf16.msra.mxu1 %v2445_v59 }
 0x82b   : > { %8515 = vmatprep.subr.bf16.mxu1 %v2447_v3  ;;  %v11903_v18 = vpop.permute.xlu0 %2575 }
 0x82c   : > { %v2453_v44 = vpop.permute.xlu1 %2452 }
 0x82d   : > { %8496 = vmatmul.mubr.msk.bf16.gmra.mrb[68].mxu0 %vm1240_vm0, %v2116_v35 }
 0x82e   : > { %8499 = vmatprep.mubr.msk.bf16.mxu0 %vm1240_vm0, %v2118_v14  ;;  %8516 = vmatpush3.bf16.msra.mxu1 %v2447_v3 }
 0x82f   : > { %8517 = vmatprep.subr.bf16.mxu1 %v2449_v38 }
 0x832   : > { %8518 = vmatpush3.bf16.msra.mxu1 %v2449_v38 }
 0x833   : > { %8519 = vmatprep.subr.bf16.mxu1 %v2451_v63 }
 0x835   : > { %8500 = vmatmul.mubr.msk.bf16.gmra.mrb[72].mxu0 %vm1240_vm0, %v2120_v1 }
 0x836   : > { %8503 = vmatprep.mubr.msk.bf16.mxu0 %vm1240_vm0, %v2122_v41  ;;  %8520 = vmatpush3.bf16.msra.mxu1 %v2451_v63 }
 0x837   : > { %8521 = vmatprep.subr.bf16.mxu1 %v2453_v44 }
 0x83a   : > { %8522 = vmatpush3.bf16.msra.mxu1 %v2453_v44 }
 0x83b   : > { %8931 = vmatprep.subr.msk.bf16.mxu1 %vm1240_vm0, %v11903_v18 }
 0x83d   : > { %8504 = vmatmul.mubr.msk.bf16.gmra.mrb[76].mxu0 %vm1240_vm0, %v2124_v29 }
 0x8a2   : > { %v11908_v56 = vpop.f32.mrb[48].mxu0 }
 0x8a3   : > { %15381 = vst [vmem:[#allocation36_spill] sm:$0xff] %v11908_v56  ;;  %v11910_v12 = vpop.f32.mrb[49].mxu0 }
 0x8a4   : > { %15382 = vst [vmem:[#allocation61_spill] sm:$0xff] %v11910_v12  ;;  %v11912_v17 = vpop.f32.mrb[50].mxu0 }
 0x8a5   : > { %15383 = vst [vmem:[#allocation62_spill] sm:$0xff] %v11912_v17  ;;  %v11916_v53 = vpop.f32.mrb[51].mxu0 }
 0x8a6   : > { %15384 = vst [vmem:[#allocation63_spill] sm:$0xff] %v11916_v53 }
 0x8da   : > { %v11920_v46 = vpop.f32.mrb[52].mxu0 }
 0x8db   : > { %15385 = vst [vmem:[#allocation64_spill] sm:$0xff] %v11920_v46  ;;  %v11922_v33 = vpop.f32.mrb[53].mxu0 }
 0x8dc   : > { %15386 = vst [vmem:[#allocation65_spill] sm:$0xff] %v11922_v33  ;;  %v11924_v52 = vpop.f32.mrb[54].mxu0 }
 0x8dd   : > { %15387 = vst [vmem:[#allocation66_spill] sm:$0xff] %v11924_v52  ;;  %v11928_v54 = vpop.f32.mrb[55].mxu0 }
 0x8de   : > { %15388 = vst [vmem:[#allocation67_spill] sm:$0xff] %v11928_v54 }
 0x8e8   : > { %v11932_v19 = vpop.f32.mrb[56].mxu0 }
 0x8e9   : > { %15389 = vst [vmem:[#allocation68_spill] sm:$0xff] %v11932_v19  ;;  %v11934_v14 = vpop.f32.mrb[57].mxu0 }
 0x8ea   : > { %15390 = vst [vmem:[#allocation69_spill] sm:$0xff] %v11934_v14  ;;  %v11936_v43 = vpop.f32.mrb[58].mxu0  ;;  %v15404_v14 = vld [vmem:[#allocation28_spill] sm:$0xff] }
 0x8eb   : > { %15391 = vst [vmem:[#allocation70_spill] sm:$0xff] %v11936_v43  ;;  %v11940_v35 = vpop.f32.mrb[59].mxu0 }
 0x8ec   : > { %15392 = vst [vmem:[#allocation71_spill] sm:$0xff] %v11940_v35  ;;  %v15405_v35 = vld [vmem:[#allocation43_spill] sm:$0xff] }
 0x8f0   : > { %v11944_v45 = vpop.f32.mrb[60].mxu0 }
 0x8f1   : > { %15393 = vst [vmem:[#allocation72_spill] sm:$0xff] %v11944_v45  ;;  %v11946_v62 = vpop.f32.mrb[61].mxu0 }
 0x8f2   : > { %15394 = vst [vmem:[#allocation73_spill] sm:$0xff] %v11946_v62  ;;  %v11948_v36 = vpop.f32.mrb[62].mxu0  ;;  %v15400_v62 = vld [vmem:[#allocation39_spill] sm:$0xff] }
 0x8f3   : > { %15395 = vst [vmem:[#allocation74_spill] sm:$0xff] %v11948_v36  ;;  %v11952_v60 = vpop.f32.mrb[63].mxu0 }
 0x8f4   : > { %15396 = vst [vmem:[#allocation75_spill] sm:$0xff] %v11952_v60 }
 0x8f8   : > { %v8493_v30 = vpop.f32.mrb[64].mxu0 }
 0x8f9   : > { %v2232_v34 = vadd.f32 %v8493_v30, %v11362_v21  ;;  %v2223_v51 = vpop.f32.mrb[65].mxu0 }
 0x8fa   : > { %v8494_v29 = vpop.f32.mrb[66].mxu0  ;;  %v2224_v59 = vadd.f32 %v2223_v51, %v11376_v47 }
 0x8fb   : > { %2290 = vmax.xlane.f32.xlu0 %v2232_v34  ;;  %v2226_v58 = vpop.f32.mrb[67].mxu0  ;;  %v2235_v38 = vadd.f32 %v8494_v29, %v11368_v27 }
 0x8fc   : > { %v2227_v32 = vadd.f32 %v2226_v58, %v11385_v42 }
 0x8fe   : > { %2288 = vmax.xlane.f32.xlu1 %v2227_v32 }
 0x8ff   : > { %2286 = vmax.xlane.f32.xlu0 %v2224_v59 }
 0x900   : > { %v8497_v3 = vpop.f32.mrb[68].mxu0 }
 0x901   : > { %v2239_v63 = vpop.f32.mrb[69].mxu0  ;;  %v11964_v41 = vadd.f32 %v8497_v3, %v11394_v8 }
 0x902   : > { %v8498_v44 = vpop.f32.mrb[70].mxu0  ;;  %v11972_v29 = vadd.f32 %v2239_v63, %v15368_v50 }
 0x903   : > { %v11961_v1 = vadd.f32 %v8498_v44, %v11403_v57  ;;  %2292 = vmax.xlane.f32.xlu0 %v2235_v38  ;;  %v2242_v30 = vpop.f32.mrb[71].mxu0 }
 0x904   : > { %v11968_v58 = vadd.f32 %v2242_v30, %v11421_v26  ;;  %v15399_v30 = vld [vmem:[#allocation40_spill] sm:$0xff] }
 0x905   : > { %2300 = vmax.xlane.f32.xlu1 %v11961_v1 }
 0x907   : > { %2298 = vmax.xlane.f32.xlu0 %v11964_v41 }
 0x908   : > { %v8501_v51 = vpop.f32.mrb[72].mxu0 }
 0x909   : > { %2296 = vmax.xlane.f32.xlu1 %v11968_v58  ;;  %v2255_v44 = vpop.f32.mrb[73].mxu0  ;;  %v11980_v13 = vadd.f32 %v8501_v51, %v15398_v9  ;;  %v15401_v51 = vld [vmem:[#allocation41_spill] sm:$0xff] }
 0x90a   : > { %v8502_v48 = vpop.f32.mrb[74].mxu0  ;;  %v11988_v60 = vadd.f32 %v2255_v44, %v15400_v62  ;;  %v15403_v44 = vld [vmem:[#allocation31_spill] sm:$0xff] }
 0x90b   : > { %v11976_v10 = vadd.f32 %v8502_v48, %v15397_v6  ;;  %2294 = vmax.xlane.f32.xlu0 %v11972_v29  ;;  %v2258_v3 = vpop.f32.mrb[75].mxu0 }
 0x90c   : > { %v11984_v4 = vadd.f32 %v2258_v3, %v15399_v30  ;;  %v15402_v3 = vld [vmem:[#allocation42_spill] sm:$0xff] }
 0x90d   : > { %2308 = vmax.xlane.f32.xlu1 %v11976_v10 }
 0x90f   : > { %2306 = vmax.xlane.f32.xlu0 %v11980_v13 }
 0x910   : > { %v8505_v63 = vpop.f32.mrb[76].mxu0 }
 0x911   : > { %2304 = vmax.xlane.f32.xlu1 %v11984_v4  ;;  %v2271_v48 = vpop.f32.mrb[77].mxu0  ;;  %v11993_v19 = vadd.f32 %v8505_v63, %v15401_v51  ;;  %v15406_v63 = vld [vmem:[#allocation44_spill] sm:$0xff] }
 0x912   : > { %v8506_v45 = vpop.f32.mrb[78].mxu0  ;;  %v11997_v43 = vadd.f32 %v2271_v48, %v15402_v3  ;;  %v12012_v48 = vpop.permute.xlu1 %2577 }
 0x913   : > { %2302 = vmax.xlane.f32.xlu0 %v11988_v60  ;;  %v2274_v36 = vpop.f32.mrb[79].mxu0  ;;  %v12005_v46 = vadd.f32 %v8506_v45, %v15405_v35 }
 0x914   : > { %v12009_v52 = vadd.f32 %v2274_v36, %v15406_v63 }
 0x917   : > { %2314 = vmax.xlane.f32.xlu0 %v11993_v19 }
 0x91b   : > { %2310 = vmax.xlane.f32.xlu0 %v11997_v43 }
 0x922   : > { %2581 = vrot.lane.b32.xlu1 %v15403_v44, %s10566_s29 }
 0x931   : > { %2579 = vrot.lane.b32.xlu0 %v15404_v14, %s10566_s29 }
 0x946   : > { %2316 = vmax.xlane.f32.xlu1 %v12005_v46 }
 0x94a   : > { %2312 = vmax.xlane.f32.xlu1 %v12009_v52 }
 0x988   : > { %v2291_v33 = vpop.xlane.xlu0 %2290 }
 0x989   : > { %v2320_v54 = vsub.f32 %v2232_v34, %v2291_v33 }
 0x98b   : > { %v2338_v12 = vmul.f32 1.442695, %v2320_v54  ;;  %v2289_v53 = vpop.xlane.xlu1 %2288 }
 0x98c   : > { %v2319_v56 = vsub.f32 %v2227_v32, %v2289_v53  ;;  %v2287_v17 = vpop.xlane.xlu0 %2286  ;;  %v15408_v53 = vld [vmem:[#allocation35_spill] sm:$0xff] }
 0x98d   : > { %9675 = vpow2.f32 %v2338_v12  ;;  %v2318_v14 = vsub.f32 %v2224_v59, %v2287_v17  ;;  %v15407_v17 = vld [vmem:[#allocation34_spill] sm:$0xff] }
 0x98e   : > { %v2336_v44 = vmul.f32 1.442695, %v2319_v56 }
 0x98f   : > { %v2334_v45 = vmul.f32 1.442695, %v2318_v14 }
 0x990   : > { %9677 = vpow2.f32 %v2336_v44  ;;  %v2293_v35 = vpop.xlane.xlu0 %2292 }
 0x991   : > { %9679 = vpow2.f32 %v2334_v45  ;;  %v2321_v3 = vsub.f32 %v2235_v38, %v2293_v35 }
 0x992   : > { %v2301_v14 = vpop.xlane.xlu1 %2300 }
 0x993   : > { %v2340_v36 = vmul.f32 1.442695, %v2321_v3  ;;  %v2325_v62 = vsub.f32 %v11961_v1, %v2301_v14 }
 0x994   : > { %v2299_v12 = vpop.xlane.xlu0 %2298 }
 0x995   : > { %9681 = vpow2.f32 %v2340_v36  ;;  %v2324_v34 = vsub.f32 %v11964_v41, %v2299_v12  ;;  %v2348_v9 = vmul.f32 1.442695, %v2325_v62 }
 0x996   : > { %v2297_v32 = vpop.xlane.xlu1 %2296 }
 0x997   : > { %v12014_v63 = vpop.eup %9675  ;;  %v2346_v38 = vmul.f32 1.442695, %v2324_v34  ;;  %v2323_v44 = vsub.f32 %v11968_v58, %v2297_v32 }
 0x998   : > { %2370 = vadd.xlane.f32.xlu1 %v12014_v63  ;;  %v2295_v54 = vpop.xlane.xlu0 %2294 }
 0x999   : > { %v2322_v3 = vsub.f32 %v11972_v29, %v2295_v54  ;;  %9683 = vpow2.f32 %v2346_v38  ;;  %v2344_v30 = vmul.f32 1.442695, %v2323_v44 }
 0x99a   : > { %v12017_v51 = vpop.eup %9677  ;;  %v2309_v45 = vpop.xlane.xlu1 %2308 }
 0x99b   : > { %v12019_v33 = vpop.eup %9679  ;;  %2368 = vadd.xlane.f32.xlu0 %v12017_v51  ;;  %v2329_v1 = vsub.f32 %v11976_v10, %v2309_v45 }
 0x99c   : > { %2366 = vadd.xlane.f32.xlu1 %v12019_v33  ;;  %v2307_v35 = vpop.xlane.xlu0 %2306 }
 0x99d   : > { %v2356_v62 = vmul.f32 1.442695, %v2329_v1 }
 0x99e   : > { %v2305_v6 = vpop.xlane.xlu1 %2304 }
 0x99f   : > { %v12023_v56 = vpop.eup %9681 }
 0x9a0   : > { %2372 = vadd.xlane.f32.xlu1 %v12023_v56  ;;  %v2303_v59 = vpop.xlane.xlu0 %2302 }
 0x9a1   : > { %v2326_v29 = vsub.f32 %v11988_v60, %v2303_v59  ;;  %v2327_v60 = vsub.f32 %v11984_v4, %v2305_v6 }
 0x9a3   : > { %v2350_v14 = vmul.f32 1.442695, %v2326_v29  ;;  %v12039_v32 = vpop.eup %9683 }
 0x9a4   : > { %v2315_v36 = vpop.xlane.xlu0 %2314 }
 0x9a5   : > { %v2332_v41 = vsub.f32 %v11993_v19, %v2315_v36 }
 0x9a7   : > { %v2362_v58 = vmul.f32 1.442695, %v2332_v41 }
 0x9a8   : > { %v2311_v54 = vpop.xlane.xlu0 %2310 }
 0x9a9   : > { %v2330_v34 = vsub.f32 %v11997_v43, %v2311_v54 }
 0x9ab   : > { %v2358_v19 = vmul.f32 1.442695, %v2330_v34 }
 0x9b1   : > { %2583 = vrot.lane.b32.xlu0 %v15407_v17, %s10566_s29  ;;  %2585 = vrot.lane.b32.xlu1 %v15408_v53, %s10566_s29  ;;  %v2342_v17 = vmul.f32 1.442695, %v2322_v3  ;;  %v2328_v53 = vsub.f32 %v11980_v13, %v2307_v35  ;;  %v12041_v13 = vpop.permute.xlu1 %2581 }
 0x9b3   : > { %9685 = vpow2.f32 %v2342_v17  ;;  %v2354_v12 = vmul.f32 1.442695, %v2328_v53  ;;  %v2352_v17 = vmul.f32 1.442695, %v2327_v60 }
 0x9b4   : > { %9687 = vpow2.f32 %v2344_v30 }
 0x9b5   : > { %9689 = vpow2.f32 %v2348_v9 }
 0x9b6   : > { %9691 = vpow2.f32 %v2354_v12  ;;  %v2580_v12 = vpop.permute.xlu0 %2579 }
 0x9b7   : > { %9693 = vpow2.f32 %v2362_v58 }
 0x9b8   : > { %9695 = vpow2.f32 %v2350_v14 }
 0x9b9   : > { %9697 = vpow2.f32 %v2358_v19 }
 0x9ba   : > { %9699 = vpow2.f32 %v2356_v62 }
 0x9bd   : > { %v12045_v9 = vpop.eup %9685 }
 0x9be   : > { %v12047_v43 = vpop.eup %9687 }
 0x9bf   : > { %v12052_v35 = vpop.eup %9689 }
 0x9c0   : > { %v12054_v4 = vpop.eup %9691 }
 0x9c1   : > { %v12059_v38 = vpop.eup %9693 }
 0x9c2   : > { %v12061_v3 = vpop.eup %9695 }
 0x9c3   : > { %v12065_v44 = vpop.eup %9697 }
 0x9c4   : > { %v12067_v45 = vpop.eup %9699 }
 0x9d0   : > { %2378 = vadd.xlane.f32.xlu0 %v12039_v32 }
 0x9d3   : > { %v2317_v30 = vpop.xlane.xlu1 %2316 }
 0x9d4   : > { %v2333_v10 = vsub.f32 %v12005_v46, %v2317_v30  ;;  %2374 = vadd.xlane.f32.xlu0 %v12045_v9 }
 0x9d5   : > { %2376 = vadd.xlane.f32.xlu1 %v12047_v43 }
 0x9d6   : > { %v2364_v53 = vmul.f32 1.442695, %v2333_v10 }
 0x9d7   : > { %v2313_v59 = vpop.xlane.xlu1 %2312 }
 0x9d8   : > { %9701 = vpow2.f32 %v2364_v53  ;;  %v2331_v6 = vsub.f32 %v12009_v52, %v2313_v59  ;;  %2380 = vadd.xlane.f32.xlu0 %v12052_v35 }
 0x9d9   : > { %2386 = vadd.xlane.f32.xlu1 %v12054_v4  ;;  %9703 = vpow2.f32 %v2352_v17 }
 0x9da   : > { %v2360_v46 = vmul.f32 1.442695, %v2331_v6  ;;  %v2616_v6 = vsel %vm1240_vm0, %v11903_v18, 0 }
 0x9dc   : > { %2394 = vadd.xlane.f32.xlu0 %v12059_v38  ;;  %9705 = vpow2.f32 %v2360_v46 }
 0x9dd   : > { %2382 = vadd.xlane.f32.xlu1 %v12061_v3 }
 0x9e0   : > { %2390 = vadd.xlane.f32.xlu0 %v12065_v44 }
 0x9e1   : > { %2388 = vadd.xlane.f32.xlu1 %v12067_v45 }
 0x9e2   : > { %v12071_v52 = vpop.eup %9701 }
 0x9e3   : > { %v12073_v36 = vpop.eup %9703 }
 0x9e4   : > { %2396 = vadd.xlane.f32.xlu0 %v12071_v52 }
 0x9e5   : > { %2384 = vadd.xlane.f32.xlu1 %v12073_v36 }
 0x9e6   : > { %v12077_v41 = vpop.eup %9705 }
 0x9e9   : > { %2392 = vadd.xlane.f32.xlu1 %v12077_v41 }
 0x9fa   : > { %2589 = vrot.lane.b32.xlu1 %v11326_v2, %s10566_s29  ;;  %2587 = vrot.lane.b32.xlu0 %v11318_v23, %s10566_s29 }
 0x9fe   : > { %2561 = vrot.lane.b32.xlu1 %v11253_v16, %s10566_s29  ;;  %2559 = vrot.lane.b32.xlu0 %v11234_v0, %s10566_s29 }
 0xa02   : > { %2565 = vrot.lane.b32.xlu1 %v11287_v20, %s10566_s29  ;;  %2563 = vrot.lane.b32.xlu0 %v11271_v37, %s10566_s29 }
 0xa06   : > { %2569 = vrot.lane.b32.xlu1 %v11312_v11, %s10566_s29  ;;  %2567 = vrot.lane.b32.xlu0 %v11303_v61, %s10566_s29 }
 0xa0a   : > { %2573 = vrot.lane.b32.xlu1 %v11328_v39, %s10566_s29  ;;  %2571 = vrot.lane.b32.xlu0 %v11320_v25, %s10566_s29 }
 0xa0e   : > { %2890 = vrot.lane.b32.xlu1 %v11242_v5, %s10566_s29  ;;  %2888 = vrot.lane.b32.xlu0 %v11246_v7, %s10566_s29 }
 0xa12   : > { %2894 = vrot.lane.b32.xlu1 %v11261_v22, %s10566_s29  ;;  %2892 = vrot.lane.b32.xlu0 %v11264_v24, %s10566_s29 }
 0xa16   : > { %2898 = vrot.lane.b32.xlu1 %v11277_v40, %s10566_s29  ;;  %2896 = vrot.lane.b32.xlu0 %v11280_v28, %s10566_s29 }
 0xa1a   : > { %2902 = vrot.lane.b32.xlu1 %v11293_v31, %s10566_s29  ;;  %2900 = vrot.lane.b32.xlu0 %v11296_v55, %s10566_s29 }
 0xa1e   : > { %3027 = vrot.lane.b32.xlu1 %v11250_v15, %s10567_s25  ;;  %3025 = vrot.lane.b32.xlu0 %v11232_v49, %s10567_s25 }
 0xa25   : > { %v2371_v29 = vpop.xlane.xlu1 %2370 }
 0xa28   : > { %v2369_v54 = vpop.xlane.xlu0 %2368 }
 0xa29   : > { %9707 = vrcp.f32 %v2369_v54  ;;  %v2367_v58 = vpop.xlane.xlu1 %2366 }
 0xa2a   : > { %9709 = vrcp.f32 %v2367_v58 }
 0xa2b   : > { %9711 = vrcp.f32 %v2371_v29 }
 0xa2c   : > { %v2584_v18 = vpop.permute.xlu0 %2583 }
 0xa2d   : > { %v2373_v34 = vpop.xlane.xlu1 %2372 }
 0xa2e   : > { %9713 = vrcp.f32 %v2373_v34 }
 0xa33   : > { %v9708_v1 = vpop.eup %9707 }
 0xa34   : > { %v9710_v14 = vpop.eup %9709  ;;  %v2415_v19 = vmul.f32 %v9708_v1, %v12017_v51  ;;  %v2619_v51 = vsel %vm1240_vm0, %v12012_v48, 0 }
 0xa35   : > { %v2414_v62 = vmul.f32 %v9710_v14, %v12019_v33  ;;  %v9712_v60 = vpop.eup %9711  ;;  %v2625_v33 = vsel %vm1240_vm0, %v12041_v13, 0 }
 0xa36   : > { %v2416_v17 = vmul.f32 %v9712_v60, %v12014_v63  ;;  %v2622_v63 = vsel %vm1240_vm0, %v2580_v12, 0 }
 0xa37   : > { %v2430_v30 = vpack.c.bf16 %v2415_v19, %v2414_v62 }
 0xa38   : > { %v9714_v10 = vpop.eup %9713 }
 0xa39   : > { %v2417_v53 = vmul.f32 %v9714_v10, %v12023_v56  ;;  %8523 = vmatprep.mubr.bf16.mxu1 %v2430_v30  ;;  %v2628_v56 = vsel %vm1240_vm0, %v2584_v18, 0 }
 0xa3b   : > { %v2431_v59 = vpack.c.bf16 %v2417_v53, %v2416_v17 }
 0xa3d   : > { %8524 = vmatmul.mubr.bf16.vlgmr.msra.gmra.mrb[48].mxu1 %v2431_v59 }
 0xa3e   : > { %8540 = vmatpush3.bf16.xpose.msra.mxu1 %v2616_v6 }
 0xa3f   : > { %8932 = vmatprep.subr.msk.bf16.mxu1 %vm1240_vm0, %v12012_v48  ;;  %v2586_v48 = vpop.permute.xlu1 %2585 }
 0xa40   : > { %v2631_v54 = vsel %vm1240_vm0, %v2586_v48, 0 }
 0xa46   : > { %8542 = vmatpush3.bf16.xpose.msra.mxu1 %v2619_v51 }
 0xa47   : > { %8933 = vmatprep.subr.msk.bf16.mxu1 %vm1240_vm0, %v2580_v12 }
 0xa4e   : > { %8544 = vmatpush3.bf16.xpose.msra.mxu1 %v2622_v63 }
 0xa4f   : > { %8934 = vmatprep.subr.msk.bf16.mxu1 %vm1240_vm0, %v12041_v13 }
 0xa56   : > { %8546 = vmatpush3.bf16.xpose.msra.mxu1 %v2625_v33 }
 0xa57   : > { %8935 = vmatprep.subr.msk.bf16.mxu1 %vm1240_vm0, %v2584_v18 }
 0xa5d   : > { %v2379_v46 = vpop.xlane.xlu0 %2378 }
 0xa5e   : > { %8548 = vmatpush3.bf16.xpose.msra.mxu1 %v2628_v56 }
 0xa5f   : > { %8936 = vmatprep.subr.msk.bf16.mxu1 %vm1240_vm0, %v2586_v48 }
 0xa61   : > { %v2375_v29 = vpop.xlane.xlu0 %2374 }
 0xa62   : > { %9715 = vrcp.f32 %v2375_v29  ;;  %v2377_v12 = vpop.xlane.xlu1 %2376 }
 0xa63   : > { %9717 = vrcp.f32 %v2377_v12 }
 0xa64   : > { %9719 = vrcp.f32 %v2379_v46 }
 0xa65   : > { %v2381_v58 = vpop.xlane.xlu0 %2380 }
 0xa66   : > { %8550 = vmatpush3.bf16.xpose.msra.mxu1 %v2631_v54  ;;  %9721 = vrcp.f32 %v2381_v58  ;;  %v2387_v13 = vpop.xlane.xlu1 %2386 }
 0xa69   : > { %v2395_v34 = vpop.xlane.xlu0 %2394 }
 0xa6a   : > { %v2383_v1 = vpop.xlane.xlu1 %2382 }
 0xa6c   : > { %v9716_v14 = vpop.eup %9715 }
 0xa6d   : > { %v9718_v19 = vpop.eup %9717  ;;  %v2391_v62 = vpop.xlane.xlu0 %2390  ;;  %v2418_v60 = vmul.f32 %v9716_v14, %v12045_v9 }
 0xa6e   : > { %v9720_v30 = vpop.eup %9719  ;;  %v2389_v10 = vpop.xlane.xlu1 %2388  ;;  %v2419_v17 = vmul.f32 %v9718_v19, %v12047_v43 }
 0xa6f   : > { %9723 = vrcp.f32 %v2389_v10  ;;  %v2420_v51 = vmul.f32 %v9720_v30, %v12039_v32 }
 0xa70   : > { %v9722_v53 = vpop.eup %9721  ;;  %v2432_v59 = vpack.c.bf16 %v2419_v17, %v2418_v60  ;;  %9725 = vrcp.f32 %v2383_v1 }
 0xa71   : > { %v2397_v6 = vpop.xlane.xlu0 %2396  ;;  %v2421_v63 = vmul.f32 %v9722_v53, %v12052_v35  ;;  %9727 = vrcp.f32 %v2387_v13 }
 0xa72   : > { %v2385_v33 = vpop.xlane.xlu1 %2384  ;;  %8527 = vmatprep.mubr.bf16.mxu1 %v2432_v59 }
 0xa73   : > { %9729 = vrcp.f32 %v2385_v33  ;;  %v2433_v18 = vpack.c.bf16 %v2421_v63, %v2420_v51 }
 0xa74   : > { %9731 = vrcp.f32 %v2391_v62 }
 0xa75   : > { %8528 = vmatmul.mubr.bf16.gmra.mrb[52].mxu1 %v2433_v18  ;;  %v2588_v9 = vpop.permute.xlu0 %2587 }
 0xa76   : > { %v2393_v56 = vpop.xlane.xlu1 %2392  ;;  %8937 = vmatprep.subr.msk.bf16.mxu1 %vm1240_vm0, %v2588_v9  ;;  %v2634_v43 = vsel %vm1240_vm0, %v2588_v9, 0 }
 0xa77   : > { %9733 = vrcp.f32 %v2393_v56  ;;  %8552 = vmatpush3.bf16.xpose.msra.mxu1 %v2634_v43 }
 0xa78   : > { %9735 = vrcp.f32 %v2397_v6 }
 0xa79   : > { %v2560_v46 = vpop.permute.xlu0 %2559  ;;  %v9724_v32 = vpop.eup %9723  ;;  %9737 = vrcp.f32 %v2395_v34 }
 0xa7a   : > { %v2590_v35 = vpop.permute.xlu1 %2589  ;;  %v9726_v48 = vpop.eup %9725  ;;  %v2425_v58 = vmul.f32 %v9724_v32, %v12067_v45 }
 0xa7b   : > { %8938 = vmatprep.subr.msk.bf16.mxu1 %vm1240_vm0, %v2590_v35  ;;  %v9728_v29 = vpop.eup %9727  ;;  %v2637_v1 = vsel %vm1240_vm0, %v2590_v35, 0  ;;  %v2422_v14 = vmul.f32 %v9726_v48, %v12061_v3 }
 0xa7c   : > { %v2424_v34 = vmul.f32 %v9728_v29, %v12054_v4 }
 0xa7d   : > { %v9730_v12 = vpop.eup %9729  ;;  %v2564_v54 = vpop.permute.xlu0 %2563 }
 0xa7e   : > { %v2562_v13 = vpop.permute.xlu1 %2561  ;;  %v2423_v19 = vmul.f32 %v9730_v12, %v12073_v36  ;;  %v9732_v62 = vpop.eup %9731  ;;  %v2435_v17 = vpack.c.bf16 %v2425_v58, %v2424_v34 }
 0xa7f   : > { %8554 = vmatpush3.bf16.xpose.msra.mxu1 %v2637_v1  ;;  %v2426_v45 = vmul.f32 %v9732_v62, %v12065_v44 }
 0xa80   : > { %v2434_v60 = vpack.c.bf16 %v2423_v19, %v2422_v14 }
 0xa81   : > { %v9734_v30 = vpop.eup %9733  ;;  %v2568_v10 = vpop.permute.xlu0 %2567 }
 0xa82   : > { %v9736_v53 = vpop.eup %9735  ;;  %v2566_v59 = vpop.permute.xlu1 %2565  ;;  %8531 = vmatprep.mubr.bf16.mxu1 %v2434_v60  ;;  %v2427_v6 = vmul.f32 %v9734_v30, %v12077_v41  ;;  %v15426_v60 = vld [vmem:[#allocation37_spill] sm:$0xff] }
 0xa83   : > { %8532 = vmatmul.mubr.bf16.gmra.mrb[56].mxu1 %v2435_v17  ;;  %v9738_v51 = vpop.eup %9737  ;;  %v2429_v36 = vmul.f32 %v9736_v53, %v12071_v52 }
 0xa84   : > { %v2436_v3 = vpack.c.bf16 %v2427_v6, %v2426_v45  ;;  %v2428_v4 = vmul.f32 %v9738_v51, %v12059_v38  ;;  %v15425_v45 = vld [vmem:[#allocation38_spill] sm:$0xff] }
 0xa85   : > { %v2572_v63 = vpop.permute.xlu0 %2571 }
 0xa86   : > { %v2570_v33 = vpop.permute.xlu1 %2569  ;;  %8535 = vmatprep.mubr.bf16.mxu1 %v2436_v3  ;;  %v2437_v9 = vpack.c.bf16 %v2429_v36, %v2428_v4 }
 0xa89   : > { %v2889_v18 = vpop.permute.xlu0 %2888 }
 0xa8a   : > { %v2574_v56 = vpop.permute.xlu1 %2573  ;;  %8571 = vmatprep.subr.bf16.mxu0 %v2889_v18 }
 0xa8b   : > { %8536 = vmatmul.mubr.bf16.gmra.mrb[60].mxu1 %v2437_v9  ;;  %8572 = vmatpush3.bf16.msra.mxu0 %v2889_v18 }
 0xa8c   : > { %8555 = vmatprep.mubr.msk.bf16.mxu1 %vm1240_vm0, %v2560_v46 }
 0xa8d   : > { %v2893_v41 = vpop.permute.xlu0 %2892 }
 0xa8e   : > { %v2891_v44 = vpop.permute.xlu1 %2890 }
 0xa8f   : > { %8573 = vmatprep.subr.bf16.mxu0 %v2891_v44 }
 0xa90   : > { %8574 = vmatpush3.bf16.msra.mxu0 %v2891_v44 }
 0xa91   : > { %8575 = vmatprep.subr.bf16.mxu0 %v2893_v41  ;;  %v2897_v38 = vpop.permute.xlu0 %2896 }
 0xa92   : > { %v2895_v52 = vpop.permute.xlu1 %2894 }
 0xa93   : > { %8556 = vmatmul.mubr.msk.bf16.vlgmr.msra.gmra.mrb[64].mxu1 %vm1240_vm0, %v2562_v13 }
 0xa94   : > { %8559 = vmatprep.mubr.msk.bf16.mxu1 %vm1240_vm0, %v2564_v54  ;;  %8576 = vmatpush3.bf16.msra.mxu0 %v2893_v41 }
 0xa95   : > { %8577 = vmatprep.subr.bf16.mxu0 %v2895_v52  ;;  %v2901_v46 = vpop.permute.xlu0 %2900 }
 0xa96   : > { %v2899_v43 = vpop.permute.xlu1 %2898 }
 0xa98   : > { %8578 = vmatpush3.bf16.msra.mxu0 %v2895_v52 }
 0xa99   : > { %8579 = vmatprep.subr.bf16.mxu0 %v2897_v38  ;;  %v12163_v35 = vpop.permute.xlu0 %3025 }
 0xa9a   : > { %v2903_v32 = vpop.permute.xlu1 %2902 }
 0xa9b   : > { %8560 = vmatmul.mubr.msk.bf16.gmra.mrb[68].mxu1 %vm1240_vm0, %v2566_v59 }
 0xa9c   : > { %8563 = vmatprep.mubr.msk.bf16.mxu1 %vm1240_vm0, %v2568_v10  ;;  %8580 = vmatpush3.bf16.msra.mxu0 %v2897_v38 }
 0xa9d   : > { %8581 = vmatprep.subr.bf16.mxu0 %v2899_v43 }
 0xaa0   : > { %8582 = vmatpush3.bf16.msra.mxu0 %v2899_v43 }
 0xaa1   : > { %8583 = vmatprep.subr.bf16.mxu0 %v2901_v46 }
 0xaa3   : > { %8564 = vmatmul.mubr.msk.bf16.gmra.mrb[72].mxu1 %vm1240_vm0, %v2570_v33 }
 0xaa4   : > { %8567 = vmatprep.mubr.msk.bf16.mxu1 %vm1240_vm0, %v2572_v63  ;;  %8584 = vmatpush3.bf16.msra.mxu0 %v2901_v46 }
 0xaa5   : > { %8585 = vmatprep.subr.bf16.mxu0 %v2903_v32 }
 0xaa8   : > { %8586 = vmatpush3.bf16.msra.mxu0 %v2903_v32 }
 0xaa9   : > { %8939 = vmatprep.subr.msk.bf16.mxu0 %vm1240_vm0, %v12163_v35 }
 0xaab   : > { %8568 = vmatmul.mubr.msk.bf16.gmra.mrb[76].mxu1 %vm1240_vm0, %v2574_v56 }
 0xb10   : > { %v12168_v48 = vpop.f32.mrb[48].mxu1 }
 0xb11   : > { %15409 = vst [vmem:[#allocation76_spill] sm:$0xff] %v12168_v48  ;;  %v12170_v29 = vpop.f32.mrb[49].mxu1 }
 0xb12   : > { %15410 = vst [vmem:[#allocation77_spill] sm:$0xff] %v12170_v29  ;;  %v12172_v12 = vpop.f32.mrb[50].mxu1 }
 0xb13   : > { %15411 = vst [vmem:[#allocation78_spill] sm:$0xff] %v12172_v12  ;;  %v12176_v58 = vpop.f32.mrb[51].mxu1 }
 0xb14   : > { %15412 = vst [vmem:[#allocation79_spill] sm:$0xff] %v12176_v58 }
 0xb48   : > { %v12180_v1 = vpop.f32.mrb[52].mxu1 }
 0xb49   : > { %15413 = vst [vmem:[#allocation80_spill] sm:$0xff] %v12180_v1  ;;  %v12182_v14 = vpop.f32.mrb[53].mxu1 }
 0xb4a   : > { %15414 = vst [vmem:[#allocation81_spill] sm:$0xff] %v12182_v14  ;;  %v12184_v19 = vpop.f32.mrb[54].mxu1 }
 0xb4b   : > { %15415 = vst [vmem:[#allocation82_spill] sm:$0xff] %v12184_v19  ;;  %v12188_v34 = vpop.f32.mrb[55].mxu1 }
 0xb4c   : > { %15416 = vst [vmem:[#allocation83_spill] sm:$0xff] %v12188_v34 }
 0xb56   : > { %v12192_v30 = vpop.f32.mrb[56].mxu1 }
 0xb57   : > { %15417 = vst [vmem:[#allocation84_spill] sm:$0xff] %v12192_v30  ;;  %v12194_v10 = vpop.f32.mrb[57].mxu1 }
 0xb58   : > { %15418 = vst [vmem:[#allocation85_spill] sm:$0xff] %v12194_v10  ;;  %v12196_v17 = vpop.f32.mrb[58].mxu1  ;;  %v15432_v10 = vld [vmem:[#allocation28_spill] sm:$0xff] }
 0xb59   : > { %15419 = vst [vmem:[#allocation86_spill] sm:$0xff] %v12196_v17  ;;  %v12200_v59 = vpop.f32.mrb[59].mxu1 }
 0xb5a   : > { %15420 = vst [vmem:[#allocation87_spill] sm:$0xff] %v12200_v59  ;;  %v15433_v59 = vld [vmem:[#allocation43_spill] sm:$0xff] }
 0xb5e   : > { %v12204_v6 = vpop.f32.mrb[60].mxu1 }
 0xb5f   : > { %15421 = vst [vmem:[#allocation88_spill] sm:$0xff] %v12204_v6  ;;  %v12206_v51 = vpop.f32.mrb[61].mxu1 }
 0xb60   : > { %15422 = vst [vmem:[#allocation89_spill] sm:$0xff] %v12206_v51  ;;  %v12208_v3 = vpop.f32.mrb[62].mxu1  ;;  %v15428_v51 = vld [vmem:[#allocation39_spill] sm:$0xff] }
 0xb61   : > { %15423 = vst [vmem:[#allocation90_spill] sm:$0xff] %v12208_v3  ;;  %v12212_v36 = vpop.f32.mrb[63].mxu1 }
 0xb62   : > { %15424 = vst [vmem:[#allocation91_spill] sm:$0xff] %v12212_v36 }
 0xb66   : > { %v8557_v4 = vpop.f32.mrb[64].mxu1 }
 0xb67   : > { %v2682_v18 = vadd.f32 %v8557_v4, %v11362_v21  ;;  %v2673_v9 = vpop.f32.mrb[65].mxu1 }
 0xb68   : > { %v8558_v56 = vpop.f32.mrb[66].mxu1  ;;  %v2674_v52 = vadd.f32 %v2673_v9, %v11376_v47 }
 0xb69   : > { %2740 = vmax.xlane.f32.xlu0 %v2682_v18  ;;  %v2676_v44 = vpop.f32.mrb[67].mxu1  ;;  %v2685_v43 = vadd.f32 %v8558_v56, %v11368_v27 }
 0xb6a   : > { %v2677_v41 = vadd.f32 %v2676_v44, %v11385_v42 }
 0xb6c   : > { %2738 = vmax.xlane.f32.xlu1 %v2677_v41 }
 0xb6d   : > { %2736 = vmax.xlane.f32.xlu0 %v2674_v52 }
 0xb6e   : > { %v8561_v38 = vpop.f32.mrb[68].mxu1 }
 0xb6f   : > { %v2689_v46 = vpop.f32.mrb[69].mxu1  ;;  %v12224_v63 = vadd.f32 %v8561_v38, %v11394_v8 }
 0xb70   : > { %v8562_v32 = vpop.f32.mrb[70].mxu1  ;;  %v12232_v56 = vadd.f32 %v2689_v46, %v15368_v50 }
 0xb71   : > { %v12221_v33 = vadd.f32 %v8562_v32, %v11403_v57  ;;  %2742 = vmax.xlane.f32.xlu0 %v2685_v43  ;;  %v2692_v4 = vpop.f32.mrb[71].mxu1 }
 0xb72   : > { %v12228_v44 = vadd.f32 %v2692_v4, %v11421_v26  ;;  %v15427_v4 = vld [vmem:[#allocation40_spill] sm:$0xff] }
 0xb73   : > { %2750 = vmax.xlane.f32.xlu1 %v12221_v33 }
 0xb75   : > { %2748 = vmax.xlane.f32.xlu0 %v12224_v63 }
 0xb76   : > { %v8565_v9 = vpop.f32.mrb[72].mxu1 }
 0xb77   : > { %2746 = vmax.xlane.f32.xlu1 %v12228_v44  ;;  %v2705_v32 = vpop.f32.mrb[73].mxu1  ;;  %v12240_v54 = vadd.f32 %v8565_v9, %v15426_v60  ;;  %v15429_v9 = vld [vmem:[#allocation41_spill] sm:$0xff] }
 0xb78   : > { %v8566_v53 = vpop.f32.mrb[74].mxu1  ;;  %v12248_v36 = vadd.f32 %v2705_v32, %v15428_v51  ;;  %v15431_v32 = vld [vmem:[#allocation31_spill] sm:$0xff] }
 0xb79   : > { %v12236_v62 = vadd.f32 %v8566_v53, %v15425_v45  ;;  %2744 = vmax.xlane.f32.xlu0 %v12232_v56  ;;  %v2708_v38 = vpop.f32.mrb[75].mxu1 }
 0xb7a   : > { %v12244_v13 = vadd.f32 %v2708_v38, %v15427_v4  ;;  %v15430_v38 = vld [vmem:[#allocation42_spill] sm:$0xff] }
 0xb7b   : > { %2758 = vmax.xlane.f32.xlu1 %v12236_v62 }
 0xb7d   : > { %2756 = vmax.xlane.f32.xlu0 %v12240_v54 }
 0xb7e   : > { %v8569_v46 = vpop.f32.mrb[76].mxu1 }
 0xb7f   : > { %2754 = vmax.xlane.f32.xlu1 %v12244_v13  ;;  %v2721_v53 = vpop.f32.mrb[77].mxu1  ;;  %v12253_v30 = vadd.f32 %v8569_v46, %v15429_v9  ;;  %v15434_v46 = vld [vmem:[#allocation44_spill] sm:$0xff] }
 0xb80   : > { %v8570_v6 = vpop.f32.mrb[78].mxu1  ;;  %v12257_v17 = vadd.f32 %v2721_v53, %v15430_v38  ;;  %v12272_v53 = vpop.permute.xlu1 %3027 }
 0xb81   : > { %2752 = vmax.xlane.f32.xlu0 %v12248_v36  ;;  %v2724_v3 = vpop.f32.mrb[79].mxu1  ;;  %v12265_v1 = vadd.f32 %v8570_v6, %v15433_v59 }
 0xb82   : > { %v12269_v19 = vadd.f32 %v2724_v3, %v15434_v46 }
 0xb85   : > { %2764 = vmax.xlane.f32.xlu0 %v12253_v30 }
 0xb89   : > { %2760 = vmax.xlane.f32.xlu0 %v12257_v17 }
 0xb90   : > { %3031 = vrot.lane.b32.xlu1 %v15431_v32, %s10567_s25 }
 0xb9f   : > { %3029 = vrot.lane.b32.xlu0 %v15432_v10, %s10567_s25 }
 0xbb4   : > { %2766 = vmax.xlane.f32.xlu1 %v12265_v1 }
 0xbb8   : > { %2762 = vmax.xlane.f32.xlu1 %v12269_v19 }
 0xbf6   : > { %v2741_v14 = vpop.xlane.xlu0 %2740 }
 0xbf7   : > { %v2770_v34 = vsub.f32 %v2682_v18, %v2741_v14 }
 0xbf9   : > { %v2788_v48 = vmul.f32 1.442695, %v2770_v34  ;;  %v2739_v12 = vpop.xlane.xlu1 %2738 }
 0xbfa   : > { %v2769_v29 = vsub.f32 %v2677_v41, %v2739_v12  ;;  %v2737_v58 = vpop.xlane.xlu0 %2736  ;;  %v15435_v12 = vld [vmem:[#allocation34_spill] sm:$0xff] }
 0xbfb   : > { %9739 = vpow2.f32 %v2788_v48  ;;  %v2768_v10 = vsub.f32 %v2674_v52, %v2737_v58  ;;  %v15436_v58 = vld [vmem:[#allocation35_spill] sm:$0xff] }
 0xbfc   : > { %v2786_v32 = vmul.f32 1.442695, %v2769_v29 }
 0xbfd   : > { %v2784_v6 = vmul.f32 1.442695, %v2768_v10 }
 0xbfe   : > { %9741 = vpow2.f32 %v2786_v32  ;;  %v2743_v59 = vpop.xlane.xlu0 %2742 }
 0xbff   : > { %9743 = vpow2.f32 %v2784_v6  ;;  %v2771_v38 = vsub.f32 %v2685_v43, %v2743_v59 }
 0xc00   : > { %v2751_v10 = vpop.xlane.xlu1 %2750 }
 0xc01   : > { %v2790_v3 = vmul.f32 1.442695, %v2771_v38  ;;  %v2775_v51 = vsub.f32 %v12221_v33, %v2751_v10 }
 0xc02   : > { %v2749_v29 = vpop.xlane.xlu0 %2748 }
 0xc03   : > { %9745 = vpow2.f32 %v2790_v3  ;;  %v2774_v18 = vsub.f32 %v12224_v63, %v2749_v29  ;;  %v2798_v60 = vmul.f32 1.442695, %v2775_v51 }
 0xc04   : > { %v2747_v41 = vpop.xlane.xlu1 %2746 }
 0xc05   : > { %v12274_v46 = vpop.eup %9739  ;;  %v2796_v43 = vmul.f32 1.442695, %v2774_v18  ;;  %v2773_v32 = vsub.f32 %v12228_v44, %v2747_v41 }
 0xc06   : > { %2820 = vadd.xlane.f32.xlu1 %v12274_v46  ;;  %v2745_v34 = vpop.xlane.xlu0 %2744 }
 0xc07   : > { %v2772_v38 = vsub.f32 %v12232_v56, %v2745_v34  ;;  %9747 = vpow2.f32 %v2796_v43  ;;  %v2794_v4 = vmul.f32 1.442695, %v2773_v32 }
 0xc08   : > { %v12277_v9 = vpop.eup %9741  ;;  %v2759_v6 = vpop.xlane.xlu1 %2758 }
 0xc09   : > { %v12279_v14 = vpop.eup %9743  ;;  %2818 = vadd.xlane.f32.xlu0 %v12277_v9  ;;  %v2779_v33 = vsub.f32 %v12236_v62, %v2759_v6 }
 0xc0a   : > { %2816 = vadd.xlane.f32.xlu1 %v12279_v14  ;;  %v2757_v59 = vpop.xlane.xlu0 %2756 }
 0xc0b   : > { %v2806_v51 = vmul.f32 1.442695, %v2779_v33 }
 0xc0c   : > { %v2755_v45 = vpop.xlane.xlu1 %2754 }
 0xc0d   : > { %v12283_v48 = vpop.eup %9745 }
 0xc0e   : > { %2822 = vadd.xlane.f32.xlu1 %v12283_v48  ;;  %v2753_v52 = vpop.xlane.xlu0 %2752 }
 0xc0f   : > { %v2776_v56 = vsub.f32 %v12248_v36, %v2753_v52  ;;  %v2777_v36 = vsub.f32 %v12244_v13, %v2755_v45 }
 0xc11   : > { %v2800_v10 = vmul.f32 1.442695, %v2776_v56  ;;  %v12299_v41 = vpop.eup %9747 }
 0xc12   : > { %v2765_v3 = vpop.xlane.xlu0 %2764 }
 0xc13   : > { %v2782_v63 = vsub.f32 %v12253_v30, %v2765_v3 }
 0xc15   : > { %v2812_v44 = vmul.f32 1.442695, %v2782_v63 }
 0xc16   : > { %v2761_v34 = vpop.xlane.xlu0 %2760 }
 0xc17   : > { %v2780_v18 = vsub.f32 %v12257_v17, %v2761_v34 }
 0xc19   : > { %v2808_v30 = vmul.f32 1.442695, %v2780_v18 }
 0xc1f   : > { %3033 = vrot.lane.b32.xlu0 %v15435_v12, %s10567_s25  ;;  %3035 = vrot.lane.b32.xlu1 %v15436_v58, %s10567_s25  ;;  %v2792_v12 = vmul.f32 1.442695, %v2772_v38  ;;  %v2778_v58 = vsub.f32 %v12240_v54, %v2757_v59  ;;  %v12301_v54 = vpop.permute.xlu1 %3031 }
 0xc21   : > { %9749 = vpow2.f32 %v2792_v12  ;;  %v2804_v29 = vmul.f32 1.442695, %v2778_v58  ;;  %v2802_v12 = vmul.f32 1.442695, %v2777_v36 }
 0xc22   : > { %9751 = vpow2.f32 %v2794_v4 }
 0xc23   : > { %9753 = vpow2.f32 %v2798_v60 }
 0xc24   : > { %9755 = vpow2.f32 %v2804_v29  ;;  %v3030_v29 = vpop.permute.xlu0 %3029 }
 0xc25   : > { %9757 = vpow2.f32 %v2812_v44 }
 0xc26   : > { %9759 = vpow2.f32 %v2800_v10 }
 0xc27   : > { %9761 = vpow2.f32 %v2808_v30 }
 0xc28   : > { %9763 = vpow2.f32 %v2806_v51 }
 0xc2b   : > { %v12305_v60 = vpop.eup %9749 }
 0xc2c   : > { %v12307_v17 = vpop.eup %9751 }
 0xc2d   : > { %v12312_v59 = vpop.eup %9753 }
 0xc2e   : > { %v12314_v13 = vpop.eup %9755 }
 0xc2f   : > { %v12319_v43 = vpop.eup %9757 }
 0xc30   : > { %v12321_v38 = vpop.eup %9759 }
 0xc31   : > { %v12325_v32 = vpop.eup %9761 }
 0xc32   : > { %v12327_v6 = vpop.eup %9763 }
 0xc3e   : > { %2828 = vadd.xlane.f32.xlu0 %v12299_v41 }
 0xc41   : > { %v2767_v4 = vpop.xlane.xlu1 %2766 }
 0xc42   : > { %v2783_v62 = vsub.f32 %v12265_v1, %v2767_v4  ;;  %2824 = vadd.xlane.f32.xlu0 %v12305_v60 }
 0xc43   : > { %2826 = vadd.xlane.f32.xlu1 %v12307_v17 }
 0xc44   : > { %v2814_v58 = vmul.f32 1.442695, %v2783_v62 }
 0xc45   : > { %v2763_v52 = vpop.xlane.xlu1 %2762 }
 0xc46   : > { %9765 = vpow2.f32 %v2814_v58  ;;  %v2781_v45 = vsub.f32 %v12269_v19, %v2763_v52  ;;  %2830 = vadd.xlane.f32.xlu0 %v12312_v59 }
 0xc47   : > { %2836 = vadd.xlane.f32.xlu1 %v12314_v13  ;;  %9767 = vpow2.f32 %v2802_v12 }
 0xc48   : > { %v2810_v1 = vmul.f32 1.442695, %v2781_v45  ;;  %v3066_v45 = vsel %vm1240_vm0, %v12163_v35, 0 }
 0xc4a   : > { %2844 = vadd.xlane.f32.xlu0 %v12319_v43  ;;  %9769 = vpow2.f32 %v2810_v1 }
 0xc4b   : > { %2832 = vadd.xlane.f32.xlu1 %v12321_v38 }
 0xc4e   : > { %2840 = vadd.xlane.f32.xlu0 %v12325_v32 }
 0xc4f   : > { %2838 = vadd.xlane.f32.xlu1 %v12327_v6 }
 0xc50   : > { %v12331_v19 = vpop.eup %9765 }
 0xc51   : > { %v12333_v3 = vpop.eup %9767 }
 0xc52   : > { %2846 = vadd.xlane.f32.xlu0 %v12331_v19 }
 0xc53   : > { %2834 = vadd.xlane.f32.xlu1 %v12333_v3 }
 0xc54   : > { %v12337_v63 = vpop.eup %9769 }
 0xc57   : > { %2842 = vadd.xlane.f32.xlu1 %v12337_v63 }
 0xc68   : > { %3039 = vrot.lane.b32.xlu1 %v11326_v2, %s10567_s25  ;;  %3037 = vrot.lane.b32.xlu0 %v11318_v23, %s10567_s25 }
 0xc6c   : > { %3011 = vrot.lane.b32.xlu1 %v11253_v16, %s10567_s25  ;;  %3009 = vrot.lane.b32.xlu0 %v11234_v0, %s10567_s25 }
 0xc70   : > { %3015 = vrot.lane.b32.xlu1 %v11287_v20, %s10567_s25  ;;  %3013 = vrot.lane.b32.xlu0 %v11271_v37, %s10567_s25 }
 0xc74   : > { %3019 = vrot.lane.b32.xlu1 %v11312_v11, %s10567_s25  ;;  %3017 = vrot.lane.b32.xlu0 %v11303_v61, %s10567_s25 }
 0xc78   : > { %3023 = vrot.lane.b32.xlu1 %v11328_v39, %s10567_s25  ;;  %3021 = vrot.lane.b32.xlu0 %v11320_v25, %s10567_s25 }
 0xc7c   : > { %3340 = vrot.lane.b32.xlu1 %v11242_v5, %s10567_s25  ;;  %3338 = vrot.lane.b32.xlu0 %v11246_v7, %s10567_s25 }
 0xc80   : > { %3344 = vrot.lane.b32.xlu1 %v11261_v22, %s10567_s25  ;;  %3342 = vrot.lane.b32.xlu0 %v11264_v24, %s10567_s25 }
 0xc84   : > { %3348 = vrot.lane.b32.xlu1 %v11277_v40, %s10567_s25  ;;  %3346 = vrot.lane.b32.xlu0 %v11280_v28, %s10567_s25 }
 0xc88   : > { %3352 = vrot.lane.b32.xlu1 %v11293_v31, %s10567_s25  ;;  %3350 = vrot.lane.b32.xlu0 %v11296_v55, %s10567_s25 }
 0xc8c   : > { %3477 = vrot.lane.b32.xlu1 %v11250_v15, %s10568_s4  ;;  %3475 = vrot.lane.b32.xlu0 %v11232_v49, %s10568_s4 }
 0xc93   : > { %v2821_v56 = vpop.xlane.xlu1 %2820 }
 0xc96   : > { %v2819_v34 = vpop.xlane.xlu0 %2818 }
 0xc97   : > { %9771 = vrcp.f32 %v2819_v34  ;;  %v2817_v44 = vpop.xlane.xlu1 %2816 }
 0xc98   : > { %9773 = vrcp.f32 %v2817_v44 }
 0xc99   : > { %9775 = vrcp.f32 %v2821_v56 }
 0xc9a   : > { %v3034_v35 = vpop.permute.xlu0 %3033 }
 0xc9b   : > { %v2823_v18 = vpop.xlane.xlu1 %2822 }
 0xc9c   : > { %9777 = vrcp.f32 %v2823_v18 }
 0xca1   : > { %v9772_v33 = vpop.eup %9771 }
 0xca2   : > { %v9774_v10 = vpop.eup %9773  ;;  %v2865_v30 = vmul.f32 %v9772_v33, %v12277_v9  ;;  %v3069_v9 = vsel %vm1240_vm0, %v12272_v53, 0 }
 0xca3   : > { %v2864_v51 = vmul.f32 %v9774_v10, %v12279_v14  ;;  %v9776_v36 = vpop.eup %9775  ;;  %v3075_v14 = vsel %vm1240_vm0, %v12301_v54, 0 }
 0xca4   : > { %v2866_v12 = vmul.f32 %v9776_v36, %v12274_v46  ;;  %v3072_v46 = vsel %vm1240_vm0, %v3030_v29, 0 }
 0xca5   : > { %v2880_v4 = vpack.c.bf16 %v2865_v30, %v2864_v51 }
 0xca6   : > { %v9778_v62 = vpop.eup %9777 }
 0xca7   : > { %v2867_v58 = vmul.f32 %v9778_v62, %v12283_v48  ;;  %8587 = vmatprep.mubr.bf16.mxu0 %v2880_v4  ;;  %v3078_v48 = vsel %vm1240_vm0, %v3034_v35, 0 }
 0xca9   : > { %v2881_v52 = vpack.c.bf16 %v2867_v58, %v2866_v12 }
 0xcab   : > { %8588 = vmatmul.mubr.bf16.vlgmr.msra.gmra.mrb[80].mxu0 %v2881_v52 }
 0xcac   : > { %8604 = vmatpush3.bf16.xpose.msra.mxu0 %v3066_v45 }
 0xcad   : > { %8940 = vmatprep.subr.msk.bf16.mxu0 %vm1240_vm0, %v12272_v53  ;;  %v3036_v53 = vpop.permute.xlu1 %3035 }
 0xcae   : > { %v3081_v34 = vsel %vm1240_vm0, %v3036_v53, 0 }
 0xcb4   : > { %8606 = vmatpush3.bf16.xpose.msra.mxu0 %v3069_v9 }
 0xcb5   : > { %8941 = vmatprep.subr.msk.bf16.mxu0 %vm1240_vm0, %v3030_v29 }
 0xcbc   : > { %8608 = vmatpush3.bf16.xpose.msra.mxu0 %v3072_v46 }
 0xcbd   : > { %8942 = vmatprep.subr.msk.bf16.mxu0 %vm1240_vm0, %v12301_v54 }
 0xcc4   : > { %8610 = vmatpush3.bf16.xpose.msra.mxu0 %v3075_v14 }
 0xcc5   : > { %8943 = vmatprep.subr.msk.bf16.mxu0 %vm1240_vm0, %v3034_v35 }
 0xccb   : > { %v2829_v1 = vpop.xlane.xlu0 %2828 }
 0xccc   : > { %8612 = vmatpush3.bf16.xpose.msra.mxu0 %v3078_v48 }
 0xccd   : > { %8944 = vmatprep.subr.msk.bf16.mxu0 %vm1240_vm0, %v3036_v53 }
 0xccf   : > { %v2825_v56 = vpop.xlane.xlu0 %2824 }
 0xcd0   : > { %9779 = vrcp.f32 %v2825_v56  ;;  %v2827_v29 = vpop.xlane.xlu1 %2826 }
 0xcd1   : > { %9781 = vrcp.f32 %v2827_v29 }
 0xcd2   : > { %9783 = vrcp.f32 %v2829_v1 }
 0xcd3   : > { %v2831_v44 = vpop.xlane.xlu0 %2830 }
 0xcd4   : > { %8614 = vmatpush3.bf16.xpose.msra.mxu0 %v3081_v34  ;;  %9785 = vrcp.f32 %v2831_v44  ;;  %v2837_v54 = vpop.xlane.xlu1 %2836 }
 0xcd7   : > { %v2845_v18 = vpop.xlane.xlu0 %2844 }
 0xcd8   : > { %v2833_v33 = vpop.xlane.xlu1 %2832 }
 0xcda   : > { %v9780_v10 = vpop.eup %9779 }
 0xcdb   : > { %v9782_v30 = vpop.eup %9781  ;;  %v2841_v51 = vpop.xlane.xlu0 %2840  ;;  %v2868_v36 = vmul.f32 %v9780_v10, %v12305_v60 }
 0xcdc   : > { %v9784_v4 = vpop.eup %9783  ;;  %v2839_v62 = vpop.xlane.xlu1 %2838  ;;  %v2869_v12 = vmul.f32 %v9782_v30, %v12307_v17 }
 0xcdd   : > { %9787 = vrcp.f32 %v2839_v62  ;;  %v2870_v9 = vmul.f32 %v9784_v4, %v12299_v41 }
 0xcde   : > { %v9786_v58 = vpop.eup %9785  ;;  %v2882_v52 = vpack.c.bf16 %v2869_v12, %v2868_v36  ;;  %9789 = vrcp.f32 %v2833_v33 }
 0xcdf   : > { %v2847_v45 = vpop.xlane.xlu0 %2846  ;;  %v2871_v46 = vmul.f32 %v9786_v58, %v12312_v59  ;;  %9791 = vrcp.f32 %v2837_v54 }
 0xce0   : > { %v2835_v14 = vpop.xlane.xlu1 %2834  ;;  %8591 = vmatprep.mubr.bf16.mxu0 %v2882_v52 }
 0xce1   : > { %9793 = vrcp.f32 %v2835_v14  ;;  %v2883_v35 = vpack.c.bf16 %v2871_v46, %v2870_v9 }
 0xce2   : > { %9795 = vrcp.f32 %v2841_v51 }
 0xce3   : > { %8592 = vmatmul.mubr.bf16.gmra.mrb[84].mxu0 %v2883_v35  ;;  %v3038_v60 = vpop.permute.xlu0 %3037 }
 0xce4   : > { %v2843_v48 = vpop.xlane.xlu1 %2842  ;;  %8945 = vmatprep.subr.msk.bf16.mxu0 %vm1240_vm0, %v3038_v60  ;;  %v3084_v17 = vsel %vm1240_vm0, %v3038_v60, 0 }
 0xce5   : > { %9797 = vrcp.f32 %v2843_v48  ;;  %8616 = vmatpush3.bf16.xpose.msra.mxu0 %v3084_v17 }
 0xce6   : > { %9799 = vrcp.f32 %v2847_v45 }
 0xce7   : > { %v3010_v1 = vpop.permute.xlu0 %3009  ;;  %v9788_v41 = vpop.eup %9787  ;;  %9801 = vrcp.f32 %v2845_v18 }
 0xce8   : > { %v3040_v59 = vpop.permute.xlu1 %3039  ;;  %v9790_v53 = vpop.eup %9789  ;;  %v2875_v44 = vmul.f32 %v9788_v41, %v12327_v6 }
 0xce9   : > { %8946 = vmatprep.subr.msk.bf16.mxu0 %vm1240_vm0, %v3040_v59  ;;  %v9792_v56 = vpop.eup %9791  ;;  %v3087_v33 = vsel %vm1240_vm0, %v3040_v59, 0  ;;  %v2872_v10 = vmul.f32 %v9790_v53, %v12321_v38 }
 0xcea   : > { %v2874_v18 = vmul.f32 %v9792_v56, %v12314_v13 }
 0xceb   : > { %v9794_v29 = vpop.eup %9793  ;;  %v3014_v34 = vpop.permute.xlu0 %3013 }
 0xcec   : > { %v3012_v54 = vpop.permute.xlu1 %3011  ;;  %v2873_v30 = vmul.f32 %v9794_v29, %v12333_v3  ;;  %v9796_v51 = vpop.eup %9795  ;;  %v2885_v12 = vpack.c.bf16 %v2875_v44, %v2874_v18 }
 0xced   : > { %8618 = vmatpush3.bf16.xpose.msra.mxu0 %v3087_v33  ;;  %v2876_v6 = vmul.f32 %v9796_v51, %v12325_v32 }
 0xcee   : > { %v2884_v36 = vpack.c.bf16 %v2873_v30, %v2872_v10 }
 0xcef   : > { %v9798_v4 = vpop.eup %9797  ;;  %v3018_v62 = vpop.permute.xlu0 %3017 }
 0xcf0   : > { %v9800_v58 = vpop.eup %9799  ;;  %v3016_v52 = vpop.permute.xlu1 %3015  ;;  %8595 = vmatprep.mubr.bf16.mxu0 %v2884_v36  ;;  %v2877_v45 = vmul.f32 %v9798_v4, %v12337_v63  ;;  %v15454_v36 = vld [vmem:[#allocation37_spill] sm:$0xff] }
 0xcf1   : > { %8596 = vmatmul.mubr.bf16.gmra.mrb[88].mxu0 %v2885_v12  ;;  %v9802_v9 = vpop.eup %9801  ;;  %v2879_v3 = vmul.f32 %v9800_v58, %v12331_v19 }
 0xcf2   : > { %v2886_v38 = vpack.c.bf16 %v2877_v45, %v2876_v6  ;;  %v2878_v13 = vmul.f32 %v9802_v9, %v12319_v43  ;;  %v15453_v6 = vld [vmem:[#allocation38_spill] sm:$0xff] }
 0xcf3   : > { %v3022_v46 = vpop.permute.xlu0 %3021 }
 0xcf4   : > { %v3020_v14 = vpop.permute.xlu1 %3019  ;;  %8599 = vmatprep.mubr.bf16.mxu0 %v2886_v38  ;;  %v2887_v60 = vpack.c.bf16 %v2879_v3, %v2878_v13 }
 0xcf7   : > { %v3339_v35 = vpop.permute.xlu0 %3338 }
 0xcf8   : > { %v3024_v48 = vpop.permute.xlu1 %3023  ;;  %8635 = vmatprep.subr.bf16.mxu1 %v3339_v35 }
 0xcf9   : > { %8600 = vmatmul.mubr.bf16.gmra.mrb[92].mxu0 %v2887_v60  ;;  %8636 = vmatpush3.bf16.msra.mxu1 %v3339_v35 }
 0xcfa   : > { %8619 = vmatprep.mubr.msk.bf16.mxu0 %vm1240_vm0, %v3010_v1 }
 0xcfb   : > { %v3343_v63 = vpop.permute.xlu0 %3342 }
 0xcfc   : > { %v3341_v32 = vpop.permute.xlu1 %3340 }
 0xcfd   : > { %8637 = vmatprep.subr.bf16.mxu1 %v3341_v32 }
 0xcfe   : > { %8638 = vmatpush3.bf16.msra.mxu1 %v3341_v32 }
 0xcff   : > { %8639 = vmatprep.subr.bf16.mxu1 %v3343_v63  ;;  %v3347_v43 = vpop.permute.xlu0 %3346 }
 0xd00   : > { %v3345_v19 = vpop.permute.xlu1 %3344 }
 0xd01   : > { %8620 = vmatmul.mubr.msk.bf16.vlgmr.msra.gmra.mrb[96].mxu0 %vm1240_vm0, %v3012_v54 }
 0xd02   : > { %8623 = vmatprep.mubr.msk.bf16.mxu0 %vm1240_vm0, %v3014_v34  ;;  %8640 = vmatpush3.bf16.msra.mxu1 %v3343_v63 }
 0xd03   : > { %8641 = vmatprep.subr.bf16.mxu1 %v3345_v19  ;;  %v3351_v1 = vpop.permute.xlu0 %3350 }
 0xd04   : > { %v3349_v17 = vpop.permute.xlu1 %3348 }
 0xd06   : > { %8642 = vmatpush3.bf16.msra.mxu1 %v3345_v19 }
 0xd07   : > { %8643 = vmatprep.subr.bf16.mxu1 %v3347_v43  ;;  %v12423_v59 = vpop.permute.xlu0 %3475 }
 0xd08   : > { %v3353_v41 = vpop.permute.xlu1 %3352 }
 0xd09   : > { %8624 = vmatmul.mubr.msk.bf16.gmra.mrb[100].mxu0 %vm1240_vm0, %v3016_v52 }
 0xd0a   : > { %8627 = vmatprep.mubr.msk.bf16.mxu0 %vm1240_vm0, %v3018_v62  ;;  %8644 = vmatpush3.bf16.msra.mxu1 %v3347_v43 }
 0xd0b   : > { %8645 = vmatprep.subr.bf16.mxu1 %v3349_v17 }
 0xd0e   : > { %8646 = vmatpush3.bf16.msra.mxu1 %v3349_v17 }
 0xd0f   : > { %8647 = vmatprep.subr.bf16.mxu1 %v3351_v1 }
 0xd11   : > { %8628 = vmatmul.mubr.msk.bf16.gmra.mrb[104].mxu0 %vm1240_vm0, %v3020_v14 }
 0xd12   : > { %8631 = vmatprep.mubr.msk.bf16.mxu0 %vm1240_vm0, %v3022_v46  ;;  %8648 = vmatpush3.bf16.msra.mxu1 %v3351_v1 }
 0xd13   : > { %8649 = vmatprep.subr.bf16.mxu1 %v3353_v41 }
 0xd16   : > { %8650 = vmatpush3.bf16.msra.mxu1 %v3353_v41 }
 0xd17   : > { %8947 = vmatprep.subr.msk.bf16.mxu1 %vm1240_vm0, %v12423_v59 }
 0xd19   : > { %8632 = vmatmul.mubr.msk.bf16.gmra.mrb[108].mxu0 %vm1240_vm0, %v3024_v48 }
 0xd7e   : > { %v12428_v53 = vpop.f32.mrb[80].mxu0 }
 0xd7f   : > { %15437 = vst [vmem:[#allocation92_spill] sm:$0xff] %v12428_v53  ;;  %v12430_v56 = vpop.f32.mrb[81].mxu0 }
 0xd80   : > { %15438 = vst [vmem:[#allocation93_spill] sm:$0xff] %v12430_v56  ;;  %v12432_v29 = vpop.f32.mrb[82].mxu0 }
 0xd81   : > { %15439 = vst [vmem:[#allocation94_spill] sm:$0xff] %v12432_v29  ;;  %v12436_v44 = vpop.f32.mrb[83].mxu0 }
 0xd82   : > { %15440 = vst [vmem:[#allocation95_spill] sm:$0xff] %v12436_v44 }
 0xdb6   : > { %v12440_v33 = vpop.f32.mrb[84].mxu0 }
 0xdb7   : > { %15441 = vst [vmem:[#allocation96_spill] sm:$0xff] %v12440_v33  ;;  %v12442_v10 = vpop.f32.mrb[85].mxu0 }
 0xdb8   : > { %15442 = vst [vmem:[#allocation97_spill] sm:$0xff] %v12442_v10  ;;  %v12444_v30 = vpop.f32.mrb[86].mxu0 }
 0xdb9   : > { %15443 = vst [vmem:[#allocation98_spill] sm:$0xff] %v12444_v30  ;;  %v12448_v18 = vpop.f32.mrb[87].mxu0 }
 0xdba   : > { %15444 = vst [vmem:[#allocation99_spill] sm:$0xff] %v12448_v18 }
 0xdc4   : > { %v12452_v4 = vpop.f32.mrb[88].mxu0 }
 0xdc5   : > { %15445 = vst [vmem:[#allocation100_spill] sm:$0xff] %v12452_v4  ;;  %v12454_v62 = vpop.f32.mrb[89].mxu0 }
 0xdc6   : > { %15446 = vst [vmem:[#allocation101_spill] sm:$0xff] %v12454_v62  ;;  %v12456_v12 = vpop.f32.mrb[90].mxu0  ;;  %v15460_v62 = vld [vmem:[#allocation28_spill] sm:$0xff] }
 0xdc7   : > { %15447 = vst [vmem:[#allocation102_spill] sm:$0xff] %v12456_v12  ;;  %v12460_v52 = vpop.f32.mrb[91].mxu0 }
 0xdc8   : > { %15448 = vst [vmem:[#allocation103_spill] sm:$0xff] %v12460_v52  ;;  %v15461_v52 = vld [vmem:[#allocation43_spill] sm:$0xff] }
 0xdcc   : > { %v12464_v45 = vpop.f32.mrb[92].mxu0 }
 0xdcd   : > { %15449 = vst [vmem:[#allocation104_spill] sm:$0xff] %v12464_v45  ;;  %v12466_v9 = vpop.f32.mrb[93].mxu0 }
 0xdce   : > { %15450 = vst [vmem:[#allocation105_spill] sm:$0xff] %v12466_v9  ;;  %v12468_v38 = vpop.f32.mrb[94].mxu0  ;;  %v15456_v9 = vld [vmem:[#allocation39_spill] sm:$0xff] }
 0xdcf   : > { %15451 = vst [vmem:[#allocation106_spill] sm:$0xff] %v12468_v38  ;;  %v12472_v3 = vpop.f32.mrb[95].mxu0 }
 0xdd0   : > { %15452 = vst [vmem:[#allocation107_spill] sm:$0xff] %v12472_v3 }
 0xdd4   : > { %v8621_v13 = vpop.f32.mrb[96].mxu0 }
 0xdd5   : > { %v3132_v35 = vadd.f32 %v8621_v13, %v11362_v21  ;;  %v3123_v60 = vpop.f32.mrb[97].mxu0 }
 0xdd6   : > { %v8622_v48 = vpop.f32.mrb[98].mxu0  ;;  %v3124_v19 = vadd.f32 %v3123_v60, %v11376_v47 }
 0xdd7   : > { %3190 = vmax.xlane.f32.xlu0 %v3132_v35  ;;  %v3126_v32 = vpop.f32.mrb[99].mxu0  ;;  %v3135_v17 = vadd.f32 %v8622_v48, %v11368_v27 }
 0xdd8   : > { %v3127_v63 = vadd.f32 %v3126_v32, %v11385_v42 }
 0xdda   : > { %3188 = vmax.xlane.f32.xlu1 %v3127_v63 }
 0xddb   : > { %3186 = vmax.xlane.f32.xlu0 %v3124_v19 }
 0xddc   : > { %v8625_v43 = vpop.f32.mrb[100].mxu0 }
 0xddd   : > { %v3139_v1 = vpop.f32.mrb[101].mxu0  ;;  %v12484_v46 = vadd.f32 %v8625_v43, %v11394_v8 }
 0xdde   : > { %v8626_v41 = vpop.f32.mrb[102].mxu0  ;;  %v12492_v48 = vadd.f32 %v3139_v1, %v15368_v50 }
 0xddf   : > { %v12481_v14 = vadd.f32 %v8626_v41, %v11403_v57  ;;  %3192 = vmax.xlane.f32.xlu0 %v3135_v17  ;;  %v3142_v13 = vpop.f32.mrb[103].mxu0 }
 0xde0   : > { %v12488_v32 = vadd.f32 %v3142_v13, %v11421_v26  ;;  %v15455_v13 = vld [vmem:[#allocation40_spill] sm:$0xff] }
 0xde1   : > { %3200 = vmax.xlane.f32.xlu1 %v12481_v14 }
 0xde3   : > { %3198 = vmax.xlane.f32.xlu0 %v12484_v46 }
 0xde4   : > { %v8629_v60 = vpop.f32.mrb[104].mxu0 }
 0xde5   : > { %3196 = vmax.xlane.f32.xlu1 %v12488_v32  ;;  %v3155_v41 = vpop.f32.mrb[105].mxu0  ;;  %v12500_v34 = vadd.f32 %v8629_v60, %v15454_v36  ;;  %v15457_v60 = vld [vmem:[#allocation41_spill] sm:$0xff] }
 0xde6   : > { %v8630_v58 = vpop.f32.mrb[106].mxu0  ;;  %v12508_v3 = vadd.f32 %v3155_v41, %v15456_v9  ;;  %v15459_v41 = vld [vmem:[#allocation31_spill] sm:$0xff] }
 0xde7   : > { %v12496_v51 = vadd.f32 %v8630_v58, %v15453_v6  ;;  %3194 = vmax.xlane.f32.xlu0 %v12492_v48  ;;  %v3158_v43 = vpop.f32.mrb[107].mxu0 }
 0xde8   : > { %v12504_v54 = vadd.f32 %v3158_v43, %v15455_v13  ;;  %v15458_v43 = vld [vmem:[#allocation42_spill] sm:$0xff] }
 0xde9   : > { %3208 = vmax.xlane.f32.xlu1 %v12496_v51 }
 0xdeb   : > { %3206 = vmax.xlane.f32.xlu0 %v12500_v34 }
 0xdec   : > { %v8633_v1 = vpop.f32.mrb[108].mxu0 }
 0xded   : > { %3204 = vmax.xlane.f32.xlu1 %v12504_v54  ;;  %v3171_v58 = vpop.f32.mrb[109].mxu0  ;;  %v12513_v4 = vadd.f32 %v8633_v1, %v15457_v60  ;;  %v15462_v1 = vld [vmem:[#allocation44_spill] sm:$0xff] }
 0xdee   : > { %v8634_v45 = vpop.f32.mrb[110].mxu0  ;;  %v12517_v12 = vadd.f32 %v3171_v58, %v15458_v43  ;;  %v12532_v58 = vpop.permute.xlu1 %3477 }
 0xdef   : > { %3202 = vmax.xlane.f32.xlu0 %v12508_v3  ;;  %v3174_v38 = vpop.f32.mrb[111].mxu0  ;;  %v12525_v33 = vadd.f32 %v8634_v45, %v15461_v52 }
 0xdf0   : > { %v12529_v30 = vadd.f32 %v3174_v38, %v15462_v1 }
 0xdf3   : > { %3214 = vmax.xlane.f32.xlu0 %v12513_v4 }
 0xdf7   : > { %3210 = vmax.xlane.f32.xlu0 %v12517_v12 }
 0xdfe   : > { %3481 = vrot.lane.b32.xlu1 %v15459_v41, %s10568_s4 }
 0xe0d   : > { %3479 = vrot.lane.b32.xlu0 %v15460_v62, %s10568_s4 }
 0xe22   : > { %3216 = vmax.xlane.f32.xlu1 %v12525_v33 }
 0xe26   : > { %3212 = vmax.xlane.f32.xlu1 %v12529_v30 }
 0xe64   : > { %v3191_v10 = vpop.xlane.xlu0 %3190 }
 0xe65   : > { %v3220_v18 = vsub.f32 %v3132_v35, %v3191_v10 }
 0xe67   : > { %v3238_v53 = vmul.f32 1.442695, %v3220_v18  ;;  %v3189_v29 = vpop.xlane.xlu1 %3188 }
 0xe68   : > { %v3219_v56 = vsub.f32 %v3127_v63, %v3189_v29  ;;  %v3187_v44 = vpop.xlane.xlu0 %3186  ;;  %v15463_v29 = vld [vmem:[#allocation34_spill] sm:$0xff] }
 0xe69   : > { %9803 = vpow2.f32 %v3238_v53  ;;  %v3218_v62 = vsub.f32 %v3124_v19, %v3187_v44  ;;  %v15464_v44 = vld [vmem:[#allocation35_spill] sm:$0xff] }
 0xe6a   : > { %v3236_v41 = vmul.f32 1.442695, %v3219_v56 }
 0xe6b   : > { %v3234_v45 = vmul.f32 1.442695, %v3218_v62 }
 0xe6c   : > { %9805 = vpow2.f32 %v3236_v41  ;;  %v3193_v52 = vpop.xlane.xlu0 %3192 }
 0xe6d   : > { %9807 = vpow2.f32 %v3234_v45  ;;  %v3221_v43 = vsub.f32 %v3135_v17, %v3193_v52 }
 0xe6e   : > { %v3201_v62 = vpop.xlane.xlu1 %3200 }
 0xe6f   : > { %v3240_v38 = vmul.f32 1.442695, %v3221_v43  ;;  %v3225_v9 = vsub.f32 %v12481_v14, %v3201_v62 }
 0xe70   : > { %v3199_v56 = vpop.xlane.xlu0 %3198 }
 0xe71   : > { %9809 = vpow2.f32 %v3240_v38  ;;  %v3224_v35 = vsub.f32 %v12484_v46, %v3199_v56  ;;  %v3248_v36 = vmul.f32 1.442695, %v3225_v9 }
 0xe72   : > { %v3197_v63 = vpop.xlane.xlu1 %3196 }
 0xe73   : > { %v12534_v1 = vpop.eup %9803  ;;  %v3246_v17 = vmul.f32 1.442695, %v3224_v35  ;;  %v3223_v41 = vsub.f32 %v12488_v32, %v3197_v63 }
 0xe74   : > { %3270 = vadd.xlane.f32.xlu1 %v12534_v1  ;;  %v3195_v18 = vpop.xlane.xlu0 %3194 }
 0xe75   : > { %v3222_v43 = vsub.f32 %v12492_v48, %v3195_v18  ;;  %9811 = vpow2.f32 %v3246_v17  ;;  %v3244_v13 = vmul.f32 1.442695, %v3223_v41 }
 0xe76   : > { %v12537_v60 = vpop.eup %9805  ;;  %v3209_v45 = vpop.xlane.xlu1 %3208 }
 0xe77   : > { %v12539_v10 = vpop.eup %9807  ;;  %3268 = vadd.xlane.f32.xlu0 %v12537_v60  ;;  %v3229_v14 = vsub.f32 %v12496_v51, %v3209_v45 }
 0xe78   : > { %3266 = vadd.xlane.f32.xlu1 %v12539_v10  ;;  %v3207_v52 = vpop.xlane.xlu0 %3206 }
 0xe79   : > { %v3256_v9 = vmul.f32 1.442695, %v3229_v14 }
 0xe7a   : > { %v3205_v6 = vpop.xlane.xlu1 %3204 }
 0xe7b   : > { %v12543_v53 = vpop.eup %9809 }
 0xe7c   : > { %3272 = vadd.xlane.f32.xlu1 %v12543_v53  ;;  %v3203_v19 = vpop.xlane.xlu0 %3202 }
 0xe7d   : > { %v3226_v48 = vsub.f32 %v12508_v3, %v3203_v19  ;;  %v3227_v3 = vsub.f32 %v12504_v54, %v3205_v6 }
 0xe7f   : > { %v3250_v62 = vmul.f32 1.442695, %v3226_v48  ;;  %v12559_v63 = vpop.eup %9811 }
 0xe80   : > { %v3215_v38 = vpop.xlane.xlu0 %3214 }
 0xe81   : > { %v3232_v46 = vsub.f32 %v12513_v4, %v3215_v38 }
 0xe83   : > { %v3262_v32 = vmul.f32 1.442695, %v3232_v46 }
 0xe84   : > { %v3211_v18 = vpop.xlane.xlu0 %3210 }
 0xe85   : > { %v3230_v35 = vsub.f32 %v12517_v12, %v3211_v18 }
 0xe87   : > { %v3258_v4 = vmul.f32 1.442695, %v3230_v35 }
 0xe8d   : > { %3483 = vrot.lane.b32.xlu0 %v15463_v29, %s10568_s4  ;;  %3485 = vrot.lane.b32.xlu1 %v15464_v44, %s10568_s4  ;;  %v3242_v29 = vmul.f32 1.442695, %v3222_v43  ;;  %v3228_v44 = vsub.f32 %v12500_v34, %v3207_v52  ;;  %v12561_v34 = vpop.permute.xlu1 %3481 }
 0xe8f   : > { %9813 = vpow2.f32 %v3242_v29  ;;  %v3254_v56 = vmul.f32 1.442695, %v3228_v44  ;;  %v3252_v29 = vmul.f32 1.442695, %v3227_v3 }
 0xe90   : > { %9815 = vpow2.f32 %v3244_v13 }
 0xe91   : > { %9817 = vpow2.f32 %v3248_v36 }
 0xe92   : > { %9819 = vpow2.f32 %v3254_v56  ;;  %v3480_v56 = vpop.permute.xlu0 %3479 }
 0xe93   : > { %9821 = vpow2.f32 %v3262_v32 }
 0xe94   : > { %9823 = vpow2.f32 %v3250_v62 }
 0xe95   : > { %9825 = vpow2.f32 %v3258_v4 }
 0xe96   : > { %9827 = vpow2.f32 %v3256_v9 }
 0xe99   : > { %v12565_v36 = vpop.eup %9813 }
 0xe9a   : > { %v12567_v12 = vpop.eup %9815 }
 0xe9b   : > { %v12572_v52 = vpop.eup %9817 }
 0xe9c   : > { %v12574_v54 = vpop.eup %9819 }
 0xe9d   : > { %v12579_v17 = vpop.eup %9821 }
 0xe9e   : > { %v12581_v43 = vpop.eup %9823 }
 0xe9f   : > { %v12585_v41 = vpop.eup %9825 }
 0xea0   : > { %v12587_v45 = vpop.eup %9827 }
 0xeac   : > { %3278 = vadd.xlane.f32.xlu0 %v12559_v63 }
 0xeaf   : > { %v3217_v13 = vpop.xlane.xlu1 %3216 }
 0xeb0   : > { %v3233_v51 = vsub.f32 %v12525_v33, %v3217_v13  ;;  %3274 = vadd.xlane.f32.xlu0 %v12565_v36 }
 0xeb1   : > { %3276 = vadd.xlane.f32.xlu1 %v12567_v12 }
 0xeb2   : > { %v3264_v44 = vmul.f32 1.442695, %v3233_v51 }
 0xeb3   : > { %v3213_v19 = vpop.xlane.xlu1 %3212 }
 0xeb4   : > { %9829 = vpow2.f32 %v3264_v44  ;;  %v3231_v6 = vsub.f32 %v12529_v30, %v3213_v19  ;;  %3280 = vadd.xlane.f32.xlu0 %v12572_v52 }
 0xeb5   : > { %3286 = vadd.xlane.f32.xlu1 %v12574_v54  ;;  %9831 = vpow2.f32 %v3252_v29 }
 0xeb6   : > { %v3260_v33 = vmul.f32 1.442695, %v3231_v6  ;;  %v3516_v6 = vsel %vm1240_vm0, %v12423_v59, 0 }
 0xeb8   : > { %3294 = vadd.xlane.f32.xlu0 %v12579_v17  ;;  %9833 = vpow2.f32 %v3260_v33 }
 0xeb9   : > { %3282 = vadd.xlane.f32.xlu1 %v12581_v43 }
 0xebc   : > { %3290 = vadd.xlane.f32.xlu0 %v12585_v41 }
 0xebd   : > { %3288 = vadd.xlane.f32.xlu1 %v12587_v45 }
 0xebe   : > { %v12591_v30 = vpop.eup %9829 }
 0xebf   : > { %v12593_v38 = vpop.eup %9831 }
 0xec0   : > { %3296 = vadd.xlane.f32.xlu0 %v12591_v30 }
 0xec1   : > { %3284 = vadd.xlane.f32.xlu1 %v12593_v38 }
 0xec2   : > { %v12597_v46 = vpop.eup %9833 }
 0xec5   : > { %3292 = vadd.xlane.f32.xlu1 %v12597_v46 }
 0xed6   : > { %3489 = vrot.lane.b32.xlu1 %v11326_v2, %s10568_s4  ;;  %3487 = vrot.lane.b32.xlu0 %v11318_v23, %s10568_s4 }
 0xeda   : > { %3461 = vrot.lane.b32.xlu1 %v11253_v16, %s10568_s4  ;;  %3459 = vrot.lane.b32.xlu0 %v11234_v0, %s10568_s4 }
 0xede   : > { %3465 = vrot.lane.b32.xlu1 %v11287_v20, %s10568_s4  ;;  %3463 = vrot.lane.b32.xlu0 %v11271_v37, %s10568_s4 }
 0xee2   : > { %3469 = vrot.lane.b32.xlu1 %v11312_v11, %s10568_s4  ;;  %3467 = vrot.lane.b32.xlu0 %v11303_v61, %s10568_s4 }
 0xee6   : > { %3473 = vrot.lane.b32.xlu1 %v11328_v39, %s10568_s4  ;;  %3471 = vrot.lane.b32.xlu0 %v11320_v25, %s10568_s4 }
 0xeea   : > { %3790 = vrot.lane.b32.xlu1 %v11242_v5, %s10568_s4  ;;  %3788 = vrot.lane.b32.xlu0 %v11246_v7, %s10568_s4 }
 0xeee   : > { %3794 = vrot.lane.b32.xlu1 %v11261_v22, %s10568_s4  ;;  %3792 = vrot.lane.b32.xlu0 %v11264_v24, %s10568_s4 }
 0xef2   : > { %3798 = vrot.lane.b32.xlu1 %v11277_v40, %s10568_s4  ;;  %3796 = vrot.lane.b32.xlu0 %v11280_v28, %s10568_s4 }
 0xef6   : > { %3802 = vrot.lane.b32.xlu1 %v11293_v31, %s10568_s4  ;;  %3800 = vrot.lane.b32.xlu0 %v11296_v55, %s10568_s4 }
 0xefa   : > { %3927 = vrot.lane.b32.xlu1 %v11250_v15, %s10569_s28  ;;  %3925 = vrot.lane.b32.xlu0 %v11232_v49, %s10569_s28 }
 0xf01   : > { %v3271_v48 = vpop.xlane.xlu1 %3270 }
 0xf04   : > { %v3269_v18 = vpop.xlane.xlu0 %3268 }
 0xf05   : > { %9835 = vrcp.f32 %v3269_v18  ;;  %v3267_v32 = vpop.xlane.xlu1 %3266 }
 0xf06   : > { %9837 = vrcp.f32 %v3267_v32 }
 0xf07   : > { %9839 = vrcp.f32 %v3271_v48 }
 0xf08   : > { %v3484_v59 = vpop.permute.xlu0 %3483 }
 0xf09   : > { %v3273_v35 = vpop.xlane.xlu1 %3272 }
 0xf0a   : > { %9841 = vrcp.f32 %v3273_v35 }
 0xf0f   : > { %v9836_v14 = vpop.eup %9835 }
 0xf10   : > { %v9838_v62 = vpop.eup %9837  ;;  %v3315_v4 = vmul.f32 %v9836_v14, %v12537_v60  ;;  %v3519_v60 = vsel %vm1240_vm0, %v12532_v58, 0 }
 0xf11   : > { %v3314_v9 = vmul.f32 %v9838_v62, %v12539_v10  ;;  %v9840_v3 = vpop.eup %9839  ;;  %v3525_v10 = vsel %vm1240_vm0, %v12561_v34, 0 }
 0xf12   : > { %v3316_v29 = vmul.f32 %v9840_v3, %v12534_v1  ;;  %v3522_v1 = vsel %vm1240_vm0, %v3480_v56, 0 }
 0xf13   : > { %v3330_v13 = vpack.c.bf16 %v3315_v4, %v3314_v9 }
 0xf14   : > { %v9842_v51 = vpop.eup %9841 }
 0xf15   : > { %v3317_v44 = vmul.f32 %v9842_v51, %v12543_v53  ;;  %8651 = vmatprep.mubr.bf16.mxu1 %v3330_v13  ;;  %v3528_v53 = vsel %vm1240_vm0, %v3484_v59, 0 }
 0xf17   : > { %v3331_v19 = vpack.c.bf16 %v3317_v44, %v3316_v29 }
 0xf19   : > { %8652 = vmatmul.mubr.bf16.vlgmr.msra.gmra.mrb[80].mxu1 %v3331_v19 }
 0xf1a   : > { %8668 = vmatpush3.bf16.xpose.msra.mxu1 %v3516_v6 }
 0xf1b   : > { %8948 = vmatprep.subr.msk.bf16.mxu1 %vm1240_vm0, %v12532_v58  ;;  %v3486_v58 = vpop.permute.xlu1 %3485 }
 0xf1c   : > { %v3531_v18 = vsel %vm1240_vm0, %v3486_v58, 0 }
 0xf22   : > { %8670 = vmatpush3.bf16.xpose.msra.mxu1 %v3519_v60 }
 0xf23   : > { %8949 = vmatprep.subr.msk.bf16.mxu1 %vm1240_vm0, %v3480_v56 }
 0xf2a   : > { %8672 = vmatpush3.bf16.xpose.msra.mxu1 %v3522_v1 }
 0xf2b   : > { %8950 = vmatprep.subr.msk.bf16.mxu1 %vm1240_vm0, %v12561_v34 }
 0xf32   : > { %8674 = vmatpush3.bf16.xpose.msra.mxu1 %v3525_v10 }
 0xf33   : > { %8951 = vmatprep.subr.msk.bf16.mxu1 %vm1240_vm0, %v3484_v59 }
 0xf39   : > { %v3279_v33 = vpop.xlane.xlu0 %3278 }
 0xf3a   : > { %8676 = vmatpush3.bf16.xpose.msra.mxu1 %v3528_v53 }
 0xf3b   : > { %8952 = vmatprep.subr.msk.bf16.mxu1 %vm1240_vm0, %v3486_v58 }
 0xf3d   : > { %v3275_v48 = vpop.xlane.xlu0 %3274 }
 0xf3e   : > { %9843 = vrcp.f32 %v3275_v48  ;;  %v3277_v56 = vpop.xlane.xlu1 %3276 }
 0xf3f   : > { %9845 = vrcp.f32 %v3277_v56 }
 0xf40   : > { %9847 = vrcp.f32 %v3279_v33 }
 0xf41   : > { %v3281_v32 = vpop.xlane.xlu0 %3280 }
 0xf42   : > { %8678 = vmatpush3.bf16.xpose.msra.mxu1 %v3531_v18  ;;  %9849 = vrcp.f32 %v3281_v32  ;;  %v3287_v34 = vpop.xlane.xlu1 %3286 }
 0xf45   : > { %v3295_v35 = vpop.xlane.xlu0 %3294 }
 0xf46   : > { %v3283_v14 = vpop.xlane.xlu1 %3282 }
 0xf48   : > { %v9844_v62 = vpop.eup %9843 }
 0xf49   : > { %v9846_v4 = vpop.eup %9845  ;;  %v3291_v9 = vpop.xlane.xlu0 %3290  ;;  %v3318_v3 = vmul.f32 %v9844_v62, %v12565_v36 }
 0xf4a   : > { %v9848_v13 = vpop.eup %9847  ;;  %v3289_v51 = vpop.xlane.xlu1 %3288  ;;  %v3319_v29 = vmul.f32 %v9846_v4, %v12567_v12 }
 0xf4b   : > { %9851 = vrcp.f32 %v3289_v51  ;;  %v3320_v60 = vmul.f32 %v9848_v13, %v12559_v63 }
 0xf4c   : > { %v9850_v44 = vpop.eup %9849  ;;  %v3332_v19 = vpack.c.bf16 %v3319_v29, %v3318_v3  ;;  %9853 = vrcp.f32 %v3283_v14 }
 0xf4d   : > { %v3297_v6 = vpop.xlane.xlu0 %3296  ;;  %v3321_v1 = vmul.f32 %v9850_v44, %v12572_v52  ;;  %9855 = vrcp.f32 %v3287_v34 }
 0xf4e   : > { %v3285_v10 = vpop.xlane.xlu1 %3284  ;;  %8655 = vmatprep.mubr.bf16.mxu1 %v3332_v19 }
 0xf4f   : > { %9857 = vrcp.f32 %v3285_v10  ;;  %v3333_v59 = vpack.c.bf16 %v3321_v1, %v3320_v60 }
 0xf50   : > { %9859 = vrcp.f32 %v3291_v9 }
 0xf51   : > { %8656 = vmatmul.mubr.bf16.gmra.mrb[84].mxu1 %v3333_v59  ;;  %v3488_v36 = vpop.permute.xlu0 %3487 }
 0xf52   : > { %v3293_v53 = vpop.xlane.xlu1 %3292  ;;  %8953 = vmatprep.subr.msk.bf16.mxu1 %vm1240_vm0, %v3488_v36  ;;  %v3534_v12 = vsel %vm1240_vm0, %v3488_v36, 0 }
 0xf53   : > { %9861 = vrcp.f32 %v3293_v53  ;;  %8680 = vmatpush3.bf16.xpose.msra.mxu1 %v3534_v12 }
 0xf54   : > { %9863 = vrcp.f32 %v3297_v6 }
 0xf55   : > { %v3460_v33 = vpop.permute.xlu0 %3459  ;;  %v9852_v63 = vpop.eup %9851  ;;  %9865 = vrcp.f32 %v3295_v35 }
 0xf56   : > { %v3490_v52 = vpop.permute.xlu1 %3489  ;;  %v9854_v58 = vpop.eup %9853  ;;  %v3325_v32 = vmul.f32 %v9852_v63, %v12587_v45 }
 0xf57   : > { %8954 = vmatprep.subr.msk.bf16.mxu1 %vm1240_vm0, %v3490_v52  ;;  %v9856_v48 = vpop.eup %9855  ;;  %v3537_v14 = vsel %vm1240_vm0, %v3490_v52, 0  ;;  %v3322_v62 = vmul.f32 %v9854_v58, %v12581_v43 }
 0xf58   : > { %v3324_v35 = vmul.f32 %v9856_v48, %v12574_v54 }
 0xf59   : > { %v9858_v56 = vpop.eup %9857  ;;  %v3464_v18 = vpop.permute.xlu0 %3463 }
 0xf5a   : > { %v3462_v34 = vpop.permute.xlu1 %3461  ;;  %v3323_v4 = vmul.f32 %v9858_v56, %v12593_v38  ;;  %v9860_v9 = vpop.eup %9859  ;;  %v3335_v29 = vpack.c.bf16 %v3325_v32, %v3324_v35 }
 0xf5b   : > { %8682 = vmatpush3.bf16.xpose.msra.mxu1 %v3537_v14  ;;  %v3326_v45 = vmul.f32 %v9860_v9, %v12585_v41 }
 0xf5c   : > { %v3334_v3 = vpack.c.bf16 %v3323_v4, %v3322_v62 }
 0xf5d   : > { %v9862_v13 = vpop.eup %9861  ;;  %v3468_v51 = vpop.permute.xlu0 %3467 }
 0xf5e   : > { %v9864_v44 = vpop.eup %9863  ;;  %v3466_v19 = vpop.permute.xlu1 %3465  ;;  %8659 = vmatprep.mubr.bf16.mxu1 %v3334_v3  ;;  %v3327_v6 = vmul.f32 %v9862_v13, %v12597_v46  ;;  %v15482_v3 = vld [vmem:[#allocation37_spill] sm:$0xff] }
 0xf5f   : > { %8660 = vmatmul.mubr.bf16.gmra.mrb[88].mxu1 %v3335_v29  ;;  %v9866_v60 = vpop.eup %9865  ;;  %v3329_v38 = vmul.f32 %v9864_v44, %v12591_v30  ;;  %v15481_v44 = vld [vmem:[#allocation38_spill] sm:$0xff] }
 0xf60   : > { %v3336_v43 = vpack.c.bf16 %v3327_v6, %v3326_v45  ;;  %v3328_v54 = vmul.f32 %v9866_v60, %v12579_v17 }
 0xf61   : > { %v3472_v1 = vpop.permute.xlu0 %3471 }
 0xf62   : > { %v3470_v10 = vpop.permute.xlu1 %3469  ;;  %8663 = vmatprep.mubr.bf16.mxu1 %v3336_v43  ;;  %v3337_v36 = vpack.c.bf16 %v3329_v38, %v3328_v54 }
 0xf65   : > { %v3789_v59 = vpop.permute.xlu0 %3788 }
 0xf66   : > { %v3474_v53 = vpop.permute.xlu1 %3473  ;;  %8699 = vmatprep.subr.bf16.mxu0 %v3789_v59 }
 0xf67   : > { %8664 = vmatmul.mubr.bf16.gmra.mrb[92].mxu1 %v3337_v36  ;;  %8700 = vmatpush3.bf16.msra.mxu0 %v3789_v59 }
 0xf68   : > { %8683 = vmatprep.mubr.msk.bf16.mxu1 %vm1240_vm0, %v3460_v33 }
 0xf69   : > { %v3793_v46 = vpop.permute.xlu0 %3792 }
 0xf6a   : > { %v3791_v41 = vpop.permute.xlu1 %3790 }
 0xf6b   : > { %8701 = vmatprep.subr.bf16.mxu0 %v3791_v41 }
 0xf6c   : > { %8702 = vmatpush3.bf16.msra.mxu0 %v3791_v41 }
 0xf6d   : > { %8703 = vmatprep.subr.bf16.mxu0 %v3793_v46  ;;  %v3797_v17 = vpop.permute.xlu0 %3796 }
 0xf6e   : > { %v3795_v30 = vpop.permute.xlu1 %3794 }
 0xf6f   : > { %8684 = vmatmul.mubr.msk.bf16.vlgmr.msra.gmra.mrb[96].mxu1 %vm1240_vm0, %v3462_v34 }
 0xf70   : > { %8687 = vmatprep.mubr.msk.bf16.mxu1 %vm1240_vm0, %v3464_v18  ;;  %8704 = vmatpush3.bf16.msra.mxu0 %v3793_v46 }
 0xf71   : > { %8705 = vmatprep.subr.bf16.mxu0 %v3795_v30  ;;  %v3801_v33 = vpop.permute.xlu0 %3800 }
 0xf72   : > { %v3799_v12 = vpop.permute.xlu1 %3798 }
 0xf74   : > { %8706 = vmatpush3.bf16.msra.mxu0 %v3795_v30 }
 0xf75   : > { %8707 = vmatprep.subr.bf16.mxu0 %v3797_v17  ;;  %v12683_v52 = vpop.permute.xlu0 %3925 }
 0xf76   : > { %v3803_v63 = vpop.permute.xlu1 %3802 }
 0xf77   : > { %8688 = vmatmul.mubr.msk.bf16.gmra.mrb[100].mxu1 %vm1240_vm0, %v3466_v19 }
 0xf78   : > { %8691 = vmatprep.mubr.msk.bf16.mxu1 %vm1240_vm0, %v3468_v51  ;;  %8708 = vmatpush3.bf16.msra.mxu0 %v3797_v17 }
 0xf79   : > { %8709 = vmatprep.subr.bf16.mxu0 %v3799_v12 }
 0xf7c   : > { %8710 = vmatpush3.bf16.msra.mxu0 %v3799_v12 }
 0xf7d   : > { %8711 = vmatprep.subr.bf16.mxu0 %v3801_v33 }
 0xf7f   : > { %8692 = vmatmul.mubr.msk.bf16.gmra.mrb[104].mxu1 %vm1240_vm0, %v3470_v10 }
 0xf80   : > { %8695 = vmatprep.mubr.msk.bf16.mxu1 %vm1240_vm0, %v3472_v1  ;;  %8712 = vmatpush3.bf16.msra.mxu0 %v3801_v33 }
 0xf81   : > { %8713 = vmatprep.subr.bf16.mxu0 %v3803_v63 }
 0xf84   : > { %8714 = vmatpush3.bf16.msra.mxu0 %v3803_v63 }
 0xf85   : > { %8955 = vmatprep.subr.msk.bf16.mxu0 %vm1240_vm0, %v12683_v52 }
 0xf87   : > { %8696 = vmatmul.mubr.msk.bf16.gmra.mrb[108].mxu1 %vm1240_vm0, %v3474_v53 }
 0xfec   : > { %v12688_v58 = vpop.f32.mrb[80].mxu1 }
 0xfed   : > { %15465 = vst [vmem:[#allocation108_spill] sm:$0xff] %v12688_v58  ;;  %v12690_v48 = vpop.f32.mrb[81].mxu1 }
 0xfee   : > { %15466 = vst [vmem:[#allocation109_spill] sm:$0xff] %v12690_v48  ;;  %v12692_v56 = vpop.f32.mrb[82].mxu1 }
 0xfef   : > { %15467 = vst [vmem:[#allocation110_spill] sm:$0xff] %v12692_v56  ;;  %v12696_v32 = vpop.f32.mrb[83].mxu1 }
 0xff0   : > { %15468 = vst [vmem:[#allocation111_spill] sm:$0xff] %v12696_v32 }
0x1024   : > { %v12700_v14 = vpop.f32.mrb[84].mxu1 }
0x1025   : > { %15469 = vst [vmem:[#allocation112_spill] sm:$0xff] %v12700_v14  ;;  %v12702_v62 = vpop.f32.mrb[85].mxu1 }
0x1026   : > { %15470 = vst [vmem:[#allocation113_spill] sm:$0xff] %v12702_v62  ;;  %v12704_v4 = vpop.f32.mrb[86].mxu1 }
0x1027   : > { %15471 = vst [vmem:[#allocation114_spill] sm:$0xff] %v12704_v4  ;;  %v12708_v35 = vpop.f32.mrb[87].mxu1 }
0x1028   : > { %15472 = vst [vmem:[#allocation115_spill] sm:$0xff] %v12708_v35 }
0x1032   : > { %v12712_v13 = vpop.f32.mrb[88].mxu1 }
0x1033   : > { %15473 = vst [vmem:[#allocation116_spill] sm:$0xff] %v12712_v13  ;;  %v12714_v51 = vpop.f32.mrb[89].mxu1  ;;  %v15488_v13 = vld [vmem:[#allocation28_spill] sm:$0xff] }
0x1034   : > { %15474 = vst [vmem:[#allocation117_spill] sm:$0xff] %v12714_v51  ;;  %v12716_v29 = vpop.f32.mrb[90].mxu1 }
0x1035   : > { %15475 = vst [vmem:[#allocation118_spill] sm:$0xff] %v12716_v29  ;;  %v12720_v19 = vpop.f32.mrb[91].mxu1  ;;  %v15489_v29 = vld [vmem:[#allocation43_spill] sm:$0xff] }
0x1036   : > { %15476 = vst [vmem:[#allocation119_spill] sm:$0xff] %v12720_v19 }
0x103a   : > { %v12724_v6 = vpop.f32.mrb[92].mxu1 }
0x103b   : > { %15477 = vst [vmem:[#allocation120_spill] sm:$0xff] %v12724_v6  ;;  %v12726_v60 = vpop.f32.mrb[93].mxu1 }
0x103c   : > { %15478 = vst [vmem:[#allocation121_spill] sm:$0xff] %v12726_v60  ;;  %v12728_v43 = vpop.f32.mrb[94].mxu1  ;;  %v15484_v60 = vld [vmem:[#allocation39_spill] sm:$0xff] }
0x103d   : > { %15479 = vst [vmem:[#allocation122_spill] sm:$0xff] %v12728_v43  ;;  %v12732_v38 = vpop.f32.mrb[95].mxu1 }
0x103e   : > { %15480 = vst [vmem:[#allocation123_spill] sm:$0xff] %v12732_v38 }
0x1042   : > { %v8685_v54 = vpop.f32.mrb[96].mxu1 }
0x1043   : > { %v3582_v59 = vadd.f32 %v8685_v54, %v11362_v21  ;;  %v3573_v36 = vpop.f32.mrb[97].mxu1 }
0x1044   : > { %v8686_v53 = vpop.f32.mrb[98].mxu1  ;;  %v3574_v30 = vadd.f32 %v3573_v36, %v11376_v47 }
0x1045   : > { %3640 = vmax.xlane.f32.xlu0 %v3582_v59  ;;  %v3576_v41 = vpop.f32.mrb[99].mxu1  ;;  %v3585_v12 = vadd.f32 %v8686_v53, %v11368_v27 }
0x1046   : > { %v3577_v46 = vadd.f32 %v3576_v41, %v11385_v42 }
0x1048   : > { %3638 = vmax.xlane.f32.xlu1 %v3577_v46 }
0x1049   : > { %3636 = vmax.xlane.f32.xlu0 %v3574_v30 }
0x104a   : > { %v8689_v17 = vpop.f32.mrb[100].mxu1 }
0x104b   : > { %v3589_v33 = vpop.f32.mrb[101].mxu1  ;;  %v12744_v1 = vadd.f32 %v8689_v17, %v11394_v8 }
0x104c   : > { %v8690_v63 = vpop.f32.mrb[102].mxu1  ;;  %v12752_v53 = vadd.f32 %v3589_v33, %v15368_v50 }
0x104d   : > { %v12741_v10 = vadd.f32 %v8690_v63, %v11403_v57  ;;  %3642 = vmax.xlane.f32.xlu0 %v3585_v12  ;;  %v3592_v54 = vpop.f32.mrb[103].mxu1 }
0x104e   : > { %v12748_v41 = vadd.f32 %v3592_v54, %v11421_v26  ;;  %v15483_v54 = vld [vmem:[#allocation40_spill] sm:$0xff] }
0x104f   : > { %3650 = vmax.xlane.f32.xlu1 %v12741_v10 }
0x1051   : > { %3648 = vmax.xlane.f32.xlu0 %v12744_v1 }
0x1052   : > { %v8693_v36 = vpop.f32.mrb[104].mxu1 }
0x1053   : > { %3646 = vmax.xlane.f32.xlu1 %v12748_v41  ;;  %v3605_v63 = vpop.f32.mrb[105].mxu1  ;;  %v12760_v18 = vadd.f32 %v8693_v36, %v15482_v3  ;;  %v15485_v36 = vld [vmem:[#allocation41_spill] sm:$0xff] }
0x1054   : > { %v8694_v45 = vpop.f32.mrb[106].mxu1  ;;  %v12768_v38 = vadd.f32 %v3605_v63, %v15484_v60  ;;  %v15487_v63 = vld [vmem:[#allocation31_spill] sm:$0xff] }
0x1055   : > { %v12756_v9 = vadd.f32 %v8694_v45, %v15481_v44  ;;  %3644 = vmax.xlane.f32.xlu0 %v12752_v53  ;;  %v3608_v17 = vpop.f32.mrb[107].mxu1 }
0x1056   : > { %v12764_v34 = vadd.f32 %v3608_v17, %v15483_v54  ;;  %v15486_v17 = vld [vmem:[#allocation42_spill] sm:$0xff] }
0x1057   : > { %3658 = vmax.xlane.f32.xlu1 %v12756_v9 }
0x1059   : > { %3656 = vmax.xlane.f32.xlu0 %v12760_v18 }
0x105a   : > { %v8697_v33 = vpop.f32.mrb[108].mxu1 }
0x105b   : > { %3654 = vmax.xlane.f32.xlu1 %v12764_v34  ;;  %v3621_v45 = vpop.f32.mrb[109].mxu1  ;;  %v12773_v51 = vadd.f32 %v8697_v33, %v15485_v36  ;;  %v15490_v33 = vld [vmem:[#allocation44_spill] sm:$0xff] }
0x105c   : > { %v8698_v6 = vpop.f32.mrb[110].mxu1  ;;  %v12777_v19 = vadd.f32 %v3621_v45, %v15486_v17  ;;  %v12792_v45 = vpop.permute.xlu1 %3927 }
0x105d   : > { %3652 = vmax.xlane.f32.xlu0 %v12768_v38  ;;  %v3624_v43 = vpop.f32.mrb[111].mxu1  ;;  %v12785_v14 = vadd.f32 %v8698_v6, %v15489_v29 }
0x105e   : > { %v12789_v4 = vadd.f32 %v3624_v43, %v15490_v33 }
0x1061   : > { %3664 = vmax.xlane.f32.xlu0 %v12773_v51 }
0x1065   : > { %3660 = vmax.xlane.f32.xlu0 %v12777_v19 }
0x106c   : > { %3931 = vrot.lane.b32.xlu1 %v15487_v63, %s10569_s28 }
0x107b   : > { %3929 = vrot.lane.b32.xlu0 %v15488_v13, %s10569_s28 }
0x1090   : > { %3666 = vmax.xlane.f32.xlu1 %v12785_v14 }
0x1094   : > { %3662 = vmax.xlane.f32.xlu1 %v12789_v4 }
0x10d2   : > { %v3641_v62 = vpop.xlane.xlu0 %3640 }
0x10d3   : > { %v3670_v35 = vsub.f32 %v3582_v59, %v3641_v62 }
0x10d5   : > { %v3688_v58 = vmul.f32 1.442695, %v3670_v35  ;;  %v3639_v56 = vpop.xlane.xlu1 %3638 }
0x10d6   : > { %v3669_v48 = vsub.f32 %v3577_v46, %v3639_v56  ;;  %v3637_v32 = vpop.xlane.xlu0 %3636  ;;  %v15491_v56 = vld [vmem:[#allocation34_spill] sm:$0xff] }
0x10d7   : > { %9867 = vpow2.f32 %v3688_v58  ;;  %v3668_v13 = vsub.f32 %v3574_v30, %v3637_v32  ;;  %v15492_v32 = vld [vmem:[#allocation35_spill] sm:$0xff] }
0x10d8   : > { %v3686_v63 = vmul.f32 1.442695, %v3669_v48 }
0x10d9   : > { %v3684_v6 = vmul.f32 1.442695, %v3668_v13 }
0x10da   : > { %9869 = vpow2.f32 %v3686_v63  ;;  %v3643_v29 = vpop.xlane.xlu0 %3642 }
0x10db   : > { %9871 = vpow2.f32 %v3684_v6  ;;  %v3671_v17 = vsub.f32 %v3585_v12, %v3643_v29 }
0x10dc   : > { %v3651_v13 = vpop.xlane.xlu1 %3650 }
0x10dd   : > { %v3690_v43 = vmul.f32 1.442695, %v3671_v17  ;;  %v3675_v60 = vsub.f32 %v12741_v10, %v3651_v13 }
0x10de   : > { %v3649_v48 = vpop.xlane.xlu0 %3648 }
0x10df   : > { %9873 = vpow2.f32 %v3690_v43  ;;  %v3674_v59 = vsub.f32 %v12744_v1, %v3649_v48  ;;  %v3698_v3 = vmul.f32 1.442695, %v3675_v60 }
0x10e0   : > { %v3647_v46 = vpop.xlane.xlu1 %3646 }
0x10e1   : > { %v12794_v33 = vpop.eup %9867  ;;  %v3696_v12 = vmul.f32 1.442695, %v3674_v59  ;;  %v3673_v63 = vsub.f32 %v12748_v41, %v3647_v46 }
0x10e2   : > { %3720 = vadd.xlane.f32.xlu1 %v12794_v33  ;;  %v3645_v35 = vpop.xlane.xlu0 %3644 }
0x10e3   : > { %v3672_v17 = vsub.f32 %v12752_v53, %v3645_v35  ;;  %9875 = vpow2.f32 %v3696_v12  ;;  %v3694_v54 = vmul.f32 1.442695, %v3673_v63 }
0x10e4   : > { %v12797_v36 = vpop.eup %9869  ;;  %v3659_v6 = vpop.xlane.xlu1 %3658 }
0x10e5   : > { %v12799_v62 = vpop.eup %9871  ;;  %3718 = vadd.xlane.f32.xlu0 %v12797_v36  ;;  %v3679_v10 = vsub.f32 %v12756_v9, %v3659_v6 }
0x10e6   : > { %3716 = vadd.xlane.f32.xlu1 %v12799_v62  ;;  %v3657_v29 = vpop.xlane.xlu0 %3656 }
0x10e7   : > { %v3706_v60 = vmul.f32 1.442695, %v3679_v10 }
0x10e8   : > { %v3655_v44 = vpop.xlane.xlu1 %3654 }
0x10e9   : > { %v12803_v58 = vpop.eup %9873 }
0x10ea   : > { %3722 = vadd.xlane.f32.xlu1 %v12803_v58  ;;  %v3653_v30 = vpop.xlane.xlu0 %3652 }
0x10eb   : > { %v3676_v53 = vsub.f32 %v12768_v38, %v3653_v30  ;;  %v3677_v38 = vsub.f32 %v12764_v34, %v3655_v44 }
0x10ed   : > { %v3700_v13 = vmul.f32 1.442695, %v3676_v53  ;;  %v12819_v46 = vpop.eup %9875 }
0x10ee   : > { %v3665_v43 = vpop.xlane.xlu0 %3664 }
0x10ef   : > { %v3682_v1 = vsub.f32 %v12773_v51, %v3665_v43 }
0x10f1   : > { %v3712_v41 = vmul.f32 1.442695, %v3682_v1 }
0x10f2   : > { %v3661_v35 = vpop.xlane.xlu0 %3660 }
0x10f3   : > { %v3680_v59 = vsub.f32 %v12777_v19, %v3661_v35 }
0x10f5   : > { %v3708_v51 = vmul.f32 1.442695, %v3680_v59 }
0x10fb   : > { %3933 = vrot.lane.b32.xlu0 %v15491_v56, %s10569_s28  ;;  %3935 = vrot.lane.b32.xlu1 %v15492_v32, %s10569_s28  ;;  %v3692_v56 = vmul.f32 1.442695, %v3672_v17  ;;  %v3678_v32 = vsub.f32 %v12760_v18, %v3657_v29  ;;  %v12821_v18 = vpop.permute.xlu1 %3931 }
0x10fd   : > { %9877 = vpow2.f32 %v3692_v56  ;;  %v3704_v48 = vmul.f32 1.442695, %v3678_v32  ;;  %v3702_v56 = vmul.f32 1.442695, %v3677_v38 }
0x10fe   : > { %9879 = vpow2.f32 %v3694_v54 }
0x10ff   : > { %9881 = vpow2.f32 %v3698_v3 }
0x1100   : > { %9883 = vpow2.f32 %v3704_v48  ;;  %v3930_v48 = vpop.permute.xlu0 %3929 }
0x1101   : > { %9885 = vpow2.f32 %v3712_v41 }
0x1102   : > { %9887 = vpow2.f32 %v3700_v13 }
0x1103   : > { %9889 = vpow2.f32 %v3708_v51 }
0x1104   : > { %9891 = vpow2.f32 %v3706_v60 }
0x1107   : > { %v12825_v3 = vpop.eup %9877 }
0x1108   : > { %v12827_v19 = vpop.eup %9879 }
0x1109   : > { %v12832_v29 = vpop.eup %9881 }
0x110a   : > { %v12834_v34 = vpop.eup %9883 }
0x110b   : > { %v12839_v12 = vpop.eup %9885 }
0x110c   : > { %v12841_v17 = vpop.eup %9887 }
0x110d   : > { %v12845_v63 = vpop.eup %9889 }
0x110e   : > { %v12847_v6 = vpop.eup %9891 }
0x111a   : > { %3728 = vadd.xlane.f32.xlu0 %v12819_v46 }
0x111d   : > { %v3667_v54 = vpop.xlane.xlu1 %3666 }
0x111e   : > { %v3683_v9 = vsub.f32 %v12785_v14, %v3667_v54  ;;  %3724 = vadd.xlane.f32.xlu0 %v12825_v3 }
0x111f   : > { %3726 = vadd.xlane.f32.xlu1 %v12827_v19 }
0x1120   : > { %v3714_v32 = vmul.f32 1.442695, %v3683_v9 }
0x1121   : > { %v3663_v30 = vpop.xlane.xlu1 %3662 }
0x1122   : > { %9893 = vpow2.f32 %v3714_v32  ;;  %v3681_v44 = vsub.f32 %v12789_v4, %v3663_v30  ;;  %3730 = vadd.xlane.f32.xlu0 %v12832_v29  ;;  %v3966_v32 = vsel %vm1240_vm0, %v12683_v52, 0 }
0x1123   : > { %3736 = vadd.xlane.f32.xlu1 %v12834_v34  ;;  %9895 = vpow2.f32 %v3702_v56 }
0x1124   : > { %v3710_v14 = vmul.f32 1.442695, %v3681_v44 }
0x1126   : > { %3744 = vadd.xlane.f32.xlu0 %v12839_v12  ;;  %9897 = vpow2.f32 %v3710_v14 }
0x1127   : > { %3732 = vadd.xlane.f32.xlu1 %v12841_v17 }
0x112a   : > { %3740 = vadd.xlane.f32.xlu0 %v12845_v63 }
0x112b   : > { %3738 = vadd.xlane.f32.xlu1 %v12847_v6 }
0x112c   : > { %v12851_v4 = vpop.eup %9893 }
0x112d   : > { %v12853_v43 = vpop.eup %9895 }
0x112e   : > { %3746 = vadd.xlane.f32.xlu0 %v12851_v4 }
0x112f   : > { %3734 = vadd.xlane.f32.xlu1 %v12853_v43 }
0x1130   : > { %v12857_v1 = vpop.eup %9897 }
0x1133   : > { %3742 = vadd.xlane.f32.xlu1 %v12857_v1 }
0x1144   : > { %3939 = vrot.lane.b32.xlu1 %v11326_v2, %s10569_s28  ;;  %3937 = vrot.lane.b32.xlu0 %v11318_v23, %s10569_s28 }
0x1148   : > { %3911 = vrot.lane.b32.xlu1 %v11253_v16, %s10569_s28  ;;  %3909 = vrot.lane.b32.xlu0 %v11234_v0, %s10569_s28 }
0x114c   : > { %3915 = vrot.lane.b32.xlu1 %v11287_v20, %s10569_s28  ;;  %3913 = vrot.lane.b32.xlu0 %v11271_v37, %s10569_s28 }
0x1150   : > { %3919 = vrot.lane.b32.xlu1 %v11312_v11, %s10569_s28  ;;  %3917 = vrot.lane.b32.xlu0 %v11303_v61, %s10569_s28 }
0x1154   : > { %3923 = vrot.lane.b32.xlu1 %v11328_v39, %s10569_s28  ;;  %3921 = vrot.lane.b32.xlu0 %v11320_v25, %s10569_s28 }
0x1158   : > { %4240 = vrot.lane.b32.xlu1 %v11242_v5, %s10569_s28  ;;  %4238 = vrot.lane.b32.xlu0 %v11246_v7, %s10569_s28 }
0x115c   : > { %4244 = vrot.lane.b32.xlu1 %v11261_v22, %s10569_s28  ;;  %4242 = vrot.lane.b32.xlu0 %v11264_v24, %s10569_s28 }
0x1160   : > { %4248 = vrot.lane.b32.xlu1 %v11277_v40, %s10569_s28  ;;  %4246 = vrot.lane.b32.xlu0 %v11280_v28, %s10569_s28 }
0x1164   : > { %4252 = vrot.lane.b32.xlu1 %v11293_v31, %s10569_s28  ;;  %4250 = vrot.lane.b32.xlu0 %v11296_v55, %s10569_s28 }
0x1168   : > { %4377 = vrot.lane.b32.xlu1 %v11250_v15, %s10570_s8  ;;  %4375 = vrot.lane.b32.xlu0 %v11232_v49, %s10570_s8 }
0x116f   : > { %v3721_v53 = vpop.xlane.xlu1 %3720 }
0x1172   : > { %v3719_v35 = vpop.xlane.xlu0 %3718 }
0x1173   : > { %9899 = vrcp.f32 %v3719_v35  ;;  %v3717_v41 = vpop.xlane.xlu1 %3716 }
0x1174   : > { %9901 = vrcp.f32 %v3717_v41 }
0x1175   : > { %9903 = vrcp.f32 %v3721_v53 }
0x1176   : > { %v3934_v52 = vpop.permute.xlu0 %3933 }
0x1177   : > { %v3723_v59 = vpop.xlane.xlu1 %3722 }
0x1178   : > { %9905 = vrcp.f32 %v3723_v59 }
0x117d   : > { %v9900_v10 = vpop.eup %9899 }
0x117e   : > { %v9902_v13 = vpop.eup %9901  ;;  %v3765_v51 = vmul.f32 %v9900_v10, %v12797_v36  ;;  %v3969_v36 = vsel %vm1240_vm0, %v12792_v45, 0 }
0x117f   : > { %v3764_v60 = vmul.f32 %v9902_v13, %v12799_v62  ;;  %v9904_v38 = vpop.eup %9903  ;;  %v3975_v62 = vsel %vm1240_vm0, %v12821_v18, 0 }
0x1180   : > { %v3766_v49 = vmul.f32 %v9904_v38, %v12794_v33  ;;  %v3972_v33 = vsel %vm1240_vm0, %v3930_v48, 0 }
0x1181   : > { %v3780_v15 = vpack.c.bf16 %v3765_v51, %v3764_v60 }
0x1182   : > { %v9906_v54 = vpop.eup %9905 }
0x1183   : > { %v3767_v9 = vmul.f32 %v9906_v54, %v12803_v58  ;;  %8715 = vmatprep.mubr.bf16.mxu0 %v3780_v15  ;;  %v3978_v58 = vsel %vm1240_vm0, %v3934_v52, 0 }
0x1185   : > { %v3781_v56 = vpack.c.bf16 %v3767_v9, %v3766_v49 }
0x1187   : > { %8716 = vmatmul.mubr.bf16.vlgmr.msra.gmra.mrb[112].mxu0 %v3781_v56 }
0x1188   : > { %8732 = vmatpush3.bf16.xpose.msra.mxu0 %v3966_v32 }
0x1189   : > { %8956 = vmatprep.subr.msk.bf16.mxu0 %vm1240_vm0, %v12792_v45  ;;  %v3936_v45 = vpop.permute.xlu1 %3935 }
0x1190   : > { %8734 = vmatpush3.bf16.xpose.msra.mxu0 %v3969_v36 }
0x1191   : > { %8957 = vmatprep.subr.msk.bf16.mxu0 %vm1240_vm0, %v3930_v48  ;;  %v3981_v48 = vsel %vm1240_vm0, %v3936_v45, 0 }
0x1198   : > { %8736 = vmatpush3.bf16.xpose.msra.mxu0 %v3972_v33 }
0x1199   : > { %8958 = vmatprep.subr.msk.bf16.mxu0 %vm1240_vm0, %v12821_v18 }
0x11a0   : > { %8738 = vmatpush3.bf16.xpose.msra.mxu0 %v3975_v62 }
0x11a1   : > { %8959 = vmatprep.subr.msk.bf16.mxu0 %vm1240_vm0, %v3934_v52 }
0x11a7   : > { %v3729_v30 = vpop.xlane.xlu0 %3728 }
0x11a8   : > { %8740 = vmatpush3.bf16.xpose.msra.mxu0 %v3978_v58 }
0x11a9   : > { %8960 = vmatprep.subr.msk.bf16.mxu0 %vm1240_vm0, %v3936_v45 }
0x11ab   : > { %v3725_v44 = vpop.xlane.xlu0 %3724 }
0x11ac   : > { %9907 = vrcp.f32 %v3725_v44  ;;  %v3727_v14 = vpop.xlane.xlu1 %3726 }
0x11ad   : > { %9909 = vrcp.f32 %v3727_v14 }
0x11ae   : > { %9911 = vrcp.f32 %v3729_v30 }
0x11af   : > { %v3731_v53 = vpop.xlane.xlu0 %3730 }
0x11b0   : > { %8742 = vmatpush3.bf16.xpose.msra.mxu0 %v3981_v48  ;;  %9913 = vrcp.f32 %v3731_v53  ;;  %v3737_v18 = vpop.xlane.xlu1 %3736 }
0x11b3   : > { %v3745_v35 = vpop.xlane.xlu0 %3744 }
0x11b4   : > { %v3733_v41 = vpop.xlane.xlu1 %3732 }
0x11b6   : > { %v9908_v59 = vpop.eup %9907 }
0x11b7   : > { %v9910_v10 = vpop.eup %9909  ;;  %v3741_v13 = vpop.xlane.xlu0 %3740  ;;  %v3768_v51 = vmul.f32 %v9908_v59, %v12825_v3 }
0x11b8   : > { %v9912_v60 = vpop.eup %9911  ;;  %v3739_v38 = vpop.xlane.xlu1 %3738  ;;  %v3769_v15 = vmul.f32 %v9910_v10, %v12827_v19 }
0x11b9   : > { %9915 = vrcp.f32 %v3739_v38  ;;  %v3770_v56 = vmul.f32 %v9912_v60, %v12819_v46 }
0x11ba   : > { %v9914_v54 = vpop.eup %9913  ;;  %v3782_v49 = vpack.c.bf16 %v3769_v15, %v3768_v51  ;;  %9917 = vrcp.f32 %v3733_v41 }
0x11bb   : > { %v3747_v9 = vpop.xlane.xlu0 %3746  ;;  %v3771_v32 = vmul.f32 %v9914_v54, %v12832_v29  ;;  %9919 = vrcp.f32 %v3737_v18 }
0x11bc   : > { %v3735_v36 = vpop.xlane.xlu1 %3734  ;;  %8719 = vmatprep.mubr.bf16.mxu0 %v3782_v49 }
0x11bd   : > { %9921 = vrcp.f32 %v3735_v36  ;;  %v3783_v33 = vpack.c.bf16 %v3771_v32, %v3770_v56 }
0x11be   : > { %9923 = vrcp.f32 %v3741_v13 }
0x11bf   : > { %8720 = vmatmul.mubr.bf16.gmra.mrb[116].mxu0 %v3783_v33  ;;  %v3938_v3 = vpop.permute.xlu0 %3937 }
0x11c0   : > { %v3743_v62 = vpop.xlane.xlu1 %3742  ;;  %8961 = vmatprep.subr.msk.bf16.mxu0 %vm1240_vm0, %v3938_v3  ;;  %v3984_v19 = vsel %vm1240_vm0, %v3938_v3, 0 }
0x11c1   : > { %9925 = vrcp.f32 %v3743_v62  ;;  %8744 = vmatpush3.bf16.xpose.msra.mxu0 %v3984_v19 }
0x11c2   : > { %9927 = vrcp.f32 %v3747_v9 }
0x11c3   : > { %v3910_v52 = vpop.permute.xlu0 %3909  ;;  %v9916_v46 = vpop.eup %9915  ;;  %9929 = vrcp.f32 %v3745_v35 }
0x11c4   : > { %v3940_v29 = vpop.permute.xlu1 %3939  ;;  %v9918_v58 = vpop.eup %9917  ;;  %v3775_v14 = vmul.f32 %v9916_v46, %v12847_v6 }
0x11c5   : > { %8962 = vmatprep.subr.msk.bf16.mxu0 %vm1240_vm0, %v3940_v29  ;;  %v9920_v30 = vpop.eup %9919  ;;  %v3987_v53 = vsel %vm1240_vm0, %v3940_v29, 0  ;;  %v3772_v18 = vmul.f32 %v9918_v58, %v12841_v17 }
0x11c6   : > { %v3774_v35 = vmul.f32 %v9920_v30, %v12834_v34  ;;  %v15512_v30 = vld [vmem:[#allocation39_spill] sm:$0xff] }
0x11c7   : > { %v9922_v45 = vpop.eup %9921  ;;  %v3914_v44 = vpop.permute.xlu0 %3913 }
0x11c8   : > { %v3912_v48 = vpop.permute.xlu1 %3911  ;;  %v3773_v41 = vmul.f32 %v9922_v45, %v12853_v43  ;;  %v9924_v59 = vpop.eup %9923  ;;  %v3785_v60 = vpack.c.bf16 %v3775_v14, %v3774_v35 }
0x11c9   : > { %8746 = vmatpush3.bf16.xpose.msra.mxu0 %v3987_v53  ;;  %v3776_v6 = vmul.f32 %v9924_v59, %v12845_v63 }
0x11ca   : > { %v3784_v10 = vpack.c.bf16 %v3773_v41, %v3772_v18 }
0x11cb   : > { %v9926_v13 = vpop.eup %9925  ;;  %v3918_v51 = vpop.permute.xlu0 %3917 }
0x11cc   : > { %v9928_v38 = vpop.eup %9927  ;;  %v3916_v15 = vpop.permute.xlu1 %3915  ;;  %8723 = vmatprep.mubr.bf16.mxu0 %v3784_v10  ;;  %v3777_v54 = vmul.f32 %v9926_v13, %v12857_v1 }
0x11cd   : > { %8724 = vmatmul.mubr.bf16.gmra.mrb[120].mxu0 %v3785_v60  ;;  %v9930_v49 = vpop.eup %9929  ;;  %v3779_v43 = vmul.f32 %v9928_v38, %v12851_v4 }
0x11ce   : > { %v3786_v17 = vpack.c.bf16 %v3777_v54, %v3776_v6  ;;  %v3778_v34 = vmul.f32 %v9930_v49, %v12839_v12  ;;  %v15509_v49 = vld [vmem:[#allocation38_spill] sm:$0xff] }
0x11cf   : > { %v3922_v9 = vpop.permute.xlu0 %3921 }
0x11d0   : > { %v3920_v56 = vpop.permute.xlu1 %3919  ;;  %8727 = vmatprep.mubr.bf16.mxu0 %v3786_v17  ;;  %v3787_v36 = vpack.c.bf16 %v3779_v43, %v3778_v34 }
0x11d3   : > { %v4239_v32 = vpop.permute.xlu0 %4238 }
0x11d4   : > { %v3924_v33 = vpop.permute.xlu1 %3923  ;;  %8763 = vmatprep.subr.bf16.mxu1 %v4239_v32 }
0x11d5   : > { %8728 = vmatmul.mubr.bf16.gmra.mrb[124].mxu0 %v3787_v36  ;;  %8764 = vmatpush3.bf16.msra.mxu1 %v4239_v32 }
0x11d6   : > { %8747 = vmatprep.mubr.msk.bf16.mxu0 %vm1240_vm0, %v3910_v52 }
0x11d7   : > { %v4243_v1 = vpop.permute.xlu0 %4242 }
0x11d8   : > { %v4241_v63 = vpop.permute.xlu1 %4240 }
0x11d9   : > { %8765 = vmatprep.subr.bf16.mxu1 %v4241_v63 }
0x11da   : > { %8766 = vmatpush3.bf16.msra.mxu1 %v4241_v63 }
0x11db   : > { %8767 = vmatprep.subr.bf16.mxu1 %v4243_v1  ;;  %v4247_v12 = vpop.permute.xlu0 %4246 }
0x11dc   : > { %v4245_v4 = vpop.permute.xlu1 %4244 }
0x11dd   : > { %8748 = vmatmul.mubr.msk.bf16.vlgmr.msra.gmra.mrb[128].mxu0 %vm1240_vm0, %v3912_v48 }
0x11de   : > { %8751 = vmatprep.mubr.msk.bf16.mxu0 %vm1240_vm0, %v3914_v44  ;;  %8768 = vmatpush3.bf16.msra.mxu1 %v4243_v1 }
0x11df   : > { %8769 = vmatprep.subr.bf16.mxu1 %v4245_v4  ;;  %v4251_v62 = vpop.permute.xlu0 %4250 }
0x11e0   : > { %v4249_v3 = vpop.permute.xlu1 %4248 }
0x11e2   : > { %8770 = vmatpush3.bf16.msra.mxu1 %v4245_v4 }
0x11e3   : > { %8771 = vmatprep.subr.bf16.mxu1 %v4247_v12  ;;  %v12943_v52 = vpop.permute.xlu0 %4375 }
0x11e4   : > { %v4253_v19 = vpop.permute.xlu1 %4252 }
0x11e5   : > { %8752 = vmatmul.mubr.msk.bf16.gmra.mrb[132].mxu0 %vm1240_vm0, %v3916_v15 }
0x11e6   : > { %8755 = vmatprep.mubr.msk.bf16.mxu0 %vm1240_vm0, %v3918_v51  ;;  %8772 = vmatpush3.bf16.msra.mxu1 %v4247_v12  ;;  %v15510_v51 = vld [vmem:[#allocation37_spill] sm:$0xff] }
0x11e7   : > { %8773 = vmatprep.subr.bf16.mxu1 %v4249_v3 }
0x11ea   : > { %8774 = vmatpush3.bf16.msra.mxu1 %v4249_v3 }
0x11eb   : > { %8775 = vmatprep.subr.bf16.mxu1 %v4251_v62 }
0x11ed   : > { %8756 = vmatmul.mubr.msk.bf16.gmra.mrb[136].mxu0 %vm1240_vm0, %v3920_v56 }
0x11ee   : > { %8759 = vmatprep.mubr.msk.bf16.mxu0 %vm1240_vm0, %v3922_v9  ;;  %8776 = vmatpush3.bf16.msra.mxu1 %v4251_v62 }
0x11ef   : > { %8777 = vmatprep.subr.bf16.mxu1 %v4253_v19 }
0x11f2   : > { %8778 = vmatpush3.bf16.msra.mxu1 %v4253_v19 }
0x11f3   : > { %8963 = vmatprep.subr.msk.bf16.mxu1 %vm1240_vm0, %v12943_v52 }
0x11f5   : > { %8760 = vmatmul.mubr.msk.bf16.gmra.mrb[140].mxu0 %vm1240_vm0, %v3924_v33 }
0x125a   : > { %v12948_v46 = vpop.f32.mrb[112].mxu0 }
0x125b   : > { %15493 = vst [vmem:[#allocation124_spill] sm:$0xff] %v12948_v46  ;;  %v12950_v29 = vpop.f32.mrb[113].mxu0 }
0x125c   : > { %15494 = vst [vmem:[#allocation125_spill] sm:$0xff] %v12950_v29  ;;  %v12952_v58 = vpop.f32.mrb[114].mxu0 }
0x125d   : > { %15495 = vst [vmem:[#allocation126_spill] sm:$0xff] %v12952_v58  ;;  %v12956_v45 = vpop.f32.mrb[115].mxu0 }
0x125e   : > { %15496 = vst [vmem:[#allocation127_spill] sm:$0xff] %v12956_v45 }
0x1292   : > { %v12960_v14 = vpop.f32.mrb[116].mxu0 }
0x1293   : > { %15497 = vst [vmem:[#allocation128_spill] sm:$0xff] %v12960_v14  ;;  %v12962_v48 = vpop.f32.mrb[117].mxu0 }
0x1294   : > { %15498 = vst [vmem:[#allocation129_spill] sm:$0xff] %v12962_v48  ;;  %v12964_v53 = vpop.f32.mrb[118].mxu0 }
0x1295   : > { %15499 = vst [vmem:[#allocation130_spill] sm:$0xff] %v12964_v53  ;;  %v12968_v41 = vpop.f32.mrb[119].mxu0 }
0x1296   : > { %15500 = vst [vmem:[#allocation131_spill] sm:$0xff] %v12968_v41 }
0x12a0   : > { %v12972_v35 = vpop.f32.mrb[120].mxu0 }
0x12a1   : > { %15501 = vst [vmem:[#allocation132_spill] sm:$0xff] %v12972_v35  ;;  %v12974_v10 = vpop.f32.mrb[121].mxu0 }
0x12a2   : > { %15502 = vst [vmem:[#allocation133_spill] sm:$0xff] %v12974_v10  ;;  %v12976_v13 = vpop.f32.mrb[122].mxu0  ;;  %v15516_v10 = vld [vmem:[#allocation28_spill] sm:$0xff] }
0x12a3   : > { %15503 = vst [vmem:[#allocation134_spill] sm:$0xff] %v12976_v13  ;;  %v12980_v60 = vpop.f32.mrb[123].mxu0 }
0x12a4   : > { %15504 = vst [vmem:[#allocation135_spill] sm:$0xff] %v12980_v60  ;;  %v15517_v60 = vld [vmem:[#allocation43_spill] sm:$0xff] }
0x12a8   : > { %v12984_v15 = vpop.f32.mrb[124].mxu0 }
0x12a9   : > { %15505 = vst [vmem:[#allocation136_spill] sm:$0xff] %v12984_v15  ;;  %v12986_v6 = vpop.f32.mrb[125].mxu0 }
0x12aa   : > { %15506 = vst [vmem:[#allocation137_spill] sm:$0xff] %v12986_v6  ;;  %v12988_v54 = vpop.f32.mrb[126].mxu0 }
0x12ab   : > { %15507 = vst [vmem:[#allocation138_spill] sm:$0xff] %v12988_v54  ;;  %v12992_v17 = vpop.f32.mrb[127].mxu0 }
0x12ac   : > { %15508 = vst [vmem:[#allocation139_spill] sm:$0xff] %v12992_v17 }
0x12b0   : > { %v8749_v43 = vpop.f32.mrb[128].mxu0 }
0x12b1   : > { %v4032_v56 = vadd.f32 %v8749_v43, %v11362_v21  ;;  %v4023_v34 = vpop.f32.mrb[129].mxu0 }
0x12b2   : > { %v8750_v32 = vpop.f32.mrb[130].mxu0  ;;  %v4024_v63 = vadd.f32 %v4023_v34, %v11376_v47 }
0x12b3   : > { %4090 = vmax.xlane.f32.xlu0 %v4032_v56  ;;  %v4026_v36 = vpop.f32.mrb[131].mxu0  ;;  %v4035_v4 = vadd.f32 %v8750_v32, %v11368_v27 }
0x12b4   : > { %v4027_v33 = vadd.f32 %v4026_v36, %v11385_v42 }
0x12b6   : > { %4088 = vmax.xlane.f32.xlu1 %v4027_v33 }
0x12b7   : > { %4086 = vmax.xlane.f32.xlu0 %v4024_v63 }
0x12b8   : > { %v8753_v1 = vpop.f32.mrb[132].mxu0 }
0x12b9   : > { %v4039_v12 = vpop.f32.mrb[133].mxu0  ;;  %v13004_v43 = vadd.f32 %v8753_v1, %v11394_v8 }
0x12ba   : > { %v8754_v3 = vpop.f32.mrb[134].mxu0  ;;  %v13012_v32 = vadd.f32 %v4039_v12, %v15368_v50 }
0x12bb   : > { %v13001_v62 = vadd.f32 %v8754_v3, %v11403_v57  ;;  %4092 = vmax.xlane.f32.xlu0 %v4035_v4  ;;  %v4042_v19 = vpop.f32.mrb[135].mxu0 }
0x12bc   : > { %v13008_v36 = vadd.f32 %v4042_v19, %v11421_v26  ;;  %v15511_v19 = vld [vmem:[#allocation40_spill] sm:$0xff] }
0x12bd   : > { %4100 = vmax.xlane.f32.xlu1 %v13001_v62 }
0x12bf   : > { %4098 = vmax.xlane.f32.xlu0 %v13004_v43 }
0x12c0   : > { %v8757_v34 = vpop.f32.mrb[136].mxu0 }
0x12c1   : > { %4096 = vmax.xlane.f32.xlu1 %v13008_v36  ;;  %v4055_v3 = vpop.f32.mrb[137].mxu0  ;;  %v13020_v18 = vadd.f32 %v8757_v34, %v15510_v51  ;;  %v15513_v34 = vld [vmem:[#allocation41_spill] sm:$0xff] }
0x12c2   : > { %v8758_v9 = vpop.f32.mrb[138].mxu0  ;;  %v13028_v44 = vadd.f32 %v4055_v3, %v15512_v30  ;;  %v15515_v3 = vld [vmem:[#allocation31_spill] sm:$0xff] }
0x12c3   : > { %v13016_v38 = vadd.f32 %v8758_v9, %v15509_v49  ;;  %4094 = vmax.xlane.f32.xlu0 %v13012_v32  ;;  %v4058_v1 = vpop.f32.mrb[139].mxu0 }
0x12c4   : > { %v13024_v59 = vadd.f32 %v4058_v1, %v15511_v19  ;;  %v15514_v1 = vld [vmem:[#allocation42_spill] sm:$0xff] }
0x12c5   : > { %4108 = vmax.xlane.f32.xlu1 %v13016_v38 }
0x12c7   : > { %4106 = vmax.xlane.f32.xlu0 %v13020_v18 }
0x12c8   : > { %v8761_v12 = vpop.f32.mrb[140].mxu0 }
0x12c9   : > { %4104 = vmax.xlane.f32.xlu1 %v13024_v59  ;;  %v4071_v9 = vpop.f32.mrb[141].mxu0  ;;  %v13033_v15 = vadd.f32 %v8761_v12, %v15513_v34  ;;  %v15518_v12 = vld [vmem:[#allocation44_spill] sm:$0xff] }
0x12ca   : > { %v8762_v6 = vpop.f32.mrb[142].mxu0  ;;  %v13037_v54 = vadd.f32 %v4071_v9, %v15514_v1  ;;  %v13052_v9 = vpop.permute.xlu1 %4377 }
0x12cb   : > { %4102 = vmax.xlane.f32.xlu0 %v13028_v44  ;;  %v4074_v17 = vpop.f32.mrb[143].mxu0  ;;  %v13045_v35 = vadd.f32 %v8762_v6, %v15517_v60 }
0x12cc   : > { %v13049_v13 = vadd.f32 %v4074_v17, %v15518_v12 }
0x12cf   : > { %4114 = vmax.xlane.f32.xlu0 %v13033_v15 }
0x12d3   : > { %4110 = vmax.xlane.f32.xlu0 %v13037_v54 }
0x12da   : > { %4381 = vrot.lane.b32.xlu1 %v15515_v3, %s10570_s8 }
0x12e9   : > { %4379 = vrot.lane.b32.xlu0 %v15516_v10, %s10570_s8 }
0x12fe   : > { %4116 = vmax.xlane.f32.xlu1 %v13045_v35 }
0x1302   : > { %4112 = vmax.xlane.f32.xlu1 %v13049_v13 }
0x1340   : > { %v4091_v14 = vpop.xlane.xlu0 %4090 }
0x1341   : > { %v4120_v53 = vsub.f32 %v4032_v56, %v4091_v14 }
0x1343   : > { %v4138_v48 = vmul.f32 1.442695, %v4120_v53  ;;  %v4089_v41 = vpop.xlane.xlu1 %4088 }
0x1344   : > { %v4119_v3 = vsub.f32 %v4027_v33, %v4089_v41  ;;  %v4087_v46 = vpop.xlane.xlu0 %4086 }
0x1345   : > { %9931 = vpow2.f32 %v4138_v48  ;;  %v4118_v10 = vsub.f32 %v4024_v63, %v4087_v46 }
0x1346   : > { %v4136_v58 = vmul.f32 1.442695, %v4119_v3 }
0x1347   : > { %v4134_v6 = vmul.f32 1.442695, %v4118_v10 }
0x1348   : > { %9933 = vpow2.f32 %v4136_v58  ;;  %v4093_v29 = vpop.xlane.xlu0 %4092 }
0x1349   : > { %9935 = vpow2.f32 %v4134_v6  ;;  %v4121_v45 = vsub.f32 %v4035_v4, %v4093_v29  ;;  %v15519_v29 = vld [vmem:[#allocation34_spill] sm:$0xff] }
0x134a   : > { %v4101_v53 = vpop.xlane.xlu1 %4100 }
0x134b   : > { %v4140_v17 = vmul.f32 1.442695, %v4121_v45  ;;  %v15520_v45 = vld [vmem:[#allocation35_spill] sm:$0xff]  ;;  %v4125_v12 = vsub.f32 %v13001_v62, %v4101_v53 }
0x134c   : > { %v4099_v58 = vpop.xlane.xlu0 %4098 }
0x134d   : > { %9937 = vpow2.f32 %v4140_v17  ;;  %v4124_v56 = vsub.f32 %v13004_v43, %v4099_v58  ;;  %v4148_v28 = vmul.f32 1.442695, %v4125_v12 }
0x134e   : > { %v4097_v33 = vpop.xlane.xlu1 %4096 }
0x134f   : > { %v13054_v55 = vpop.eup %9931  ;;  %v4146_v4 = vmul.f32 1.442695, %v4124_v56  ;;  %v4123_v10 = vsub.f32 %v13008_v36, %v4097_v33 }
0x1350   : > { %4170 = vadd.xlane.f32.xlu1 %v13054_v55  ;;  %v4095_v48 = vpop.xlane.xlu0 %4094 }
0x1351   : > { %v4122_v3 = vsub.f32 %v13012_v32, %v4095_v48  ;;  %9939 = vpow2.f32 %v4146_v4  ;;  %v4144_v60 = vmul.f32 1.442695, %v4123_v10 }
0x1352   : > { %v13057_v31 = vpop.eup %9933  ;;  %v4109_v6 = vpop.xlane.xlu1 %4108 }
0x1353   : > { %v13059_v14 = vpop.eup %9935  ;;  %4168 = vadd.xlane.f32.xlu0 %v13057_v31  ;;  %v4129_v62 = vsub.f32 %v13016_v38, %v4109_v6 }
0x1354   : > { %4166 = vadd.xlane.f32.xlu1 %v13059_v14  ;;  %v4107_v41 = vpop.xlane.xlu0 %4106 }
0x1356   : > { %v4105_v40 = vpop.xlane.xlu1 %4104 }
0x1357   : > { %v13063_v46 = vpop.eup %9937 }
0x1358   : > { %4172 = vadd.xlane.f32.xlu1 %v13063_v46  ;;  %v4103_v63 = vpop.xlane.xlu0 %4102 }
0x1359   : > { %v4126_v32 = vsub.f32 %v13028_v44, %v4103_v63  ;;  %v4127_v44 = vsub.f32 %v13024_v59, %v4105_v40 }
0x135b   : > { %v4150_v53 = vmul.f32 1.442695, %v4126_v32  ;;  %v13079_v33 = vpop.eup %9939  ;;  %v4416_v32 = vsel %vm1240_vm0, %v12943_v52, 0 }
0x135c   : > { %v4115_v17 = vpop.xlane.xlu0 %4114 }
0x135d   : > { %v4132_v43 = vsub.f32 %v13033_v15, %v4115_v17  ;;  %v4156_v15 = vmul.f32 1.442695, %v4129_v62 }
0x135f   : > { %v4162_v36 = vmul.f32 1.442695, %v4132_v43 }
0x1360   : > { %v4111_v48 = vpop.xlane.xlu0 %4110 }
0x1361   : > { %v4130_v56 = vsub.f32 %v13037_v54, %v4111_v48 }
0x1369   : > { %4383 = vrot.lane.b32.xlu0 %v15519_v29, %s10570_s8  ;;  %4385 = vrot.lane.b32.xlu1 %v15520_v45, %s10570_s8  ;;  %v4142_v29 = vmul.f32 1.442695, %v4122_v3  ;;  %v4128_v45 = vsub.f32 %v13020_v18, %v4107_v41  ;;  %v13081_v18 = vpop.permute.xlu1 %4381  ;;  %v4152_v41 = vmul.f32 1.442695, %v4127_v44 }
0x136b   : > { %9941 = vpow2.f32 %v4142_v29  ;;  %v4154_v58 = vmul.f32 1.442695, %v4128_v45 }
0x136c   : > { %9943 = vpow2.f32 %v4144_v60  ;;  %v4158_v60 = vmul.f32 1.442695, %v4130_v56 }
0x136d   : > { %9945 = vpow2.f32 %v4148_v28 }
0x136e   : > { %9947 = vpow2.f32 %v4154_v58 }
0x136f   : > { %9949 = vpow2.f32 %v4162_v36 }
0x1370   : > { %9951 = vpow2.f32 %v4150_v53 }
0x1371   : > { %9953 = vpow2.f32 %v4158_v60 }
0x1372   : > { %9955 = vpow2.f32 %v4156_v15 }
0x1375   : > { %v13085_v28 = vpop.eup %9941 }
0x1376   : > { %v13087_v54 = vpop.eup %9943 }
0x1377   : > { %v13092_v4 = vpop.eup %9945 }
0x1378   : > { %v13094_v40 = vpop.eup %9947 }
0x1379   : > { %v13099_v10 = vpop.eup %9949 }
0x137a   : > { %v13101_v6 = vpop.eup %9951 }
0x137b   : > { %v13105_v17 = vpop.eup %9953 }
0x137c   : > { %v13107_v29 = vpop.eup %9955 }
0x1388   : > { %4178 = vadd.xlane.f32.xlu0 %v13079_v33 }
0x138b   : > { %v4117_v12 = vpop.xlane.xlu1 %4116 }
0x138c   : > { %v4133_v38 = vsub.f32 %v13045_v35, %v4117_v12  ;;  %4174 = vadd.xlane.f32.xlu0 %v13085_v28 }
0x138d   : > { %4176 = vadd.xlane.f32.xlu1 %v13087_v54 }
0x138e   : > { %v4164_v63 = vmul.f32 1.442695, %v4133_v38 }
0x138f   : > { %v4113_v3 = vpop.xlane.xlu1 %4112 }
0x1390   : > { %9957 = vpow2.f32 %v4164_v63  ;;  %v4131_v59 = vsub.f32 %v13049_v13, %v4113_v3  ;;  %4180 = vadd.xlane.f32.xlu0 %v13092_v4 }
0x1391   : > { %4186 = vadd.xlane.f32.xlu1 %v13094_v40  ;;  %9959 = vpow2.f32 %v4152_v41 }
0x1392   : > { %v4160_v35 = vmul.f32 1.442695, %v4131_v59 }
0x1394   : > { %4194 = vadd.xlane.f32.xlu0 %v13099_v10  ;;  %9961 = vpow2.f32 %v4160_v35 }
0x1395   : > { %4182 = vadd.xlane.f32.xlu1 %v13101_v6 }
0x1398   : > { %4190 = vadd.xlane.f32.xlu0 %v13105_v17 }
0x1399   : > { %4188 = vadd.xlane.f32.xlu1 %v13107_v29 }
0x139a   : > { %v13111_v13 = vpop.eup %9957 }
0x139b   : > { %v13113_v45 = vpop.eup %9959 }
0x139c   : > { %4196 = vadd.xlane.f32.xlu0 %v13111_v13 }
0x139d   : > { %4184 = vadd.xlane.f32.xlu1 %v13113_v45 }
0x139e   : > { %v13117_v43 = vpop.eup %9961 }
0x13a1   : > { %4192 = vadd.xlane.f32.xlu1 %v13117_v43 }
0x13b2   : > { %4389 = vrot.lane.b32.xlu1 %v11326_v2, %s10570_s8  ;;  %4387 = vrot.lane.b32.xlu0 %v11318_v23, %s10570_s8 }
0x13b6   : > { %4361 = vrot.lane.b32.xlu1 %v11253_v16, %s10570_s8  ;;  %4359 = vrot.lane.b32.xlu0 %v11234_v0, %s10570_s8  ;;  %v4380_v0 = vpop.permute.xlu0 %4379 }
0x13ba   : > { %4365 = vrot.lane.b32.xlu1 %v11287_v20, %s10570_s8  ;;  %4363 = vrot.lane.b32.xlu0 %v11271_v37, %s10570_s8 }
0x13be   : > { %4369 = vrot.lane.b32.xlu1 %v11312_v11, %s10570_s8  ;;  %4367 = vrot.lane.b32.xlu0 %v11303_v61, %s10570_s8 }
0x13c2   : > { %4373 = vrot.lane.b32.xlu1 %v11328_v39, %s10570_s8  ;;  %4371 = vrot.lane.b32.xlu0 %v11320_v25, %s10570_s8 }
0x13c6   : > { %4690 = vrot.lane.b32.xlu1 %v11242_v5, %s10570_s8  ;;  %4688 = vrot.lane.b32.xlu0 %v11246_v7, %s10570_s8 }
0x13ca   : > { %4692 = vrot.lane.b32.xlu0 %v11264_v24, %s10570_s8 }
0x13ce   : > { %4694 = vrot.lane.b32.xlu0 %v11261_v22, %s10570_s8 }
0x13dd   : > { %v4171_v16 = vpop.xlane.xlu1 %4170 }
0x13e0   : > { %v4169_v37 = vpop.xlane.xlu0 %4168 }
0x13e1   : > { %9963 = vrcp.f32 %v4169_v37  ;;  %v4167_v20 = vpop.xlane.xlu1 %4166 }
0x13e2   : > { %9965 = vrcp.f32 %v4167_v20 }
0x13e3   : > { %9967 = vrcp.f32 %v4171_v16 }
0x13e4   : > { %v4384_v52 = vpop.permute.xlu0 %4383 }
0x13e5   : > { %v4173_v61 = vpop.xlane.xlu1 %4172 }
0x13e6   : > { %9969 = vrcp.f32 %v4173_v61 }
0x13eb   : > { %v9964_v11 = vpop.eup %9963 }
0x13ec   : > { %v9966_v5 = vpop.eup %9965  ;;  %v4215_v23 = vmul.f32 %v9964_v11, %v13057_v31  ;;  %v4419_v31 = vsel %vm1240_vm0, %v13052_v9, 0 }
0x13ed   : > { %v4214_v7 = vmul.f32 %v9966_v5, %v13059_v14  ;;  %v9968_v25 = vpop.eup %9967  ;;  %v4425_v14 = vsel %vm1240_vm0, %v13081_v18, 0 }
0x13ee   : > { %v4216_v22 = vmul.f32 %v9968_v25, %v13054_v55  ;;  %v4422_v55 = vsel %vm1240_vm0, %v4380_v0, 0 }
0x13ef   : > { %v4230_v24 = vpack.c.bf16 %v4215_v23, %v4214_v7 }
0x13f0   : > { %v9970_v2 = vpop.eup %9969 }
0x13f1   : > { %v4217_v39 = vmul.f32 %v9970_v2, %v13063_v46  ;;  %8779 = vmatprep.mubr.bf16.mxu1 %v4230_v24  ;;  %v4428_v46 = vsel %vm1240_vm0, %v4384_v52, 0 }
0x13f3   : > { %v4231_v58 = vpack.c.bf16 %v4217_v39, %v4216_v22 }
0x13f5   : > { %8780 = vmatmul.mubr.bf16.vlgmr.msra.gmra.mrb[112].mxu1 %v4231_v58 }
0x13f6   : > { %8796 = vmatpush3.bf16.xpose.msra.mxu1 %v4416_v32 }
0x13f7   : > { %8964 = vmatprep.subr.msk.bf16.mxu1 %vm1240_vm0, %v13052_v9  ;;  %v4386_v9 = vpop.permute.xlu1 %4385 }
0x13f8   : > { %v4431_v62 = vsel %vm1240_vm0, %v4386_v9, 0 }
0x13fe   : > { %8798 = vmatpush3.bf16.xpose.msra.mxu1 %v4419_v31 }
0x13ff   : > { %8965 = vmatprep.subr.msk.bf16.mxu1 %vm1240_vm0, %v4380_v0 }
0x1406   : > { %8800 = vmatpush3.bf16.xpose.msra.mxu1 %v4422_v55 }
0x1407   : > { %8966 = vmatprep.subr.msk.bf16.mxu1 %vm1240_vm0, %v13081_v18 }
0x140e   : > { %8802 = vmatpush3.bf16.xpose.msra.mxu1 %v4425_v14 }
0x140f   : > { %8967 = vmatprep.subr.msk.bf16.mxu1 %vm1240_vm0, %v4384_v52 }
0x1415   : > { %v4179_v48 = vpop.xlane.xlu0 %4178 }
0x1416   : > { %8804 = vmatpush3.bf16.xpose.msra.mxu1 %v4428_v46 }
0x1417   : > { %8968 = vmatprep.subr.msk.bf16.mxu1 %vm1240_vm0, %v4386_v9 }
0x1419   : > { %v4175_v36 = vpop.xlane.xlu0 %4174 }
0x141a   : > { %9971 = vrcp.f32 %v4175_v36  ;;  %v4177_v56 = vpop.xlane.xlu1 %4176 }
0x141b   : > { %9973 = vrcp.f32 %v4177_v56 }
0x141c   : > { %9975 = vrcp.f32 %v4179_v48 }
0x141d   : > { %v4181_v53 = vpop.xlane.xlu0 %4180 }
0x141e   : > { %8806 = vmatpush3.bf16.xpose.msra.mxu1 %v4431_v62  ;;  %9977 = vrcp.f32 %v4181_v53  ;;  %v4187_v18 = vpop.xlane.xlu1 %4186 }
0x1421   : > { %v4195_v60 = vpop.xlane.xlu0 %4194 }
0x1422   : > { %v4183_v15 = vpop.xlane.xlu1 %4182 }
0x1424   : > { %v9972_v44 = vpop.eup %9971 }
0x1425   : > { %v9974_v12 = vpop.eup %9973  ;;  %v4191_v38 = vpop.xlane.xlu0 %4190  ;;  %v4218_v41 = vmul.f32 %v9972_v44, %v13085_v28 }
0x1426   : > { %v9976_v63 = vpop.eup %9975  ;;  %v4189_v3 = vpop.xlane.xlu1 %4188  ;;  %v4219_v59 = vmul.f32 %v9974_v12, %v13087_v54 }
0x1427   : > { %9979 = vrcp.f32 %v4189_v3  ;;  %v4220_v37 = vmul.f32 %v9976_v63, %v13079_v33 }
0x1428   : > { %v9978_v35 = vpop.eup %9977  ;;  %v4232_v0 = vpack.c.bf16 %v4219_v59, %v4218_v41  ;;  %9981 = vrcp.f32 %v4183_v15 }
0x1429   : > { %v4197_v16 = vpop.xlane.xlu0 %4196  ;;  %v4221_v20 = vmul.f32 %v9978_v35, %v13092_v4  ;;  %9983 = vrcp.f32 %v4187_v18 }
0x142a   : > { %v4185_v61 = vpop.xlane.xlu1 %4184  ;;  %8783 = vmatprep.mubr.bf16.mxu1 %v4232_v0 }
0x142b   : > { %9985 = vrcp.f32 %v4185_v61  ;;  %v4233_v11 = vpack.c.bf16 %v4221_v20, %v4220_v37 }
0x142c   : > { %9987 = vrcp.f32 %v4191_v38 }
0x142d   : > { %8784 = vmatmul.mubr.bf16.gmra.mrb[116].mxu1 %v4233_v11  ;;  %v4388_v28 = vpop.permute.xlu0 %4387 }
0x142e   : > { %v4193_v5 = vpop.xlane.xlu1 %4192  ;;  %8969 = vmatprep.subr.msk.bf16.mxu1 %vm1240_vm0, %v4388_v28  ;;  %v4434_v54 = vsel %vm1240_vm0, %v4388_v28, 0 }
0x142f   : > { %9989 = vrcp.f32 %v4193_v5  ;;  %8808 = vmatpush3.bf16.xpose.msra.mxu1 %v4434_v54 }
0x1430   : > { %9991 = vrcp.f32 %v4197_v16 }
0x1431   : > { %v4360_v23 = vpop.permute.xlu0 %4359  ;;  %v9980_v33 = vpop.eup %9979  ;;  %9993 = vrcp.f32 %v4195_v60 }
0x1432   : > { %v4390_v4 = vpop.permute.xlu1 %4389  ;;  %v9982_v7 = vpop.eup %9981  ;;  %v4225_v22 = vmul.f32 %v9980_v33, %v13107_v29 }
0x1433   : > { %8970 = vmatprep.subr.msk.bf16.mxu1 %vm1240_vm0, %v4390_v4  ;;  %v9984_v25 = vpop.eup %9983  ;;  %v4437_v58 = vsel %vm1240_vm0, %v4390_v4, 0  ;;  %v4222_v32 = vmul.f32 %v9982_v7, %v13101_v6 }
0x1434   : > { %v4224_v14 = vmul.f32 %v9984_v25, %v13094_v40 }
0x1435   : > { %v9986_v24 = vpop.eup %9985  ;;  %v4364_v2 = vpop.permute.xlu0 %4363 }
0x1436   : > { %v4362_v39 = vpop.permute.xlu1 %4361  ;;  %v4223_v31 = vmul.f32 %v9986_v24, %v13113_v45  ;;  %v9988_v55 = vpop.eup %9987  ;;  %v4235_v9 = vpack.c.bf16 %v4225_v22, %v4224_v14 }
0x1437   : > { %8810 = vmatpush3.bf16.xpose.msra.mxu1 %v4437_v58  ;;  %v4226_v29 = vmul.f32 %v9988_v55, %v13105_v17 }
0x1438   : > { %v4234_v52 = vpack.c.bf16 %v4223_v31, %v4222_v32 }
0x1439   : > { %v9990_v46 = vpop.eup %9989  ;;  %v4368_v48 = vpop.permute.xlu0 %4367 }
0x143a   : > { %v9992_v36 = vpop.eup %9991  ;;  %v4366_v56 = vpop.permute.xlu1 %4365  ;;  %8787 = vmatprep.mubr.bf16.mxu1 %v4234_v52  ;;  %v4227_v62 = vmul.f32 %v9990_v46, %v13117_v43 }
0x143b   : > { %8788 = vmatmul.mubr.bf16.gmra.mrb[120].mxu1 %v4235_v9  ;;  %v9994_v53 = vpop.eup %9993  ;;  %v4229_v45 = vmul.f32 %v9992_v36, %v13111_v13 }
0x143c   : > { %v4236_v6 = vpack.c.bf16 %v4227_v62, %v4226_v29  ;;  %v4228_v40 = vmul.f32 %v9994_v53, %v13099_v10  ;;  %v15521_v10 = vmov 0  }
0x143d   : > { %v4372_v18 = vpop.permute.xlu0 %4371 }
0x143e   : > { %v4370_v60 = vpop.permute.xlu1 %4369  ;;  %8791 = vmatprep.mubr.bf16.mxu1 %v4236_v6  ;;  %v4237_v44 = vpack.c.bf16 %v4229_v45, %v4228_v40 }
0x1441   : > { %v4689_v15 = vpop.permute.xlu0 %4688 }
0x1442   : > { %v4374_v12 = vpop.permute.xlu1 %4373  ;;  %8827 = vmatprep.subr.bf16.mxu0 %v4689_v15 }
0x1443   : > { %8792 = vmatmul.mubr.bf16.gmra.mrb[124].mxu1 %v4237_v44  ;;  %8828 = vmatpush3.bf16.msra.mxu0 %v4689_v15  ;;  %v15523_v15 = vld [vmem:[#allocation30_spill] sm:$0xff]  ;;  %v15524_v44 = vld [vmem:[#allocation43_spill] sm:$0xff] }
0x1444   : > { %8811 = vmatprep.mubr.msk.bf16.mxu1 %vm1240_vm0, %v4360_v23 }
0x1445   : > { %v4693_v17 = vpop.permute.xlu0 %4692 }
0x1446   : > { %v4691_v43 = vpop.permute.xlu1 %4690 }
0x1447   : > { %8829 = vmatprep.subr.bf16.mxu0 %v4691_v43 }
0x1448   : > { %8830 = vmatpush3.bf16.msra.mxu0 %v4691_v43 }
0x1449   : > { %8831 = vmatprep.subr.bf16.mxu0 %v4693_v17  ;;  %v4695_v13 = vpop.permute.xlu0 %4694 }
0x144b   : > { %8812 = vmatmul.mubr.msk.bf16.vlgmr.msra.gmra.mrb[128].mxu1 %vm1240_vm0, %v4362_v39 }
0x144c   : > { %8815 = vmatprep.mubr.msk.bf16.mxu1 %vm1240_vm0, %v4364_v2  ;;  %8832 = vmatpush3.bf16.msra.mxu0 %v4693_v17 }
0x144d   : > { %8833 = vmatprep.subr.bf16.mxu0 %v4695_v13 }
0x1450   : > { %8834 = vmatpush3.bf16.msra.mxu0 %v4695_v13 }
0x1453   : > { %8816 = vmatmul.mubr.msk.bf16.gmra.mrb[132].mxu1 %vm1240_vm0, %v4366_v56 }
0x1454   : > { %8819 = vmatprep.mubr.msk.bf16.mxu1 %vm1240_vm0, %v4368_v48 }
0x145b   : > { %8820 = vmatmul.mubr.msk.bf16.gmra.mrb[136].mxu1 %vm1240_vm0, %v4370_v60 }
0x145c   : > { %8823 = vmatprep.mubr.msk.bf16.mxu1 %vm1240_vm0, %v4372_v18 }
0x1463   : > { %8824 = vmatmul.mubr.msk.bf16.gmra.mrb[140].mxu1 %vm1240_vm0, %v4374_v12 }
0x1464   : > { %5991 = vmatprep.mubr.bf16.mxu1 %v15521_v10 }
0x14c8   : > { %v13193_v38 = vpop.f32.mrb[112].mxu1 }
0x14c9   : > { %v13195_v41 = vpop.f32.mrb[113].mxu1 }
0x14ca   : > { %v13197_v63 = vpop.f32.mrb[114].mxu1 }
0x14cb   : > { %v9170_v3 = vpack.i.bf16 %v13197_v63, %v13193_v38  ;;  %v13201_v59 = vpop.f32.mrb[115].mxu1  ;;  %v15570_v63 = vld [vmem:[#allocation99_spill] sm:$0xff] }
0x14cc   : > { %v9165_v35 = vpack.i.bf16 %v13201_v59, %v13195_v41  ;;  %v15567_v59 = vld [vmem:[#allocation82_spill] sm:$0xff] }
0x1500   : > { %v13205_v0 = vpop.f32.mrb[116].mxu1 }
0x1501   : > { %v13207_v16 = vpop.f32.mrb[117].mxu1 }
0x1502   : > { %v13209_v37 = vpop.f32.mrb[118].mxu1 }
0x1503   : > { %v9230_v20 = vpack.i.bf16 %v13209_v37, %v13205_v0  ;;  %v13213_v61 = vpop.f32.mrb[119].mxu1  ;;  %v15595_v0 = vld [vmem:[#allocation85_spill] sm:$0xff] }
0x1504   : > { %v9225_v11 = vpack.i.bf16 %v13213_v61, %v13207_v16  ;;  %v15594_v61 = vld [vmem:[#allocation87_spill] sm:$0xff] }
0x1505   : > { %v15596_v37 = vpack.i.bf16 %v15594_v61, %v15595_v0 }
0x150e   : > { %v13217_v28 = vpop.f32.mrb[120].mxu1 }
0x150f   : > { %v13219_v5 = vpop.f32.mrb[121].mxu1 }
0x1510   : > { %v13221_v54 = vpop.f32.mrb[122].mxu1 }
0x1511   : > { %v9300_v23 = vpack.i.bf16 %v13221_v54, %v13217_v28  ;;  %v13225_v33 = vpop.f32.mrb[123].mxu1  ;;  %v15628_v28 = vld [vmem:[#allocation90_spill] sm:$0xff]  ;;  %v15629_v54 = vld [vmem:[#allocation88_spill] sm:$0xff] }
0x1512   : > { %v9295_v4 = vpack.i.bf16 %v13225_v33, %v13219_v5  ;;  %v15631_v5 = vld [vmem:[#allocation91_spill] sm:$0xff]  ;;  %v15632_v33 = vld [vmem:[#allocation89_spill] sm:$0xff] }
0x1516   : > { %v13229_v7 = vpop.f32.mrb[124].mxu1 }
0x1517   : > { %v13231_v25 = vpop.f32.mrb[125].mxu1 }
0x1518   : > { %v13233_v24 = vpop.f32.mrb[126].mxu1 }
0x1519   : > { %v9380_v2 = vpack.i.bf16 %v13233_v24, %v13229_v7  ;;  %v13237_v22 = vpop.f32.mrb[127].mxu1 }
0x151a   : > { %v9375_v39 = vpack.i.bf16 %v13237_v22, %v13231_v25  ;;  %v15653_v25 = vld [vmem:[#allocation48_spill] sm:$0xff] }
0x151e   : > { %v8813_v58 = vpop.f32.mrb[128].mxu1 }
0x151f   : > { %v4482_v32 = vadd.f32 %v8813_v58, %v11362_v21  ;;  %v4473_v31 = vpop.f32.mrb[129].mxu1 }
0x1520   : > { %v8814_v55 = vpop.f32.mrb[130].mxu1  ;;  %v4474_v46 = vadd.f32 %v4473_v31, %v11376_v47 }
0x1521   : > { %4540 = vmax.xlane.f32.xlu0 %v4482_v32  ;;  %v4476_v14 = vpop.f32.mrb[131].mxu1  ;;  %v4485_v9 = vadd.f32 %v8814_v55, %v11368_v27 }
0x1522   : > { %v4477_v52 = vadd.f32 %v4476_v14, %v11385_v42 }
0x1524   : > { %4538 = vmax.xlane.f32.xlu1 %v4477_v52 }
0x1525   : > { %4536 = vmax.xlane.f32.xlu0 %v4474_v46 }
0x1526   : > { %v8817_v48 = vpop.f32.mrb[132].mxu1 }
0x1527   : > { %v4489_v36 = vpop.f32.mrb[133].mxu1  ;;  %v4498_v21 = vadd.f32 %v8817_v48, %v11394_v8 }
0x1528   : > { %v8818_v56 = vpop.f32.mrb[134].mxu1  ;;  %v4490_v47 = vadd.f32 %v4489_v36, %v15368_v50 }
0x1529   : > { %v4501_v29 = vadd.f32 %v8818_v56, %v11403_v57  ;;  %4542 = vmax.xlane.f32.xlu0 %v4485_v9  ;;  %v4492_v62 = vpop.f32.mrb[135].mxu1 }
0x152a   : > { %v13248_v53 = vadd.f32 %v4492_v62, %v11421_v26 }
0x152b   : > { %4550 = vmax.xlane.f32.xlu1 %v4501_v29 }
0x152d   : > { %4548 = vmax.xlane.f32.xlu0 %v4498_v21 }
0x152e   : > { %v8821_v42 = vpop.f32.mrb[136].mxu1 }
0x152f   : > { %4546 = vmax.xlane.f32.xlu1 %v13248_v53  ;;  %v4505_v6 = vpop.f32.mrb[137].mxu1  ;;  %v13256_v45 = vadd.f32 %v8821_v42, %v15510_v51 }
0x1530   : > { %v8822_v27 = vpop.f32.mrb[138].mxu1  ;;  %v13264_v50 = vadd.f32 %v4505_v6, %v15512_v30  ;;  %v15522_v30 = vld [vmem:[#allocation29_spill] sm:$0xff] }
0x1531   : > { %v13253_v18 = vadd.f32 %v8822_v27, %v15509_v49  ;;  %4544 = vmax.xlane.f32.xlu0 %v4490_v47  ;;  %v4508_v57 = vpop.f32.mrb[139].mxu1 }
0x1532   : > { %v13260_v8 = vadd.f32 %v4508_v57, %v15511_v19 }
0x1533   : > { %4558 = vmax.xlane.f32.xlu1 %v13253_v18 }
0x1535   : > { %4556 = vmax.xlane.f32.xlu0 %v13256_v45 }
0x1536   : > { %v8825_v26 = vpop.f32.mrb[140].mxu1 }
0x1537   : > { %4554 = vmax.xlane.f32.xlu1 %v13260_v8  ;;  %v4521_v49 = vpop.f32.mrb[141].mxu1  ;;  %v13269_v51 = vadd.f32 %v8825_v26, %v15513_v34  ;;  %v15525_v34 = vld [vmem:[#allocation44_spill] sm:$0xff] }
0x1538   : > { %v8826_v60 = vpop.f32.mrb[142].mxu1  ;;  %v13273_v19 = vadd.f32 %v4521_v49, %v15514_v1 }
0x1539   : > { %4552 = vmax.xlane.f32.xlu0 %v13264_v50  ;;  %v4524_v40 = vpop.f32.mrb[143].mxu1  ;;  %v13281_v12 = vadd.f32 %v8826_v60, %v15524_v44 }
0x153a   : > { %v13285_v17 = vadd.f32 %v4524_v40, %v15525_v34 }
0x153d   : > { %4564 = vmax.xlane.f32.xlu0 %v13269_v51 }
0x1541   : > { %4560 = vmax.xlane.f32.xlu0 %v13273_v19 }
0x1548   : > { %4698 = vrot.lane.b32.xlu1 %v15522_v30, %s10570_s8 }
0x1557   : > { %4696 = vrot.lane.b32.xlu0 %v15523_v15, %s10570_s8 }
0x156c   : > { %4566 = vmax.xlane.f32.xlu1 %v13281_v12 }
0x1570   : > { %4562 = vmax.xlane.f32.xlu1 %v13285_v17 }
0x15ae   : > { %v4541_v1 = vpop.xlane.xlu0 %4540 }
0x15af   : > { %v4570_v43 = vsub.f32 %v4482_v32, %v4541_v1 }
0x15b1   : > { %v4588_v13 = vmul.f32 1.442695, %v4570_v43  ;;  %v4539_v31 = vpop.xlane.xlu1 %4538 }
0x15b2   : > { %v4537_v58 = vpop.xlane.xlu0 %4536  ;;  %v4569_v48 = vsub.f32 %v4477_v52, %v4539_v31 }
0x15b3   : > { %9995 = vpow2.f32 %v4588_v13  ;;  %v4568_v55 = vsub.f32 %v4474_v46, %v4537_v58 }
0x15b4   : > { %v4586_v6 = vmul.f32 1.442695, %v4569_v48 }
0x15b5   : > { %v4584_v14 = vmul.f32 1.442695, %v4568_v55 }
0x15b6   : > { %v4543_v36 = vpop.xlane.xlu0 %4542 }
0x15b7   : > { %9997 = vpow2.f32 %v4584_v14  ;;  %v4571_v56 = vsub.f32 %v4485_v9, %v4543_v36 }
0x15b8   : > { %v4551_v62 = vpop.xlane.xlu1 %4550 }
0x15b9   : > { %v4590_v42 = vmul.f32 1.442695, %v4571_v56  ;;  %v4575_v27 = vsub.f32 %v4501_v29, %v4551_v62  ;;  %v15526_v56 = vld [vmem:[#allocation32_spill] sm:$0xff]  ;;  %v15527_v62 = vld [vmem:[#allocation33_spill] sm:$0xff] }
0x15ba   : > { %v4549_v57 = vpop.xlane.xlu0 %4548 }
0x15bb   : > { %9999 = vpow2.f32 %v4590_v42  ;;  %v4574_v26 = vsub.f32 %v4498_v21, %v4549_v57  ;;  %v4598_v40 = vmul.f32 1.442695, %v4575_v27 }
0x15bc   : > { %v4547_v49 = vpop.xlane.xlu1 %4546  ;;  %10001 = vpow2.f32 %v4586_v6 }
0x15bd   : > { %v13288_v60 = vpop.eup %9995  ;;  %v4596_v32 = vmul.f32 1.442695, %v4574_v26  ;;  %v4573_v52 = vsub.f32 %v13248_v53, %v4547_v49 }
0x15be   : > { %4620 = vadd.xlane.f32.xlu1 %v13288_v60  ;;  %v4545_v46 = vpop.xlane.xlu0 %4544 }
0x15bf   : > { %10003 = vpow2.f32 %v4596_v32  ;;  %v4572_v9 = vsub.f32 %v4490_v47, %v4545_v46  ;;  %v4594_v21 = vmul.f32 1.442695, %v4573_v52 }
0x15c0   : > { %10005 = vpow2.f32 %v4598_v40  ;;  %v4559_v43 = vpop.xlane.xlu1 %4558 }
0x15c1   : > { %v13292_v30 = vpop.eup %9997  ;;  %v4592_v15 = vmul.f32 1.442695, %v4572_v9  ;;  %v4579_v6 = vsub.f32 %v13253_v18, %v4559_v43 }
0x15c2   : > { %4616 = vadd.xlane.f32.xlu1 %v13292_v30  ;;  %v4557_v29 = vpop.xlane.xlu0 %4556 }
0x15c3   : > { %10007 = vpow2.f32 %v4592_v15  ;;  %v4606_v26 = vmul.f32 1.442695, %v4579_v6  ;;  %v4578_v49 = vsub.f32 %v13256_v45, %v4557_v29  ;;  %v15534_v6 = vld [vmem:[#allocation63_spill] sm:$0xff] }
0x15c4   : > { %10009 = vpow2.f32 %v4594_v21  ;;  %v4555_v31 = vpop.xlane.xlu1 %4554 }
0x15c5   : > { %v13295_v44 = vpop.eup %9999  ;;  %v4577_v27 = vsub.f32 %v13260_v8, %v4555_v31  ;;  %v4604_v46 = vmul.f32 1.442695, %v4578_v49  ;;  %v15538_v49 = vld [vmem:[#allocation76_spill] sm:$0xff] }
0x15c6   : > { %4622 = vadd.xlane.f32.xlu1 %v13295_v44  ;;  %v4553_v34 = vpop.xlane.xlu0 %4552  ;;  %v13298_v1 = vpop.eup %10001 }
0x15c7   : > { %v4576_v42 = vsub.f32 %v13264_v50, %v4553_v34  ;;  %v4602_v32 = vmul.f32 1.442695, %v4577_v27  ;;  %v15535_v27 = vld [vmem:[#allocation61_spill] sm:$0xff] }
0x15c8   : > { %v4699_v36 = vpop.permute.xlu1 %4698 }
0x15c9   : > { %v13300_v53 = vpop.eup %10003  ;;  %v4600_v57 = vmul.f32 1.442695, %v4576_v42 }
0x15ca   : > { %4618 = vadd.xlane.f32.xlu1 %v13298_v1  ;;  %4628 = vadd.xlane.f32.xlu0 %v13300_v53  ;;  %v4565_v47 = vpop.xlane.xlu0 %4564  ;;  %v13304_v13 = vpop.eup %10005 }
0x15cb   : > { %10011 = vpow2.f32 %v4600_v57  ;;  %v4582_v18 = vsub.f32 %v13269_v51, %v4565_v47  ;;  %v15536_v57 = vpack.i.bf16 %v15534_v6, %v15535_v27  ;;  %v15558_v27 = vld [vmem:[#allocation67_spill] sm:$0xff] }
0x15cc   : > { %10013 = vpow2.f32 %v4606_v26  ;;  %v15537_v26 = vld [vmem:[#allocation78_spill] sm:$0xff] }
0x15cd   : > { %v13306_v58 = vpop.eup %10007  ;;  %10015 = vpow2.f32 %v4602_v32  ;;  %v4612_v29 = vmul.f32 1.442695, %v4582_v18  ;;  %v15539_v32 = vpack.i.bf16 %v15537_v26, %v15538_v49  ;;  %v15546_v18 = vld [vmem:[#allocation111_spill] sm:$0xff]  ;;  %v15561_v49 = vld [vmem:[#allocation66_spill] sm:$0xff] }
0x15ce   : > { %4630 = vadd.xlane.f32.xlu0 %v13304_v13  ;;  %4624 = vadd.xlane.f32.xlu1 %v13306_v58  ;;  %v4561_v55 = vpop.xlane.xlu0 %4560  ;;  %v13310_v14 = vpop.eup %10009  ;;  %10017 = vpow2.f32 %v4604_v46  ;;  %v15541_v46 = vld [vmem:[#allocation93_spill] sm:$0xff] }
0x15cf   : > { %v4580_v52 = vsub.f32 %v13273_v19, %v4561_v55  ;;  %v15528_v55 = vld [vmem:[#allocation62_spill] sm:$0xff] }
0x15d1   : > { %v4608_v8 = vmul.f32 1.442695, %v4580_v52 }
0x15d2   : > { %4626 = vadd.xlane.f32.xlu0 %v13310_v14  ;;  %v4697_v48 = vpop.permute.xlu0 %4696 }
0x15d3   : > { %8835 = vmatprep.subr.bf16.mxu0 %v4697_v48 }
0x15d4   : > { %8836 = vmatpush3.bf16.msra.mxu0 %v4697_v48  ;;  %v15529_v48 = vld [vmem:[#allocation36_spill] sm:$0xff] }
0x15d5   : > { %8837 = vmatprep.subr.bf16.mxu0 %v4699_v36  ;;  %v13325_v34 = vpop.eup %10011 }
0x15d6   : > { %v13328_v43 = vpop.eup %10013 }
0x15d7   : > { %v13330_v19 = vpop.eup %10015 }
0x15d8   : > { %8838 = vmatpush3.bf16.msra.mxu0 %v4699_v36  ;;  %v13334_v51 = vpop.eup %10017  ;;  %v15530_v36 = vpack.i.bf16 %v15528_v55, %v15529_v48  ;;  %v15552_v48 = vld [vmem:[#allocation127_spill] sm:$0xff] }
0x15df   : > { %4702 = vrot.lane.b32.xlu1 %v15526_v56, %s10570_s8  ;;  %v15531_v56 = vld [vmem:[#allocation79_spill] sm:$0xff] }
0x15e8   : > { %4700 = vrot.lane.b32.xlu0 %v15527_v62, %s10570_s8  ;;  %v15532_v62 = vld [vmem:[#allocation77_spill] sm:$0xff] }
0x15e9   : > { %v15533_v42 = vpack.i.bf16 %v15531_v56, %v15532_v62  ;;  %v15555_v62 = vld [vmem:[#allocation126_spill] sm:$0xff] }
0x15f9   : > { %v4567_v40 = vpop.xlane.xlu1 %4566 }
0x15fa   : > { %v4583_v15 = vsub.f32 %v13281_v12, %v4567_v40  ;;  %v15540_v40 = vld [vmem:[#allocation95_spill] sm:$0xff] }
0x15fb   : > { %v15542_v52 = vpack.i.bf16 %v15540_v40, %v15541_v46  ;;  %v15564_v46 = vld [vmem:[#allocation83_spill] sm:$0xff] }
0x15fc   : > { %v4614_v45 = vmul.f32 1.442695, %v4583_v15  ;;  %v15544_v15 = vld [vmem:[#allocation92_spill] sm:$0xff] }
0x15fd   : > { %v4563_v9 = vpop.xlane.xlu1 %4562 }
0x15fe   : > { %v4581_v50 = vsub.f32 %v13285_v17, %v4563_v9  ;;  %v15543_v9 = vld [vmem:[#allocation94_spill] sm:$0xff] }
0x1600   : > { %v4610_v21 = vmul.f32 1.442695, %v4581_v50  ;;  %v15545_v50 = vpack.i.bf16 %v15543_v9, %v15544_v15  ;;  %v15573_v15 = vld [vmem:[#allocation98_spill] sm:$0xff] }
0x1602   : > { %10019 = vpow2.f32 %v4610_v21 }
0x1603   : > { %4632 = vadd.xlane.f32.xlu1 %v13325_v34  ;;  %10021 = vpow2.f32 %v4608_v8  ;;  %v15547_v8 = vld [vmem:[#allocation109_spill] sm:$0xff] }
0x1604   : > { %10023 = vpow2.f32 %v4614_v45  ;;  %v15548_v21 = vpack.i.bf16 %v15546_v18, %v15547_v8  ;;  %v15549_v45 = vld [vmem:[#allocation110_spill] sm:$0xff]  ;;  %v15576_v8 = vld [vmem:[#allocation115_spill] sm:$0xff] }
0x1605   : > { %10025 = vpow2.f32 %v4612_v29  ;;  %v15550_v29 = vld [vmem:[#allocation108_spill] sm:$0xff] }
0x1606   : > { %v15551_v55 = vpack.i.bf16 %v15549_v45, %v15550_v29  ;;  %v15579_v29 = vld [vmem:[#allocation114_spill] sm:$0xff] }
0x1607   : > { %4634 = vadd.xlane.f32.xlu0 %v13330_v19  ;;  %4638 = vadd.xlane.f32.xlu1 %v13328_v43 }
0x160b   : > { %4636 = vadd.xlane.f32.xlu0 %v13334_v51 }
0x160c   : > { %v13337_v12 = vpop.eup %10019 }
0x160d   : > { %4642 = vadd.xlane.f32.xlu1 %v13337_v12  ;;  %v13340_v17 = vpop.eup %10021 }
0x160e   : > { %v13343_v47 = vpop.eup %10023 }
0x160f   : > { %4640 = vadd.xlane.f32.xlu0 %v13340_v17  ;;  %v13346_v31 = vpop.eup %10025 }
0x1611   : > { %4646 = vadd.xlane.f32.xlu1 %v13343_v47 }
0x1613   : > { %4644 = vadd.xlane.f32.xlu0 %v13346_v31 }
0x1622   : > { %9121 = vrot.lane.b32.xlu1 %v15530_v36, %s10570_s8  ;;  %v15553_v36 = vld [vmem:[#allocation125_spill] sm:$0xff] }
0x1623   : > { %v15554_v56 = vpack.i.bf16 %v15552_v48, %v15553_v36 }
0x1626   : > { %9126 = vrot.lane.b32.xlu1 %v15533_v42, %s10569_s28  ;;  %v15556_v42 = vld [vmem:[#allocation124_spill] sm:$0xff] }
0x1627   : > { %v15557_v6 = vpack.i.bf16 %v15555_v62, %v15556_v42  ;;  %v15583_v62 = vld [vmem:[#allocation129_spill] sm:$0xff] }
0x1629   : > { %9116 = vrot.lane.b32.xlu0 %v15536_v57, %s10570_s8  ;;  %v15559_v57 = vld [vmem:[#allocation65_spill] sm:$0xff] }
0x162a   : > { %9131 = vrot.lane.b32.xlu1 %v15539_v32, %s10569_s28  ;;  %v15560_v26 = vpack.i.bf16 %v15558_v27, %v15559_v57  ;;  %v15562_v32 = vld [vmem:[#allocation64_spill] sm:$0xff] }
0x162b   : > { %v15563_v40 = vpack.i.bf16 %v15561_v49, %v15562_v32  ;;  %v15586_v27 = vld [vmem:[#allocation128_spill] sm:$0xff]  ;;  %v15588_v32 = vld [vmem:[#allocation71_spill] sm:$0xff] }
0x162d   : > { %9136 = vrot.lane.b32.xlu0 %v15542_v52, %s10568_s4  ;;  %v15565_v52 = vld [vmem:[#allocation81_spill] sm:$0xff] }
0x162e   : > { %9141 = vrot.lane.b32.xlu1 %v15545_v50, %s10568_s4  ;;  %v15566_v41 = vpack.i.bf16 %v15564_v46, %v15565_v52  ;;  %v15574_v50 = vld [vmem:[#allocation96_spill] sm:$0xff]  ;;  %v15591_v52 = vld [vmem:[#allocation70_spill] sm:$0xff] }
0x162f   : > { %v15575_v18 = vpack.i.bf16 %v15573_v15, %v15574_v50  ;;  %v15601_v15 = vld [vmem:[#allocation101_spill] sm:$0xff] }
0x1631   : > { %9146 = vrot.lane.b32.xlu0 %v15548_v21, %s10567_s25  ;;  %v15577_v21 = vld [vmem:[#allocation113_spill] sm:$0xff] }
0x1632   : > { %9151 = vrot.lane.b32.xlu1 %v15551_v55, %s10567_s25  ;;  %v15578_v45 = vpack.i.bf16 %v15576_v8, %v15577_v21  ;;  %v15580_v55 = vld [vmem:[#allocation112_spill] sm:$0xff] }
0x1633   : > { %v15581_v48 = vpack.i.bf16 %v15579_v29, %v15580_v55  ;;  %v15604_v8 = vld [vmem:[#allocation100_spill] sm:$0xff] }
0x1635   : > { %9156 = vrot.lane.b32.xlu0 %v15554_v56, %s10566_s29  ;;  %v15582_v56 = vld [vmem:[#allocation131_spill] sm:$0xff] }
0x1636   : > { %9161 = vrot.lane.b32.xlu1 %v15557_v6, %s10566_s29  ;;  %v15584_v42 = vpack.i.bf16 %v15582_v56, %v15583_v62  ;;  %v15585_v6 = vld [vmem:[#allocation130_spill] sm:$0xff] }
0x1637   : > { %v15587_v57 = vpack.i.bf16 %v15585_v6, %v15586_v27 }
0x1639   : > { %9166 = vrot.lane.b32.xlu0 %v9165_v35, %s10565_s27  ;;  %v15568_v35 = vld [vmem:[#allocation80_spill] sm:$0xff] }
0x163a   : > { %9171 = vrot.lane.b32.xlu1 %v9170_v3, %s10565_s27  ;;  %v15569_v38 = vpack.i.bf16 %v15567_v59, %v15568_v35  ;;  %v15571_v3 = vld [vmem:[#allocation97_spill] sm:$0xff] }
0x163b   : > { %v15572_v9 = vpack.i.bf16 %v15570_v63, %v15571_v3 }
0x163d   : > { %9176 = vrot.lane.b32.xlu0 %v15560_v26, %s10570_s8 }
0x163e   : > { %9181 = vrot.lane.b32.xlu1 %v15563_v40, %s10570_s8  ;;  %v15589_v40 = vld [vmem:[#allocation69_spill] sm:$0xff] }
0x163f   : > { %v15590_v46 = vpack.i.bf16 %v15588_v32, %v15589_v40 }
0x1641   : > { %9186 = vrot.lane.b32.xlu0 %v15566_v41, %s10569_s28  ;;  %v15592_v41 = vld [vmem:[#allocation68_spill] sm:$0xff] }
0x1642   : > { %9191 = vrot.lane.b32.xlu1 %v15569_v38, %s10569_s28  ;;  %v15593_v59 = vpack.i.bf16 %v15591_v52, %v15592_v41 }
0x1645   : > { %9196 = vrot.lane.b32.xlu0 %v15572_v9, %s10568_s4  ;;  %v15600_v9 = vld [vmem:[#allocation103_spill] sm:$0xff] }
0x1646   : > { %9201 = vrot.lane.b32.xlu1 %v15575_v18, %s10568_s4  ;;  %v15602_v50 = vpack.i.bf16 %v15600_v9, %v15601_v15  ;;  %v15603_v18 = vld [vmem:[#allocation102_spill] sm:$0xff] }
0x1647   : > { %v15605_v21 = vpack.i.bf16 %v15603_v18, %v15604_v8 }
0x1649   : > { %9206 = vrot.lane.b32.xlu0 %v15578_v45, %s10567_s25 }
0x164a   : > { %9211 = vrot.lane.b32.xlu1 %v15581_v48, %s10567_s25 }
0x164b   : > { %v4621_v36 = vpop.xlane.xlu1 %4620 }
0x164d   : > { %9216 = vrot.lane.b32.xlu0 %v15584_v42, %s10566_s29 }
0x164e   : > { %9221 = vrot.lane.b32.xlu1 %v15587_v57, %s10566_s29 }
0x164f   : > { %v4617_v26 = vpop.xlane.xlu1 %4616 }
0x1650   : > { %10027 = vrcp.f32 %v4617_v26 }
0x1651   : > { %9226 = vrot.lane.b32.xlu0 %v9225_v11, %s10565_s27  ;;  %v15598_v11 = vld [vmem:[#allocation84_spill] sm:$0xff] }
0x1652   : > { %9231 = vrot.lane.b32.xlu1 %v9230_v20, %s10565_s27  ;;  %v15597_v20 = vld [vmem:[#allocation86_spill] sm:$0xff] }
0x1653   : > { %v4623_v49 = vpop.xlane.xlu1 %4622  ;;  %v15599_v38 = vpack.i.bf16 %v15597_v20, %v15598_v11 }
0x1655   : > { %9236 = vrot.lane.b32.xlu0 %v15590_v46, %s10570_s8 }
0x1656   : > { %9241 = vrot.lane.b32.xlu1 %v15593_v59, %s10570_s8 }
0x1657   : > { %v4619_v35 = vpop.xlane.xlu1 %4618  ;;  %v4629_v16 = vpop.xlane.xlu0 %4628 }
0x1658   : > { %10029 = vrcp.f32 %v4619_v35 }
0x1659   : > { %10031 = vrcp.f32 %v4623_v49  ;;  %9246 = vrot.lane.b32.xlu0 %v15596_v37, %s10569_s28 }
0x165a   : > { %9251 = vrot.lane.b32.xlu1 %v15599_v38, %s10569_s28  ;;  %10033 = vrcp.f32 %v4621_v36  ;;  %v10028_v29 = vpop.eup %10027 }
0x165b   : > { %v4625_v63 = vpop.xlane.xlu1 %4624  ;;  %v4631_v3 = vpop.xlane.xlu0 %4630  ;;  %v4664_v56 = vmul.f32 %v10028_v29, %v13292_v30 }
0x165c   : > { %10035 = vrcp.f32 %v4625_v63 }
0x165d   : > { %9256 = vrot.lane.b32.xlu0 %v15602_v50, %s10568_s4 }
0x165e   : > { %9261 = vrot.lane.b32.xlu1 %v15605_v21, %s10568_s4 }
0x165f   : > { %v4627_v45 = vpop.xlane.xlu0 %4626  ;;  %v4703_v6 = vpop.permute.xlu1 %4702 }
0x1660   : > { %10037 = vrcp.f32 %v4627_v45 }
0x1661   : > { %10039 = vrcp.f32 %v4631_v3 }
0x1662   : > { %v10030_v55 = vpop.eup %10029  ;;  %10041 = vrcp.f32 %v4629_v16 }
0x1663   : > { %v10032_v48 = vpop.eup %10031  ;;  %v4701_v36 = vpop.permute.xlu0 %4700  ;;  %v4665_v62 = vmul.f32 %v10030_v55, %v13298_v1 }
0x1664   : > { %8839 = vmatprep.subr.bf16.mxu0 %v4701_v36  ;;  %v10034_v42 = vpop.eup %10033  ;;  %v4667_v57 = vmul.f32 %v10032_v48, %v13295_v44 }
0x1665   : > { %8840 = vmatpush3.bf16.msra.mxu0 %v4701_v36  ;;  %v4680_v27 = vpack.c.bf16 %v4665_v62, %v4664_v56  ;;  %v4666_v49 = vmul.f32 %v10034_v42, %v13288_v60 }
0x1666   : > { %8841 = vmatprep.subr.bf16.mxu0 %v4703_v6  ;;  %v10036_v26 = vpop.eup %10035 }
0x1667   : > { %8843 = vmatprep.mubr.bf16.mxu0 %v4680_v27  ;;  %v4681_v40 = vpack.c.bf16 %v4667_v57, %v4666_v49  ;;  %v4668_v30 = vmul.f32 %v10036_v26, %v13306_v58 }
0x1669   : > { %8842 = vmatpush3.bf16.msra.mxu0 %v4703_v6 }
0x166a   : > { %v10038_v32 = vpop.eup %10037 }
0x166b   : > { %v10040_v46 = vpop.eup %10039  ;;  %v4669_v1 = vmul.f32 %v10038_v32, %v13310_v14 }
0x166c   : > { %8844 = vmatmul.mubr.bf16.vlgmr.msra.gmra.mrb[144].mxu0 %v4681_v40  ;;  %v10042_v52 = vpop.eup %10041  ;;  %v4671_v59 = vmul.f32 %v10040_v46, %v13304_v13 }
0x166d   : > { %v4682_v41 = vpack.c.bf16 %v4669_v1, %v4668_v30  ;;  %v4670_v44 = vmul.f32 %v10042_v52, %v13300_v53 }
0x166f   : > { %8847 = vmatprep.mubr.bf16.mxu0 %v4682_v41  ;;  %v4683_v35 = vpack.c.bf16 %v4671_v59, %v4670_v44 }
0x1674   : > { %8848 = vmatmul.mubr.bf16.gmra.mrb[148].mxu0 %v4683_v35 }
0x1690   : > { %v4633_v16 = vpop.xlane.xlu1 %4632 }
0x1691   : > { %10043 = vrcp.f32 %v4633_v16 }
0x1694   : > { %v4639_v60 = vpop.xlane.xlu1 %4638  ;;  %v4635_v61 = vpop.xlane.xlu0 %4634 }
0x1695   : > { %10045 = vrcp.f32 %v4635_v61 }
0x1696   : > { %10047 = vrcp.f32 %v4639_v60 }
0x1698   : > { %v4637_v0 = vpop.xlane.xlu0 %4636 }
0x1699   : > { %10049 = vrcp.f32 %v4637_v0 }
0x169a   : > { %v4643_v58 = vpop.xlane.xlu1 %4642 }
0x169b   : > { %10051 = vrcp.f32 %v4643_v58  ;;  %v10044_v37 = vpop.eup %10043  ;;  %v15606_v58 = vld [vmem:[#allocation56_spill] sm:$0xff] }
0x169c   : > { %v4641_v14 = vpop.xlane.xlu0 %4640  ;;  %v4672_v38 = vmul.f32 %v10044_v37, %v13325_v34  ;;  %v15607_v37 = vld [vmem:[#allocation54_spill] sm:$0xff] }
0x169d   : > { %10053 = vrcp.f32 %v4641_v14 }
0x169e   : > { %v4647_v20 = vpop.xlane.xlu1 %4646 }
0x169f   : > { %10055 = vrcp.f32 %v4647_v20  ;;  %v10046_v13 = vpop.eup %10045 }
0x16a0   : > { %v4645_v11 = vpop.xlane.xlu0 %4644  ;;  %v10048_v53 = vpop.eup %10047  ;;  %v4673_v63 = vmul.f32 %v10046_v13, %v13330_v19 }
0x16a1   : > { %10057 = vrcp.f32 %v4645_v11  ;;  %v4675_v8 = vmul.f32 %v10048_v53, %v13328_v43 }
0x16a2   : > { %v13479_v3 = vpop.permute.xlu1 %9121  ;;  %v4684_v15 = vpack.c.bf16 %v4673_v63, %v4672_v38  ;;  %v15608_v38 = vld [vmem:[#allocation55_spill] sm:$0xff] }
0x16a3   : > { %v10050_v9 = vpop.eup %10049  ;;  %v9124_v24 = vunpack.i.h.bf16 %v13479_v3  ;;  %v9123_v22 = vunpack.i.l.bf16 %v13479_v3 }
0x16a4   : > { %v13481_v50 = vpop.permute.xlu0 %9116  ;;  %v4674_v18 = vmul.f32 %v10050_v9, %v13334_v51  ;;  %8851 = vmatprep.mubr.bf16.mxu0 %v4684_v15  ;;  %v15609_v9 = vld [vmem:[#allocation53_spill] sm:$0xff] }
0x16a5   : > { %v10052_v21 = vpop.eup %10051 }
0x16a6   : > { %v13485_v45 = vpop.permute.xlu1 %9126  ;;  %v4685_v29 = vpack.c.bf16 %v4675_v8, %v4674_v18  ;;  %v4677_v48 = vmul.f32 %v10052_v21, %v13337_v12  ;;  %v9427_v18 = vld [vmem:[%s10984_s26] sm:$0xff]   ;;  %v9428_v8 = vld [vmem:[%s10984_s26 + $0x8] sm:$0xff]   ;;  %v9429_v21 = vld [vmem:[%s10984_s26 + $0x10] sm:$0xff]  }
0x16a7   : > { %v10054_v55 = vpop.eup %10053  ;;  %8859 = vmatprep.subr.bf16.mxu0 %v9427_v18  ;;  %v9129_v7 = vunpack.i.h.bf16 %v13485_v45 }
0x16a8   : > { %8852 = vmatmul.mubr.bf16.gmra.mrb[152].mxu0 %v4685_v29  ;;  %v13487_v34 = vpop.permute.xlu0 %9136  ;;  %v4676_v19 = vmul.f32 %v10054_v55, %v13340_v17  ;;  %v9430_v29 = vld [vmem:[%s10984_s26 + $0x18] sm:$0xff]   ;;  %v9431_v55 = vld [vmem:[%s10984_s26 + $0x20] sm:$0xff]  }
0x16a9   : > { %v10056_v36 = vpop.eup %10055  ;;  %8860 = vmatpush3.bf16.msra.mxu0 %v9427_v18 }
0x16aa   : > { %v13491_v56 = vpop.permute.xlu1 %9131  ;;  %v4686_v62 = vpack.c.bf16 %v4677_v48, %v4676_v19  ;;  %v4679_v6 = vmul.f32 %v10056_v36, %v13343_v47  ;;  %8861 = vmatprep.subr.bf16.mxu0 %v9428_v8  ;;  %v9432_v19 = vld [vmem:[%s10984_s26 + $0x28] sm:$0xff]   ;;  %v9433_v48 = vld [vmem:[%s10984_s26 + $0x30] sm:$0xff]   ;;  %v9434_v36 = vld [vmem:[%s10984_s26 + $0x38] sm:$0xff]  }
0x16ab   : > { %v10058_v51 = vpop.eup %10057 }
0x16ac   : > { %8855 = vmatprep.mubr.bf16.mxu0 %v4686_v62  ;;  %v13493_v43 = vpop.permute.xlu0 %9146  ;;  %v4678_v42 = vmul.f32 %v10058_v51, %v13346_v31 }
0x16ad   : > { %8862 = vmatpush3.bf16.msra.mxu0 %v9428_v8 }
0x16ae   : > { %v13497_v27 = vpop.permute.xlu1 %9141  ;;  %v4687_v57 = vpack.c.bf16 %v4679_v6, %v4678_v42  ;;  %8863 = vmatprep.subr.bf16.mxu0 %v9429_v21 }
0x16b0   : > { %8856 = vmatmul.mubr.bf16.gmra.mrb[156].mxu0 %v4687_v57  ;;  %v13499_v26 = vpop.permute.xlu0 %9156 }
0x16b1   : > { %8864 = vmatpush3.bf16.msra.mxu0 %v9429_v21 }
0x16b2   : > { %v13501_v17 = vpop.permute.xlu1 %9151  ;;  %8865 = vmatprep.subr.bf16.mxu0 %v9430_v29 }
0x16b4   : > { %v13503_v12 = vpop.permute.xlu0 %9166 }
0x16b5   : > { %8866 = vmatpush3.bf16.msra.mxu0 %v9430_v29  ;;  %v15616_v29 = vld [vmem:[#allocation134_spill] sm:$0xff] }
0x16b6   : > { %v13505_v49 = vpop.permute.xlu1 %9161  ;;  %8867 = vmatprep.subr.bf16.mxu0 %v9431_v55 }
0x16b8   : > { %v13507_v32 = vpop.permute.xlu0 %9176 }
0x16b9   : > { %8868 = vmatpush3.bf16.msra.mxu0 %v9431_v55  ;;  %v15617_v55 = vld [vmem:[#allocation132_spill] sm:$0xff] }
0x16ba   : > { %v13509_v40 = vpop.permute.xlu1 %9171  ;;  %8869 = vmatprep.subr.bf16.mxu0 %v9432_v19 }
0x16bc   : > { %v13511_v46 = vpop.permute.xlu0 %9186 }
0x16bd   : > { %8870 = vmatpush3.bf16.msra.mxu0 %v9432_v19  ;;  %v15618_v19 = vpack.i.bf16 %v15616_v29, %v15617_v55 }
0x16be   : > { %v13513_v31 = vpop.permute.xlu1 %9181  ;;  %8871 = vmatprep.subr.bf16.mxu0 %v9433_v48 }
0x16c0   : > { %v13515_v47 = vpop.permute.xlu0 %9196 }
0x16c1   : > { %8872 = vmatpush3.bf16.msra.mxu0 %v9433_v48  ;;  %v15619_v48 = vld [vmem:[#allocation135_spill] sm:$0xff] }
0x16c2   : > { %v13517_v30 = vpop.permute.xlu1 %9191  ;;  %8873 = vmatprep.subr.bf16.mxu0 %v9434_v36 }
0x16c4   : > { %v13519_v1 = vpop.permute.xlu0 %9206 }
0x16c5   : > { %8874 = vmatpush3.bf16.msra.mxu0 %v9434_v36  ;;  %v15620_v36 = vld [vmem:[#allocation133_spill] sm:$0xff] }
0x16c6   : > { %v13521_v52 = vpop.permute.xlu1 %9201 }
0x16c8   : > { %v13523_v41 = vpop.permute.xlu0 %9216 }
0x16ca   : > { %v13525_v59 = vpop.permute.xlu1 %9211 }
0x16cc   : > { %v13527_v44 = vpop.permute.xlu0 %9226 }
0x16ce   : > { %v13529_v35 = vpop.permute.xlu1 %9221 }
0x16d0   : > { %v9237_v16 = vpop.permute.xlu0 %9236 }
0x16d1   : > { %v9239_v60 = vunpack.i.h.bf16 %v9237_v16  ;;  %v9238_v61 = vunpack.i.l.bf16 %v9237_v16 }
0x16d2   : > { %v13531_v0 = vpop.permute.xlu1 %9231 }
0x16d3   : > { %v13535_v14 = vsel %vm1240_vm0, %v15606_v58, %v9239_v60  ;;  %v13539_v20 = vsel %vm1240_vm0, %v15607_v37, %v9238_v61  ;;  %v15610_v61 = vld [vmem:[#allocation118_spill] sm:$0xff]  ;;  %v15611_v58 = vld [vmem:[#allocation116_spill] sm:$0xff] }
0x16d4   : > { %v15612_v37 = vpack.i.bf16 %v15610_v61, %v15611_v58  ;;  %v15634_v61 = vld [vmem:[#allocation106_spill] sm:$0xff]  ;;  %v15635_v58 = vld [vmem:[#allocation104_spill] sm:$0xff] }
0x16d6   : > { %v9242_v13 = vpop.permute.xlu1 %9241 }
0x16d7   : > { %v9244_v11 = vunpack.i.h.bf16 %v9242_v13  ;;  %v9243_v53 = vunpack.i.l.bf16 %v9242_v13 }
0x16d9   : > { %v13543_v63 = vsel %vm1240_vm0, %v15608_v38, %v9244_v11  ;;  %v13547_v15 = vsel %vm1240_vm0, %v15609_v9, %v9243_v53  ;;  %v15613_v11 = vld [vmem:[#allocation119_spill] sm:$0xff]  ;;  %v15614_v53 = vld [vmem:[#allocation117_spill] sm:$0xff] }
0x16da   : > { %v15615_v38 = vpack.i.bf16 %v15613_v11, %v15614_v53  ;;  %v15638_v11 = vld [vmem:[#allocation105_spill] sm:$0xff] }
0x173f   : > { %v8845_v62 = vpop.f32.mrb[144].mxu0 }
0x1740   : > { %v4746_v51 = vpop.f32.mrb[145].mxu0 }
0x1741   : > { %v8846_v42 = vpop.f32.mrb[146].mxu0 }
0x1742   : > { %v9265_v6 = vpack.i.bf16 %v8846_v42, %v8845_v62  ;;  %v4749_v57 = vpop.f32.mrb[147].mxu0  ;;  %v15621_v62 = vpack.i.bf16 %v15619_v48, %v15620_v36  ;;  %v15623_v42 = vld [vmem:[#allocation72_spill] sm:$0xff] }
0x1743   : > { %v9270_v16 = vpack.i.bf16 %v4749_v57, %v4746_v51  ;;  %v15622_v51 = vld [vmem:[#allocation74_spill] sm:$0xff]  ;;  %v15625_v57 = vld [vmem:[#allocation75_spill] sm:$0xff]  ;;  %v15641_v48 = vld [vmem:[#allocation120_spill] sm:$0xff] }
0x1744   : > { %9266 = vrot.lane.b32.xlu1 %v9265_v6, %s10563_s0  ;;  %v15624_v6 = vpack.i.bf16 %v15622_v51, %v15623_v42  ;;  %v15643_v51 = vld [vmem:[#allocation123_spill] sm:$0xff]  ;;  %v15644_v42 = vld [vmem:[#allocation121_spill] sm:$0xff] }
0x1745   : > { %9271 = vrot.lane.b32.xlu0 %v9270_v16, %s10563_s0  ;;  %v15626_v16 = vld [vmem:[#allocation73_spill] sm:$0xff] }
0x1747   : > { %v8849_v60 = vpop.f32.mrb[148].mxu0 }
0x1748   : > { %9281 = vrot.lane.b32.xlu1 %v15612_v37, %s10567_s25  ;;  %v4762_v13 = vpop.f32.mrb[149].mxu0  ;;  %v15636_v37 = vpack.i.bf16 %v15634_v61, %v15635_v58  ;;  %v9118_v58 = vunpack.i.l.bf16 %v13481_v50 }
0x1749   : > { %9276 = vrot.lane.b32.xlu0 %v15615_v38, %s10567_s25  ;;  %v8850_v9 = vpop.f32.mrb[150].mxu0 }
0x174a   : > { %v9305_v18 = vpack.i.bf16 %v8850_v9, %v8849_v60  ;;  %v4765_v8 = vpop.f32.mrb[151].mxu0  ;;  %v15627_v60 = vpack.i.bf16 %v15625_v57, %v15626_v16 }
0x174b   : > { %v9310_v21 = vpack.i.bf16 %v4765_v8, %v4762_v13  ;;  %v15637_v13 = vld [vmem:[#allocation107_spill] sm:$0xff] }
0x174c   : > { %9291 = vrot.lane.b32.xlu1 %v15618_v19, %s10566_s29  ;;  %v15639_v53 = vpack.i.bf16 %v15637_v13, %v15638_v11  ;;  %v15640_v19 = vld [vmem:[#allocation122_spill] sm:$0xff]  ;;  %v9128_v13 = vunpack.i.l.bf16 %v13485_v45 }
0x174d   : > { %9286 = vrot.lane.b32.xlu0 %v15621_v62, %s10566_s29  ;;  %v15642_v36 = vpack.i.bf16 %v15640_v19, %v15641_v48  ;;  %v15652_v11 = vld [vmem:[#allocation46_spill] sm:$0xff]  ;;  %v15655_v19 = vld [vmem:[#allocation45_spill] sm:$0xff] }
0x174e   : > { %v5259_v48 = vsel %vm1240_vm0, %v15655_v19, %v9123_v22 }
0x1750   : > { %9301 = vrot.lane.b32.xlu1 %v9300_v23, %s10565_s27  ;;  %v15630_v23 = vpack.i.bf16 %v15628_v28, %v15629_v54  ;;  %v15646_v54 = vld [vmem:[#allocation138_spill] sm:$0xff] }
0x1751   : > { %9296 = vrot.lane.b32.xlu0 %v9295_v4, %s10565_s27  ;;  %v15633_v4 = vpack.i.bf16 %v15631_v5, %v15632_v33  ;;  %v15649_v33 = vld [vmem:[#allocation139_spill] sm:$0xff] }
0x1754   : > { %9306 = vrot.lane.b32.xlu1 %v9305_v18, %s10563_s0 }
0x1755   : > { %9311 = vrot.lane.b32.xlu0 %v9310_v21, %s10563_s0 }
0x1758   : > { %9321 = vrot.lane.b32.xlu1 %v15624_v6, %s10570_s8  ;;  %v15645_v6 = vpack.i.bf16 %v15643_v51, %v15644_v42  ;;  %v9144_v42 = vunpack.i.h.bf16 %v13497_v27 }
0x1759   : > { %9316 = vrot.lane.b32.xlu0 %v15627_v60, %s10570_s8 }
0x175c   : > { %9331 = vrot.lane.b32.xlu1 %v15630_v23, %s10569_s28  ;;  %v15647_v23 = vld [vmem:[#allocation136_spill] sm:$0xff] }
0x175d   : > { %9326 = vrot.lane.b32.xlu0 %v15633_v4, %s10569_s28  ;;  %v15648_v5 = vpack.i.bf16 %v15646_v54, %v15647_v23  ;;  %v15650_v4 = vld [vmem:[#allocation137_spill] sm:$0xff] }
0x175e   : > { %v15651_v61 = vpack.i.bf16 %v15649_v33, %v15650_v4 }
0x1760   : > { %9341 = vrot.lane.b32.xlu1 %v15636_v37, %s10568_s4  ;;  %v9119_v37 = vunpack.i.h.bf16 %v13481_v50 }
0x1761   : > { %9336 = vrot.lane.b32.xlu0 %v15639_v53, %s10568_s4  ;;  %v5257_v53 = vsel %vm1240_vm0, %v15652_v11, %v9118_v58  ;;  %v9169_v11 = vunpack.i.h.bf16 %v13503_v12 }
0x1762   : > { %v5274_v50 = vsel %vm5273_vm2, %v5257_v53, %v9128_v13 }
0x177b   : > { %v8853_v38 = vpop.f32.mrb[152].mxu0 }
0x177c   : > { %v4778_v9 = vpop.f32.mrb[153].mxu0 }
0x177d   : > { %v8854_v18 = vpop.f32.mrb[154].mxu0 }
0x177e   : > { %v9345_v8 = vpack.i.bf16 %v8854_v18, %v8853_v38  ;;  %v4781_v21 = vpop.f32.mrb[155].mxu0  ;;  %v13648_v38 = vpop.permute.xlu1 %9251 }
0x177f   : > { %v9350_v29 = vpack.i.bf16 %v4781_v21, %v4778_v9  ;;  %v9139_v9 = vunpack.i.h.bf16 %v13487_v34  ;;  %v13652_v18 = vpop.permute.xlu0 %9246  ;;  %v15654_v21 = vld [vmem:[#allocation47_spill] sm:$0xff] }
0x1780   : > { %9346 = vrot.lane.b32.xlu1 %v9345_v8, %s10563_s0  ;;  %v9133_v8 = vunpack.i.l.bf16 %v13491_v56  ;;  %v5260_v3 = vsel %vm1240_vm0, %v15654_v21, %v9124_v24  ;;  %v9179_v21 = vunpack.i.h.bf16 %v13507_v32 }
0x1781   : > { %9351 = vrot.lane.b32.xlu0 %v9350_v29, %s10563_s0  ;;  %v9134_v29 = vunpack.i.h.bf16 %v13491_v56  ;;  %v9158_v56 = vunpack.i.l.bf16 %v13499_v26 }
0x1782   : > { %v13673_v54 = vpop.permute.xlu1 %9261 }
0x1783   : > { %v8857_v55 = vpop.f32.mrb[156].mxu0  ;;  %v13679_v33 = vpop.permute.xlu0 %9256 }
0x1784   : > { %9361 = vrot.lane.b32.xlu1 %v15642_v36, %s10567_s25  ;;  %v4794_v62 = vpop.f32.mrb[157].mxu0  ;;  %v9149_v36 = vunpack.i.h.bf16 %v13493_v43 }
0x1785   : > { %9356 = vrot.lane.b32.xlu0 %v15645_v6, %s10567_s25  ;;  %v8858_v57 = vpop.f32.mrb[158].mxu0  ;;  %v9159_v6 = vunpack.i.h.bf16 %v13499_v26 }
0x1786   : > { %v9390_v16 = vpack.i.bf16 %v8858_v57, %v8857_v55  ;;  %v4797_v60 = vpop.f32.mrb[159].mxu0  ;;  %v9148_v55 = vunpack.i.l.bf16 %v13493_v43  ;;  %v5276_v57 = vsel %vm5273_vm2, %v5259_v48, %v9133_v8  ;;  %v5277_v43 = vsel %vm5273_vm2, %v5260_v3, %v9134_v29 }
0x1787   : > { %v9385_v28 = vpack.i.bf16 %v4797_v60, %v4794_v62  ;;  %v9143_v62 = vunpack.i.l.bf16 %v13497_v27  ;;  %v9153_v60 = vunpack.i.l.bf16 %v13501_v17  ;;  %v9164_v27 = vunpack.i.h.bf16 %v13505_v49 }
0x1788   : > { %9371 = vrot.lane.b32.xlu1 %v15648_v5, %s10566_s29  ;;  %v9163_v5 = vunpack.i.l.bf16 %v13505_v49  ;;  %v5294_v58 = vsel %vm5290_vm3, %v5277_v43, %v9144_v42  ;;  %v15657_v43 = vld [vmem:[#allocation50_spill] sm:$0xff] }
0x1789   : > { %9366 = vrot.lane.b32.xlu0 %v15651_v61, %s10566_s29  ;;  %v5293_v4 = vsel %vm5290_vm3, %v5276_v57, %v9143_v62  ;;  %v9173_v61 = vunpack.i.l.bf16 %v13509_v40  ;;  %v9189_v62 = vunpack.i.h.bf16 %v13511_v46  ;;  %v9183_v57 = vunpack.i.l.bf16 %v13513_v31 }
0x178a   : > { %v5310_v49 = vsel %vm5307_vm4, %v5293_v4, %v9153_v60  ;;  %v15656_v60 = vld [vmem:[#allocation52_spill] sm:$0xff] }
0x178c   : > { %9381 = vrot.lane.b32.xlu1 %v9380_v2, %s10565_s27  ;;  %v5258_v2 = vsel %vm1240_vm0, %v15653_v25, %v9119_v37  ;;  %v5327_v25 = vsel %vm5324_vm5, %v5310_v49, %v9163_v5 }
0x178d   : > { %9376 = vrot.lane.b32.xlu0 %v9375_v39, %s10565_s27  ;;  %v9138_v39 = vunpack.i.l.bf16 %v13487_v34  ;;  %v5275_v45 = vsel %vm5273_vm2, %v5258_v2, %v9129_v7 }
0x178e   : > { %v5292_v51 = vsel %vm5290_vm3, %v5275_v45, %v9139_v9 }
0x178f   : > { %v5291_v34 = vsel %vm5290_vm3, %v5274_v50, %v9138_v39  ;;  %v5309_v26 = vsel %vm5307_vm4, %v5292_v51, %v9149_v36  ;;  %v5344_v50 = vsel %vm5341_vm6, %v5327_v25, %v9173_v61  ;;  %v9188_v51 = vunpack.i.l.bf16 %v13511_v46  ;;  %v15659_v61 = vld [vmem:[#allocation49_spill] sm:$0xff] }
0x1790   : > { %9391 = vrot.lane.b32.xlu1 %v9390_v16, %s10563_s0  ;;  %v9154_v16 = vunpack.i.h.bf16 %v13501_v17  ;;  %v5308_v23 = vsel %vm5307_vm4, %v5291_v34, %v9148_v55  ;;  %v9174_v17 = vunpack.i.h.bf16 %v13509_v40  ;;  %v5326_v13 = vsel %vm5324_vm5, %v5309_v26, %v9159_v6 }
0x1791   : > { %9386 = vrot.lane.b32.xlu0 %v9385_v28, %s10563_s0  ;;  %v9168_v28 = vunpack.i.l.bf16 %v13503_v12  ;;  %v5325_v37 = vsel %vm5324_vm5, %v5308_v23, %v9158_v56  ;;  %v5343_v8 = vsel %vm5341_vm6, %v5326_v13, %v9169_v11  ;;  %v9178_v55 = vunpack.i.l.bf16 %v13507_v32 }
0x1792   : > { %v5311_v53 = vsel %vm5307_vm4, %v5294_v58, %v9154_v16  ;;  %v9184_v56 = vunpack.i.h.bf16 %v13513_v31  ;;  %v9199_v32 = vunpack.i.h.bf16 %v13515_v47  ;;  %v9198_v16 = vunpack.i.l.bf16 %v13515_v47  ;;  %v15658_v47 = vld [vmem:[#allocation51_spill] sm:$0xff] }
0x1793   : > { %v5342_v7 = vsel %vm5341_vm6, %v5325_v37, %v9168_v28  ;;  %v5328_v40 = vsel %vm5324_vm5, %v5311_v53, %v9164_v27  ;;  %v5262_v28 = vsel %vm1240_vm0, %v15656_v60, %v9179_v21  ;;  %v5261_v23 = vsel %vm1240_vm0, %v15657_v43, %v9178_v55 }
0x1794   : > { %v5345_v9 = vsel %vm5341_vm6, %v5328_v40, %v9174_v17  ;;  %v5278_v46 = vsel %vm5273_vm2, %v5261_v23, %v9188_v51  ;;  %v5279_v5 = vsel %vm5273_vm2, %v5262_v28, %v9189_v62  ;;  %v9194_v31 = vunpack.i.h.bf16 %v13517_v30 }
0x1795   : > { %v9193_v26 = vunpack.i.l.bf16 %v13517_v30  ;;  %v5264_v17 = vsel %vm1240_vm0, %v15658_v47, %v9184_v56  ;;  %v5263_v58 = vsel %vm1240_vm0, %v15659_v61, %v9183_v57  ;;  %v9209_v37 = vunpack.i.h.bf16 %v13519_v1 }
0x1796   : > { %v9208_v13 = vunpack.i.l.bf16 %v13519_v1  ;;  %v5295_v11 = vsel %vm5290_vm3, %v5278_v46, %v9198_v16  ;;  %v5296_v49 = vsel %vm5290_vm3, %v5279_v5, %v9199_v32  ;;  %v9204_v53 = vunpack.i.h.bf16 %v13521_v52 }
0x1797   : > { %v9203_v30 = vunpack.i.l.bf16 %v13521_v52  ;;  %v9214_v25 = vunpack.i.h.bf16 %v13525_v59  ;;  %v9213_v40 = vunpack.i.l.bf16 %v13525_v59  ;;  %v5280_v1 = vsel %vm5273_vm2, %v5263_v58, %v9193_v26 }
0x1798   : > { %v5312_v52 = vsel %vm5307_vm4, %v5295_v11, %v9208_v13  ;;  %v9233_v59 = vunpack.i.l.bf16 %v13531_v0  ;;  %v9229_v21 = vunpack.i.h.bf16 %v13527_v44  ;;  %v9249_v61 = vunpack.i.h.bf16 %v13652_v18 }
0x1799   : > { %v9258_v58 = vunpack.i.l.bf16 %v13679_v33  ;;  %v9259_v13 = vunpack.i.h.bf16 %v13679_v33 }
0x17b6   : > { %v9267_v24 = vpop.permute.xlu1 %9266 }
0x17b7   : > { %v9269_v2 = vunpack.i.h.bf16 %v9267_v24  ;;  %v9268_v22 = vunpack.i.l.bf16 %v9267_v24  ;;  %v9272_v39 = vpop.permute.xlu0 %9271  ;;  %v9218_v24 = vunpack.i.l.bf16 %v13523_v41 }
0x17b8   : > { %v9274_v12 = vunpack.i.h.bf16 %v9272_v39  ;;  %v9273_v45 = vunpack.i.l.bf16 %v9272_v39  ;;  %v9224_v39 = vunpack.i.h.bf16 %v13529_v35 }
0x17b9   : > { %v5362_v3 = vsel %vm5358_vm7, %v5345_v9, %v9269_v2  ;;  %v5361_v29 = vsel %vm5358_vm7, %v5344_v50, %v9268_v22  ;;  %v5281_v22 = vsel %vm5273_vm2, %v5264_v17, %v9194_v31  ;;  %v9223_v50 = vunpack.i.l.bf16 %v13529_v35 }
0x17ba   : > { %v5376_v19 = vpack.c.bf16 %v5362_v3, %v5361_v29  ;;  %v13701_v48 = vpop.permute.xlu1 %9281  ;;  %v5359_v34 = vsel %vm5358_vm7, %v5342_v7, %v9273_v45  ;;  %v5360_v36 = vsel %vm5358_vm7, %v5343_v8, %v9274_v12  ;;  %v9219_v7 = vunpack.i.h.bf16 %v13523_v41 }
0x17bb   : > { %v13707_v42 = vpop.permute.xlu0 %9276  ;;  %v5375_v6 = vpack.c.bf16 %v5360_v36, %v5359_v34  ;;  %v5313_v41 = vsel %vm5307_vm4, %v5296_v49, %v9209_v37  ;;  %v9234_v12 = vunpack.i.h.bf16 %v13531_v0  ;;  %v5297_v45 = vsel %vm5290_vm3, %v5280_v1, %v9203_v30 }
0x17bc   : > { %v5298_v8 = vsel %vm5290_vm3, %v5281_v22, %v9204_v53  ;;  %v9228_v3 = vunpack.i.l.bf16 %v13527_v44  ;;  %v5329_v35 = vsel %vm5324_vm5, %v5312_v52, %v9218_v24  ;;  %v5330_v29 = vsel %vm5324_vm5, %v5313_v41, %v9219_v7 }
0x17bd   : > { %8875 = vmatprep.mubr.bf16.mxu0 %v5375_v6  ;;  %v5314_v55 = vsel %vm5307_vm4, %v5297_v45, %v9213_v40  ;;  %v5347_v60 = vsel %vm5341_vm6, %v5330_v29, %v9229_v21  ;;  %v9248_v17 = vunpack.i.l.bf16 %v13652_v18  ;;  %v9254_v53 = vunpack.i.h.bf16 %v13648_v38 }
0x17be   : > { %v13717_v27 = vpop.permute.xlu1 %9291  ;;  %8876 = vmatmul.mubr.bf16.vlgmr.msra.gmra.mrb[160].mxu0 %v5376_v19  ;;  %v5315_v19 = vsel %vm5307_vm4, %v5298_v8, %v9214_v25  ;;  %v5331_v36 = vsel %vm5324_vm5, %v5314_v55, %v9223_v50  ;;  %v5346_v16 = vsel %vm5341_vm6, %v5329_v35, %v9228_v3  ;;  %v9253_v30 = vunpack.i.l.bf16 %v13648_v38 }
0x17bf   : > { %v13723_v4 = vpop.permute.xlu0 %9286  ;;  %v5332_v0 = vsel %vm5324_vm5, %v5315_v19, %v9224_v39  ;;  %v5348_v56 = vsel %vm5341_vm6, %v5331_v36, %v9233_v59  ;;  %v5282_v49 = vsel %vm5273_vm2, %v13539_v20, %v9248_v17  ;;  %v5283_v7 = vsel %vm5273_vm2, %v13535_v14, %v9249_v61 }
0x17c0   : > { %v5349_v44 = vsel %vm5341_vm6, %v5332_v0, %v9234_v12  ;;  %v5299_v18 = vsel %vm5290_vm3, %v5282_v49, %v9258_v58  ;;  %v9264_v24 = vunpack.i.h.bf16 %v13673_v54  ;;  %v9263_v25 = vunpack.i.l.bf16 %v13673_v54  ;;  %v15660_v49 = vld [vmem:[#allocation59_spill] sm:$0xff] }
0x17c1   : > { %v5300_v33 = vsel %vm5290_vm3, %v5283_v7, %v9259_v13  ;;  %v9284_v40 = vunpack.i.h.bf16 %v13701_v48  ;;  %v9283_v1 = vunpack.i.l.bf16 %v13701_v48  ;;  %v9278_v20 = vunpack.i.l.bf16 %v13707_v42 }
0x17c2   : > { %v13739_v2 = vpop.permute.xlu1 %9301  ;;  %v9279_v22 = vunpack.i.h.bf16 %v13707_v42  ;;  %v9294_v38 = vunpack.i.h.bf16 %v13717_v27  ;;  %v9293_v14 = vunpack.i.l.bf16 %v13717_v27  ;;  %v9288_v39 = vunpack.i.l.bf16 %v13723_v4 }
0x17c3   : > { %v13745_v9 = vpop.permute.xlu0 %9296  ;;  %v5284_v54 = vsel %vm5273_vm2, %v13547_v15, %v9253_v30  ;;  %v5285_v52 = vsel %vm5273_vm2, %v13543_v63, %v9254_v53  ;;  %v9289_v48 = vunpack.i.h.bf16 %v13723_v4  ;;  %v9303_v41 = vunpack.i.l.bf16 %v13739_v2  ;;  %v15661_v30 = vld [vmem:[#allocation57_spill] sm:$0xff] }
0x17c4   : > { %v5301_v42 = vsel %vm5290_vm3, %v5284_v54, %v9263_v25  ;;  %v5302_v27 = vsel %vm5290_vm3, %v5285_v52, %v9264_v24  ;;  %v9304_v59 = vunpack.i.h.bf16 %v13739_v2  ;;  %v9298_v45 = vunpack.i.l.bf16 %v13745_v9  ;;  %v15663_v25 = vld [vmem:[#allocation58_spill] sm:$0xff] }
0x17c5   : > { %v5319_v8 = vsel %vm5307_vm4, %v5302_v27, %v9284_v40  ;;  %v5318_v15 = vsel %vm5307_vm4, %v5301_v42, %v9283_v1  ;;  %v5316_v63 = vsel %vm5307_vm4, %v5299_v18, %v9278_v20  ;;  %v9299_v4 = vunpack.i.h.bf16 %v13745_v9 }
0x17c6   : > { %v9307_v34 = vpop.permute.xlu1 %9306  ;;  %v5317_v21 = vsel %vm5307_vm4, %v5300_v33, %v9279_v22  ;;  %v5335_v3 = vsel %vm5324_vm5, %v5318_v15, %v9293_v14  ;;  %v5336_v35 = vsel %vm5324_vm5, %v5319_v8, %v9294_v38  ;;  %v5333_v29 = vsel %vm5324_vm5, %v5316_v63, %v9288_v39 }
0x17c7   : > { %v9309_v62 = vunpack.i.h.bf16 %v9307_v34  ;;  %v9308_v51 = vunpack.i.l.bf16 %v9307_v34  ;;  %v9312_v6 = vpop.permute.xlu0 %9311  ;;  %v5334_v2 = vsel %vm5324_vm5, %v5317_v21, %v9289_v48  ;;  %v5352_v19 = vsel %vm5341_vm6, %v5335_v3, %v9303_v41 }
0x17c8   : > { %v9314_v57 = vunpack.i.h.bf16 %v9312_v6  ;;  %v9313_v32 = vunpack.i.l.bf16 %v9312_v6  ;;  %v5350_v9 = vsel %vm5341_vm6, %v5333_v29, %v9298_v45 }
0x17c9   : > { %v5365_v28 = vsel %vm5358_vm7, %v5348_v56, %v9308_v51  ;;  %v5366_v43 = vsel %vm5358_vm7, %v5349_v44, %v9309_v62  ;;  %v5353_v62 = vsel %vm5341_vm6, %v5336_v35, %v9304_v59  ;;  %v5351_v56 = vsel %vm5341_vm6, %v5334_v2, %v9299_v4 }
0x17ca   : > { %v5363_v23 = vsel %vm5358_vm7, %v5346_v16, %v9313_v32  ;;  %v5364_v46 = vsel %vm5358_vm7, %v5347_v60, %v9314_v57  ;;  %v5378_v5 = vpack.c.bf16 %v5366_v43, %v5365_v28  ;;  %v13769_v26 = vpop.permute.xlu1 %9321 }
0x17cb   : > { %v5377_v31 = vpack.c.bf16 %v5364_v46, %v5363_v23  ;;  %v13771_v47 = vpop.permute.xlu0 %9316  ;;  %v9324_v44 = vunpack.i.h.bf16 %v13769_v26  ;;  %v9323_v16 = vunpack.i.l.bf16 %v13769_v26 }
0x17cc   : > { %v9319_v46 = vunpack.i.h.bf16 %v13771_v47 }
0x17cd   : > { %8879 = vmatprep.mubr.bf16.mxu0 %v5377_v31  ;;  %v5272_v53 = vsel %vm1240_vm0, %v15660_v49, %v9324_v44  ;;  %v5271_v7 = vsel %vm1240_vm0, %v15661_v30, %v9323_v16 }
0x17ce   : > { %8880 = vmatmul.mubr.bf16.gmra.mrb[164].mxu0 %v5378_v5  ;;  %v13776_v37 = vpop.permute.xlu1 %9331  ;;  %v9318_v5 = vunpack.i.l.bf16 %v13771_v47  ;;  %v15662_v47 = vld [vmem:[#allocation60_spill] sm:$0xff] }
0x17cf   : > { %v13779_v11 = vpop.permute.xlu0 %9326  ;;  %v9334_v61 = vunpack.i.h.bf16 %v13776_v37  ;;  %v9333_v58 = vunpack.i.l.bf16 %v13776_v37  ;;  %v5270_v24 = vsel %vm1240_vm0, %v15662_v47, %v9319_v46  ;;  %v10221_v47 = vld [vmem:[%s11006_s23 + $0x10] sm:$0xff] }
0x17d0   : > { %v9329_v13 = vunpack.i.h.bf16 %v13779_v11  ;;  %v9328_v26 = vunpack.i.l.bf16 %v13779_v11  ;;  %v5269_v33 = vsel %vm1240_vm0, %v15663_v25, %v9318_v5  ;;  %v10222_v25 = vld [vmem:[%s11006_s23 + $0x18] sm:$0xff] }
0x17d1   : > { %v5288_v1 = vsel %vm5273_vm2, %v5271_v7, %v9333_v58  ;;  %v5289_v20 = vsel %vm5273_vm2, %v5272_v53, %v9334_v61  ;;  %v10220_v7 = vld [vmem:[%s11006_s23 + $0x8] sm:$0xff] }
0x17d2   : > { %v13798_v50 = vpop.permute.xlu1 %9341  ;;  %v5286_v14 = vsel %vm5273_vm2, %v5269_v33, %v9328_v26  ;;  %v5287_v39 = vsel %vm5273_vm2, %v5270_v24, %v9329_v13  ;;  %v10219_v26 = vld [vmem:[%s11006_s23] sm:$0xff] }
0x17d3   : > { %v13806_v12 = vpop.permute.xlu0 %9336  ;;  %v9344_v37 = vunpack.i.h.bf16 %v13798_v50  ;;  %v9343_v40 = vunpack.i.l.bf16 %v13798_v50 }
0x17d4   : > { %v9339_v22 = vunpack.i.h.bf16 %v13806_v12  ;;  %v9338_v38 = vunpack.i.l.bf16 %v13806_v12 }
0x17d5   : > { %v5305_v59 = vsel %vm5290_vm3, %v5288_v1, %v9343_v40  ;;  %v5306_v45 = vsel %vm5290_vm3, %v5289_v20, %v9344_v37 }
0x17d6   : > { %v5303_v12 = vsel %vm5290_vm3, %v5286_v14, %v9338_v38  ;;  %v5304_v4 = vsel %vm5290_vm3, %v5287_v39, %v9339_v22  ;;  %v10224_v38 = vld [vmem:[%s11006_s23 + $0x28] sm:$0xff]  ;;  %v10225_v39 = vld [vmem:[%s11006_s23 + $0x30] sm:$0xff] }
0x17f2   : > { %v9347_v55 = vpop.permute.xlu1 %9346 }
0x17f3   : > { %v9349_v34 = vunpack.i.h.bf16 %v9347_v55  ;;  %v9348_v36 = vunpack.i.l.bf16 %v9347_v55  ;;  %v9352_v0 = vpop.permute.xlu0 %9351 }
0x17f4   : > { %v9354_v51 = vunpack.i.h.bf16 %v9352_v0  ;;  %v9353_v6 = vunpack.i.l.bf16 %v9352_v0 }
0x17f5   : > { %v5369_v57 = vsel %vm5358_vm7, %v5352_v19, %v9348_v36  ;;  %v5370_v32 = vsel %vm5358_vm7, %v5353_v62, %v9349_v34 }
0x17f6   : > { %v9362_v60 = vpop.permute.xlu1 %9361  ;;  %v5367_v28 = vsel %vm5358_vm7, %v5350_v9, %v9353_v6  ;;  %v5368_v43 = vsel %vm5358_vm7, %v5351_v56, %v9354_v51  ;;  %v5380_v23 = vpack.c.bf16 %v5370_v32, %v5369_v57 }
0x17f7   : > { %v9357_v31 = vpop.permute.xlu0 %9356  ;;  %v5379_v17 = vpack.c.bf16 %v5368_v43, %v5367_v28  ;;  %v9364_v54 = vunpack.i.h.bf16 %v9362_v60  ;;  %v9363_v52 = vunpack.i.l.bf16 %v9362_v60 }
0x17f8   : > { %v9359_v48 = vunpack.i.h.bf16 %v9357_v31  ;;  %v9358_v41 = vunpack.i.l.bf16 %v9357_v31 }
0x17f9   : > { %8883 = vmatprep.mubr.bf16.mxu0 %v5379_v17  ;;  %v5323_v35 = vsel %vm5307_vm4, %v5306_v45, %v9364_v54  ;;  %v5322_v29 = vsel %vm5307_vm4, %v5305_v59, %v9363_v52  ;;  %v10226_v52 = vld [vmem:[%s11006_s23 + $0x38] sm:$0xff] }
0x17fa   : > { %v9372_v18 = vpop.permute.xlu1 %9371  ;;  %8884 = vmatmul.mubr.bf16.gmra.mrb[168].mxu0 %v5380_v23  ;;  %v5320_v19 = vsel %vm5307_vm4, %v5303_v12, %v9358_v41  ;;  %v5321_v34 = vsel %vm5307_vm4, %v5304_v4, %v9359_v48  ;;  %v10230_v4 = vld [vmem:[%s11006_s23 + $0x58] sm:$0xff] }
0x17fb   : > { %v9367_v11 = vpop.permute.xlu0 %9366  ;;  %v9374_v42 = vunpack.i.h.bf16 %v9372_v18  ;;  %v9373_v27 = vunpack.i.l.bf16 %v9372_v18 }
0x17fc   : > { %v9369_v8 = vunpack.i.h.bf16 %v9367_v11  ;;  %v9368_v15 = vunpack.i.l.bf16 %v9367_v11  ;;  %v10223_v11 = vld [vmem:[%s11006_s23 + $0x20] sm:$0xff] }
0x17fd   : > { %v5339_v36 = vsel %vm5324_vm5, %v5322_v29, %v9373_v27  ;;  %v5340_v0 = vsel %vm5324_vm5, %v5323_v35, %v9374_v42  ;;  %v10227_v27 = vld [vmem:[%s11006_s23 + $0x40] sm:$0xff] }
0x17fe   : > { %v9382_v50 = vpop.permute.xlu1 %9381  ;;  %v5337_v9 = vsel %vm5324_vm5, %v5320_v19, %v9368_v15  ;;  %v5338_v51 = vsel %vm5324_vm5, %v5321_v34, %v9369_v8  ;;  %v10228_v8 = vld [vmem:[%s11006_s23 + $0x48] sm:$0xff]  ;;  %v10231_v29 = vld [vmem:[%s11006_s23 + $0x60] sm:$0xff] }
0x17ff   : > { %v9377_v63 = vpop.permute.xlu0 %9376  ;;  %v9384_v21 = vunpack.i.h.bf16 %v9382_v50  ;;  %v9383_v3 = vunpack.i.l.bf16 %v9382_v50  ;;  %v10232_v34 = vld [vmem:[%s11006_s23 + $0x68] sm:$0xff] }
0x1800   : > { %v9379_v55 = vunpack.i.h.bf16 %v9377_v63  ;;  %v9378_v2 = vunpack.i.l.bf16 %v9377_v63  ;;  %v10229_v63 = vld [vmem:[%s11006_s23 + $0x50] sm:$0xff] }
0x1801   : > { %v5356_v57 = vsel %vm5341_vm6, %v5339_v36, %v9383_v3  ;;  %v5357_v32 = vsel %vm5341_vm6, %v5340_v0, %v9384_v21  ;;  %v10233_v0 = vld [vmem:[%s11006_s23 + $0x70] sm:$0xff] }
0x1802   : > { %v9392_v62 = vpop.permute.xlu1 %9391  ;;  %v5354_v28 = vsel %vm5341_vm6, %v5337_v9, %v9378_v2  ;;  %v5355_v43 = vsel %vm5341_vm6, %v5338_v51, %v9379_v55  ;;  %v10234_v9 = vld [vmem:[%s11006_s23 + $0x78] sm:$0xff] }
0x1803   : > { %v9394_v6 = vunpack.i.h.bf16 %v9392_v62  ;;  %v9393_v56 = vunpack.i.l.bf16 %v9392_v62  ;;  %v9387_v44 = vpop.permute.xlu0 %9386 }
0x1804   : > { %v9389_v16 = vunpack.i.h.bf16 %v9387_v44  ;;  %v9388_v60 = vunpack.i.l.bf16 %v9387_v44  ;;  %v9438_v44 = vld [vmem:[%s10986_s7 + $0x8] ss:$16 sps:$4 sm:$0xff]  }
0x1805   : > { %v5373_v23 = vsel %vm5358_vm7, %v5356_v57, %v9393_v56  ;;  %v5374_v46 = vsel %vm5358_vm7, %v5357_v32, %v9394_v6  ;;  %v9435_v6 = vld [vmem:[%s10986_s7] ss:$16 sps:$4 sm:$0xff]   ;;  %v9437_v56 = vld [vmem:[%s10986_s7 + $0x4] ss:$16 sps:$4 sm:$0xff]   ;;  %v9440_v57 = vld [vmem:[%s10986_s7 + $0xc] ss:$16 sps:$4 sm:$0xff]  }
0x1806   : > { %v5371_v5 = vsel %vm5358_vm7, %v5354_v28, %v9388_v60  ;;  %v5372_v31 = vsel %vm5358_vm7, %v5355_v43, %v9389_v16  ;;  %v5382_v17 = vpack.c.bf16 %v5374_v46, %v5373_v23  ;;  %v9443_v32 = vld [vmem:[%s10986_s7 + $0x24] ss:$16 sps:$4 sm:$0xff]   ;;  %5959 = vmatprep.subr.bf16.mxu1 %v9437_v56  ;;  %v9446_v16 = vld [vmem:[%s10986_s7 + $0x2c] ss:$16 sps:$4 sm:$0xff]   ;;  %6072 = vmatprep.subr.bf16.mxu0 %v9440_v57  ;;  %v9441_v60 = vld [vmem:[%s10986_s7 + $0x20] ss:$16 sps:$4 sm:$0xff]  }
0x1807   : > { %v5381_v61 = vpack.c.bf16 %v5372_v31, %v5371_v5  ;;  %5960 = vmatpush1.bf16.msra.mxu1 %v9435_v6  ;;  %6073 = vmatpush1.bf16.msra.mxu0 %v9438_v44  ;;  %v9444_v28 = vld [vmem:[%s10986_s7 + $0x28] ss:$16 sps:$4 sm:$0xff]   ;;  %v9449_v43 = vld [vmem:[%s10986_s7 + $0x44] ss:$16 sps:$4 sm:$0xff]   ;;  %v9452_v23 = vld [vmem:[%s10986_s7 + $0x4c] ss:$16 sps:$4 sm:$0xff]  }
0x1808   : > { %5961 = vmatprep.subr.bf16.mxu1 %v9443_v32  ;;  %6074 = vmatprep.subr.bf16.mxu0 %v9446_v16  ;;  %v9447_v46 = vld [vmem:[%s10986_s7 + $0x40] ss:$16 sps:$4 sm:$0xff]   ;;  %v9450_v5 = vld [vmem:[%s10986_s7 + $0x48] ss:$16 sps:$4 sm:$0xff]   ;;  %v9461_v56 = vld [vmem:[%s10986_s7 + $0x84] ss:$16 sps:$4 sm:$0xff]  }
0x1809   : > { %8887 = vmatprep.mubr.bf16.mxu0 %v5381_v61  ;;  %v9464_v44 = vld [vmem:[%s10986_s7 + $0x8c] ss:$16 sps:$4 sm:$0xff]   ;;  %v9459_v57 = vld [vmem:[%s10986_s7 + $0x80] ss:$16 sps:$4 sm:$0xff]   ;;  %v9462_v32 = vld [vmem:[%s10986_s7 + $0x88] ss:$16 sps:$4 sm:$0xff]  }
0x180a   : > { %8888 = vmatmul.mubr.bf16.gmra.mrb[172].mxu0 %v5382_v17  ;;  %v9467_v16 = vld [vmem:[%s10986_s7 + $0xa4] ss:$16 sps:$4 sm:$0xff]  }
0x180b   : > { %6104 = vmatprep.mubr.bf16.mxu0 %v15521_v10  ;;  %5962 = vmatpush1.bf16.msra.mxu1 %v9441_v60  ;;  %v9470_v60 = vld [vmem:[%s10986_s7 + $0xac] ss:$16 sps:$4 sm:$0xff]  }
0x180c   : > { %6075 = vmatpush1.bf16.msra.mxu0 %v9444_v28  ;;  %5963 = vmatprep.subr.bf16.mxu1 %v9449_v43  ;;  %v9465_v28 = vld [vmem:[%s10986_s7 + $0xa0] ss:$16 sps:$4 sm:$0xff]   ;;  %v9468_v43 = vld [vmem:[%s10986_s7 + $0xa8] ss:$16 sps:$4 sm:$0xff]  }
0x180d   : > { %6076 = vmatprep.subr.bf16.mxu0 %v9452_v23  ;;  %v9473_v23 = vld [vmem:[%s10986_s7 + $0xc4] ss:$16 sps:$4 sm:$0xff]  }
0x180f   : > { %5964 = vmatpush1.bf16.msra.mxu1 %v9447_v46  ;;  %v9476_v46 = vld [vmem:[%s10986_s7 + $0xcc] ss:$16 sps:$4 sm:$0xff]  }
0x1810   : > { %6077 = vmatpush1.bf16.msra.mxu0 %v9450_v5  ;;  %v9471_v5 = vld [vmem:[%s10986_s7 + $0xc0] ss:$16 sps:$4 sm:$0xff]  }
0x1891   : > { %v8877_v58 = vpop.f32.mrb[160].mxu0 }
0x1892   : > { %v5481_v13 = vpop.f32.mrb[161].mxu0  ;;  %v13882_v24 = vadd.f32 %v10221_v47, %v8877_v58 }
0x1893   : > { %v13875_v49 = vadd.f32 %v10219_v26, %v5481_v13  ;;  %v8878_v53 = vpop.f32.mrb[162].mxu0 }
0x1894   : > { %v5484_v30 = vpop.f32.mrb[163].mxu0  ;;  %15666 = vst [vmem:[#allocation40_spill] sm:$0xff] %v13882_v24  ;;  %v13887_v33 = vadd.f32 %v10222_v25, %v8878_v53 }
0x1895   : > { %15664 = vst [vmem:[#allocation38_spill] sm:$0xff] %v13875_v49  ;;  %v13878_v18 = vadd.f32 %v10220_v7, %v5484_v30  ;;  %5561 = vadd.xlane.f32.xlu0 %v13875_v49 }
0x1896   : > { %15667 = vst [vmem:[#allocation39_spill] sm:$0xff] %v13887_v33 }
0x1897   : > { %15665 = vst [vmem:[#allocation37_spill] sm:$0xff] %v13878_v18  ;;  %5563 = vadd.xlane.f32.xlu1 %v13878_v18 }
0x1899   : > { %5565 = vadd.xlane.f32.xlu0 %v13882_v24 }
0x189d   : > { %5567 = vadd.xlane.f32.xlu0 %v13887_v33 }
0x18a1   : > { %v8881_v37 = vpop.f32.mrb[164].mxu0 }
0x18a2   : > { %v5497_v40 = vpop.f32.mrb[165].mxu0  ;;  %v13898_v54 = vadd.f32 %v10225_v39, %v8881_v37 }
0x18a3   : > { %v13891_v1 = vadd.f32 %v10223_v11, %v5497_v40  ;;  %v8882_v20 = vpop.f32.mrb[166].mxu0 }
0x18a4   : > { %v5500_v22 = vpop.f32.mrb[167].mxu0  ;;  %15670 = vst [vmem:[#allocation31_spill] sm:$0xff] %v13898_v54  ;;  %v13902_v48 = vadd.f32 %v10226_v52, %v8882_v20 }
0x18a5   : > { %15668 = vst [vmem:[#allocation41_spill] sm:$0xff] %v13891_v1  ;;  %v13894_v14 = vadd.f32 %v10224_v38, %v5500_v22  ;;  %5569 = vadd.xlane.f32.xlu0 %v13891_v1 }
0x18a6   : > { %15671 = vst [vmem:[#allocation28_spill] sm:$0xff] %v13902_v48 }
0x18a7   : > { %15669 = vst [vmem:[#allocation42_spill] sm:$0xff] %v13894_v14  ;;  %5571 = vadd.xlane.f32.xlu1 %v13894_v14 }
0x18a9   : > { %5573 = vadd.xlane.f32.xlu0 %v13898_v54 }
0x18ab   : > { %5575 = vadd.xlane.f32.xlu1 %v13902_v48 }
0x18cd   : > { %v8885_v41 = vpop.f32.mrb[168].mxu0 }
0x18ce   : > { %v5513_v42 = vpop.f32.mrb[169].mxu0  ;;  %v13914_v12 = vadd.f32 %v10229_v63, %v8885_v41 }
0x18cf   : > { %v13907_v50 = vadd.f32 %v10227_v27, %v5513_v42  ;;  %v8886_v59 = vpop.f32.mrb[170].mxu0 }
0x18d0   : > { %v5516_v45 = vpop.f32.mrb[171].mxu0  ;;  %15674 = vst [vmem:[#allocation29_spill] sm:$0xff] %v13914_v12  ;;  %v13918_v21 = vadd.f32 %v10230_v4, %v8886_v59 }
0x18d1   : > { %15672 = vst [vmem:[#allocation34_spill] sm:$0xff] %v13907_v50  ;;  %v13910_v15 = vadd.f32 %v10228_v8, %v5516_v45  ;;  %5577 = vadd.xlane.f32.xlu0 %v13907_v50 }
0x18d2   : > { %15675 = vst [vmem:[#allocation30_spill] sm:$0xff] %v13918_v21 }
0x18d3   : > { %15673 = vst [vmem:[#allocation35_spill] sm:$0xff] %v13910_v15  ;;  %5579 = vadd.xlane.f32.xlu1 %v13910_v15 }
0x18d5   : > { %5581 = vadd.xlane.f32.xlu0 %v13914_v12 }
0x18d7   : > { %5583 = vadd.xlane.f32.xlu1 %v13918_v21 }
0x18dd   : > { %v8889_v3 = vpop.f32.mrb[172].mxu0 }
0x18de   : > { %v5529_v35 = vpop.f32.mrb[173].mxu0  ;;  %v13930_v62 = vadd.f32 %v10233_v0, %v8889_v3 }
0x18df   : > { %v13923_v55 = vadd.f32 %v10231_v29, %v5529_v35  ;;  %v8890_v2 = vpop.f32.mrb[174].mxu0  ;;  %v9455_v29 = vld [vmem:[%s10986_s7 + $0x64] ss:$16 sps:$4 sm:$0xff]  }
0x18e0   : > { %v5532_v19 = vpop.f32.mrb[175].mxu0  ;;  %15678 = vst [vmem:[#allocation32_spill] sm:$0xff] %v13930_v62  ;;  %v13934_v51 = vadd.f32 %v10234_v9, %v8890_v2  ;;  %v9458_v2 = vld [vmem:[%s10986_s7 + $0x6c] ss:$16 sps:$4 sm:$0xff]   ;;  %5965 = vmatprep.subr.bf16.mxu1 %v9455_v29 }
0x18e1   : > { %15676 = vst [vmem:[#allocation43_spill] sm:$0xff] %v13923_v55  ;;  %v13926_v36 = vadd.f32 %v10232_v34, %v5532_v19  ;;  %5585 = vadd.xlane.f32.xlu0 %v13923_v55  ;;  %v9453_v19 = vld [vmem:[%s10986_s7 + $0x60] ss:$16 sps:$4 sm:$0xff]   ;;  %v9456_v34 = vld [vmem:[%s10986_s7 + $0x68] ss:$16 sps:$4 sm:$0xff]   ;;  %6078 = vmatprep.subr.bf16.mxu0 %v9458_v2 }
0x18e2   : > { %15679 = vst [vmem:[#allocation33_spill] sm:$0xff] %v13934_v51  ;;  %5966 = vmatpush1.bf16.msra.mxu1 %v9453_v19  ;;  %6079 = vmatpush1.bf16.msra.mxu0 %v9456_v34 }
0x18e3   : > { %15677 = vst [vmem:[#allocation44_spill] sm:$0xff] %v13926_v36  ;;  %5587 = vadd.xlane.f32.xlu1 %v13926_v36  ;;  %5967 = vmatprep.subr.bf16.mxu1 %v9461_v56 }
0x18e4   : > { %6080 = vmatprep.subr.bf16.mxu0 %v9464_v44 }
0x18e5   : > { %5589 = vadd.xlane.f32.xlu0 %v13930_v62 }
0x18e6   : > { %5968 = vmatpush1.bf16.msra.mxu1 %v9459_v57  ;;  %6081 = vmatpush1.bf16.msra.mxu0 %v9462_v32 }
0x18e7   : > { %5591 = vadd.xlane.f32.xlu1 %v13934_v51  ;;  %5969 = vmatprep.subr.bf16.mxu1 %v9467_v16 }
0x18e8   : > { %6082 = vmatprep.subr.bf16.mxu0 %v9470_v60 }
0x18ea   : > { %5970 = vmatpush1.bf16.msra.mxu1 %v9465_v28  ;;  %6083 = vmatpush1.bf16.msra.mxu0 %v9468_v43 }
0x18eb   : > { %5971 = vmatprep.subr.bf16.mxu1 %v9473_v23  ;;  %6084 = vmatprep.subr.bf16.mxu0 %v9476_v46  ;;  %v9483_v46 = vld [vmem:[%s11004_s18 + $0x40] sm:$0xff]  }
0x18ee   : > { %5972 = vmatpush1.bf16.msra.mxu1 %v9471_v5 }
0x1922   : > { %v5562_v31 = vpop.xlane.xlu0 %5561 }
0x1923   : > { %v5593_v17 = vmul.f32 0.0078125, %v5562_v31  ;;  %v9474_v31 = vld [vmem:[%s10986_s7 + $0xc8] ss:$16 sps:$4 sm:$0xff]  }
0x1924   : > { %v5564_v61 = vpop.xlane.xlu1 %5563  ;;  %6085 = vmatpush1.bf16.msra.mxu0 %v9474_v31 }
0x1925   : > { %v13951_v58 = vsub.f32 %v13875_v49, %v5593_v17  ;;  %v5594_v13 = vmul.f32 0.0078125, %v5564_v61  ;;  %v9479_v17 = vld [vmem:[%s10986_s7 + $0xe4] ss:$16 sps:$4 sm:$0xff]   ;;  %v9482_v61 = vld [vmem:[%s10986_s7 + $0xec] ss:$16 sps:$4 sm:$0xff]  }
0x1926   : > { %v5566_v26 = vpop.xlane.xlu0 %5565  ;;  %5973 = vmatprep.subr.bf16.mxu1 %v9479_v17  ;;  %6086 = vmatprep.subr.bf16.mxu0 %v9482_v61 }
0x1927   : > { %v13954_v53 = vsub.f32 %v13878_v18, %v5594_v13  ;;  %v5595_v30 = vmul.f32 0.0078125, %v5566_v26  ;;  %v5625_v7 = vmul.f32 %v13951_v58, %v13951_v58  ;;  %v9477_v13 = vld [vmem:[%s10986_s7 + $0xe0] ss:$16 sps:$4 sm:$0xff]   ;;  %v9480_v26 = vld [vmem:[%s10986_s7 + $0xe8] ss:$16 sps:$4 sm:$0xff]  }
0x1928   : > { %5974 = vmatpush1.bf16.msra.mxu1 %v9477_v13  ;;  %6087 = vmatpush1.bf16.msra.mxu0 %v9480_v26 }
0x1929   : > { %v13959_v47 = vsub.f32 %v13882_v24, %v5595_v30  ;;  %5641 = vadd.xlane.f32.xlu0 %v5625_v7  ;;  %v5626_v25 = vmul.f32 %v13954_v53, %v13954_v53  ;;  %8187 = vmatprep.subr.bf16.mxu1 %v9483_v46 }
0x192a   : > { %v5568_v37 = vpop.xlane.xlu0 %5567 }
0x192b   : > { %v5596_v40 = vmul.f32 0.0078125, %v5568_v37  ;;  %5643 = vadd.xlane.f32.xlu1 %v5626_v25  ;;  %v5627_v11 = vmul.f32 %v13959_v47, %v13959_v47 }
0x192d   : > { %v13966_v20 = vsub.f32 %v13887_v33, %v5596_v40  ;;  %5645 = vadd.xlane.f32.xlu0 %v5627_v11 }
0x192f   : > { %v5628_v22 = vmul.f32 %v13966_v20, %v13966_v20 }
0x1931   : > { %5647 = vadd.xlane.f32.xlu1 %v5628_v22 }
0x1932   : > { %v5570_v38 = vpop.xlane.xlu0 %5569 }
0x1933   : > { %v5597_v39 = vmul.f32 0.0078125, %v5570_v38 }
0x1934   : > { %v5572_v52 = vpop.xlane.xlu1 %5571 }
0x1935   : > { %v13971_v41 = vsub.f32 %v13891_v1, %v5597_v39  ;;  %v5598_v42 = vmul.f32 0.0078125, %v5572_v52 }
0x1936   : > { %v5574_v27 = vpop.xlane.xlu0 %5573 }
0x1937   : > { %v13974_v59 = vsub.f32 %v13894_v14, %v5598_v42  ;;  %v5599_v45 = vmul.f32 0.0078125, %v5574_v27  ;;  %v5629_v8 = vmul.f32 %v13971_v41, %v13971_v41 }
0x1938   : > { %v5576_v63 = vpop.xlane.xlu1 %5575 }
0x1939   : > { %v13979_v4 = vsub.f32 %v13898_v54, %v5599_v45  ;;  %v5600_v3 = vmul.f32 0.0078125, %v5576_v63  ;;  %5649 = vadd.xlane.f32.xlu0 %v5629_v8  ;;  %v5630_v35 = vmul.f32 %v13974_v59, %v13974_v59 }
0x193b   : > { %v13988_v0 = vsub.f32 %v13902_v48, %v5600_v3  ;;  %5651 = vadd.xlane.f32.xlu1 %v5630_v35  ;;  %v5631_v9 = vmul.f32 %v13979_v4, %v13979_v4 }
0x193d   : > { %5653 = vadd.xlane.f32.xlu0 %v5631_v9  ;;  %v5632_v6 = vmul.f32 %v13988_v0, %v13988_v0 }
0x193f   : > { %5655 = vadd.xlane.f32.xlu1 %v5632_v6 }
0x195e   : > { %v5578_v30 = vpop.xlane.xlu0 %5577 }
0x195f   : > { %v5601_v7 = vmul.f32 0.0078125, %v5578_v30 }
0x1960   : > { %v5580_v25 = vpop.xlane.xlu1 %5579 }
0x1961   : > { %v14011_v37 = vsub.f32 %v13907_v50, %v5601_v7  ;;  %v5602_v40 = vmul.f32 0.0078125, %v5580_v25 }
0x1962   : > { %v5582_v11 = vpop.xlane.xlu0 %5581 }
0x1963   : > { %v14014_v22 = vsub.f32 %v13910_v15, %v5602_v40  ;;  %v5603_v38 = vmul.f32 0.0078125, %v5582_v11  ;;  %v5633_v39 = vmul.f32 %v14011_v37, %v14011_v37 }
0x1964   : > { %v5584_v52 = vpop.xlane.xlu1 %5583 }
0x1965   : > { %v14019_v42 = vsub.f32 %v13914_v12, %v5603_v38  ;;  %v5604_v27 = vmul.f32 0.0078125, %v5584_v52  ;;  %5657 = vadd.xlane.f32.xlu0 %v5633_v39  ;;  %v5634_v45 = vmul.f32 %v14014_v22, %v14014_v22 }
0x1967   : > { %v14024_v8 = vsub.f32 %v13918_v21, %v5604_v27  ;;  %5659 = vadd.xlane.f32.xlu1 %v5634_v45  ;;  %v5635_v63 = vmul.f32 %v14019_v42, %v14019_v42 }
0x1969   : > { %5661 = vadd.xlane.f32.xlu0 %v5635_v63  ;;  %v5636_v3 = vmul.f32 %v14024_v8, %v14024_v8 }
0x196b   : > { %5663 = vadd.xlane.f32.xlu1 %v5636_v3  ;;  %v14057_v3 = vld [vmem:[%s517_s19] ss:$0 sm:$0xff] }
0x196e   : > { %v5586_v35 = vpop.xlane.xlu0 %5585 }
0x196f   : > { %v5605_v29 = vmul.f32 0.0078125, %v5586_v35 }
0x1970   : > { %v5588_v2 = vpop.xlane.xlu1 %5587 }
0x1971   : > { %v14031_v19 = vsub.f32 %v13923_v55, %v5605_v29  ;;  %v5606_v34 = vmul.f32 0.0078125, %v5588_v2 }
0x1972   : > { %v5590_v9 = vpop.xlane.xlu0 %5589 }
0x1973   : > { %v14034_v6 = vsub.f32 %v13926_v36, %v5606_v34  ;;  %v5607_v56 = vmul.f32 0.0078125, %v5590_v9  ;;  %v5637_v44 = vmul.f32 %v14031_v19, %v14031_v19 }
0x1974   : > { %v5592_v57 = vpop.xlane.xlu1 %5591 }
0x1975   : > { %v14039_v32 = vsub.f32 %v13930_v62, %v5607_v56  ;;  %v5608_v16 = vmul.f32 0.0078125, %v5592_v57  ;;  %5665 = vadd.xlane.f32.xlu0 %v5637_v44  ;;  %v5638_v60 = vmul.f32 %v14034_v6, %v14034_v6 }
0x1977   : > { %v14044_v28 = vsub.f32 %v13934_v51, %v5608_v16  ;;  %5667 = vadd.xlane.f32.xlu1 %v5638_v60  ;;  %v5639_v43 = vmul.f32 %v14039_v32, %v14039_v32 }
0x1979   : > { %5669 = vadd.xlane.f32.xlu0 %v5639_v43  ;;  %v5640_v23 = vmul.f32 %v14044_v28, %v14044_v28 }
0x197b   : > { %5671 = vadd.xlane.f32.xlu1 %v5640_v23  ;;  %v9484_v23 = vld [vmem:[%s11004_s18] sm:$0xff]  }
0x19b6   : > { %v5642_v5 = vpop.xlane.xlu0 %5641 }
0x19b7   : > { %v5673_v31 = vmul.f32 0.0078125, %v5642_v5 }
0x19b8   : > { %v5644_v17 = vpop.xlane.xlu1 %5643 }
0x19b9   : > { %v5689_v61 = vadd.f32 1e-05, %v5673_v31  ;;  %v5674_v13 = vmul.f32 0.0078125, %v5644_v17 }
0x19ba   : > { %v5646_v26 = vpop.xlane.xlu0 %5645 }
0x19bb   : > { %10059 = vrsqrt.f32 %v5689_v61  ;;  %v5690_v30 = vadd.f32 1e-05, %v5674_v13  ;;  %v5675_v7 = vmul.f32 0.0078125, %v5646_v26 }
0x19bd   : > { %10061 = vrsqrt.f32 %v5690_v30  ;;  %v5691_v25 = vadd.f32 1e-05, %v5675_v7 }
0x19be   : > { %v5648_v40 = vpop.xlane.xlu1 %5647 }
0x19bf   : > { %v5676_v11 = vmul.f32 0.0078125, %v5648_v40  ;;  %10063 = vrsqrt.f32 %v5691_v25 }
0x19c1   : > { %v5692_v38 = vadd.f32 1e-05, %v5676_v11 }
0x19c3   : > { %10065 = vrsqrt.f32 %v5692_v38 }
0x19c5   : > { %v10060_v39 = vpop.eup %10059 }
0x19c6   : > { %v5721_v52 = vmul.f32 %v10060_v39, %v13951_v58  ;;  %v5650_v27 = vpop.xlane.xlu0 %5649 }
0x19c7   : > { %v10062_v45 = vpop.eup %10061  ;;  %v5677_v63 = vmul.f32 0.0078125, %v5650_v27 }
0x19c8   : > { %v5722_v35 = vmul.f32 %v10062_v45, %v13954_v53  ;;  %v5652_v29 = vpop.xlane.xlu1 %5651  ;;  %v5743_v56 = vmul.f32 %v14057_v3, %v5721_v52 }
0x19c9   : > { %v5693_v2 = vadd.f32 1e-05, %v5677_v63  ;;  %v5678_v34 = vmul.f32 0.0078125, %v5652_v29  ;;  %v10064_v44 = vpop.eup %10063 }
0x19ca   : > { %v5654_v9 = vpop.xlane.xlu0 %5653  ;;  %v5744_v58 = vmul.f32 %v14057_v3, %v5722_v35  ;;  %v5723_v53 = vmul.f32 %v10064_v44, %v13959_v47 }
0x19cb   : > { %10067 = vrsqrt.f32 %v5693_v2  ;;  %v5694_v57 = vadd.f32 1e-05, %v5678_v34  ;;  %v5679_v16 = vmul.f32 0.0078125, %v5654_v9 }
0x19cc   : > { %v5656_v60 = vpop.xlane.xlu1 %5655  ;;  %v5759_v43 = vpack.c.bf16 %v5744_v58, %v5743_v56  ;;  %v5745_v26 = vmul.f32 %v14057_v3, %v5723_v53 }
0x19cd   : > { %v10066_v46 = vpop.eup %10065  ;;  %10069 = vrsqrt.f32 %v5694_v57  ;;  %v5695_v5 = vadd.f32 1e-05, %v5679_v16  ;;  %v5680_v31 = vmul.f32 0.0078125, %v5656_v60 }
0x19ce   : > { %5992 = vmatmul.mubr.bf16.vlgmr.msra.gmra.mrb[144].mxu1 %v5759_v43  ;;  %6105 = vmatmul.mubr.bf16.vlgmr.msra.gmra.mrb[176].mxu0 %v5759_v43  ;;  %v5724_v17 = vmul.f32 %v10066_v46, %v13966_v20 }
0x19cf   : > { %v5696_v61 = vadd.f32 1e-05, %v5680_v31  ;;  %6001 = vmatprep.mubr.bf16.mxu1 %v15521_v10  ;;  %6114 = vmatprep.mubr.bf16.mxu0 %v15521_v10  ;;  %10071 = vrsqrt.f32 %v5695_v5 }
0x19d0   : > { %v5746_v13 = vmul.f32 %v14057_v3, %v5724_v17  ;;  %8188 = vmatpush3.bf16.msra.mxu1 %v9484_v23 }
0x19d1   : > { %10073 = vrsqrt.f32 %v5696_v61 }
0x19d2   : > { %v5760_v30 = vpack.c.bf16 %v5746_v13, %v5745_v26 }
0x19d5   : > { %v10068_v7 = vpop.eup %10067 }
0x19d6   : > { %6002 = vmatmul.mubr.bf16.gmra.mrb[148].mxu1 %v5760_v30  ;;  %6115 = vmatmul.mubr.bf16.gmra.mrb[180].mxu0 %v5760_v30  ;;  %v5725_v47 = vmul.f32 %v10068_v7, %v13971_v41 }
0x19d7   : > { %v10070_v25 = vpop.eup %10069  ;;  %6011 = vmatprep.mubr.bf16.mxu1 %v15521_v10  ;;  %6124 = vmatprep.mubr.bf16.mxu0 %v15521_v10 }
0x19d8   : > { %v5726_v20 = vmul.f32 %v10070_v25, %v13974_v59  ;;  %v5747_v11 = vmul.f32 %v14057_v3, %v5725_v47 }
0x19d9   : > { %v10072_v40 = vpop.eup %10071 }
0x19da   : > { %v5748_v38 = vmul.f32 %v14057_v3, %v5726_v20  ;;  %v5727_v41 = vmul.f32 %v10072_v40, %v13979_v4 }
0x19db   : > { %v10074_v39 = vpop.eup %10073 }
0x19dc   : > { %v5761_v52 = vpack.c.bf16 %v5748_v38, %v5747_v11  ;;  %v5728_v27 = vmul.f32 %v10074_v39, %v13988_v0  ;;  %v5749_v59 = vmul.f32 %v14057_v3, %v5727_v41 }
0x19de   : > { %6012 = vmatmul.mubr.bf16.gmra.mrb[152].mxu1 %v5761_v52  ;;  %6125 = vmatmul.mubr.bf16.gmra.mrb[184].mxu0 %v5761_v52  ;;  %v5750_v45 = vmul.f32 %v14057_v3, %v5728_v27 }
0x19df   : > { %6021 = vmatprep.mubr.bf16.mxu1 %v15521_v10  ;;  %6134 = vmatprep.mubr.bf16.mxu0 %v15521_v10 }
0x19e0   : > { %v5762_v63 = vpack.c.bf16 %v5750_v45, %v5749_v59 }
0x19e6   : > { %6022 = vmatmul.mubr.bf16.gmra.mrb[156].mxu1 %v5762_v63  ;;  %6135 = vmatmul.mubr.bf16.gmra.mrb[188].mxu0 %v5762_v63 }
0x19e7   : > { %6031 = vmatprep.mubr.bf16.mxu1 %v15521_v10  ;;  %6144 = vmatprep.mubr.bf16.mxu0 %v15521_v10 }
0x19f2   : > { %v5658_v0 = vpop.xlane.xlu0 %5657 }
0x19f3   : > { %v5681_v35 = vmul.f32 0.0078125, %v5658_v0 }
0x19f4   : > { %v5660_v29 = vpop.xlane.xlu1 %5659 }
0x19f5   : > { %v5697_v2 = vadd.f32 1e-05, %v5681_v35  ;;  %v5682_v4 = vmul.f32 0.0078125, %v5660_v29 }
0x19f6   : > { %v5662_v34 = vpop.xlane.xlu0 %5661 }
0x19f7   : > { %10075 = vrsqrt.f32 %v5697_v2  ;;  %v5698_v9 = vadd.f32 1e-05, %v5682_v4  ;;  %v5683_v56 = vmul.f32 0.0078125, %v5662_v34 }
0x19f8   : > { %v5664_v58 = vpop.xlane.xlu1 %5663 }
0x19f9   : > { %10077 = vrsqrt.f32 %v5698_v9  ;;  %v5699_v44 = vadd.f32 1e-05, %v5683_v56  ;;  %v5684_v57 = vmul.f32 0.0078125, %v5664_v58  ;;  %v9485_v58 = vld [vmem:[%s11004_s18 + $0xc0] sm:$0xff]  }
0x19fa   : > { %8251 = vmatprep.subr.bf16.mxu0 %v9485_v58 }
0x19fb   : > { %v5700_v16 = vadd.f32 1e-05, %v5684_v57  ;;  %10079 = vrsqrt.f32 %v5699_v44  ;;  %v9489_v44 = vld [vmem:[%s11004_s18 + $0x8] sm:$0xff]   ;;  %v9491_v57 = vld [vmem:[%s11004_s18 + $0x50] sm:$0xff]  }
0x19fd   : > { %10081 = vrsqrt.f32 %v5700_v16  ;;  %v14122_v16 = vld [vmem:[%s11004_s18 + $0xd0] sm:$0xff]  }
0x1a01   : > { %v10076_v60 = vpop.eup %10075 }
0x1a02   : > { %v5666_v43 = vpop.xlane.xlu0 %5665  ;;  %v5729_v23 = vmul.f32 %v10076_v60, %v14011_v37  ;;  %v9493_v60 = vld [vmem:[%s11004_s18 + $0x10] sm:$0xff]  }
0x1a03   : > { %v10078_v46 = vpop.eup %10077  ;;  %v5685_v5 = vmul.f32 0.0078125, %v5666_v43  ;;  %v14127_v43 = vld [vmem:[%s11004_s18 + $0x90] sm:$0xff]  }
0x1a04   : > { %v5668_v31 = vpop.xlane.xlu1 %5667  ;;  %v5730_v53 = vmul.f32 %v10078_v46, %v14014_v22  ;;  %v5751_v30 = vmul.f32 %v14057_v3, %v5729_v23  ;;  %15681 = vst [vmem:[#allocation62_spill] sm:$0xff] %v14127_v43  ;;  %v9495_v23 = vld [vmem:[%s11004_s18 + $0x58] sm:$0xff]  }
0x1a05   : > { %v5701_v17 = vadd.f32 1e-05, %v5685_v5  ;;  %v5686_v61 = vmul.f32 0.0078125, %v5668_v31  ;;  %v10080_v13 = vpop.eup %10079  ;;  %v14132_v46 = vld [vmem:[%s11004_s18 + $0xd8] sm:$0xff]  }
0x1a06   : > { %v5670_v26 = vpop.xlane.xlu0 %5669  ;;  %v5752_v7 = vmul.f32 %v14057_v3, %v5730_v53  ;;  %v5731_v22 = vmul.f32 %v10080_v13, %v14019_v42  ;;  %15682 = vst [vmem:[#allocation36_spill] sm:$0xff] %v14132_v46  ;;  %v9497_v5 = vld [vmem:[%s11004_s18 + $0x18] sm:$0xff]   ;;  %v9499_v53 = vld [vmem:[%s11004_s18 + $0x60] sm:$0xff]  }
0x1a07   : > { %v10082_v47 = vpop.eup %10081  ;;  %10083 = vrsqrt.f32 %v5701_v17  ;;  %v5702_v25 = vadd.f32 1e-05, %v5686_v61  ;;  %v5687_v20 = vmul.f32 0.0078125, %v5670_v26  ;;  %v14136_v31 = vld [vmem:[%s11004_s18 + $0x98] sm:$0xff]   ;;  %v14142_v17 = vld [vmem:[%s11004_s18 + $0xe0] sm:$0xff]   ;;  %v9503_v26 = vld [vmem:[%s11004_s18 + $0x68] sm:$0xff]  }
0x1a08   : > { %v5672_v40 = vpop.xlane.xlu1 %5671  ;;  %v5763_v11 = vpack.c.bf16 %v5752_v7, %v5751_v30  ;;  %v5732_v37 = vmul.f32 %v10082_v47, %v14024_v8  ;;  %v5753_v41 = vmul.f32 %v14057_v3, %v5731_v22  ;;  %15683 = vst [vmem:[#allocation79_spill] sm:$0xff] %v14136_v31  ;;  %15684 = vst [vmem:[#allocation77_spill] sm:$0xff] %v14142_v17  ;;  %v9501_v61 = vld [vmem:[%s11004_s18 + $0x20] sm:$0xff]   ;;  %v14152_v30 = vld [vmem:[%s11004_s18 + $0xe8] sm:$0xff]  }
0x1a09   : > { %10085 = vrsqrt.f32 %v5702_v25  ;;  %v5703_v38 = vadd.f32 1e-05, %v5687_v20  ;;  %v5688_v39 = vmul.f32 0.0078125, %v5672_v40  ;;  %v14147_v13 = vld [vmem:[%s11004_s18 + $0xa0] sm:$0xff]   ;;  %15686 = vst [vmem:[#allocation61_spill] sm:$0xff] %v14152_v30  ;;  %v9505_v7 = vld [vmem:[%s11004_s18 + $0x28] sm:$0xff]  }
0x1a0a   : > { %6032 = vmatmul.mubr.bf16.gmra.mrb[160].mxu1 %v5763_v11  ;;  %6145 = vmatmul.mubr.bf16.gmra.mrb[192].mxu0 %v5763_v11  ;;  %v5754_v27 = vmul.f32 %v14057_v3, %v5732_v37  ;;  %15685 = vst [vmem:[#allocation63_spill] sm:$0xff] %v14147_v13  ;;  %v14156_v47 = vld [vmem:[%s11004_s18 + $0xa8] sm:$0xff]   ;;  %v9507_v25 = vld [vmem:[%s11004_s18 + $0x70] sm:$0xff]   ;;  %v9511_v37 = vld [vmem:[%s11004_s18 + $0x78] sm:$0xff]  }
0x1a0b   : > { %v5704_v52 = vadd.f32 1e-05, %v5688_v39  ;;  %6041 = vmatprep.mubr.bf16.mxu1 %v15521_v10  ;;  %6154 = vmatprep.mubr.bf16.mxu0 %v15521_v10  ;;  %10087 = vrsqrt.f32 %v5703_v38  ;;  %15687 = vst [vmem:[#allocation78_spill] sm:$0xff] %v14156_v47  ;;  %v14162_v20 = vld [vmem:[%s11004_s18 + $0xf0] sm:$0xff]   ;;  %v14172_v38 = vld [vmem:[%s11004_s18 + $0xf8] sm:$0xff]  }
0x1a0c   : > { %v5764_v45 = vpack.c.bf16 %v5754_v27, %v5753_v41  ;;  %15688 = vst [vmem:[#allocation76_spill] sm:$0xff] %v14162_v20  ;;  %v9509_v40 = vld [vmem:[%s11004_s18 + $0x30] sm:$0xff]   ;;  %15690 = vst [vmem:[#allocation93_spill] sm:$0xff] %v14172_v38  ;;  %v9513_v39 = vld [vmem:[%s11004_s18 + $0x38] sm:$0xff]  }
0x1a0d   : > { %10089 = vrsqrt.f32 %v5704_v52  ;;  %v14167_v11 = vld [vmem:[%s11004_s18 + $0xb0] sm:$0xff]   ;;  %v14176_v22 = vld [vmem:[%s11004_s18 + $0xb8] sm:$0xff]  }
0x1a0e   : > { %15689 = vst [vmem:[#allocation95_spill] sm:$0xff] %v14167_v11  ;;  %15691 = vst [vmem:[#allocation94_spill] sm:$0xff] %v14176_v22 }
0x1a11   : > { %v10084_v8 = vpop.eup %10083 }
0x1a12   : > { %6042 = vmatmul.mubr.bf16.gmra.mrb[164].mxu1 %v5764_v45  ;;  %6155 = vmatmul.mubr.bf16.gmra.mrb[196].mxu0 %v5764_v45  ;;  %v5733_v59 = vmul.f32 %v10084_v8, %v14031_v19 }
0x1a13   : > { %v10086_v63 = vpop.eup %10085  ;;  %6051 = vmatprep.mubr.bf16.mxu1 %v15521_v10  ;;  %6164 = vmatprep.mubr.bf16.mxu0 %v15521_v10 }
0x1a14   : > { %v5734_v42 = vmul.f32 %v10086_v63, %v14034_v6  ;;  %v5755_v35 = vmul.f32 %v14057_v3, %v5733_v59 }
0x1a15   : > { %v10088_v0 = vpop.eup %10087 }
0x1a16   : > { %v5756_v29 = vmul.f32 %v14057_v3, %v5734_v42  ;;  %v5735_v19 = vmul.f32 %v10088_v0, %v14039_v32  ;;  %v9487_v32 = vld [vmem:[%s11004_s18 + $0x48] sm:$0xff]  }
0x1a17   : > { %v10090_v2 = vpop.eup %10089  ;;  %8189 = vmatprep.subr.bf16.mxu1 %v9487_v32 }
0x1a18   : > { %v5765_v4 = vpack.c.bf16 %v5756_v29, %v5755_v35  ;;  %v5736_v34 = vmul.f32 %v10090_v2, %v14044_v28  ;;  %v5757_v9 = vmul.f32 %v14057_v3, %v5735_v19  ;;  %v14107_v28 = vld [vmem:[%s11004_s18 + $0x80] sm:$0xff]   ;;  %8190 = vmatpush3.bf16.msra.mxu1 %v9489_v44 }
0x1a19   : > { %8252 = vmatpush3.bf16.msra.mxu0 %v14107_v28  ;;  %8191 = vmatprep.subr.bf16.mxu1 %v9491_v57 }
0x1a1a   : > { %6052 = vmatmul.mubr.bf16.gmra.mrb[168].mxu1 %v5765_v4  ;;  %6165 = vmatmul.mubr.bf16.gmra.mrb[200].mxu0 %v5765_v4  ;;  %v5758_v6 = vmul.f32 %v14057_v3, %v5736_v34  ;;  %v14116_v3 = vld [vmem:[%s11004_s18 + $0x88] sm:$0xff]  }
0x1a1b   : > { %6061 = vmatprep.mubr.bf16.mxu1 %v15521_v10  ;;  %6174 = vmatprep.mubr.bf16.mxu0 %v15521_v10  ;;  %v14112_v10 = vld [vmem:[%s11004_s18 + $0xc8] sm:$0xff]  }
0x1a1c   : > { %v5766_v56 = vpack.c.bf16 %v5758_v6, %v5757_v9  ;;  %8253 = vmatprep.subr.bf16.mxu0 %v14112_v10  ;;  %8192 = vmatpush3.bf16.msra.mxu1 %v9493_v60 }
0x1a1d   : > { %8254 = vmatpush3.bf16.msra.mxu0 %v14116_v3  ;;  %8193 = vmatprep.subr.bf16.mxu1 %v9495_v23 }
0x1a1e   : > { %8255 = vmatprep.subr.bf16.mxu0 %v14122_v16 }
0x1a20   : > { %8194 = vmatpush3.bf16.msra.mxu1 %v9497_v5 }
0x1a21   : > { %8256 = vmatpush3.bf16.msra.mxu0 %v14127_v43  ;;  %8195 = vmatprep.subr.bf16.mxu1 %v9499_v53 }
0x1a22   : > { %6062 = vmatmul.mubr.bf16.gmra.mrb[172].mxu1 %v5766_v56  ;;  %6175 = vmatmul.mubr.bf16.gmra.mrb[204].mxu0 %v5766_v56 }
0x1a23   : > { %8257 = vmatprep.subr.bf16.mxu0 %v14132_v46 }
0x1a24   : > { %8196 = vmatpush3.bf16.msra.mxu1 %v9501_v61 }
0x1a25   : > { %8258 = vmatpush3.bf16.msra.mxu0 %v14136_v31  ;;  %8197 = vmatprep.subr.bf16.mxu1 %v9503_v26 }
0x1a26   : > { %8259 = vmatprep.subr.bf16.mxu0 %v14142_v17 }
0x1a28   : > { %8198 = vmatpush3.bf16.msra.mxu1 %v9505_v7 }
0x1a29   : > { %8260 = vmatpush3.bf16.msra.mxu0 %v14147_v13  ;;  %8199 = vmatprep.subr.bf16.mxu1 %v9507_v25 }
0x1a2a   : > { %8261 = vmatprep.subr.bf16.mxu0 %v14152_v30 }
0x1a2c   : > { %8200 = vmatpush3.bf16.msra.mxu1 %v9509_v40 }
0x1a2d   : > { %8262 = vmatpush3.bf16.msra.mxu0 %v14156_v47  ;;  %8201 = vmatprep.subr.bf16.mxu1 %v9511_v37 }
0x1a2e   : > { %8263 = vmatprep.subr.bf16.mxu0 %v14162_v20 }
0x1a30   : > { %8202 = vmatpush3.bf16.msra.mxu1 %v9513_v39 }
0x1a31   : > { %8264 = vmatpush3.bf16.msra.mxu0 %v14167_v11  ;;  %8891 = vmatprep.subr.bf16.mxu1 %v9485_v58 }
0x1a32   : > { %8265 = vmatprep.subr.bf16.mxu0 %v14172_v38 }
0x1a35   : > { %8266 = vmatpush3.bf16.msra.mxu0 %v14176_v22 }
0x1aa1   : > { %v5993_v52 = vpop.f32.mrb[144].mxu1  ;;  %v6106_v27 = vpop.f32.mrb[176].mxu0 }
0x1aa2   : > { %v6249_v41 = vmul.f32 0.044715, %v5993_v52  ;;  %v6251_v45 = vmul.f32 0.044715, %v6106_v27  ;;  %v14180_v8 = vmul.f32 0.5, %v5993_v52  ;;  %v14182_v59 = vmul.f32 0.5, %v6106_v27 }
0x1aa3   : > { %v14184_v63 = vpop.f32.mrb[145].mxu1  ;;  %v14186_v42 = vpop.f32.mrb[177].mxu0 }
0x1aa4   : > { %v6313_v0 = vmul.f32 %v6249_v41, %v5993_v52  ;;  %v6315_v35 = vmul.f32 %v6251_v45, %v6106_v27  ;;  %v6250_v29 = vmul.f32 0.044715, %v14184_v63  ;;  %v6252_v2 = vmul.f32 0.044715, %v14186_v42  ;;  %v5997_v4 = vpop.f32.mrb[146].mxu1  ;;  %v6110_v34 = vpop.f32.mrb[178].mxu0 }
0x1aa5   : > { %v14190_v19 = vmul.f32 0.5, %v5997_v4  ;;  %v6253_v6 = vmul.f32 0.044715, %v5997_v4  ;;  %v14192_v9 = vmul.f32 0.5, %v6110_v34  ;;  %v6255_v56 = vmul.f32 0.044715, %v6110_v34 }
0x1aa6   : > { %v6377_v58 = vmul.f32 %v6313_v0, %v5993_v52  ;;  %v6379_v32 = vmul.f32 %v6315_v35, %v6106_v27  ;;  %v6314_v44 = vmul.f32 %v6250_v29, %v14184_v63  ;;  %v6316_v57 = vmul.f32 %v6252_v2, %v14186_v42  ;;  %v14196_v60 = vpop.f32.mrb[147].mxu1  ;;  %v14198_v23 = vpop.f32.mrb[179].mxu0 }
0x1aa7   : > { %v6317_v5 = vmul.f32 %v6253_v6, %v5997_v4  ;;  %v6319_v53 = vmul.f32 %v6255_v56, %v6110_v34  ;;  %v6254_v61 = vmul.f32 0.044715, %v14196_v60  ;;  %v6256_v26 = vmul.f32 0.044715, %v14198_v23 }
0x1aa8   : > { %v6441_v7 = vadd.f32 %v6377_v58, %v5993_v52  ;;  %v6443_v25 = vadd.f32 %v6379_v32, %v6106_v27  ;;  %v6378_v40 = vmul.f32 %v6314_v44, %v14184_v63  ;;  %v6380_v37 = vmul.f32 %v6316_v57, %v14186_v42 }
0x1aa9   : > { %v6381_v39 = vmul.f32 %v6317_v5, %v5997_v4  ;;  %v6383_v41 = vmul.f32 %v6319_v53, %v6110_v34  ;;  %v6318_v45 = vmul.f32 %v6254_v61, %v14196_v60  ;;  %v6320_v0 = vmul.f32 %v6256_v26, %v14198_v23  ;;  %v14206_v35 = vpop.f32.mrb[148].mxu1  ;;  %v14208_v29 = vpop.f32.mrb[180].mxu0 }
0x1aaa   : > { %v6505_v2 = vmul.f32 0.7978846, %v6441_v7  ;;  %v6507_v6 = vmul.f32 0.7978846, %v6443_v25  ;;  %v6442_v56 = vadd.f32 %v6378_v40, %v14184_v63  ;;  %v6444_v52 = vadd.f32 %v6380_v37, %v14186_v42  ;;  %v14212_v27 = vpop.f32.mrb[149].mxu1  ;;  %v14214_v58 = vpop.f32.mrb[181].mxu0 }
0x1aab   : > { %v6445_v32 = vadd.f32 %v6381_v39, %v5997_v4  ;;  %v6447_v44 = vadd.f32 %v6383_v41, %v6110_v34  ;;  %v6382_v57 = vmul.f32 %v6318_v45, %v14196_v60  ;;  %v6384_v5 = vmul.f32 %v6320_v0, %v14198_v23  ;;  %v14218_v53 = vpop.f32.mrb[150].mxu1  ;;  %v14220_v61 = vpop.f32.mrb[182].mxu0 }
0x1aac   : > { %10091 = vtanh.f32 %v6505_v2  ;;  %v6506_v26 = vmul.f32 0.7978846, %v6442_v56  ;;  %v6508_v7 = vmul.f32 0.7978846, %v6444_v52  ;;  %v6257_v25 = vmul.f32 0.044715, %v14206_v35 }
0x1aad   : > { %10093 = vtanh.f32 %v6507_v6  ;;  %v6509_v40 = vmul.f32 0.7978846, %v6445_v32  ;;  %v6511_v37 = vmul.f32 0.7978846, %v6447_v44  ;;  %v6446_v51 = vadd.f32 %v6382_v57, %v14196_v60  ;;  %v14224_v4 = vpop.f32.mrb[151].mxu1  ;;  %v14226_v34 = vpop.f32.mrb[183].mxu0 }
0x1aae   : > { %10095 = vtanh.f32 %v6506_v26  ;;  %v6448_v39 = vadd.f32 %v6384_v5, %v14198_v23  ;;  %v6321_v41 = vmul.f32 %v6257_v25, %v14206_v35  ;;  %v6259_v45 = vmul.f32 0.044715, %v14208_v29 }
0x1aaf   : > { %10097 = vtanh.f32 %v6508_v7  ;;  %v6510_v0 = vmul.f32 0.7978846, %v6446_v51  ;;  %v6258_v2 = vmul.f32 0.044715, %v14212_v27  ;;  %v6260_v6 = vmul.f32 0.044715, %v14214_v58 }
0x1ab0   : > { %10099 = vtanh.f32 %v6509_v40  ;;  %v6512_v56 = vmul.f32 0.7978846, %v6448_v39  ;;  %v6385_v52 = vmul.f32 %v6321_v41, %v14206_v35  ;;  %v6323_v32 = vmul.f32 %v6259_v45, %v14208_v29 }
0x1ab1   : > { %10101 = vtanh.f32 %v6511_v37  ;;  %v6322_v44 = vmul.f32 %v6258_v2, %v14212_v27  ;;  %v6324_v57 = vmul.f32 %v6260_v6, %v14214_v58  ;;  %v6261_v5 = vmul.f32 0.044715, %v14218_v53  ;;  %v14238_v26 = vpop.f32.mrb[152].mxu1  ;;  %v14240_v51 = vpop.f32.mrb[184].mxu0 }
0x1ab2   : > { %10103 = vtanh.f32 %v6510_v0  ;;  %v6449_v7 = vadd.f32 %v6385_v52, %v14206_v35  ;;  %v6387_v25 = vmul.f32 %v6323_v32, %v14208_v29  ;;  %v6263_v40 = vmul.f32 0.044715, %v14220_v61  ;;  %v14245_v39 = vpop.f32.mrb[153].mxu1  ;;  %v14247_v37 = vpop.f32.mrb[185].mxu0 }
0x1ab3   : > { %10105 = vtanh.f32 %v6512_v56  ;;  %v6386_v41 = vmul.f32 %v6322_v44, %v14212_v27  ;;  %v6388_v45 = vmul.f32 %v6324_v57, %v14214_v58  ;;  %v6325_v2 = vmul.f32 %v6261_v5, %v14218_v53  ;;  %v14252_v6 = vpop.f32.mrb[154].mxu1  ;;  %v14254_v0 = vpop.f32.mrb[186].mxu0 }
0x1ab4   : > { %15692 = vst [vmem:[#allocation92_spill] sm:$0xff] %v14254_v0  ;;  %v6513_v52 = vmul.f32 0.7978846, %v6449_v7  ;;  %v6451_v32 = vadd.f32 %v6387_v25, %v14208_v29  ;;  %v6327_v62 = vmul.f32 %v6263_v40, %v14220_v61  ;;  %v6262_v36 = vmul.f32 0.044715, %v14224_v4  ;;  %v14259_v55 = vpop.f32.mrb[155].mxu1 }
0x1ab5   : > { %v14261_v56 = vpop.f32.mrb[187].mxu0  ;;  %v6450_v44 = vadd.f32 %v6386_v41, %v14212_v27  ;;  %v6452_v57 = vadd.f32 %v6388_v45, %v14214_v58  ;;  %v6389_v5 = vmul.f32 %v6325_v2, %v14218_v53  ;;  %v6264_v21 = vmul.f32 0.044715, %v14226_v34 }
0x1ab6   : > { %v10092_v12 = vpop.eup %10091  ;;  %10107 = vtanh.f32 %v6513_v52  ;;  %v6515_v7 = vmul.f32 0.7978846, %v6451_v32  ;;  %v6391_v25 = vmul.f32 %v6327_v62, %v14220_v61  ;;  %v6326_v40 = vmul.f32 %v6262_v36, %v14224_v4 }
0x1ab7   : > { %v10094_v15 = vpop.eup %10093  ;;  %v6633_v50 = vadd.f32 1.0, %v10092_v12  ;;  %v6514_v48 = vmul.f32 0.7978846, %v6450_v44  ;;  %v6516_v54 = vmul.f32 0.7978846, %v6452_v57  ;;  %v6453_v14 = vadd.f32 %v6389_v5, %v14218_v53 }
0x1ab8   : > { %v14270_v41 = vpop.eup %10095  ;;  %v6635_v45 = vadd.f32 1.0, %v10094_v15  ;;  %10109 = vtanh.f32 %v6515_v7  ;;  %v6455_v2 = vadd.f32 %v6391_v25, %v14220_v61  ;;  %v6390_v1 = vmul.f32 %v6326_v40, %v14224_v4 }
0x1ab9   : > { %v14274_v52 = vpop.eup %10097  ;;  %v14277_v62 = vmul.f32 %v6633_v50, %v14180_v8  ;;  %10111 = vtanh.f32 %v6514_v48  ;;  %v6517_v36 = vmul.f32 0.7978846, %v6453_v14  ;;  %v6328_v12 = vmul.f32 %v6264_v21, %v14226_v34  ;;  %v14280_v32 = vpop.f32.mrb[156].mxu1 }
0x1aba   : > { %15693 = vst [vmem:[#allocation111_spill] sm:$0xff] %v14280_v32  ;;  %v14282_v44 = vpop.f32.mrb[188].mxu0  ;;  %v10100_v57 = vpop.eup %10099  ;;  %v14285_v15 = vmul.f32 %v6635_v45, %v14182_v59  ;;  %10113 = vtanh.f32 %v6516_v54  ;;  %v6519_v5 = vmul.f32 0.7978846, %v6455_v2  ;;  %v6454_v7 = vadd.f32 %v6390_v1, %v14224_v4 }
0x1abb   : > { %15694 = vst [vmem:[#allocation109_spill] sm:$0xff] %v14282_v44  ;;  %v14288_v25 = vpop.f32.mrb[157].mxu1  ;;  %v14290_v50 = vpop.f32.mrb[189].mxu0  ;;  %v6637_v14 = vadd.f32 1.0, %v10100_v57  ;;  %10115 = vtanh.f32 %v6517_v36  ;;  %v6392_v21 = vmul.f32 %v6328_v12, %v14226_v34  ;;  %v6265_v8 = vmul.f32 0.044715, %v14238_v26 }
0x1abc   : > { %15695 = vst [vmem:[#allocation110_spill] sm:$0xff] %v14288_v25  ;;  %v10102_v48 = vpop.eup %10101  ;;  %v14294_v40 = vpop.f32.mrb[158].mxu1  ;;  %10117 = vtanh.f32 %v6519_v5  ;;  %v6518_v1 = vmul.f32 0.7978846, %v6454_v7  ;;  %v6267_v45 = vmul.f32 0.044715, %v14240_v51 }
0x1abd   : > { %v14296_v33 = vpop.f32.mrb[190].mxu0  ;;  %v14298_v59 = vpop.eup %10103  ;;  %v6639_v54 = vadd.f32 1.0, %v10102_v48  ;;  %v14306_v36 = vmul.f32 %v6637_v14, %v14190_v19  ;;  %v6456_v12 = vadd.f32 %v6392_v21, %v14226_v34  ;;  %v6329_v57 = vmul.f32 %v6265_v8, %v14238_v26 }
0x1abe   : > { %v14301_v2 = vpop.f32.mrb[159].mxu1  ;;  %v14303_v24 = vpop.eup %10105  ;;  %v6266_v18 = vmul.f32 0.044715, %v14245_v39  ;;  %10119 = vtanh.f32 %v6518_v1  ;;  %v6331_v7 = vmul.f32 %v6267_v45, %v14240_v51  ;;  %v6268_v48 = vmul.f32 0.044715, %v14247_v37 }
0x1abf   : > { %v14311_v49 = vpop.f32.mrb[191].mxu0  ;;  %v14314_v5 = vmul.f32 %v6639_v54, %v14192_v9  ;;  %v6520_v22 = vmul.f32 0.7978846, %v6456_v12  ;;  %v6393_v19 = vmul.f32 %v6329_v57, %v14238_v26  ;;  %v6269_v21 = vmul.f32 0.044715, %v14252_v6 }
0x1ac0   : > { %v6330_v14 = vmul.f32 %v6266_v18, %v14245_v39  ;;  %v14321_v8 = vpop.eup %10107  ;;  %v6395_v38 = vmul.f32 %v6331_v7, %v14240_v51  ;;  %v6332_v11 = vmul.f32 %v6268_v48, %v14247_v37  ;;  %v6271_v9 = vmul.f32 0.044715, %v14254_v0 }
0x1ac1   : > { %v6270_v54 = vmul.f32 0.044715, %v14259_v55  ;;  %10121 = vtanh.f32 %v6520_v22  ;;  %v6457_v1 = vadd.f32 %v6393_v19, %v14238_v26  ;;  %v6333_v12 = vmul.f32 %v6269_v21, %v14252_v6 }
0x1ac2   : > { %v6394_v45 = vmul.f32 %v6330_v14, %v14245_v39  ;;  %v14330_v18 = vpop.eup %10109  ;;  %v6459_v57 = vadd.f32 %v6395_v38, %v14240_v51  ;;  %v6396_v20 = vmul.f32 %v6332_v11, %v14247_v37  ;;  %v6335_v7 = vmul.f32 %v6271_v9, %v14254_v0 }
0x1ac3   : > { %v6334_v48 = vmul.f32 %v6270_v54, %v14259_v55  ;;  %v14336_v47 = vpop.eup %10111  ;;  %v6521_v30 = vmul.f32 0.7978846, %v6457_v1  ;;  %v6397_v19 = vmul.f32 %v6333_v12, %v14252_v6  ;;  %v6272_v14 = vmul.f32 0.044715, %v14261_v56 }
0x1ac4   : > { %v6458_v22 = vadd.f32 %v6394_v45, %v14245_v39  ;;  %v14341_v21 = vpop.eup %10113  ;;  %v6523_v13 = vmul.f32 0.7978846, %v6459_v57  ;;  %v6460_v38 = vadd.f32 %v6396_v20, %v14247_v37  ;;  %v6399_v11 = vmul.f32 %v6335_v7, %v14254_v0 }
0x1ac5   : > { %v6398_v9 = vmul.f32 %v6334_v48, %v14259_v55  ;;  %v14346_v17 = vpop.eup %10115  ;;  %10123 = vtanh.f32 %v6521_v30  ;;  %v6461_v1 = vadd.f32 %v6397_v19, %v14252_v6  ;;  %v6336_v45 = vmul.f32 %v6272_v14, %v14261_v56 }
0x1ac6   : > { %v6522_v54 = vmul.f32 0.7978846, %v6458_v22  ;;  %v14350_v12 = vpop.eup %10117  ;;  %10125 = vtanh.f32 %v6523_v13  ;;  %v6524_v31 = vmul.f32 0.7978846, %v6460_v38  ;;  %v6463_v57 = vadd.f32 %v6399_v11, %v14254_v0 }
0x1ac7   : > { %v6462_v20 = vadd.f32 %v6398_v9, %v14259_v55  ;;  %v6525_v7 = vmul.f32 0.7978846, %v6461_v1  ;;  %v6400_v48 = vmul.f32 %v6336_v45, %v14261_v56  ;;  %v6273_v46 = vmul.f32 0.044715, %v14280_v32 }
0x1ac8   : > { %10127 = vtanh.f32 %v6522_v54  ;;  %v14356_v30 = vpop.eup %10119  ;;  %v6527_v22 = vmul.f32 0.7978846, %v6463_v57  ;;  %v6275_v14 = vmul.f32 0.044715, %v14282_v44  ;;  %v6274_v11 = vmul.f32 0.044715, %v14288_v25 }
0x1ac9   : > { %10129 = vtanh.f32 %v6524_v31  ;;  %v6526_v19 = vmul.f32 0.7978846, %v6462_v20  ;;  %v6464_v13 = vadd.f32 %v6400_v48, %v14261_v56  ;;  %v6337_v38 = vmul.f32 %v6273_v46, %v14280_v32 }
0x1aca   : > { %10131 = vtanh.f32 %v6525_v7  ;;  %v6339_v9 = vmul.f32 %v6275_v14, %v14282_v44  ;;  %v6276_v54 = vmul.f32 0.044715, %v14290_v50  ;;  %v6277_v1 = vmul.f32 0.044715, %v14294_v40 }
0x1acb   : > { %10133 = vtanh.f32 %v6527_v22  ;;  %v14365_v45 = vpop.eup %10121  ;;  %v6528_v31 = vmul.f32 0.7978846, %v6464_v13  ;;  %v6401_v57 = vmul.f32 %v6337_v38, %v14280_v32  ;;  %v6338_v20 = vmul.f32 %v6274_v11, %v14288_v25 }
0x1acc   : > { %10135 = vtanh.f32 %v6526_v19  ;;  %v6403_v7 = vmul.f32 %v6339_v9, %v14282_v44  ;;  %v6340_v46 = vmul.f32 %v6276_v54, %v14290_v50  ;;  %v6341_v48 = vmul.f32 %v6277_v1, %v14294_v40 }
0x1acd   : > { %v6279_v22 = vmul.f32 0.044715, %v14296_v33  ;;  %10137 = vtanh.f32 %v6528_v31  ;;  %v6465_v14 = vadd.f32 %v6401_v57, %v14280_v32  ;;  %v6402_v43 = vmul.f32 %v6338_v20, %v14288_v25 }
0x1ace   : > { %v6278_v19 = vmul.f32 0.044715, %v14301_v2  ;;  %v6467_v13 = vadd.f32 %v6403_v7, %v14282_v44  ;;  %v6404_v38 = vmul.f32 %v6340_v46, %v14290_v50  ;;  %v6405_v11 = vmul.f32 %v6341_v48, %v14294_v40 }
0x1acf   : > { %v6343_v9 = vmul.f32 %v6279_v22, %v14296_v33  ;;  %v14380_v54 = vpop.eup %10123  ;;  %v6529_v1 = vmul.f32 0.7978846, %v6465_v14  ;;  %v6466_v0 = vadd.f32 %v6402_v43, %v14288_v25  ;;  %v6280_v57 = vmul.f32 0.044715, %v14311_v49 }
0x1ad0   : > { %v6342_v31 = vmul.f32 %v6278_v19, %v14301_v2  ;;  %v14385_v20 = vpop.eup %10125  ;;  %v6531_v32 = vmul.f32 0.7978846, %v6467_v13  ;;  %v6468_v7 = vadd.f32 %v6404_v38, %v14290_v50  ;;  %v6469_v46 = vadd.f32 %v6405_v11, %v14294_v40 }
0x1ad1   : > { %15696 = vst [vmem:[#allocation108_spill] sm:$0xff] %v14385_v20  ;;  %v6407_v48 = vmul.f32 %v6343_v9, %v14296_v33  ;;  %10139 = vtanh.f32 %v6529_v1  ;;  %v6530_v22 = vmul.f32 0.7978846, %v6466_v0  ;;  %v6344_v43 = vmul.f32 %v6280_v57, %v14311_v49 }
0x1ad2   : > { %v14390_v44 = vpop.eup %10127  ;;  %v6406_v14 = vmul.f32 %v6342_v31, %v14301_v2  ;;  %10141 = vtanh.f32 %v6531_v32  ;;  %v6532_v25 = vmul.f32 0.7978846, %v6468_v7  ;;  %v6533_v20 = vmul.f32 0.7978846, %v6469_v46 }
0x1ad3   : > { %v14394_v19 = vpop.eup %10129  ;;  %v6471_v13 = vadd.f32 %v6407_v48, %v14296_v33  ;;  %10143 = vtanh.f32 %v6530_v22  ;;  %v6408_v9 = vmul.f32 %v6344_v43, %v14311_v49  ;;  %v6186_v0 = vmul.f32 0.5, %v14184_v63 }
0x1ad4   : > { %v14397_v38 = vpop.eup %10131  ;;  %v6470_v11 = vadd.f32 %v6406_v14, %v14301_v2  ;;  %10145 = vtanh.f32 %v6532_v25  ;;  %v6190_v57 = vmul.f32 0.5, %v14196_v60  ;;  %v6634_v32 = vadd.f32 1.0, %v14270_v41 }
0x1ad5   : > { %v14402_v1 = vpop.eup %10133  ;;  %v6535_v31 = vmul.f32 0.7978846, %v6471_v13  ;;  %10147 = vtanh.f32 %v6533_v20  ;;  %v6472_v48 = vadd.f32 %v6408_v9, %v14311_v49  ;;  %v6638_v22 = vadd.f32 1.0, %v14298_v59 }
0x1ad6   : > { %v14406_v7 = vpop.eup %10135  ;;  %v6534_v46 = vmul.f32 0.7978846, %v6470_v11  ;;  %v6698_v14 = vmul.f32 %v6634_v32, %v6186_v0  ;;  %v6188_v63 = vmul.f32 0.5, %v14186_v42  ;;  %v6192_v43 = vmul.f32 0.5, %v14198_v23 }
0x1ad7   : > { %10149 = vtanh.f32 %v6535_v31  ;;  %v14412_v25 = vpop.eup %10137  ;;  %v6536_v60 = vmul.f32 0.7978846, %v6472_v48  ;;  %v6702_v13 = vmul.f32 %v6638_v22, %v6190_v57  ;;  %v6636_v41 = vadd.f32 1.0, %v14274_v52 }
0x1ad8   : > { %10151 = vtanh.f32 %v6534_v46  ;;  %v6640_v20 = vadd.f32 1.0, %v14303_v24  ;;  %v6761_v11 = vpack.c.bf16 %v14306_v36, %v14277_v62  ;;  %v6763_v59 = vpack.c.bf16 %v14314_v5, %v14285_v15 }
0x1ad9   : > { %v6194_v9 = vmul.f32 0.5, %v14212_v27  ;;  %10153 = vtanh.f32 %v6536_v60  ;;  %v6762_v42 = vpack.c.bf16 %v6702_v13, %v6698_v14  ;;  %v6700_v23 = vmul.f32 %v6636_v41, %v6188_v63 }
0x1ada   : > { %v6198_v0 = vmul.f32 0.5, %v14224_v4  ;;  %v6704_v31 = vmul.f32 %v6640_v20, %v6192_v43  ;;  %v6642_v57 = vadd.f32 1.0, %v14336_v47  ;;  %v6646_v52 = vadd.f32 1.0, %v14356_v30 }
0x1adb   : > { %v6196_v24 = vmul.f32 0.5, %v14214_v58  ;;  %v14425_v32 = vpop.eup %10139  ;;  %7081 = vmatprep.mubr.bf16.mxu1 %v6762_v42  ;;  %v6200_v62 = vmul.f32 0.5, %v14226_v34  ;;  %v6644_v15 = vadd.f32 1.0, %v14341_v21  ;;  %v6648_v27 = vadd.f32 1.0, %v14365_v45 }
0x1adc   : > { %v6193_v36 = vmul.f32 0.5, %v14206_v35  ;;  %v14431_v5 = vpop.eup %10141  ;;  %v6764_v4 = vpack.c.bf16 %v6704_v31, %v6700_v23  ;;  %7082 = vmatmul.mubr.bf16.vlgmr.msra.gmra.mrb[176].mxu1 %v6761_v11  ;;  %v6706_v47 = vmul.f32 %v6642_v57, %v6194_v9  ;;  %v6710_v46 = vmul.f32 %v6646_v52, %v6198_v0 }
0x1add   : > { %v6197_v30 = vmul.f32 0.5, %v14218_v53  ;;  %v14434_v58 = vpop.eup %10143  ;;  %v6708_v48 = vmul.f32 %v6644_v15, %v6196_v24  ;;  %v6712_v22 = vmul.f32 %v6648_v27, %v6200_v62  ;;  %v6641_v34 = vadd.f32 1.0, %v14321_v8  ;;  %v14438_v14 = vpop.f32.mrb[160].mxu1  ;;  %8899 = vmatpush3.bf16.msra.mxu1 %v14107_v28 }
0x1ade   : > { %v6645_v21 = vadd.f32 1.0, %v14346_v17  ;;  %v14440_v45 = vpop.f32.mrb[192].mxu0  ;;  %v14443_v35 = vpop.eup %10145  ;;  %7178 = vmatprep.mubr.bf16.mxu0 %v6764_v4  ;;  %v6766_v63 = vpack.c.bf16 %v6710_v46, %v6706_v47  ;;  %v6195_v53 = vmul.f32 0.5, %v14208_v29  ;;  %v6199_v43 = vmul.f32 0.5, %v14220_v61  ;;  %8892 = vmatprep.subr.bf16.mxu1 %v14112_v10 }
0x1adf   : > { %v6643_v60 = vadd.f32 1.0, %v14330_v18  ;;  %v14448_v13 = vpop.f32.mrb[161].mxu1  ;;  %v14450_v8 = vpop.f32.mrb[193].mxu0  ;;  %7179 = vmatmul.mubr.bf16.vlgmr.msra.gmra.mrb[208].mxu0 %v6763_v59  ;;  %v6768_v28 = vpack.c.bf16 %v6712_v22, %v6708_v48  ;;  %v6705_v41 = vmul.f32 %v6641_v34, %v6193_v36  ;;  %v6647_v11 = vadd.f32 1.0, %v14350_v12 }
0x1ae0   : > { %v14453_v17 = vpop.eup %10147  ;;  %v6709_v20 = vmul.f32 %v6645_v21, %v6197_v30  ;;  %v14456_v9 = vpop.f32.mrb[162].mxu1  ;;  %7089 = vmatprep.mubr.bf16.mxu1 %v6766_v63  ;;  %v6202_v42 = vmul.f32 0.5, %v14245_v39  ;;  %v6206_v10 = vmul.f32 0.5, %v14259_v55  ;;  %v6650_v23 = vadd.f32 1.0, %v14390_v44 }
0x1ae1   : > { %v14458_v29 = vpop.f32.mrb[194].mxu0  ;;  %v14460_v61 = vpop.eup %10149  ;;  %v6707_v18 = vmul.f32 %v6643_v60, %v6195_v53  ;;  %7186 = vmatprep.mubr.bf16.mxu0 %v6768_v28  ;;  %v6711_v57 = vmul.f32 %v6647_v11, %v6199_v43  ;;  %v6654_v52 = vadd.f32 1.0, %v14406_v7  ;;  %v6204_v24 = vmul.f32 0.5, %v14247_v37  ;;  %8900 = vmatpush3.bf16.msra.mxu1 %v14116_v3  ;;  %v15701_v60 = vld [vmem:[#allocation110_spill] sm:$0xff] }
0x1ae2   : > { %v14465_v59 = vpop.f32.mrb[163].mxu1  ;;  %v14467_v0 = vpop.f32.mrb[195].mxu0  ;;  %v6765_v12 = vpack.c.bf16 %v6709_v20, %v6705_v41  ;;  %v6714_v62 = vmul.f32 %v6650_v23, %v6202_v42  ;;  %v6208_v39 = vmul.f32 0.5, %v14261_v56  ;;  %v6652_v55 = vadd.f32 1.0, %v14394_v19  ;;  %8893 = vmatprep.subr.bf16.mxu1 %v14122_v16  ;;  %v15698_v16 = vld [vmem:[#allocation108_spill] sm:$0xff] }
0x1ae3   : > { %v10152_v31 = vpop.eup %10151  ;;  %v6656_v44 = vadd.f32 1.0, %v14412_v25  ;;  %v6767_v27 = vpack.c.bf16 %v6711_v57, %v6707_v18  ;;  %v6718_v36 = vmul.f32 %v6654_v52, %v6206_v10  ;;  %v6201_v4 = vmul.f32 0.5, %v14238_v26  ;;  %v15697_v25 = vld [vmem:[#allocation92_spill] sm:$0xff]  ;;  %v15699_v26 = vld [vmem:[#allocation62_spill] sm:$0xff] }
0x1ae4   : > { %v10154_v15 = vpop.eup %10153  ;;  %v6205_v7 = vmul.f32 0.5, %v14252_v6  ;;  %7090 = vmatmul.mubr.bf16.gmra.mrb[180].mxu1 %v6765_v12  ;;  %v6716_v37 = vmul.f32 %v6652_v55, %v6204_v24  ;;  %v6649_v3 = vadd.f32 1.0, %v14380_v54  ;;  %v6653_v56 = vadd.f32 1.0, %v14397_v38 }
0x1ae5   : > { %v6720_v47 = vmul.f32 %v6656_v44, %v6208_v39  ;;  %v6770_v46 = vpack.c.bf16 %v6718_v36, %v6714_v62  ;;  %v6203_v19 = vmul.f32 0.5, %v14240_v51  ;;  %v6207_v30 = vmul.f32 0.5, %v15697_v25  ;;  %v14483_v22 = vpop.f32.mrb[164].mxu1  ;;  %v14485_v34 = vpop.f32.mrb[196].mxu0  ;;  %8901 = vmatpush3.bf16.msra.mxu1 %v15699_v26  ;;  %v15700_v51 = vld [vmem:[#allocation36_spill] sm:$0xff]  ;;  %v15702_v62 = vld [vmem:[#allocation79_spill] sm:$0xff] }
0x1ae6   : > { %v6651_v48 = vadd.f32 1.0, %v15698_v16  ;;  %v6713_v21 = vmul.f32 %v6649_v3, %v6201_v4  ;;  %v6717_v63 = vmul.f32 %v6653_v56, %v6205_v7  ;;  %v6655_v54 = vadd.f32 1.0, %v14402_v1  ;;  %v14489_v53 = vpop.f32.mrb[165].mxu1  ;;  %v14491_v38 = vpop.f32.mrb[197].mxu0  ;;  %8894 = vmatprep.subr.bf16.mxu1 %v15700_v51  ;;  %v15703_v44 = vld [vmem:[#allocation111_spill] sm:$0xff]  ;;  %v15704_v36 = vld [vmem:[#allocation77_spill] sm:$0xff] }
0x1ae7   : > { %v6772_v6 = vpack.c.bf16 %v6720_v47, %v6716_v37  ;;  %7187 = vmatmul.mubr.bf16.gmra.mrb[212].mxu0 %v6767_v27  ;;  %7097 = vmatprep.mubr.bf16.mxu1 %v6770_v46  ;;  %v6210_v28 = vmul.f32 0.5, %v15701_v60  ;;  %v6214_v41 = vmul.f32 0.5, %v14301_v2  ;;  %v6658_v20 = vadd.f32 1.0, %v14434_v58  ;;  %v14497_v11 = vpop.f32.mrb[166].mxu1  ;;  %v14499_v18 = vpop.f32.mrb[198].mxu0 }
0x1ae8   : > { %v6715_v43 = vmul.f32 %v6651_v48, %v6203_v19  ;;  %v6769_v1 = vpack.c.bf16 %v6717_v63, %v6713_v21  ;;  %v6719_v42 = vmul.f32 %v6655_v54, %v6207_v30  ;;  %v6662_v10 = vadd.f32 1.0, %v10152_v31  ;;  %v14502_v12 = vpop.f32.mrb[167].mxu1  ;;  %v14504_v57 = vpop.f32.mrb[199].mxu0 }
0x1ae9   : > { %7194 = vmatprep.mubr.bf16.mxu0 %v6772_v6  ;;  %v6212_v23 = vmul.f32 0.5, %v14290_v50  ;;  %v6722_v52 = vmul.f32 %v6658_v20, %v6210_v28  ;;  %v6216_v24 = vmul.f32 0.5, %v14311_v49  ;;  %v6660_v2 = vadd.f32 1.0, %v14443_v35  ;;  %8902 = vmatpush3.bf16.msra.mxu1 %v15702_v62  ;;  %v15705_v35 = vld [vmem:[#allocation109_spill] sm:$0xff] }
0x1aea   : > { %v6664_v58 = vadd.f32 1.0, %v10154_v15  ;;  %v6771_v39 = vpack.c.bf16 %v6719_v42, %v6715_v43  ;;  %v6726_v55 = vmul.f32 %v6662_v10, %v6214_v41  ;;  %v6209_v27 = vmul.f32 0.5, %v15703_v44  ;;  %8895 = vmatprep.subr.bf16.mxu1 %v15704_v36  ;;  %v15711_v44 = vld [vmem:[#allocation76_spill] sm:$0xff] }
0x1aeb   : > { %v6213_v31 = vmul.f32 0.5, %v14294_v40  ;;  %v6724_v50 = vmul.f32 %v6660_v2, %v6212_v23  ;;  %v6657_v7 = vadd.f32 1.0, %v14425_v32  ;;  %v6661_v37 = vadd.f32 1.0, %v14453_v17  ;;  %v15706_v32 = vld [vmem:[#allocation63_spill] sm:$0xff]  ;;  %v15710_v2 = vld [vmem:[#allocation78_spill] sm:$0xff] }
0x1aec   : > { %v6728_v4 = vmul.f32 %v6664_v58, %v6216_v24  ;;  %7098 = vmatmul.mubr.bf16.gmra.mrb[184].mxu1 %v6769_v1  ;;  %v6774_v49 = vpack.c.bf16 %v6726_v55, %v6722_v52  ;;  %v6211_v15 = vmul.f32 0.5, %v15705_v35  ;;  %v6215_v47 = vmul.f32 0.5, %v14296_v33 }
0x1aed   : > { %v6659_v3 = vadd.f32 1.0, %v14431_v5  ;;  %v6721_v46 = vmul.f32 %v6657_v7, %v6209_v27  ;;  %v6725_v19 = vmul.f32 %v6661_v37, %v6213_v31  ;;  %v6663_v40 = vadd.f32 1.0, %v14460_v61  ;;  %v14518_v25 = vpop.f32.mrb[168].mxu1  ;;  %v14520_v30 = vpop.f32.mrb[200].mxu0  ;;  %8903 = vmatpush3.bf16.msra.mxu1 %v15706_v32  ;;  %v15707_v5 = vld [vmem:[#allocation61_spill] sm:$0xff] }
0x1aee   : > { %v6776_v56 = vpack.c.bf16 %v6728_v4, %v6724_v50  ;;  %7105 = vmatprep.mubr.bf16.mxu1 %v6774_v49  ;;  %v6281_v16 = vmul.f32 0.044715, %v14438_v14  ;;  %v6283_v48 = vmul.f32 0.044715, %v14440_v45  ;;  %v6282_v33 = vmul.f32 0.044715, %v14448_v13  ;;  %8896 = vmatprep.subr.bf16.mxu1 %v15707_v5 }
0x1aef   : > { %v6723_v17 = vmul.f32 %v6659_v3, %v6211_v15  ;;  %7195 = vmatmul.mubr.bf16.gmra.mrb[216].mxu0 %v6771_v39  ;;  %v6773_v26 = vpack.c.bf16 %v6725_v19, %v6721_v46  ;;  %v6727_v6 = vmul.f32 %v6663_v40, %v6215_v47  ;;  %v6284_v61 = vmul.f32 0.044715, %v14450_v8  ;;  %v14529_v63 = vpop.f32.mrb[169].mxu1  ;;  %v14531_v54 = vpop.f32.mrb[201].mxu0  ;;  %v15713_v19 = vld [vmem:[#allocation95_spill] sm:$0xff] }
0x1af0   : > { %v6285_v21 = vmul.f32 0.044715, %v14456_v9  ;;  %15708 = vst [vmem:[#allocation127_spill] sm:$0xff] %v14531_v54  ;;  %7202 = vmatprep.mubr.bf16.mxu0 %v6776_v56  ;;  %v6345_v51 = vmul.f32 %v6281_v16, %v14438_v14  ;;  %v6347_v43 = vmul.f32 %v6283_v48, %v14440_v45  ;;  %v6346_v60 = vmul.f32 %v6282_v33, %v14448_v13  ;;  %v14537_v41 = vpop.f32.mrb[170].mxu1  ;;  %v14539_v20 = vpop.f32.mrb[202].mxu0  ;;  %v15714_v48 = vld [vmem:[#allocation93_spill] sm:$0xff] }
0x1af1   : > { %v6287_v28 = vmul.f32 0.044715, %v14458_v29  ;;  %v6775_v1 = vpack.c.bf16 %v6727_v6, %v6723_v17  ;;  %v6348_v42 = vmul.f32 %v6284_v61, %v14450_v8  ;;  %v6286_v23 = vmul.f32 0.044715, %v14465_v59  ;;  %v14544_v52 = vpop.f32.mrb[171].mxu1  ;;  %v14546_v24 = vpop.f32.mrb[203].mxu0  ;;  %8904 = vmatpush3.bf16.msra.mxu1 %v15710_v2 }
0x1af2   : > { %v6349_v10 = vmul.f32 %v6285_v21, %v14456_v9  ;;  %15709 = vst [vmem:[#allocation125_spill] sm:$0xff] %v14546_v24  ;;  %v6409_v58 = vmul.f32 %v6345_v51, %v14438_v14  ;;  %v6411_v62 = vmul.f32 %v6347_v43, %v14440_v45  ;;  %v6410_v39 = vmul.f32 %v6346_v60, %v14448_v13  ;;  %v15717_v2 = vld [vmem:[#allocation94_spill] sm:$0xff] }
0x1af3   : > { %v6351_v55 = vmul.f32 %v6287_v28, %v14458_v29  ;;  %8897 = vmatprep.subr.bf16.mxu1 %v15711_v44  ;;  %v6412_v27 = vmul.f32 %v6348_v42, %v14450_v8  ;;  %v6350_v36 = vmul.f32 %v6286_v23, %v14465_v59  ;;  %v6288_v50 = vmul.f32 0.044715, %v14467_v0 }
0x1af4   : > { %v6413_v31 = vmul.f32 %v6349_v10, %v14456_v9  ;;  %7106 = vmatmul.mubr.bf16.gmra.mrb[188].mxu1 %v6773_v26  ;;  %v6473_v4 = vadd.f32 %v6409_v58, %v14438_v14  ;;  %v6475_v7 = vadd.f32 %v6411_v62, %v14440_v45  ;;  %v6474_v37 = vadd.f32 %v6410_v39, %v14448_v13 }
0x1af5   : > { %v6415_v49 = vmul.f32 %v6351_v55, %v14458_v29  ;;  %v6476_v35 = vadd.f32 %v6412_v27, %v14450_v8  ;;  %v6414_v47 = vmul.f32 %v6350_v36, %v14465_v59  ;;  %v6352_v3 = vmul.f32 %v6288_v50, %v14467_v0  ;;  %v14566_v56 = vpop.f32.mrb[172].mxu1  ;;  %v14568_v46 = vpop.f32.mrb[204].mxu0  ;;  %8905 = vmatpush3.bf16.msra.mxu1 %v15713_v19 }
0x1af6   : > { %v6477_v15 = vadd.f32 %v6413_v31, %v14456_v9  ;;  %15712 = vst [vmem:[#allocation126_spill] sm:$0xff] %v14568_v46  ;;  %v6537_v40 = vmul.f32 0.7978846, %v6473_v4  ;;  %v6539_v32 = vmul.f32 0.7978846, %v6475_v7  ;;  %8898 = vmatprep.subr.bf16.mxu1 %v15714_v48  ;;  %v14575_v61 = vpop.f32.mrb[173].mxu1 }
0x1af7   : > { %v6538_v17 = vmul.f32 0.7978846, %v6474_v37  ;;  %v6479_v16 = vadd.f32 %v6415_v49, %v14458_v29  ;;  %7203 = vmatmul.mubr.bf16.gmra.mrb[220].mxu0 %v6775_v1  ;;  %v6540_v33 = vmul.f32 0.7978846, %v6476_v35  ;;  %v6478_v26 = vadd.f32 %v6414_v47, %v14465_v59  ;;  %v14577_v21 = vpop.f32.mrb[205].mxu0  ;;  %v14583_v10 = vpop.f32.mrb[174].mxu1 }
0x1af8   : > { %v6541_v5 = vmul.f32 0.7978846, %v6477_v15  ;;  %v6416_v6 = vmul.f32 %v6352_v3, %v14467_v0  ;;  %15715 = vst [vmem:[#allocation124_spill] sm:$0xff] %v14577_v21  ;;  %10155 = vtanh.f32 %v6537_v40  ;;  %v6289_v43 = vmul.f32 0.044715, %v14483_v22  ;;  %v14585_v23 = vpop.f32.mrb[206].mxu0 }
0x1af9   : > { %v6543_v51 = vmul.f32 0.7978846, %v6479_v16  ;;  %v6291_v60 = vmul.f32 0.044715, %v14485_v34  ;;  %10157 = vtanh.f32 %v6539_v32  ;;  %v6542_v28 = vmul.f32 0.7978846, %v6478_v26  ;;  %8906 = vmatpush3.bf16.msra.mxu1 %v15717_v2 }
0x1afa   : > { %v6480_v1 = vadd.f32 %v6416_v6, %v14467_v0  ;;  %v6290_v42 = vmul.f32 0.044715, %v14489_v53  ;;  %15716 = vst [vmem:[#allocation67_spill] sm:$0xff] %v14585_v23  ;;  %10159 = vtanh.f32 %v6538_v17  ;;  %v6353_v58 = vmul.f32 %v6289_v43, %v14483_v22  ;;  %v14591_v55 = vpop.f32.mrb[175].mxu1  ;;  %v14593_v44 = vpop.f32.mrb[207].mxu0 }
0x1afb   : > { %v6355_v62 = vmul.f32 %v6291_v60, %v14485_v34  ;;  %v6292_v39 = vmul.f32 0.044715, %v14491_v38  ;;  %10161 = vtanh.f32 %v6540_v33  ;;  %v6293_v36 = vmul.f32 0.044715, %v14497_v11 }
0x1afc   : > { %v6544_v27 = vmul.f32 0.7978846, %v6480_v1  ;;  %v6354_v31 = vmul.f32 %v6290_v42, %v14489_v53  ;;  %10163 = vtanh.f32 %v6541_v5  ;;  %v6417_v50 = vmul.f32 %v6353_v58, %v14483_v22 }
0x1afd   : > { %v6419_v4 = vmul.f32 %v6355_v62, %v14485_v34  ;;  %v6356_v7 = vmul.f32 %v6292_v39, %v14491_v38  ;;  %10165 = vtanh.f32 %v6543_v51  ;;  %v6357_v49 = vmul.f32 %v6293_v36, %v14497_v11 }
0x1afe   : > { %v6418_v37 = vmul.f32 %v6354_v31, %v14489_v53  ;;  %v6295_v35 = vmul.f32 0.044715, %v14499_v18  ;;  %10167 = vtanh.f32 %v6542_v28  ;;  %v6481_v15 = vadd.f32 %v6417_v50, %v14483_v22 }
0x1aff   : > { %v6483_v47 = vadd.f32 %v6419_v4, %v14485_v34  ;;  %v6420_v3 = vmul.f32 %v6356_v7, %v14491_v38  ;;  %10169 = vtanh.f32 %v6544_v27  ;;  %v6421_v40 = vmul.f32 %v6357_v49, %v14497_v11 }
0x1b00   : > { %v6482_v19 = vadd.f32 %v6418_v37, %v14489_v53  ;;  %v6359_v32 = vmul.f32 %v6295_v35, %v14499_v18  ;;  %v6545_v17 = vmul.f32 0.7978846, %v6481_v15  ;;  %v6294_v33 = vmul.f32 0.044715, %v14502_v12 }
0x1b01   : > { %v6547_v16 = vmul.f32 0.7978846, %v6483_v47  ;;  %v6484_v48 = vadd.f32 %v6420_v3, %v14491_v38  ;;  %v6485_v26 = vadd.f32 %v6421_v40, %v14497_v11  ;;  %v6296_v51 = vmul.f32 0.044715, %v14504_v57 }
0x1b02   : > { %v6546_v5 = vmul.f32 0.7978846, %v6482_v19  ;;  %v6423_v6 = vmul.f32 %v6359_v32, %v14499_v18  ;;  %v14614_v43 = vpop.eup %10155  ;;  %10171 = vtanh.f32 %v6545_v17  ;;  %v6358_v28 = vmul.f32 %v6294_v33, %v14502_v12 }
0x1b03   : > { %v6548_v60 = vmul.f32 0.7978846, %v6484_v48  ;;  %v6297_v1 = vmul.f32 0.044715, %v14518_v25  ;;  %v14618_v42 = vpop.eup %10157  ;;  %10173 = vtanh.f32 %v6547_v16  ;;  %v6549_v2 = vmul.f32 0.7978846, %v6485_v26 }
0x1b04   : > { %v6487_v58 = vadd.f32 %v6423_v6, %v14499_v18  ;;  %v6360_v62 = vmul.f32 %v6296_v51, %v14504_v57  ;;  %v14622_v39 = vpop.eup %10159  ;;  %10175 = vtanh.f32 %v6546_v5  ;;  %v6422_v27 = vmul.f32 %v6358_v28, %v14502_v12 }
0x1b05   : > { %v6361_v31 = vmul.f32 %v6297_v1, %v14518_v25  ;;  %v14627_v36 = vmul.f32 0.5, %v14520_v30  ;;  %v14629_v50 = vpop.eup %10161  ;;  %10177 = vtanh.f32 %v6548_v60  ;;  %v6299_v37 = vmul.f32 0.044715, %v14520_v30 }
0x1b06   : > { %v6551_v4 = vmul.f32 0.7978846, %v6487_v58  ;;  %v6424_v7 = vmul.f32 %v6360_v62, %v14504_v57  ;;  %v14633_v49 = vpop.eup %10163  ;;  %10179 = vtanh.f32 %v6549_v2  ;;  %v6486_v35 = vadd.f32 %v6422_v27, %v14502_v12 }
0x1b07   : > { %v6425_v15 = vmul.f32 %v6361_v31, %v14518_v25  ;;  %v6298_v47 = vmul.f32 0.044715, %v14529_v63  ;;  %v14638_v3 = vpop.eup %10165  ;;  %v6363_v40 = vmul.f32 %v6299_v37, %v14520_v30  ;;  %v6300_v32 = vmul.f32 0.044715, %v14531_v54 }
0x1b08   : > { %10181 = vtanh.f32 %v6551_v4  ;;  %v6488_v19 = vadd.f32 %v6424_v7, %v14504_v57  ;;  %v14643_v17 = vpop.eup %10167  ;;  %v6550_v16 = vmul.f32 0.7978846, %v6486_v35  ;;  %v6301_v5 = vmul.f32 0.044715, %v14537_v41 }
0x1b09   : > { %v6489_v48 = vadd.f32 %v6425_v15, %v14518_v25  ;;  %v6362_v33 = vmul.f32 %v6298_v47, %v14529_v63  ;;  %v14648_v26 = vpop.eup %10169  ;;  %v6427_v51 = vmul.f32 %v6363_v40, %v14520_v30  ;;  %v6364_v60 = vmul.f32 %v6300_v32, %v14531_v54 }
0x1b0a   : > { %v6552_v6 = vmul.f32 0.7978846, %v6488_v19  ;;  %v14653_v28 = vmul.f32 0.5, %v14539_v20  ;;  %10183 = vtanh.f32 %v6550_v16  ;;  %v6365_v58 = vmul.f32 %v6301_v5, %v14537_v41 }
0x1b0b   : > { %v6553_v1 = vmul.f32 0.7978846, %v6489_v48  ;;  %v6426_v2 = vmul.f32 %v6362_v33, %v14529_v63  ;;  %v6491_v62 = vadd.f32 %v6427_v51, %v14520_v30  ;;  %v6428_v27 = vmul.f32 %v6364_v60, %v14531_v54 }
0x1b0c   : > { %10185 = vtanh.f32 %v6552_v6  ;;  %v6303_v31 = vmul.f32 0.044715, %v14539_v20  ;;  %v14660_v4 = vpop.eup %10171  ;;  %v6429_v37 = vmul.f32 %v6365_v58, %v14537_v41  ;;  %v6302_v35 = vmul.f32 0.044715, %v14544_v52 }
0x1b0d   : > { %10187 = vtanh.f32 %v6553_v1  ;;  %v6490_v7 = vadd.f32 %v6426_v2, %v14529_v63  ;;  %v14665_v15 = vpop.eup %10173  ;;  %v6555_v47 = vmul.f32 0.7978846, %v6491_v62  ;;  %v6492_v19 = vadd.f32 %v6428_v27, %v14531_v54 }
0x1b0e   : > { %v6367_v30 = vmul.f32 %v6303_v31, %v14539_v20  ;;  %v6304_v40 = vmul.f32 0.044715, %v14546_v24  ;;  %v14670_v32 = vpop.eup %10175  ;;  %v6493_v48 = vadd.f32 %v6429_v37, %v14537_v41  ;;  %v6366_v33 = vmul.f32 %v6302_v35, %v14544_v52 }
0x1b0f   : > { %v6554_v16 = vmul.f32 0.7978846, %v6490_v7  ;;  %v6305_v5 = vmul.f32 0.044715, %v14566_v56  ;;  %v14675_v6 = vpop.eup %10177  ;;  %10189 = vtanh.f32 %v6555_v47  ;;  %v6556_v51 = vmul.f32 0.7978846, %v6492_v19 }
0x1b10   : > { %v6431_v60 = vmul.f32 %v6367_v30, %v14539_v20  ;;  %v6368_v1 = vmul.f32 %v6304_v40, %v14546_v24  ;;  %v14679_v2 = vpop.eup %10179  ;;  %v6557_v58 = vmul.f32 0.7978846, %v6493_v48  ;;  %v6430_v62 = vmul.f32 %v6366_v33, %v14544_v52 }
0x1b11   : > { %10191 = vtanh.f32 %v6554_v16  ;;  %v6369_v27 = vmul.f32 %v6305_v5, %v14566_v56  ;;  %v6307_v35 = vmul.f32 0.044715, %v14568_v46  ;;  %v6306_v30 = vmul.f32 0.044715, %v14575_v61 }
0x1b12   : > { %v14683_v31 = vpop.eup %10181  ;;  %10193 = vtanh.f32 %v6556_v51  ;;  %v6495_v7 = vadd.f32 %v6431_v60, %v14539_v20  ;;  %v6432_v37 = vmul.f32 %v6368_v1, %v14546_v24  ;;  %v6494_v47 = vadd.f32 %v6430_v62, %v14544_v52 }
0x1b13   : > { %10195 = vtanh.f32 %v6557_v58  ;;  %v6433_v19 = vmul.f32 %v6369_v27, %v14566_v56  ;;  %v6371_v48 = vmul.f32 %v6307_v35, %v14568_v46  ;;  %v6308_v33 = vmul.f32 0.044715, %v14577_v21 }
0x1b14   : > { %v6559_v40 = vmul.f32 0.7978846, %v6495_v7  ;;  %v6496_v16 = vadd.f32 %v6432_v37, %v14546_v24  ;;  %v14694_v5 = vpop.eup %10183  ;;  %v6558_v20 = vmul.f32 0.7978846, %v6494_v47  ;;  %v6370_v60 = vmul.f32 %v6306_v30, %v14575_v61 }
0x1b15   : > { %v6497_v51 = vadd.f32 %v6433_v19, %v14566_v56  ;;  %v6309_v1 = vmul.f32 0.044715, %v14583_v10  ;;  %v6435_v27 = vmul.f32 %v6371_v48, %v14568_v46  ;;  %v6372_v7 = vmul.f32 %v6308_v33, %v14577_v21 }
0x1b16   : > { %v14699_v58 = vpop.eup %10185  ;;  %10197 = vtanh.f32 %v6559_v40  ;;  %v6560_v62 = vmul.f32 0.7978846, %v6496_v16  ;;  %v6434_v47 = vmul.f32 %v6370_v60, %v14575_v61  ;;  %v6311_v40 = vmul.f32 0.044715, %v14585_v23 }
0x1b17   : > { %v14703_v37 = vpop.eup %10187  ;;  %10199 = vtanh.f32 %v6558_v20  ;;  %v6561_v35 = vmul.f32 0.7978846, %v6497_v51  ;;  %v6373_v19 = vmul.f32 %v6309_v1, %v14583_v10  ;;  %v6499_v30 = vadd.f32 %v6435_v27, %v14568_v46 }
0x1b18   : > { %10201 = vtanh.f32 %v6560_v62  ;;  %v6436_v24 = vmul.f32 %v6372_v7, %v14577_v21  ;;  %v6498_v16 = vadd.f32 %v6434_v47, %v14575_v61  ;;  %v6310_v33 = vmul.f32 0.044715, %v14591_v55 }
0x1b19   : > { %10203 = vtanh.f32 %v6561_v35  ;;  %v6437_v48 = vmul.f32 %v6373_v19, %v14583_v10  ;;  %v10190_v20 = vpop.eup %10189  ;;  %v6563_v51 = vmul.f32 0.7978846, %v6499_v30  ;;  %v6375_v1 = vmul.f32 %v6311_v40, %v14585_v23 }
0x1b1a   : > { %v6500_v60 = vadd.f32 %v6436_v24, %v14577_v21  ;;  %v6312_v62 = vmul.f32 0.044715, %v14593_v44  ;;  %v6683_v7 = vadd.f32 1.0, %v10190_v20  ;;  %v6562_v46 = vmul.f32 0.7978846, %v6498_v16 }
0x1b1b   : > { %v14716_v27 = vpop.eup %10191  ;;  %v6501_v35 = vadd.f32 %v6437_v48, %v14583_v10  ;;  %v6374_v47 = vmul.f32 %v6310_v33, %v14591_v55  ;;  %10205 = vtanh.f32 %v6563_v51  ;;  %v6439_v30 = vmul.f32 %v6375_v1, %v14585_v23 }
0x1b1c   : > { %v14720_v54 = vpop.eup %10193  ;;  %v6564_v19 = vmul.f32 0.7978846, %v6500_v60  ;;  %v6376_v24 = vmul.f32 %v6312_v62, %v14593_v44  ;;  %v14727_v40 = vmul.f32 %v6683_v7, %v14627_v36  ;;  %10207 = vtanh.f32 %v6562_v46 }
0x1b1d   : > { %v14724_v21 = vpop.eup %10195  ;;  %v6565_v20 = vmul.f32 0.7978846, %v6501_v35  ;;  %v6438_v16 = vmul.f32 %v6374_v47, %v14591_v55  ;;  %v6503_v48 = vadd.f32 %v6439_v30, %v14585_v23  ;;  %v6218_v51 = vmul.f32 0.5, %v14448_v13 }
0x1b1e   : > { %10209 = vtanh.f32 %v6564_v19  ;;  %v6440_v33 = vmul.f32 %v6376_v24, %v14593_v44  ;;  %v6222_v1 = vmul.f32 0.5, %v14465_v59  ;;  %v6666_v62 = vadd.f32 1.0, %v14622_v39 }
0x1b1f   : > { %10211 = vtanh.f32 %v6565_v20  ;;  %v6502_v60 = vadd.f32 %v6438_v16, %v14591_v55  ;;  %v6567_v7 = vmul.f32 0.7978846, %v6503_v48  ;;  %v6670_v35 = vadd.f32 1.0, %v14643_v17 }
0x1b20   : > { %v10198_v36 = vpop.eup %10197  ;;  %v6504_v46 = vadd.f32 %v6440_v33, %v14593_v44  ;;  %v6220_v47 = vmul.f32 0.5, %v14450_v8  ;;  %v6730_v13 = vmul.f32 %v6666_v62, %v6218_v51  ;;  %v6224_v20 = vmul.f32 0.5, %v14467_v0 }
0x1b21   : > { %v14739_v19 = vpop.eup %10199  ;;  %v6687_v30 = vadd.f32 1.0, %v10198_v36  ;;  %v6566_v24 = vmul.f32 0.7978846, %v6502_v60  ;;  %10213 = vtanh.f32 %v6567_v7  ;;  %v6734_v39 = vmul.f32 %v6670_v35, %v6222_v1 }
0x1b22   : > { %v14742_v16 = vpop.eup %10201  ;;  %v6568_v59 = vmul.f32 0.7978846, %v6504_v46  ;;  %v6668_v48 = vadd.f32 1.0, %v14629_v50  ;;  %v6672_v8 = vadd.f32 1.0, %v14648_v26  ;;  %v6217_v33 = vmul.f32 0.5, %v14438_v14 }
0x1b23   : > { %v14745_v23 = vpop.eup %10203  ;;  %v14748_v17 = vmul.f32 %v6687_v30, %v14653_v28  ;;  %10215 = vtanh.f32 %v6566_v24  ;;  %v6778_v51 = vpack.c.bf16 %v6734_v39, %v6730_v13  ;;  %v6221_v60 = vmul.f32 0.5, %v14456_v9 }
0x1b24   : > { %10217 = vtanh.f32 %v6568_v59  ;;  %v6732_v0 = vmul.f32 %v6668_v48, %v6220_v47  ;;  %v6736_v62 = vmul.f32 %v6672_v8, %v6224_v20  ;;  %v6665_v1 = vadd.f32 1.0, %v14614_v43 }
0x1b25   : > { %v6669_v50 = vadd.f32 1.0, %v14633_v49  ;;  %v6219_v36 = vmul.f32 0.5, %v14440_v45  ;;  %v14756_v7 = vpop.eup %10205  ;;  %7113 = vmatprep.mubr.bf16.mxu1 %v6778_v51  ;;  %v6223_v28 = vmul.f32 0.5, %v14458_v29  ;;  %v6667_v26 = vadd.f32 1.0, %v14618_v42 }
0x1b26   : > { %v6671_v14 = vadd.f32 1.0, %v14638_v3  ;;  %v6226_v46 = vmul.f32 0.5, %v14489_v53  ;;  %v10208_v35 = vpop.eup %10207  ;;  %v6780_v9 = vpack.c.bf16 %v6736_v62, %v6732_v0  ;;  %v6729_v47 = vmul.f32 %v6665_v1, %v6217_v33 }
0x1b27   : > { %v6733_v30 = vmul.f32 %v6669_v50, %v6221_v60  ;;  %v6230_v43 = vmul.f32 0.5, %v14502_v12  ;;  %v6731_v45 = vmul.f32 %v6667_v26, %v6219_v36  ;;  %v6674_v13 = vadd.f32 1.0, %v14670_v32 }
0x1b28   : > { %v14763_v49 = vpop.eup %10209  ;;  %v6735_v24 = vmul.f32 %v6671_v14, %v6223_v28  ;;  %v6678_v29 = vadd.f32 1.0, %v14694_v5  ;;  %7210 = vmatprep.mubr.bf16.mxu0 %v6780_v9  ;;  %v6228_v3 = vmul.f32 0.5, %v14491_v38  ;;  %v6232_v53 = vmul.f32 0.5, %v14504_v57 }
0x1b29   : > { %v10212_v20 = vpop.eup %10211  ;;  %v6777_v42 = vpack.c.bf16 %v6733_v30, %v6729_v47  ;;  %v6676_v59 = vadd.f32 1.0, %v14675_v6  ;;  %v6738_v48 = vmul.f32 %v6674_v13, %v6226_v46  ;;  %v6680_v8 = vadd.f32 1.0, %v14699_v58 }
0x1b2a   : > { %v6779_v39 = vpack.c.bf16 %v6735_v24, %v6731_v45  ;;  %v6742_v12 = vmul.f32 %v6678_v29, %v6230_v43  ;;  %v6225_v32 = vmul.f32 0.5, %v14483_v22  ;;  %v6229_v5 = vmul.f32 0.5, %v14497_v11 }
0x1b2b   : > { %7114 = vmatmul.mubr.bf16.gmra.mrb[192].mxu1 %v6777_v42  ;;  %v6740_v33 = vmul.f32 %v6676_v59, %v6228_v3  ;;  %v6673_v51 = vadd.f32 1.0, %v14660_v4  ;;  %v14774_v0 = vpop.eup %10213  ;;  %v6744_v57 = vmul.f32 %v6680_v8, %v6232_v53  ;;  %v6677_v6 = vadd.f32 1.0, %v14679_v2 }
0x1b2c   : > { %7211 = vmatmul.mubr.bf16.gmra.mrb[224].mxu0 %v6779_v39  ;;  %v6782_v38 = vpack.c.bf16 %v6742_v12, %v6738_v48  ;;  %v6227_v60 = vmul.f32 0.5, %v14485_v34  ;;  %v6231_v58 = vmul.f32 0.5, %v14499_v18  ;;  %v6675_v50 = vadd.f32 1.0, %v14665_v15 }
0x1b2d   : > { %v10216_v62 = vpop.eup %10215  ;;  %v6737_v1 = vmul.f32 %v6673_v51, %v6225_v32  ;;  %v6679_v22 = vadd.f32 1.0, %v14683_v31  ;;  %v6784_v4 = vpack.c.bf16 %v6744_v57, %v6740_v33  ;;  %v6741_v36 = vmul.f32 %v6677_v6, %v6229_v5  ;;  %v15720_v5 = vld [vmem:[#allocation124_spill] sm:$0xff] }
0x1b2e   : > { %v10218_v11 = vpop.eup %10217  ;;  %7121 = vmatprep.mubr.bf16.mxu1 %v6782_v38  ;;  %v6234_v28 = vmul.f32 0.5, %v14529_v63  ;;  %v6238_v26 = vmul.f32 0.5, %v14544_v52  ;;  %v6739_v14 = vmul.f32 %v6675_v50, %v6227_v60  ;;  %v6682_v34 = vadd.f32 1.0, %v14716_v27 }
0x1b2f   : > { %v6743_v2 = vmul.f32 %v6679_v22, %v6231_v58  ;;  %v6686_v46 = vadd.f32 1.0, %v14739_v19  ;;  %7218 = vmatprep.mubr.bf16.mxu0 %v6784_v4  ;;  %v6781_v18 = vpack.c.bf16 %v6741_v36, %v6737_v1  ;;  %v6233_v15 = vmul.f32 0.5, %v14518_v25 }
0x1b30   : > { %v6237_v31 = vmul.f32 0.5, %v14537_v41  ;;  %v6681_v9 = vadd.f32 1.0, %v14703_v37  ;;  %v6746_v30 = vmul.f32 %v6682_v34, %v6234_v28  ;;  %v6685_v63 = vadd.f32 1.0, %v14724_v21 }
0x1b31   : > { %v6783_v47 = vpack.c.bf16 %v6743_v2, %v6739_v14  ;;  %v6750_v43 = vmul.f32 %v6686_v46, %v6238_v26  ;;  %v6242_v45 = vmul.f32 0.5, %v14575_v61  ;;  %v6246_v27 = vmul.f32 0.5, %v14591_v55  ;;  %v15718_v61 = vld [vmem:[#allocation127_spill] sm:$0xff]  ;;  %v15719_v55 = vld [vmem:[#allocation125_spill] sm:$0xff] }
0x1b32   : > { %v6745_v52 = vmul.f32 %v6681_v9, %v6233_v15  ;;  %v6690_v24 = vadd.f32 1.0, %v10208_v35  ;;  %v6749_v13 = vmul.f32 %v6685_v63, %v6237_v31  ;;  %v6694_v29 = vadd.f32 1.0, %v10216_v62  ;;  %v15723_v9 = vld [vmem:[#allocation38_spill] sm:$0xff] }
0x1b33   : > { %7122 = vmatmul.mubr.bf16.gmra.mrb[196].mxu1 %v6781_v18  ;;  %v6786_v19 = vpack.c.bf16 %v6750_v43, %v6746_v30  ;;  %v6241_v25 = vmul.f32 0.5, %v14566_v56  ;;  %v6245_v37 = vmul.f32 0.5, %v14583_v10  ;;  %v6689_v42 = vadd.f32 1.0, %v14745_v23 }
0x1b34   : > { %7219 = vmatmul.mubr.bf16.gmra.mrb[228].mxu0 %v6783_v47  ;;  %v6754_v41 = vmul.f32 %v6690_v24, %v6242_v45  ;;  %v6693_v3 = vadd.f32 1.0, %v10212_v20  ;;  %v6785_v21 = vpack.c.bf16 %v6749_v13, %v6745_v52  ;;  %v6758_v53 = vmul.f32 %v6694_v29, %v6246_v27  ;;  %v15724_v45 = vld [vmem:[#allocation37_spill] sm:$0xff] }
0x1b35   : > { %7129 = vmatprep.mubr.bf16.mxu1 %v6786_v19  ;;  %v6236_v59 = vmul.f32 0.5, %v15718_v61  ;;  %v6240_v35 = vmul.f32 0.5, %v15719_v55  ;;  %v6753_v39 = vmul.f32 %v6689_v42, %v6241_v25  ;;  %v6684_v12 = vadd.f32 1.0, %v14720_v54  ;;  %v15721_v54 = vld [vmem:[#allocation126_spill] sm:$0xff] }
0x1b36   : > { %v6757_v48 = vmul.f32 %v6693_v3, %v6245_v37  ;;  %v6688_v56 = vadd.f32 1.0, %v14742_v16  ;;  %v6790_v8 = vpack.c.bf16 %v6758_v53, %v6754_v41  ;;  %v6787_v10 = vpack.c.bf16 %v14748_v17, %v14727_v40  ;;  %v15722_v16 = vld [vmem:[#allocation67_spill] sm:$0xff]  ;;  %v15725_v53 = vld [vmem:[#allocation40_spill] sm:$0xff] }
0x1b37   : > { %v6748_v23 = vmul.f32 %v6684_v12, %v6236_v59  ;;  %v6692_v32 = vadd.f32 1.0, %v14763_v49  ;;  %v6244_v51 = vmul.f32 0.5, %v15720_v5  ;;  %v6248_v38 = vmul.f32 0.5, %v14593_v44 }
0x1b38   : > { %v6789_v33 = vpack.c.bf16 %v6757_v48, %v6753_v39  ;;  %v6752_v20 = vmul.f32 %v6688_v56, %v6240_v35  ;;  %v6696_v57 = vadd.f32 1.0, %v10218_v11  ;;  %v6691_v6 = vadd.f32 1.0, %v14756_v7  ;;  %v15726_v48 = vld [vmem:[#allocation39_spill] sm:$0xff] }
0x1b39   : > { %v6243_v62 = vmul.f32 0.5, %v15721_v54  ;;  %v6247_v1 = vmul.f32 0.5, %v15722_v16  ;;  %v6695_v58 = vadd.f32 1.0, %v14774_v0  ;;  %v6756_v40 = vmul.f32 %v6692_v32, %v6244_v51 }
0x1b3a   : > { %v6788_v60 = vpack.c.bf16 %v6752_v20, %v6748_v23  ;;  %v6760_v17 = vmul.f32 %v6696_v57, %v6248_v38  ;;  %v15727_v57 = vld [vmem:[#allocation41_spill] sm:$0xff] }
0x1b3b   : > { %7130 = vmatmul.mubr.bf16.gmra.mrb[200].mxu1 %v6785_v21  ;;  %v6755_v50 = vmul.f32 %v6691_v6, %v6243_v62  ;;  %v6759_v49 = vmul.f32 %v6695_v58, %v6247_v1  ;;  %v15728_v1 = vld [vmem:[#allocation42_spill] sm:$0xff] }
0x1b3c   : > { %7137 = vmatprep.mubr.bf16.mxu1 %v6790_v8  ;;  %v6792_v22 = vpack.c.bf16 %v6760_v17, %v6756_v40 }
0x1b3d   : > { %v6791_v4 = vpack.c.bf16 %v6759_v49, %v6755_v50 }
0x1b43   : > { %7138 = vmatmul.mubr.bf16.gmra.mrb[204].mxu1 %v6789_v33 }
0x1b44   : > { %7226 = vmatprep.mubr.bf16.mxu1 %v6788_v60 }
0x1b4b   : > { %7227 = vmatmul.mubr.bf16.vlgmr.msra.gmra.mrb[208].mxu1 %v6787_v10 }
0x1b4c   : > { %7234 = vmatprep.mubr.bf16.mxu1 %v6792_v22 }
0x1b53   : > { %7235 = vmatmul.mubr.bf16.gmra.mrb[212].mxu1 %v6791_v4 }
0x1baf   : > { %v8203_v44 = vpop.f32.mrb[176].mxu1 }
0x1bb0   : > { %v8204_v7 = vpop.f32.mrb[177].mxu1 }
0x1bb1   : > { %v8205_v11 = vadd.f32 %v8204_v7, %v8203_v44  ;;  %v8206_v36 = vpop.f32.mrb[178].mxu1 }
0x1bb2   : > { %v8267_v28 = vpop.f32.mrb[208].mxu0  ;;  %v8207_v26 = vpop.f32.mrb[179].mxu1 }
0x1bb3   : > { %v8268_v0 = vpop.f32.mrb[209].mxu0  ;;  %v8208_v14 = vadd.f32 %v8207_v26, %v8206_v36  ;;  %v15729_v36 = vld [vmem:[#allocation31_spill] sm:$0xff] }
0x1bb4   : > { %v8269_v2 = vadd.f32 %v8268_v0, %v8267_v28  ;;  %v8270_v34 = vpop.f32.mrb[210].mxu0  ;;  %v15730_v0 = vld [vmem:[#allocation28_spill] sm:$0xff] }
0x1bb5   : > { %v8271_v46 = vpop.f32.mrb[211].mxu0 }
0x1bb6   : > { %v7181_v18 = vadd.f32 %v8269_v2, %v8205_v11  ;;  %v8272_v15 = vadd.f32 %v8271_v46, %v8270_v34 }
0x1bb7   : > { %v8209_v31 = vpop.f32.mrb[180].mxu1 }
0x1bb8   : > { %v14808_v47 = vadd.f32 %v7181_v18, %v15723_v9  ;;  %v7184_v30 = vadd.f32 %v8272_v15, %v8208_v14  ;;  %v8210_v43 = vpop.f32.mrb[181].mxu1 }
0x1bb9   : > { %v8211_v63 = vadd.f32 %v8210_v43, %v8209_v31  ;;  %v8212_v52 = vpop.f32.mrb[182].mxu1 }
0x1bba   : > { %v14811_v27 = vadd.f32 %v7184_v30, %v15724_v45  ;;  %v8273_v24 = vpop.f32.mrb[212].mxu0  ;;  %v8213_v19 = vpop.f32.mrb[183].mxu1  ;;  %7263 = vst [vmem:[%s11006_s23] sm:$0xff] (!%p7886_p10), %v14808_v47 }
0x1bbb   : > { %v8274_v13 = vpop.f32.mrb[213].mxu0  ;;  %v8214_v29 = vadd.f32 %v8213_v19, %v8212_v52  ;;  %v15731_v19 = vld [vmem:[#allocation34_spill] sm:$0xff] }
0x1bbc   : > { %v8275_v25 = vadd.f32 %v8274_v13, %v8273_v24  ;;  %v8276_v41 = vpop.f32.mrb[214].mxu0  ;;  %7264 = vst [vmem:[%s11006_s23 + $0x8] sm:$0xff] (!%p7886_p10), %v14811_v27 }
0x1bbd   : > { %v8277_v37 = vpop.f32.mrb[215].mxu0 }
0x1bbe   : > { %v7189_v42 = vadd.f32 %v8275_v25, %v8211_v63  ;;  %v8278_v3 = vadd.f32 %v8277_v37, %v8276_v41  ;;  %v15732_v41 = vld [vmem:[#allocation35_spill] sm:$0xff] }
0x1bbf   : > { %v8215_v21 = vpop.f32.mrb[184].mxu1 }
0x1bc0   : > { %v14814_v61 = vadd.f32 %v7189_v42, %v15725_v53  ;;  %v7192_v59 = vadd.f32 %v8278_v3, %v8214_v29  ;;  %v8216_v55 = vpop.f32.mrb[185].mxu1 }
0x1bc1   : > { %v8217_v35 = vadd.f32 %v8216_v55, %v8215_v21  ;;  %v8218_v39 = vpop.f32.mrb[186].mxu1 }
0x1bc2   : > { %v14817_v12 = vadd.f32 %v7192_v59, %v15726_v48  ;;  %v8279_v56 = vpop.f32.mrb[216].mxu0  ;;  %v8219_v8 = vpop.f32.mrb[187].mxu1  ;;  %7265 = vst [vmem:[%s11006_s23 + $0x10] sm:$0xff] (!%p7886_p10), %v14814_v61 }
0x1bc3   : > { %v8280_v10 = vpop.f32.mrb[217].mxu0  ;;  %v8220_v33 = vadd.f32 %v8219_v8, %v8218_v39 }
0x1bc4   : > { %v8281_v23 = vadd.f32 %v8280_v10, %v8279_v56  ;;  %v8282_v20 = vpop.f32.mrb[218].mxu0  ;;  %7266 = vst [vmem:[%s11006_s23 + $0x18] sm:$0xff] (!%p7886_p10), %v14817_v12 }
0x1bc5   : > { %v8283_v32 = vpop.f32.mrb[219].mxu0 }
0x1bc6   : > { %v7197_v5 = vadd.f32 %v8281_v23, %v8217_v35  ;;  %v8284_v51 = vadd.f32 %v8283_v32, %v8282_v20 }
0x1bc7   : > { %v8221_v38 = vpop.f32.mrb[188].mxu1 }
0x1bc8   : > { %v14820_v6 = vadd.f32 %v7197_v5, %v15727_v57  ;;  %v7200_v60 = vadd.f32 %v8284_v51, %v8220_v33  ;;  %v8222_v54 = vpop.f32.mrb[189].mxu1  ;;  %v15733_v33 = vld [vmem:[#allocation29_spill] sm:$0xff]  ;;  %v15734_v5 = vld [vmem:[#allocation30_spill] sm:$0xff] }
0x1bc9   : > { %v8223_v62 = vadd.f32 %v8222_v54, %v8221_v38  ;;  %v8224_v16 = vpop.f32.mrb[190].mxu1 }
0x1bca   : > { %v14823_v58 = vadd.f32 %v7200_v60, %v15728_v1  ;;  %v8285_v40 = vpop.f32.mrb[220].mxu0  ;;  %v8225_v17 = vpop.f32.mrb[191].mxu1  ;;  %7267 = vst [vmem:[%s11006_s23 + $0x20] sm:$0xff] (!%p7886_p10), %v14820_v6 }
0x1bcb   : > { %v8286_v50 = vpop.f32.mrb[221].mxu0  ;;  %v8226_v49 = vadd.f32 %v8225_v17, %v8224_v16 }
0x1bcc   : > { %v8287_v22 = vadd.f32 %v8286_v50, %v8285_v40  ;;  %v8288_v4 = vpop.f32.mrb[222].mxu0  ;;  %7268 = vst [vmem:[%s11006_s23 + $0x28] sm:$0xff] (!%p7886_p10), %v14823_v58 }
0x1bcd   : > { %v8289_v44 = vpop.f32.mrb[223].mxu0 }
0x1bce   : > { %v7205_v7 = vadd.f32 %v8287_v22, %v8223_v62  ;;  %v8290_v11 = vadd.f32 %v8289_v44, %v8288_v4 }
0x1bd0   : > { %v14826_v28 = vadd.f32 %v7205_v7, %v15729_v36  ;;  %v7208_v26 = vadd.f32 %v8290_v11, %v8226_v49 }
0x1bd2   : > { %v14829_v14 = vadd.f32 %v7208_v26, %v15730_v0  ;;  %v15735_v0 = vld [vmem:[#allocation43_spill] sm:$0xff]  ;;  %7269 = vst [vmem:[%s11006_s23 + $0x30] sm:$0xff] (!%p7886_p10), %v14826_v28 }
0x1bd4   : > { %7270 = vst [vmem:[%s11006_s23 + $0x38] sm:$0xff] (!%p7886_p10), %v14829_v14 }
0x1bfe   : > { %v8227_v2 = vpop.f32.mrb[192].mxu1 }
0x1bff   : > { %v8291_v34 = vpop.f32.mrb[224].mxu0  ;;  %v8228_v46 = vpop.f32.mrb[193].mxu1 }
0x1c00   : > { %v8229_v18 = vadd.f32 %v8228_v46, %v8227_v2  ;;  %v8292_v15 = vpop.f32.mrb[225].mxu0  ;;  %v8230_v31 = vpop.f32.mrb[194].mxu1  ;;  %v15736_v46 = vld [vmem:[#allocation44_spill] sm:$0xff] }
0x1c01   : > { %v8293_v9 = vadd.f32 %v8292_v15, %v8291_v34  ;;  %v8294_v30 = vpop.f32.mrb[226].mxu0  ;;  %v8231_v43 = vpop.f32.mrb[195].mxu1 }
0x1c02   : > { %v8232_v63 = vadd.f32 %v8231_v43, %v8230_v31  ;;  %v8295_v52 = vpop.f32.mrb[227].mxu0 }
0x1c03   : > { %v7213_v45 = vadd.f32 %v8293_v9, %v8229_v18  ;;  %v8296_v24 = vadd.f32 %v8295_v52, %v8294_v30 }
0x1c05   : > { %v14832_v13 = vadd.f32 %v7213_v45, %v15731_v19  ;;  %v7216_v29 = vadd.f32 %v8296_v24, %v8232_v63  ;;  %v15737_v45 = vld [vmem:[#allocation32_spill] sm:$0xff] }
0x1c06   : > { %v8233_v25 = vpop.f32.mrb[196].mxu1 }
0x1c07   : > { %v14835_v37 = vadd.f32 %v7216_v29, %v15732_v41  ;;  %v8297_v42 = vpop.f32.mrb[228].mxu0  ;;  %v8234_v3 = vpop.f32.mrb[197].mxu1  ;;  %v15738_v29 = vld [vmem:[#allocation33_spill] sm:$0xff]  ;;  %7271 = vst [vmem:[%s11006_s23 + $0x40] sm:$0xff] (!%p7886_p10), %v14832_v13 }
0x1c08   : > { %v8235_v21 = vadd.f32 %v8234_v3, %v8233_v25  ;;  %v8298_v53 = vpop.f32.mrb[229].mxu0  ;;  %v8236_v59 = vpop.f32.mrb[198].mxu1 }
0x1c09   : > { %v8299_v55 = vadd.f32 %v8298_v53, %v8297_v42  ;;  %v8300_v35 = vpop.f32.mrb[230].mxu0  ;;  %v8237_v39 = vpop.f32.mrb[199].mxu1  ;;  %7272 = vst [vmem:[%s11006_s23 + $0x48] sm:$0xff] (!%p7886_p10), %v14835_v37 }
0x1c0a   : > { %v8238_v48 = vadd.f32 %v8237_v39, %v8236_v59  ;;  %v8301_v56 = vpop.f32.mrb[231].mxu0 }
0x1c0b   : > { %v7221_v8 = vadd.f32 %v8299_v55, %v8235_v21  ;;  %v8302_v10 = vadd.f32 %v8301_v56, %v8300_v35 }
0x1c0d   : > { %v14838_v23 = vadd.f32 %v7221_v8, %v15733_v33  ;;  %v7224_v20 = vadd.f32 %v8302_v10, %v8238_v48 }
0x1c0e   : > { %v8239_v32 = vpop.f32.mrb[200].mxu1 }
0x1c0f   : > { %v14841_v51 = vadd.f32 %v7224_v20, %v15734_v5  ;;  %v8240_v38 = vpop.f32.mrb[201].mxu1  ;;  %7273 = vst [vmem:[%s11006_s23 + $0x50] sm:$0xff] (!%p7886_p10), %v14838_v23 }
0x1c10   : > { %v8241_v57 = vadd.f32 %v8240_v38, %v8239_v32  ;;  %v8242_v60 = vpop.f32.mrb[202].mxu1 }
0x1c11   : > { %v8243_v54 = vpop.f32.mrb[203].mxu1  ;;  %7274 = vst [vmem:[%s11006_s23 + $0x58] sm:$0xff] (!%p7886_p10), %v14841_v51 }
0x1c12   : > { %v8244_v62 = vadd.f32 %v8243_v54, %v8242_v60 }
0x1c16   : > { %v8245_v16 = vpop.f32.mrb[204].mxu1 }
0x1c17   : > { %v8246_v1 = vpop.f32.mrb[205].mxu1 }
0x1c18   : > { %v8247_v40 = vadd.f32 %v8246_v1, %v8245_v16  ;;  %v8248_v17 = vpop.f32.mrb[206].mxu1 }
0x1c19   : > { %v8249_v50 = vpop.f32.mrb[207].mxu1 }
0x1c1a   : > { %v8250_v49 = vadd.f32 %v8249_v50, %v8248_v17 }
0x1c1e   : > { %v8303_v22 = vpop.f32.mrb[208].mxu1 }
0x1c1f   : > { %v8304_v4 = vpop.f32.mrb[209].mxu1 }
0x1c20   : > { %v8305_v44 = vadd.f32 %v8304_v4, %v8303_v22  ;;  %v8306_v7 = vpop.f32.mrb[210].mxu1 }
0x1c21   : > { %v8307_v11 = vpop.f32.mrb[211].mxu1 }
0x1c22   : > { %v7229_v36 = vadd.f32 %v8305_v44, %v8241_v57  ;;  %v8308_v26 = vadd.f32 %v8307_v11, %v8306_v7 }
0x1c24   : > { %v14844_v2 = vadd.f32 %v7229_v36, %v15735_v0  ;;  %v7232_v34 = vadd.f32 %v8308_v26, %v8244_v62 }
0x1c26   : > { %v14847_v18 = vadd.f32 %v7232_v34, %v15736_v46  ;;  %v8309_v15 = vpop.f32.mrb[212].mxu1  ;;  %7275 = vst [vmem:[%s11006_s23 + $0x60] sm:$0xff] (!%p7886_p10), %v14844_v2 }
0x1c27   : > { %v8310_v31 = vpop.f32.mrb[213].mxu1 }
0x1c28   : > { %v8311_v9 = vadd.f32 %v8310_v31, %v8309_v15  ;;  %v8312_v30 = vpop.f32.mrb[214].mxu1  ;;  %7262 = sbr.rel (%p7886_p10) target bundleno = 7217 (0x1c31), region = 80  ;;  %7276 = vst [vmem:[%s11006_s23 + $0x68] sm:$0xff] (!%p7886_p10), %v14847_v18 }
0x1c29   : > { %v8313_v43 = vpop.f32.mrb[215].mxu1 }
0x1c2a   : > { %v7237_v63 = vadd.f32 %v8311_v9, %v8247_v40  ;;  %v8314_v52 = vadd.f32 %v8313_v43, %v8312_v30 }
0x1c2c   : > { %v14850_v24 = vadd.f32 %v7237_v63, %v15737_v45  ;;  %v7240_v19 = vadd.f32 %v8314_v52, %v8250_v49 }
0x1c2e   : > { %v14853_v25 = vadd.f32 %v7240_v19, %v15738_v29  ;;  %7277 = vst [vmem:[%s11006_s23 + $0x70] sm:$0xff] (!%p7886_p10), %v14850_v24 }
0x1c30   : > { %7278 = vst [vmem:[%s11006_s23 + $0x78] sm:$0xff] %v14853_v25 }
0x1c31 PF: > { %s15740_s11 = sld [smem:[#allocation19_spill]] }
0x1c37   : > { %p7887_p13 = scmp.ne.s32.totalorder %s15740_s11, 1 }
0x1c38   : > { %7284 = vadd.xlane.f32.xlu0 (!%p7887_p13), %v14808_v47  ;;  %7288 = vadd.xlane.f32.xlu1 (!%p7887_p13), %v14814_v61  ;;  %s15741_s24 = sld [smem:[#allocation145_spill]] (!%p7887_p13) }
0x1c39   : > { %7282 = sbr.rel (%p7887_p13) target bundleno = 7566 (0x1d8e), region = 84 }
0x1c3c   : > { %7286 = vadd.xlane.f32.xlu0 (!%p7887_p13), %v14811_v27  ;;  %7290 = vadd.xlane.f32.xlu1 (!%p7887_p13), %v14817_v12 }
0x1c40   : > { %7292 = vadd.xlane.f32.xlu0 %v14820_v6  ;;  %7294 = vadd.xlane.f32.xlu1 %v14823_v58 }
0x1c44   : > { %7296 = vadd.xlane.f32.xlu0 %v14826_v28  ;;  %7298 = vadd.xlane.f32.xlu1 %v14829_v14 }
0x1c48   : > { %7300 = vadd.xlane.f32.xlu0 %v14832_v13  ;;  %7302 = vadd.xlane.f32.xlu1 %v14835_v37 }
0x1c4c   : > { %7304 = vadd.xlane.f32.xlu0 %v14838_v23  ;;  %7306 = vadd.xlane.f32.xlu1 %v14841_v51 }
0x1c50   : > { %7308 = vadd.xlane.f32.xlu0 %v14844_v2  ;;  %7310 = vadd.xlane.f32.xlu1 %v14847_v18 }
0x1c54   : > { %7312 = vadd.xlane.f32.xlu0 %v14850_v24  ;;  %7314 = vadd.xlane.f32.xlu1 %v14853_v25 }
0x1cc5   : > { %v7285_v41 = vpop.xlane.xlu0 %7284  ;;  %v7289_v42 = vpop.xlane.xlu1 %7288 }
0x1cc6   : > { %v7316_v3 = vmul.f32 0.0078125, %v7285_v41  ;;  %v7318_v21 = vmul.f32 0.0078125, %v7289_v42 }
0x1cc8   : > { %v14906_v53 = vsub.f32 %v14808_v47, %v7316_v3  ;;  %v14909_v59 = vsub.f32 %v14814_v61, %v7318_v21 }
0x1cc9   : > { %v7287_v55 = vpop.xlane.xlu0 %7286  ;;  %v7291_v35 = vpop.xlane.xlu1 %7290 }
0x1cca   : > { %v7317_v39 = vmul.f32 0.0078125, %v7287_v55  ;;  %v7348_v48 = vmul.f32 %v14906_v53, %v14906_v53  ;;  %v7319_v56 = vmul.f32 0.0078125, %v7291_v35  ;;  %v7350_v47 = vmul.f32 %v14909_v59, %v14909_v59 }
0x1ccc   : > { %v14914_v8 = vsub.f32 %v14811_v27, %v7317_v39  ;;  %7364 = vadd.xlane.f32.xlu0 %v7348_v48  ;;  %v14917_v10 = vsub.f32 %v14817_v12, %v7319_v56 }
0x1ccd   : > { %v7293_v33 = vpop.xlane.xlu0 %7292  ;;  %v7295_v61 = vpop.xlane.xlu1 %7294 }
0x1cce   : > { %v7320_v20 = vmul.f32 0.0078125, %v7293_v33  ;;  %v7349_v32 = vmul.f32 %v14914_v8, %v14914_v8  ;;  %v7321_v5 = vmul.f32 0.0078125, %v7295_v61  ;;  %v7351_v12 = vmul.f32 %v14917_v10, %v14917_v10 }
0x1cd0   : > { %v14924_v38 = vsub.f32 %v14820_v6, %v7320_v20  ;;  %7368 = vadd.xlane.f32.xlu0 %v7350_v47  ;;  %7366 = vadd.xlane.f32.xlu1 %v7349_v32  ;;  %v14927_v27 = vsub.f32 %v14823_v58, %v7321_v5 }
0x1cd1   : > { %v7297_v57 = vpop.xlane.xlu0 %7296  ;;  %v7299_v60 = vpop.xlane.xlu1 %7298 }
0x1cd2   : > { %v7322_v54 = vmul.f32 0.0078125, %v7297_v57  ;;  %v7352_v62 = vmul.f32 %v14924_v38, %v14924_v38  ;;  %v7323_v16 = vmul.f32 0.0078125, %v7299_v60  ;;  %v7353_v58 = vmul.f32 %v14927_v27, %v14927_v27 }
0x1cd4   : > { %v14934_v1 = vsub.f32 %v14826_v28, %v7322_v54  ;;  %7370 = vadd.xlane.f32.xlu1 %v7351_v12  ;;  %7372 = vadd.xlane.f32.xlu0 %v7352_v62  ;;  %v14937_v6 = vsub.f32 %v14829_v14, %v7323_v16  ;;  %v14988_v16 = vld [vmem:[%s15741_s24] ss:$0 sm:$0xff] }
0x1cd5   : > { %v7301_v40 = vpop.xlane.xlu0 %7300  ;;  %v7303_v17 = vpop.xlane.xlu1 %7302 }
0x1cd6   : > { %v7324_v50 = vmul.f32 0.0078125, %v7301_v40  ;;  %v7354_v49 = vmul.f32 %v14934_v1, %v14934_v1  ;;  %v7325_v22 = vmul.f32 0.0078125, %v7303_v17  ;;  %v7355_v14 = vmul.f32 %v14937_v6, %v14937_v6 }
0x1cd8   : > { %v14944_v4 = vsub.f32 %v14832_v13, %v7324_v50  ;;  %7374 = vadd.xlane.f32.xlu1 %v7353_v58  ;;  %7376 = vadd.xlane.f32.xlu0 %v7354_v49  ;;  %v14947_v28 = vsub.f32 %v14835_v37, %v7325_v22 }
0x1cd9   : > { %v7305_v44 = vpop.xlane.xlu0 %7304  ;;  %v7307_v7 = vpop.xlane.xlu1 %7306 }
0x1cda   : > { %v7326_v11 = vmul.f32 0.0078125, %v7305_v44  ;;  %v7356_v36 = vmul.f32 %v14944_v4, %v14944_v4  ;;  %v7327_v26 = vmul.f32 0.0078125, %v7307_v7  ;;  %v7357_v37 = vmul.f32 %v14947_v28, %v14947_v28 }
0x1cdc   : > { %v14954_v0 = vsub.f32 %v14838_v23, %v7326_v11  ;;  %7378 = vadd.xlane.f32.xlu1 %v7355_v14  ;;  %7380 = vadd.xlane.f32.xlu0 %v7356_v36  ;;  %v14957_v13 = vsub.f32 %v14841_v51, %v7327_v26 }
0x1cdd   : > { %v7309_v34 = vpop.xlane.xlu0 %7308  ;;  %v7311_v46 = vpop.xlane.xlu1 %7310 }
0x1cde   : > { %v7328_v15 = vmul.f32 0.0078125, %v7309_v34  ;;  %v7358_v31 = vmul.f32 %v14954_v0, %v14954_v0  ;;  %v7329_v9 = vmul.f32 0.0078125, %v7311_v46  ;;  %v7359_v51 = vmul.f32 %v14957_v13, %v14957_v13 }
0x1ce0   : > { %v14964_v30 = vsub.f32 %v14844_v2, %v7328_v15  ;;  %7382 = vadd.xlane.f32.xlu1 %v7357_v37  ;;  %7384 = vadd.xlane.f32.xlu0 %v7358_v31  ;;  %v14967_v23 = vsub.f32 %v14847_v18, %v7329_v9 }
0x1ce1   : > { %v7313_v43 = vpop.xlane.xlu0 %7312  ;;  %v7315_v63 = vpop.xlane.xlu1 %7314 }
0x1ce2   : > { %v7330_v52 = vmul.f32 0.0078125, %v7313_v43  ;;  %v7360_v45 = vmul.f32 %v14964_v30, %v14964_v30  ;;  %v7331_v19 = vmul.f32 0.0078125, %v7315_v63  ;;  %v7361_v18 = vmul.f32 %v14967_v23, %v14967_v23 }
0x1ce4   : > { %v14974_v29 = vsub.f32 %v14850_v24, %v7330_v52  ;;  %7386 = vadd.xlane.f32.xlu1 %v7359_v51  ;;  %7388 = vadd.xlane.f32.xlu0 %v7360_v45  ;;  %v14977_v2 = vsub.f32 %v14853_v25, %v7331_v19 }
0x1ce6   : > { %v7362_v41 = vmul.f32 %v14974_v29, %v14974_v29  ;;  %v7363_v42 = vmul.f32 %v14977_v2, %v14977_v2 }
0x1ce8   : > { %7390 = vadd.xlane.f32.xlu1 %v7361_v18  ;;  %7392 = vadd.xlane.f32.xlu0 %v7362_v41 }
0x1cec   : > { %7394 = vadd.xlane.f32.xlu1 %v7363_v42 }
0x1d59   : > { %v7365_v3 = vpop.xlane.xlu0 %7364 }
0x1d5a   : > { %v7396_v24 = vmul.f32 0.0078125, %v7365_v3 }
0x1d5c   : > { %v7412_v21 = vadd.f32 1e-05, %v7396_v24 }
0x1d5d   : > { %v7367_v55 = vpop.xlane.xlu1 %7366  ;;  %v7369_v35 = vpop.xlane.xlu0 %7368 }
0x1d5e   : > { %10235 = vrsqrt.f32 %v7412_v21  ;;  %v7397_v25 = vmul.f32 0.0078125, %v7367_v55  ;;  %v7398_v39 = vmul.f32 0.0078125, %v7369_v35 }
0x1d60   : > { %v7413_v48 = vadd.f32 1e-05, %v7397_v25  ;;  %v7414_v56 = vadd.f32 1e-05, %v7398_v39 }
0x1d61   : > { %v7371_v47 = vpop.xlane.xlu1 %7370  ;;  %v7373_v33 = vpop.xlane.xlu0 %7372 }
0x1d62   : > { %10237 = vrsqrt.f32 %v7413_v48  ;;  %v7399_v61 = vmul.f32 0.0078125, %v7371_v47  ;;  %v7400_v20 = vmul.f32 0.0078125, %v7373_v33 }
0x1d63   : > { %10239 = vrsqrt.f32 %v7414_v56 }
0x1d64   : > { %v7415_v32 = vadd.f32 1e-05, %v7399_v61  ;;  %v7416_v5 = vadd.f32 1e-05, %v7400_v20 }
0x1d65   : > { %v7375_v12 = vpop.xlane.xlu1 %7374  ;;  %v7377_v57 = vpop.xlane.xlu0 %7376 }
0x1d66   : > { %10241 = vrsqrt.f32 %v7415_v32  ;;  %v7401_v60 = vmul.f32 0.0078125, %v7375_v12  ;;  %v7402_v54 = vmul.f32 0.0078125, %v7377_v57 }
0x1d67   : > { %10243 = vrsqrt.f32 %v7416_v5 }
0x1d68   : > { %v10236_v62 = vpop.eup %10235  ;;  %v7417_v58 = vadd.f32 1e-05, %v7401_v60  ;;  %v7418_v40 = vadd.f32 1e-05, %v7402_v54 }
0x1d69   : > { %v7444_v17 = vmul.f32 %v10236_v62, %v14906_v53  ;;  %v7379_v50 = vpop.xlane.xlu1 %7378  ;;  %v7381_v49 = vpop.xlane.xlu0 %7380 }
0x1d6a   : > { %10245 = vrsqrt.f32 %v7417_v58  ;;  %v7403_v22 = vmul.f32 0.0078125, %v7379_v50  ;;  %v7404_v14 = vmul.f32 0.0078125, %v7381_v49 }
0x1d6b   : > { %v7466_v44 = vmul.f32 %v14988_v16, %v7444_v17  ;;  %10247 = vrsqrt.f32 %v7418_v40 }
0x1d6c   : > { %v10238_v7 = vpop.eup %10237  ;;  %v7419_v11 = vadd.f32 1e-05, %v7403_v22  ;;  %v7420_v36 = vadd.f32 1e-05, %v7404_v14 }
0x1d6d   : > { %v10240_v26 = vpop.eup %10239  ;;  %7482 = vst [vmem:[%s11006_s23] sm:$0xff] %v7466_v44  ;;  %v7445_v37 = vmul.f32 %v10238_v7, %v14914_v8  ;;  %v7383_v34 = vpop.xlane.xlu1 %7382 }
0x1d6e   : > { %v7385_v46 = vpop.xlane.xlu0 %7384  ;;  %v7446_v53 = vmul.f32 %v10240_v26, %v14909_v59  ;;  %10249 = vrsqrt.f32 %v7419_v11  ;;  %v7405_v15 = vmul.f32 0.0078125, %v7383_v34 }
0x1d6f   : > { %v7406_v31 = vmul.f32 0.0078125, %v7385_v46  ;;  %v7467_v9 = vmul.f32 %v14988_v16, %v7445_v37  ;;  %10251 = vrsqrt.f32 %v7420_v36 }
0x1d70   : > { %v10242_v51 = vpop.eup %10241  ;;  %v7468_v43 = vmul.f32 %v14988_v16, %v7446_v53  ;;  %v7421_v63 = vadd.f32 1e-05, %v7405_v15 }
0x1d71   : > { %v7422_v52 = vadd.f32 1e-05, %v7406_v31  ;;  %v10244_v45 = vpop.eup %10243  ;;  %7483 = vst [vmem:[%s11006_s23 + $0x8] sm:$0xff] %v7467_v9  ;;  %v7447_v8 = vmul.f32 %v10242_v51, %v14917_v10  ;;  %v7387_v19 = vpop.xlane.xlu1 %7386 }
0x1d72   : > { %v7389_v18 = vpop.xlane.xlu0 %7388  ;;  %7484 = vst [vmem:[%s11006_s23 + $0x10] sm:$0xff] %v7468_v43  ;;  %v7448_v59 = vmul.f32 %v10244_v45, %v14924_v38  ;;  %10253 = vrsqrt.f32 %v7421_v63  ;;  %v7407_v41 = vmul.f32 0.0078125, %v7387_v19 }
0x1d73   : > { %v7408_v42 = vmul.f32 0.0078125, %v7389_v18  ;;  %v7469_v3 = vmul.f32 %v14988_v16, %v7447_v8  ;;  %10255 = vrsqrt.f32 %v7422_v52 }
0x1d74   : > { %v10246_v24 = vpop.eup %10245  ;;  %v7470_v21 = vmul.f32 %v14988_v16, %v7448_v59  ;;  %v7423_v55 = vadd.f32 1e-05, %v7407_v41 }
0x1d75   : > { %v7424_v35 = vadd.f32 1e-05, %v7408_v42  ;;  %v10248_v25 = vpop.eup %10247  ;;  %7485 = vst [vmem:[%s11006_s23 + $0x18] sm:$0xff] %v7469_v3  ;;  %v7449_v10 = vmul.f32 %v10246_v24, %v14927_v27  ;;  %v7391_v39 = vpop.xlane.xlu1 %7390 }
0x1d76   : > { %v7393_v48 = vpop.xlane.xlu0 %7392  ;;  %7486 = vst [vmem:[%s11006_s23 + $0x20] sm:$0xff] %v7470_v21  ;;  %v7450_v38 = vmul.f32 %v10248_v25, %v14934_v1  ;;  %10257 = vrsqrt.f32 %v7423_v55  ;;  %v7409_v56 = vmul.f32 0.0078125, %v7391_v39 }
0x1d77   : > { %v7410_v47 = vmul.f32 0.0078125, %v7393_v48  ;;  %v7471_v33 = vmul.f32 %v14988_v16, %v7449_v10  ;;  %10259 = vrsqrt.f32 %v7424_v35 }
0x1d78   : > { %v10250_v61 = vpop.eup %10249  ;;  %v7472_v20 = vmul.f32 %v14988_v16, %v7450_v38  ;;  %v7425_v32 = vadd.f32 1e-05, %v7409_v56 }
0x1d79   : > { %v7426_v5 = vadd.f32 1e-05, %v7410_v47  ;;  %v10252_v12 = vpop.eup %10251  ;;  %7487 = vst [vmem:[%s11006_s23 + $0x28] sm:$0xff] %v7471_v33  ;;  %v7451_v27 = vmul.f32 %v10250_v61, %v14937_v6  ;;  %v7395_v57 = vpop.xlane.xlu1 %7394 }
0x1d7a   : > { %7488 = vst [vmem:[%s11006_s23 + $0x30] sm:$0xff] %v7472_v20  ;;  %v7452_v1 = vmul.f32 %v10252_v12, %v14944_v4  ;;  %10261 = vrsqrt.f32 %v7425_v32  ;;  %v7411_v60 = vmul.f32 0.0078125, %v7395_v57 }
0x1d7b   : > { %v7473_v54 = vmul.f32 %v14988_v16, %v7451_v27  ;;  %10263 = vrsqrt.f32 %v7426_v5 }
0x1d7c   : > { %v10254_v62 = vpop.eup %10253  ;;  %v7474_v58 = vmul.f32 %v14988_v16, %v7452_v1  ;;  %v7427_v40 = vadd.f32 1e-05, %v7411_v60 }
0x1d7d   : > { %v10256_v17 = vpop.eup %10255  ;;  %7489 = vst [vmem:[%s11006_s23 + $0x38] sm:$0xff] %v7473_v54  ;;  %v7453_v50 = vmul.f32 %v10254_v62, %v14947_v28 }
0x1d7e   : > { %7490 = vst [vmem:[%s11006_s23 + $0x40] sm:$0xff] %v7474_v58  ;;  %v7454_v6 = vmul.f32 %v10256_v17, %v14954_v0  ;;  %10265 = vrsqrt.f32 %v7427_v40 }
0x1d7f   : > { %v7475_v4 = vmul.f32 %v14988_v16, %v7453_v50 }
0x1d80   : > { %v10258_v49 = vpop.eup %10257  ;;  %v7476_v22 = vmul.f32 %v14988_v16, %v7454_v6 }
0x1d81   : > { %v10260_v14 = vpop.eup %10259  ;;  %7491 = vst [vmem:[%s11006_s23 + $0x48] sm:$0xff] %v7475_v4  ;;  %v7455_v44 = vmul.f32 %v10258_v49, %v14957_v13 }
0x1d82   : > { %7492 = vst [vmem:[%s11006_s23 + $0x50] sm:$0xff] %v7476_v22  ;;  %v7456_v28 = vmul.f32 %v10260_v14, %v14964_v30 }
0x1d83   : > { %v7477_v7 = vmul.f32 %v14988_v16, %v7455_v44 }
0x1d84   : > { %v10262_v0 = vpop.eup %10261  ;;  %v7478_v11 = vmul.f32 %v14988_v16, %v7456_v28 }
0x1d85   : > { %v10264_v36 = vpop.eup %10263  ;;  %7493 = vst [vmem:[%s11006_s23 + $0x58] sm:$0xff] %v7477_v7  ;;  %v7457_v26 = vmul.f32 %v10262_v0, %v14967_v23 }
0x1d86   : > { %7494 = vst [vmem:[%s11006_s23 + $0x60] sm:$0xff] %v7478_v11  ;;  %v7458_v37 = vmul.f32 %v10264_v36, %v14974_v29 }
0x1d87   : > { %v7479_v34 = vmul.f32 %v14988_v16, %v7457_v26 }
0x1d88   : > { %v10266_v13 = vpop.eup %10265  ;;  %v7480_v46 = vmul.f32 %v14988_v16, %v7458_v37 }
0x1d89   : > { %7495 = vst [vmem:[%s11006_s23 + $0x68] sm:$0xff] %v7479_v34  ;;  %v7459_v30 = vmul.f32 %v10266_v13, %v14977_v2 }
0x1d8a   : > { %7496 = vst [vmem:[%s11006_s23 + $0x70] sm:$0xff] %v7480_v46 }
0x1d8b   : > { %v7481_v53 = vmul.f32 %v14988_v16, %v7459_v30 }
0x1d8d   : > { %7497 = vst [vmem:[%s11006_s23 + $0x78] sm:$0xff] %v7481_v53 }
0x1d8e PF: > { %s15742_s5 = sld [smem:[#allocation20_spill]]  ;;  %s15743_s21 = sld [smem:[#allocation146_spill]] }
0x1d8f   : > { %s7512_s0 = sshll.u32 %s11006_s23, 4  ;;  %s7499_s27 = scalar_lea.sflag [#allocation4], %s10966_s14  ;;  %s15045_s0 = int_to_ptr.vmem [resolvable:$true] %s7512_s0 }
0x1d90   : > { %s10417_s29 = scalar_lea.vmem %s15045_s0, 2048  ;;  %p15744_p3 = scmp.ne.s32.totalorder %s15318_s16, 0 }
0x1d91   : > { %p10418_p7 = scmp.ne.s32.totalorder %s15045_s0, %s10417_s29  ;;  %s10571_s25 = smov [#allocation11]  }
0x1d92   : > { %s10421_s4 = sshll.u32 %s10571_s25, 4  ;;  %s10422_s4 = int_to_ptr.vmem [resolvable:$false] %s10421_s4 }
0x1d93   : > { %p10419_p6 = pnand %p10418_p7, %p15744_p3  ;;  %s10423_s28 = scalar_lea.vmem %s10422_s4, 4096 }
0x1d94   : > { %s7898_s19 = sshll.u32 %s15742_s5, 11  ;;  %p10424_p0 = scmp.lt.s32.totalorder %s15045_s0, %s10422_s4 }
0x1d95   : > { %s15042_s20 = scalar_lea.hbm %s15743_s21, %s7898_s19  ;;  %p10420_p12 = pneg %p10419_p6 }
0x1d96   : > { %p10425_p2 = scmp.lt.s32.totalorder %s10423_s28, %s10417_s29 }
0x1d98   : > { %p10426_p8 = por %p10425_p2, %p10424_p0 }
0x1d9a   : > { %p10427_p9 = pnand %p10426_p8, %p10420_p12 }
0x1d9c   : > { %10430 = shalt.err (!%p10427_p9)
}
0x1d9d   : > { %s10431_s23 = scalar_lea.hbm %s15042_s20, 2048  ;;  %s10435_s7 = scalar_lea.hbm %s15743_s21, 4096 }
0x1d9e   : > { %p10432_p5 = scmp.ne.s32.totalorder %s15042_s20, %s10431_s23  ;;  %p10436_p1 = scmp.lt.u32.totalorder %s15042_s20, %s15743_s21 }
0x1d9f   : > { %p10437_p10 = scmp.lt.u32.totalorder %s10435_s7, %s10431_s23  ;;  %p10439_p7 = scmp.lt.u32.totalorder %s10431_s23, %s15042_s20 }
0x1da0   : > { %p10433_p4 = pnand %p10432_p5, %p15744_p3 }
0x1da1   : > { %p10438_p13 = por %p10437_p10, %p10436_p1 }
0x1da2   : > { %p10434_p11 = pneg %p10433_p4 }
0x1da3   : > { %p10440_p6 = por %p10439_p7, %p10438_p13 }
0x1da5   : > { %p10441_p12 = pnand %p10440_p6, %p10434_p11 }
0x1da7   : > { %10444 = shalt.err (!%p10441_p12)
}
0x1da8   : > { %s10572_s11 = smov 128   ;;  %s10573_s12 = smov 8  }
0x1da9   : > { %8984 = dma.vmem_to_hbm [thread:$0]  (%p15744_p3), %s15045_s0, 2048, %s15042_s20, %s7499_s27, %s10572_s11, %s10572_s11, %s10573_s12  }
0x1daa PF: > { %p9007_p0 = scmp.ge.s32.totalorder %s10547_s15, 2  ;;  %s7527_s17 = sand.u32 1, %s10519_s30  }
0x1dab   : > { %p15745_p2 = scmp.ne.s32.totalorder %s15320_s1, 0  ;;  %s7528_s24 = scalar_lea.sflag [#allocation4], %s7527_s17 }
0x1dad   : > { %p9003_p8 = pnand %p9007_p0, %p15745_p2 }
0x1daf   : > { %10502 = dma.done.wait (!%p9003_p8), %s7528_s24, 2048  }
0x1db0   : > { %10504 = vsyncadd (!%p9003_p8), %s7528_s24, 4294965248  ;;  %s30_s15 = sadd.s32 1, %s10547_s15   ;;  %s15746_s27 = sld [smem:[#allocation16_spill]] }
0x1db1   : > { %p27_p9 = scmp.ge.s32.totalorder %s30_s15, 6   ;;  %s15747_s28 = sld [smem:[#allocation17_spill]] }
0x1db2   : > { %s15748_s29 = sld [smem:[#allocation23_spill]]  ;;  %s15749_s16 = sld [smem:[#allocation18_spill]] }
0x1db3   : > { %s15750_s10 = sld [smem:[#allocation27_spill]]  ;;  %s15751_s12 = sld [smem:[#allocation21_spill]] }
0x1db4   : > { %s15752_s14 = sld [smem:[#allocation22_spill]]  ;;  %s15753_s5 = sld [smem:[#allocation25_spill]] }
0x1db5   : > { %s15754_s30 = smov %s10523_s9  ;;  %s15756_s11 = smov %s10539_s13 }
0x1db6   :  { %29 = sbr.rel (!%p27_p9) target bundleno = 21 (0x15), region = 163 }
0x1db8   : > { %s15755_s9 = smov %s15749_s16 }
0x1dba   : > { %s15757_s13 = smov %s15752_s14  ;;  %s15758_s14 = smov %s15753_s5 }
0x1dbd   :  { %7533 = vsyncpa [#allocation3], 1 }
0x1dbe   :  { %7535 = vsyncpa [#allocation3 + $0x1], 1 }
0x1dbf   :  { %7536 = vsyncpa [#allocation6], 1 }
0x1dc0   :  { %7538 = vsyncpa [#allocation6 + $0x1], 1 }
0x1dc1   :  { %7539 = vsyncpa [#allocation9], 1 }
0x1dc2   :  { %7541 = vsyncpa [#allocation9 + $0x1], 1 }
0x1dc3   :  { %7542 = vsyncpa [#allocation4], 1 }
0x1dc4   :  { %7544 = vsyncpa [#allocation4 + $0x1], 1 }

</bundles_post_ra>
